<compile_context>
chip_gen: v5e
topology: v5e:2x2
jax: 0.10.0
libtpu: 0.0.40
codegen_flags: <defaults>
</compile_context>

<pallas_src>
import jax
import jax.numpy as jnp
from jax.experimental import pallas as pl
from jax.experimental.pallas import tpu as pltpu

_BP = 8  # batch rows padded to one sublane tile


# ----------------------------- kernel helpers (traced inside the kernel) ----

def _conv_bn_relu_flat(x, w, scale, shift, row_stride):
    # x: (R, Cin) time-major flat (row r = t*row_stride + b), w: (K, Cin, Cout)
    # scale/shift: (1, Cout) = folded conv-bias + eval-mode BatchNorm.
    # 'VALID' conv, stride 1: one aligned row-shifted matmul per tap.
    R, Cin = x.shape
    K = w.shape[0]
    acc = jnp.dot(x, w[0], preferred_element_type=jnp.float32)
    for k in range(1, K):
        s = k * row_stride                      # multiple of 8 -> aligned shift
        xk = jnp.concatenate(
            [x[s:, :], jnp.zeros((s, Cin), x.dtype)], axis=0)
        acc = acc + jnp.dot(xk, w[k], preferred_element_type=jnp.float32)
    y = acc * scale + shift                     # rows with t >= Lout are garbage
    return jnp.maximum(y, 0.0)                  # (masked later via pool matrices)


def _se_block_flat(x, pool, expand, w_a, w_b):
    # Squeeze-and-excite on flat (R, C) activation.
    # pool: (Bp, R) masked per-batch mean; expand: (R, Bp) batch membership.
    y = jnp.dot(pool, x, preferred_element_type=jnp.float32)               # (Bp, C)
    y = jnp.maximum(jnp.dot(y, w_a, preferred_element_type=jnp.float32), 0.0)
    y = jax.nn.sigmoid(jnp.dot(y, w_b, preferred_element_type=jnp.float32))
    return x * jnp.dot(expand, y, preferred_element_type=jnp.float32)


# ----------------------------- the Pallas kernel ----------------------------

def _make_kernel(L, Bp, H, n_classes):
    def kernel(x_ref, wih_ref, whh_ref, bl_ref,
               w1_ref, s1_ref, t1_ref, se1a_ref, se1b_ref, p1_ref,
               w2_ref, s2_ref, t2_ref, se2a_ref, se2b_ref, p2_ref,
               w3_ref, s3_ref, t3_ref, p3_ref,
               exp_ref, wfc_l_ref, wfc_f_ref, bfc_ref,
               out_ref, gx_ref):
        x = x_ref[...]                                       # (R, F), R = L*Bp

        # -------- LSTM input projection hoisted out of the recurrence -------
        gx_ref[...] = (jnp.dot(x, wih_ref[...],
                               preferred_element_type=jnp.float32)
                       + bl_ref[...])                        # (R, 4H)

        # -------- FCN branch (time-major flat, channels on lanes) -----------
        a = _conv_bn_relu_flat(x, w1_ref[...], s1_ref[...], t1_ref[...], Bp)
        a = _se_block_flat(a, p1_ref[...], exp_ref[...],
                           se1a_ref[...], se1b_ref[...])
        a = _conv_bn_relu_flat(a, w2_ref[...], s2_ref[...], t2_ref[...], Bp)
        a = _se_block_flat(a, p2_ref[...], exp_ref[...],
                           se2a_ref[...], se2b_ref[...])
        a = _conv_bn_relu_flat(a, w3_ref[...], s3_ref[...], t3_ref[...], Bp)
        pooled = jnp.dot(p3_ref[...], a,
                         preferred_element_type=jnp.float32)  # (Bp, 128)

        # -------- LSTM recurrence: only h @ W_hh + elementwise on the chain --
        whh = whh_ref[...]                                    # (H, 4H)

        def step(t, carry):
            h, c = carry
            off = pl.multiple_of(t * Bp, Bp)
            g = (gx_ref[pl.ds(off, Bp), :]
                 + jnp.dot(h, whh, preferred_element_type=jnp.float32))  # (Bp,4H)
            sg = jax.nn.sigmoid(g)          # one full-vreg EUP pass
            th = jnp.tanh(g)                # one full-vreg EUP pass
            i = sg[:, 0 * H:1 * H]          # PyTorch gate order i, f, g, o
            f = sg[:, 1 * H:2 * H]
            gg = th[:, 2 * H:3 * H]
            o = sg[:, 3 * H:4 * H]
            c = f * c + i * gg
            h = o * jnp.tanh(c)
            return h, c

        h0 = jnp.zeros((Bp, H), jnp.float32)
        c0 = jnp.zeros((Bp, H), jnp.float32)
        h_last, _ = jax.lax.fori_loop(0, L, step, (h0, c0), unroll=True)
        # lstm_drop / fc_drop are identity at inference.

        # -------- head: split FC (no lane concat) + masked log_softmax ------
        logits = (jnp.dot(h_last, wfc_l_ref[...],
                          preferred_element_type=jnp.float32)
                  + jnp.dot(pooled, wfc_f_ref[...],
                            preferred_element_type=jnp.float32)
                  + bfc_ref[...])                             # (Bp, Cpad)
        lane = jax.lax.broadcasted_iota(jnp.int32, logits.shape, 1)
        logits = jnp.where(lane < n_classes, logits, -1e30)   # mask padded classes
        m = jnp.max(logits, axis=1, keepdims=True)
        z = logits - m
        lse = jnp.log(jnp.sum(jnp.exp(z), axis=1, keepdims=True))
        out_ref[...] = (z - lse).astype(out_ref.dtype)

    return kernel


# ----------------------------- glue: params + wrapper ------------------------

def init_params(key, n_features, n_classes, lstm_units):
    H = lstm_units
    ks = iter(jax.random.split(key, 40))

    def rnd(shape, scale=0.1):
        return (scale * jax.random.normal(next(ks), shape)).astype(jnp.float32)

    def pos(shape):  # positive running_var
        return (1.0 + 0.1 * jnp.abs(jax.random.normal(next(ks), shape))).astype(jnp.float32)

    p = dict(
        lstm_w_ih=rnd((4 * H, n_features)),
        lstm_w_hh=rnd((4 * H, H)),
        lstm_b_ih=rnd((4 * H,)),
        lstm_b_hh=rnd((4 * H,)),
        conv1_w=rnd((128, n_features, 8)), conv1_b=rnd((128,)),
        conv2_w=rnd((256, 128, 5)),        conv2_b=rnd((256,)),
        conv3_w=rnd((128, 256, 3)),        conv3_b=rnd((128,)),
        bn1_g=1.0 + rnd((128,)), bn1_b=rnd((128,)), bn1_m=rnd((128,)), bn1_v=pos((128,)),
        bn2_g=1.0 + rnd((256,)), bn2_b=rnd((256,)), bn2_m=rnd((256,)), bn2_v=pos((256,)),
        bn3_g=1.0 + rnd((128,)), bn3_b=rnd((128,)), bn3_m=rnd((128,)), bn3_v=pos((128,)),
        se1_w1=rnd((128 // 16, 128)), se1_w2=rnd((128, 128 // 16)),
        se2_w1=rnd((256 // 16, 256)), se2_w2=rnd((256, 256 // 16)),
        fc_w=rnd((n_classes, 128 + H)), fc_b=rnd((n_classes,)),
    )
    return p


def lstmfcn_forward(x, p, n_classes):
    # x: (B, n_features, seq_len)  -- PyTorch NCL layout
    x = x.astype(jnp.float32)
    B, F, L = x.shape
    H = p['lstm_w_hh'].shape[1]
    Bp = _BP
    assert B <= Bp, "pad/tile the batch for B > 8"
    R = L * Bp
    c_pad = max(128, ((n_classes + 127) // 128) * 128)   # lane-dense output width

    # Time-major, batch padded to 8 sublanes, flattened: row r = t*Bp + b.
    x_tm = jnp.transpose(x, (2, 0, 1))                           # (L, B, F)
    x_flat = jnp.pad(x_tm, ((0, 0), (0, Bp - B), (0, 0))).reshape(R, F)

    def fold_bn(conv_b, g, b, m, v, eps=1e-5):
        s = g / jnp.sqrt(v + eps)
        t = (conv_b - m) * s + b
        return s.reshape(1, -1), t.reshape(1, -1)

    s1, t1 = fold_bn(p['conv1_b'], p['bn1_g'], p['bn1_b'], p['bn1_m'], p['bn1_v'])
    s2, t2 = fold_bn(p['conv2_b'], p['bn2_g'], p['bn2_b'], p['bn2_m'], p['bn2_v'])
    s3, t3 = fold_bn(p['conv3_b'], p['bn3_g'], p['bn3_b'], p['bn3_m'], p['bn3_v'])

    # Valid lengths after each VALID conv.
    L1 = L - 8 + 1
    L2 = L1 - 5 + 1
    L3 = L2 - 3 + 1

    t_idx = jnp.arange(R) // Bp
    b_idx = jnp.arange(R) % Bp

    def pool_mat(l_valid):
        sel = ((b_idx[None, :] == jnp.arange(Bp)[:, None])
               & (t_idx[None, :] < l_valid)
               & (b_idx[None, :] < B))
        return sel.astype(jnp.float32) / float(l_valid)          # (Bp, R)

    p1m, p2m, p3m = pool_mat(L1), pool_mat(L2), pool_mat(L3)
    expand = (b_idx[:, None] == jnp.arange(Bp)[None, :]).astype(jnp.float32)  # (R, Bp)

    # FC split into LSTM / FCN halves, classes zero-padded to the lane width.
    fc_w = p['fc_w']                                             # (C, H + 128)
    wfc_l = jnp.zeros((H, c_pad), jnp.float32).at[:, :n_classes].set(fc_w[:, :H].T)
    wfc_f = jnp.zeros((128, c_pad), jnp.float32).at[:, :n_classes].set(fc_w[:, H:].T)
    bfc = jnp.zeros((1, c_pad), jnp.float32).at[0, :n_classes].set(p['fc_b'])

    inputs = [
        x_flat,
        jnp.transpose(p['lstm_w_ih']),                     # (F, 4H)
        jnp.transpose(p['lstm_w_hh']),                     # (H, 4H)
        (p['lstm_b_ih'] + p['lstm_b_hh']).reshape(1, -1),  # (1, 4H)
        jnp.transpose(p['conv1_w'], (2, 1, 0)), s1, t1,    # (K, Cin, Cout)
        jnp.transpose(p['se1_w1']), jnp.transpose(p['se1_w2']), p1m,
        jnp.transpose(p['conv2_w'], (2, 1, 0)), s2, t2,
        jnp.transpose(p['se2_w1']), jnp.transpose(p['se2_w2']), p2m,
        jnp.transpose(p['conv3_w'], (2, 1, 0)), s3, t3, p3m,
        expand,
        wfc_l, wfc_f, bfc,
    ]

    kernel = _make_kernel(L, Bp, H, n_classes)
    out = pl.pallas_call(
        kernel,
        out_shape=jax.ShapeDtypeStruct((Bp, c_pad), jnp.float32),
        in_specs=[pl.BlockSpec(memory_space=pltpu.MemorySpace.VMEM)] * len(inputs),
        out_specs=pl.BlockSpec(memory_space=pltpu.MemorySpace.VMEM),
        scratch_shapes=[pltpu.VMEM((R, 4 * H), jnp.float32)],   # hoisted gate inputs
    )(*inputs)
    return out[:B, :n_classes]


# ----------------------------- pure-JAX reference (for self-check) ----------

def lstmfcn_reference(x, p, n_classes):
    x = x.astype(jnp.float32)
    B, _, _ = x.shape
    H = p['lstm_w_hh'].shape[1]
    wih, whh = p['lstm_w_ih'], p['lstm_w_hh']
    bias = p['lstm_b_ih'] + p['lstm_b_hh']
    xs = jnp.transpose(x, (2, 0, 1))          # (L, B, F)

    def step(carry, xt):
        h, c = carry
        g = xt @ wih.T + h @ whh.T + bias
        i, f, gg, o = jnp.split(g, 4, axis=1)
        c = jax.nn.sigmoid(f) * c + jax.nn.sigmoid(i) * jnp.tanh(gg)
        h = jax.nn.sigmoid(o) * jnp.tanh(c)
        return (h, c), None

    (h, _), _ = jax.lax.scan(step, (jnp.zeros((B, H)), jnp.zeros((B, H))), xs)

    def conv1d(a, w, b):
        y = jax.lax.conv_general_dilated(a, w, (1,), 'VALID',
                                         dimension_numbers=('NCH', 'OIH', 'NCH'))
        return y + b[None, :, None]

    def bn(a, g, b, m, v, eps=1e-5):
        return ((a - m[None, :, None]) / jnp.sqrt(v[None, :, None] + eps)
                * g[None, :, None] + b[None, :, None])

    def se(a, w1, w2):
        y = jnp.mean(a, axis=2)
        y = jax.nn.relu(y @ w1.T)
        y = jax.nn.sigmoid(y @ w2.T)
        return a * y[:, :, None]

    a = jax.nn.relu(bn(conv1d(x, p['conv1_w'], p['conv1_b']),
                       p['bn1_g'], p['bn1_b'], p['bn1_m'], p['bn1_v']))
    a = se(a, p['se1_w1'], p['se1_w2'])
    a = jax.nn.relu(bn(conv1d(a, p['conv2_w'], p['conv2_b']),
                       p['bn2_g'], p['bn2_b'], p['bn2_m'], p['bn2_v']))
    a = se(a, p['se2_w1'], p['se2_w2'])
    a = jax.nn.relu(bn(conv1d(a, p['conv3_w'], p['conv3_b']),
                       p['bn3_g'], p['bn3_b'], p['bn3_m'], p['bn3_v']))
    pooled = jnp.mean(a, axis=2)
    feat = jnp.concatenate([h, pooled], axis=1)
    logits = feat @ p['fc_w'].T + p['fc_b']
    return jax.nn.log_softmax(logits, axis=1)


if __name__ == "__main__":
    key = jax.random.PRNGKey(0)
    B, n_features, seq_len = 2, 4, 32
    n_classes, lstm_units = 5, 32

    kx, kp = jax.random.split(key)
    x = jax.random.normal(kx, (B, n_features, seq_len), dtype=jnp.float32)
    params = init_params(kp, n_features, n_classes, lstm_units)

    out = jax.block_until_ready(lstmfcn_forward(x, params, n_classes))
    ref = jax.block_until_ready(lstmfcn_reference(x, params, n_classes))

    assert out.shape == (B, n_classes)
    assert bool(jnp.all(jnp.isfinite(out)))
    assert bool(jnp.allclose(out, ref, atol=2e-3, rtol=2e-3))
    print("KERNEL_OK")
</pallas_src>

<mosaic_0001>
module attributes {stable_mosaic.version = 11 : i64} {
  func.func @kernel(%arg0: memref<256x4xf32, #tpu.memory_space<vmem>>, %arg1: memref<4x128xf32, #tpu.memory_space<vmem>>, %arg2: memref<32x128xf32, #tpu.memory_space<vmem>>, %arg3: memref<1x128xf32, #tpu.memory_space<vmem>>, %arg4: memref<8x4x128xf32, #tpu.memory_space<vmem>>, %arg5: memref<1x128xf32, #tpu.memory_space<vmem>>, %arg6: memref<1x128xf32, #tpu.memory_space<vmem>>, %arg7: memref<128x8xf32, #tpu.memory_space<vmem>>, %arg8: memref<8x128xf32, #tpu.memory_space<vmem>>, %arg9: memref<8x256xf32, #tpu.memory_space<vmem>>, %arg10: memref<5x128x256xf32, #tpu.memory_space<vmem>>, %arg11: memref<1x256xf32, #tpu.memory_space<vmem>>, %arg12: memref<1x256xf32, #tpu.memory_space<vmem>>, %arg13: memref<256x16xf32, #tpu.memory_space<vmem>>, %arg14: memref<16x256xf32, #tpu.memory_space<vmem>>, %arg15: memref<8x256xf32, #tpu.memory_space<vmem>>, %arg16: memref<3x256x128xf32, #tpu.memory_space<vmem>>, %arg17: memref<1x128xf32, #tpu.memory_space<vmem>>, %arg18: memref<1x128xf32, #tpu.memory_space<vmem>>, %arg19: memref<8x256xf32, #tpu.memory_space<vmem>>, %arg20: memref<256x8xf32, #tpu.memory_space<vmem>>, %arg21: memref<32x128xf32, #tpu.memory_space<vmem>>, %arg22: memref<128x128xf32, #tpu.memory_space<vmem>>, %arg23: memref<1x128xf32, #tpu.memory_space<vmem>>, %arg24: memref<8x128xf32, #tpu.memory_space<vmem>>, %arg25: memref<256x128xf32, #tpu.memory_space<vmem>>) attributes {dimension_semantics = [], scalar_prefetch = 0 : i64, scratch_operands = 1 : i64, tpu.core_type = #tpu.core_type<tc>} {
    %c0 = arith.constant 0 : index
    %c0_0 = arith.constant 0 : index
    %0 = vector.load %arg0[%c0, %c0_0] : memref<256x4xf32, #tpu.memory_space<vmem>>, vector<256x4xf32>
    %c0_1 = arith.constant 0 : index
    %c0_2 = arith.constant 0 : index
    %1 = vector.load %arg1[%c0_1, %c0_2] : memref<4x128xf32, #tpu.memory_space<vmem>>, vector<4x128xf32>
    %cst = arith.constant dense<0.000000e+00> : vector<256x128xf32>
    %2 = tpu.matmul %0, %1, %cst {dimension_numbers = #tpu.dot_dimension_numbers<[1], [0], [0], [1], [0, 0, 1, 1], [], []>} : vector<256x4xf32>, vector<4x128xf32>, vector<256x128xf32> -> vector<256x128xf32>
    %c0_3 = arith.constant 0 : index
    %c0_4 = arith.constant 0 : index
    %3 = vector.load %arg3[%c0_3, %c0_4] : memref<1x128xf32, #tpu.memory_space<vmem>>, vector<1x128xf32>
    %4 = vector.broadcast %3 : vector<1x128xf32> to vector<256x128xf32>
    %5 = arith.addf %2, %4 : vector<256x128xf32>
    %c0_5 = arith.constant 0 : index
    %c0_6 = arith.constant 0 : index
    %6 = vector.load %arg25[%c0_5, %c0_6] : memref<256x128xf32, #tpu.memory_space<vmem>>, vector<256x128xf32>
    tpu.vector_store %arg25[%c0_5, %c0_6], %5 {strides = array<i32>} : memref<256x128xf32, #tpu.memory_space<vmem>>, vector<256x128xf32>,
    %c0_7 = arith.constant 0 : index
    %c0_8 = arith.constant 0 : index
    %c0_9 = arith.constant 0 : index
    %7 = vector.load %arg4[%c0_7, %c0_8, %c0_9] : memref<8x4x128xf32, #tpu.memory_space<vmem>>, vector<8x4x128xf32>
    %c0_10 = arith.constant 0 : index
    %c0_11 = arith.constant 0 : index
    %8 = vector.load %arg5[%c0_10, %c0_11] : memref<1x128xf32, #tpu.memory_space<vmem>>, vector<1x128xf32>
    %c0_12 = arith.constant 0 : index
    %c0_13 = arith.constant 0 : index
    %9 = vector.load %arg6[%c0_12, %c0_13] : memref<1x128xf32, #tpu.memory_space<vmem>>, vector<1x128xf32>
    %10 = vector.extract_strided_slice %7 {offsets = [0, 0, 0], sizes = [1, 4, 128], strides = [1, 1, 1]} : vector<8x4x128xf32> to vector<1x4x128xf32>
    %11 = vector.shape_cast %10 : vector<1x4x128xf32> to vector<4x128xf32>
    %cst_14 = arith.constant dense<0.000000e+00> : vector<256x128xf32>
    %12 = tpu.matmul %0, %11, %cst_14 {dimension_numbers = #tpu.dot_dimension_numbers<[1], [0], [0], [1], [0, 0, 1, 1], [], []>} : vector<256x4xf32>, vector<4x128xf32>, vector<256x128xf32> -> vector<256x128xf32>
    %13 = vector.extract_strided_slice %0 {offsets = [8, 0], sizes = [248, 4], strides = [1, 1]} : vector<256x4xf32> to vector<248x4xf32>
    %cst_15 = arith.constant 0.000000e+00 : f32
    %14 = vector.broadcast %cst_15 : f32 to vector<8x4xf32>
    %15 = tpu.concatenate %13, %14 in 0 : vector<248x4xf32>, vector<8x4xf32> -> vector<256x4xf32>
    %16 = vector.extract_strided_slice %7 {offsets = [1, 0, 0], sizes = [1, 4, 128], strides = [1, 1, 1]} : vector<8x4x128xf32> to vector<1x4x128xf32>
    %17 = vector.shape_cast %16 : vector<1x4x128xf32> to vector<4x128xf32>
    %cst_16 = arith.constant dense<0.000000e+00> : vector<256x128xf32>
    %18 = tpu.matmul %15, %17, %cst_16 {dimension_numbers = #tpu.dot_dimension_numbers<[1], [0], [0], [1], [0, 0, 1, 1], [], []>} : vector<256x4xf32>, vector<4x128xf32>, vector<256x128xf32> -> vector<256x128xf32>
    %19 = arith.addf %12, %18 : vector<256x128xf32>
    %20 = vector.extract_strided_slice %0 {offsets = [16, 0], sizes = [240, 4], strides = [1, 1]} : vector<256x4xf32> to vector<240x4xf32>
    %cst_17 = arith.constant 0.000000e+00 : f32
    %21 = vector.broadcast %cst_17 : f32 to vector<16x4xf32>
    %22 = tpu.concatenate %20, %21 in 0 : vector<240x4xf32>, vector<16x4xf32> -> vector<256x4xf32>
    %23 = vector.extract_strided_slice %7 {offsets = [2, 0, 0], sizes = [1, 4, 128], strides = [1, 1, 1]} : vector<8x4x128xf32> to vector<1x4x128xf32>
    %24 = vector.shape_cast %23 : vector<1x4x128xf32> to vector<4x128xf32>
    %cst_18 = arith.constant dense<0.000000e+00> : vector<256x128xf32>
    %25 = tpu.matmul %22, %24, %cst_18 {dimension_numbers = #tpu.dot_dimension_numbers<[1], [0], [0], [1], [0, 0, 1, 1], [], []>} : vector<256x4xf32>, vector<4x128xf32>, vector<256x128xf32> -> vector<256x128xf32>
    %26 = arith.addf %19, %25 : vector<256x128xf32>
    %27 = vector.extract_strided_slice %0 {offsets = [24, 0], sizes = [232, 4], strides = [1, 1]} : vector<256x4xf32> to vector<232x4xf32>
    %cst_19 = arith.constant 0.000000e+00 : f32
    %28 = vector.broadcast %cst_19 : f32 to vector<24x4xf32>
    %29 = tpu.concatenate %27, %28 in 0 : vector<232x4xf32>, vector<24x4xf32> -> vector<256x4xf32>
    %30 = vector.extract_strided_slice %7 {offsets = [3, 0, 0], sizes = [1, 4, 128], strides = [1, 1, 1]} : vector<8x4x128xf32> to vector<1x4x128xf32>
    %31 = vector.shape_cast %30 : vector<1x4x128xf32> to vector<4x128xf32>
    %cst_20 = arith.constant dense<0.000000e+00> : vector<256x128xf32>
    %32 = tpu.matmul %29, %31, %cst_20 {dimension_numbers = #tpu.dot_dimension_numbers<[1], [0], [0], [1], [0, 0, 1, 1], [], []>} : vector<256x4xf32>, vector<4x128xf32>, vector<256x128xf32> -> vector<256x128xf32>
    %33 = arith.addf %26, %32 : vector<256x128xf32>
    %34 = vector.extract_strided_slice %0 {offsets = [32, 0], sizes = [224, 4], strides = [1, 1]} : vector<256x4xf32> to vector<224x4xf32>
    %cst_21 = arith.constant 0.000000e+00 : f32
    %35 = vector.broadcast %cst_21 : f32 to vector<32x4xf32>
    %36 = tpu.concatenate %34, %35 in 0 : vector<224x4xf32>, vector<32x4xf32> -> vector<256x4xf32>
    %37 = vector.extract_strided_slice %7 {offsets = [4, 0, 0], sizes = [1, 4, 128], strides = [1, 1, 1]} : vector<8x4x128xf32> to vector<1x4x128xf32>
    %38 = vector.shape_cast %37 : vector<1x4x128xf32> to vector<4x128xf32>
    %cst_22 = arith.constant dense<0.000000e+00> : vector<256x128xf32>
    %39 = tpu.matmul %36, %38, %cst_22 {dimension_numbers = #tpu.dot_dimension_numbers<[1], [0], [0], [1], [0, 0, 1, 1], [], []>} : vector<256x4xf32>, vector<4x128xf32>, vector<256x128xf32> -> vector<256x128xf32>
    %40 = arith.addf %33, %39 : vector<256x128xf32>
    %41 = vector.extract_strided_slice %0 {offsets = [40, 0], sizes = [216, 4], strides = [1, 1]} : vector<256x4xf32> to vector<216x4xf32>
    %cst_23 = arith.constant 0.000000e+00 : f32
    %42 = vector.broadcast %cst_23 : f32 to vector<40x4xf32>
    %43 = tpu.concatenate %41, %42 in 0 : vector<216x4xf32>, vector<40x4xf32> -> vector<256x4xf32>
    %44 = vector.extract_strided_slice %7 {offsets = [5, 0, 0], sizes = [1, 4, 128], strides = [1, 1, 1]} : vector<8x4x128xf32> to vector<1x4x128xf32>
    %45 = vector.shape_cast %44 : vector<1x4x128xf32> to vector<4x128xf32>
    %cst_24 = arith.constant dense<0.000000e+00> : vector<256x128xf32>
    %46 = tpu.matmul %43, %45, %cst_24 {dimension_numbers = #tpu.dot_dimension_numbers<[1], [0], [0], [1], [0, 0, 1, 1], [], []>} : vector<256x4xf32>, vector<4x128xf32>, vector<256x128xf32> -> vector<256x128xf32>
    %47 = arith.addf %40, %46 : vector<256x128xf32>
    %48 = vector.extract_strided_slice %0 {offsets = [48, 0], sizes = [208, 4], strides = [1, 1]} : vector<256x4xf32> to vector<208x4xf32>
    %cst_25 = arith.constant 0.000000e+00 : f32
    %49 = vector.broadcast %cst_25 : f32 to vector<48x4xf32>
    %50 = tpu.concatenate %48, %49 in 0 : vector<208x4xf32>, vector<48x4xf32> -> vector<256x4xf32>
    %51 = vector.extract_strided_slice %7 {offsets = [6, 0, 0], sizes = [1, 4, 128], strides = [1, 1, 1]} : vector<8x4x128xf32> to vector<1x4x128xf32>
    %52 = vector.shape_cast %51 : vector<1x4x128xf32> to vector<4x128xf32>
    %cst_26 = arith.constant dense<0.000000e+00> : vector<256x128xf32>
    %53 = tpu.matmul %50, %52, %cst_26 {dimension_numbers = #tpu.dot_dimension_numbers<[1], [0], [0], [1], [0, 0, 1, 1], [], []>} : vector<256x4xf32>, vector<4x128xf32>, vector<256x128xf32> -> vector<256x128xf32>
    %54 = arith.addf %47, %53 : vector<256x128xf32>
    %55 = vector.extract_strided_slice %0 {offsets = [56, 0], sizes = [200, 4], strides = [1, 1]} : vector<256x4xf32> to vector<200x4xf32>
    %cst_27 = arith.constant 0.000000e+00 : f32
    %56 = vector.broadcast %cst_27 : f32 to vector<56x4xf32>
    %57 = tpu.concatenate %55, %56 in 0 : vector<200x4xf32>, vector<56x4xf32> -> vector<256x4xf32>
    %58 = vector.extract_strided_slice %7 {offsets = [7, 0, 0], sizes = [1, 4, 128], strides = [1, 1, 1]} : vector<8x4x128xf32> to vector<1x4x128xf32>
    %59 = vector.shape_cast %58 : vector<1x4x128xf32> to vector<4x128xf32>
    %cst_28 = arith.constant dense<0.000000e+00> : vector<256x128xf32>
    %60 = tpu.matmul %57, %59, %cst_28 {dimension_numbers = #tpu.dot_dimension_numbers<[1], [0], [0], [1], [0, 0, 1, 1], [], []>} : vector<256x4xf32>, vector<4x128xf32>, vector<256x128xf32> -> vector<256x128xf32>
    %61 = arith.addf %54, %60 : vector<256x128xf32>
    %62 = vector.broadcast %8 : vector<1x128xf32> to vector<256x128xf32>
    %63 = arith.mulf %61, %62 : vector<256x128xf32>
    %64 = vector.broadcast %9 : vector<1x128xf32> to vector<256x128xf32>
    %65 = arith.addf %63, %64 : vector<256x128xf32>
    %cst_29 = arith.constant 0.000000e+00 : f32
    %66 = vector.broadcast %cst_29 : f32 to vector<256x128xf32>
    %67 = arith.maximumf %65, %66 : vector<256x128xf32>
    %c0_30 = arith.constant 0 : index
    %c0_31 = arith.constant 0 : index
    %68 = vector.load %arg9[%c0_30, %c0_31] : memref<8x256xf32, #tpu.memory_space<vmem>>, vector<8x256xf32>
    %c0_32 = arith.constant 0 : index
    %c0_33 = arith.constant 0 : index
    %69 = vector.load %arg20[%c0_32, %c0_33] : memref<256x8xf32, #tpu.memory_space<vmem>>, vector<256x8xf32>
    %c0_34 = arith.constant 0 : index
    %c0_35 = arith.constant 0 : index
    %70 = vector.load %arg7[%c0_34, %c0_35] : memref<128x8xf32, #tpu.memory_space<vmem>>, vector<128x8xf32>
    %c0_36 = arith.constant 0 : index
    %c0_37 = arith.constant 0 : index
    %71 = vector.load %arg8[%c0_36, %c0_37] : memref<8x128xf32, #tpu.memory_space<vmem>>, vector<8x128xf32>
    %cst_38 = arith.constant dense<0.000000e+00> : vector<8x128xf32>
    %72 = tpu.matmul %68, %67, %cst_38 {dimension_numbers = #tpu.dot_dimension_numbers<[1], [0], [0], [1], [0, 0, 1, 1], [], []>} : vector<8x256xf32>, vector<256x128xf32>, vector<8x128xf32> -> vector<8x128xf32>
    %cst_39 = arith.constant dense<0.000000e+00> : vector<8x8xf32>
    %73 = tpu.matmul %72, %70, %cst_39 {dimension_numbers = #tpu.dot_dimension_numbers<[1], [0], [0], [1], [0, 0, 1, 1], [], []>} : vector<8x128xf32>, vector<128x8xf32>, vector<8x8xf32> -> vector<8x8xf32>
    %cst_40 = arith.constant 0.000000e+00 : f32
    %74 = vector.broadcast %cst_40 : f32 to vector<8x8xf32>
    %75 = arith.maximumf %73, %74 : vector<8x8xf32>
    %cst_41 = arith.constant dense<0.000000e+00> : vector<8x128xf32>
    %76 = tpu.matmul %75, %71, %cst_41 {dimension_numbers = #tpu.dot_dimension_numbers<[1], [0], [0], [1], [0, 0, 1, 1], [], []>} : vector<8x8xf32>, vector<8x128xf32>, vector<8x128xf32> -> vector<8x128xf32>
    %77 = arith.negf %76 : vector<8x128xf32>
    %78 = math.exp %77 : vector<8x128xf32>
    %cst_42 = arith.constant 1.000000e+00 : f32
    %79 = vector.broadcast %cst_42 : f32 to vector<8x128xf32>
    %80 = arith.addf %79, %78 : vector<8x128xf32>
    %81 = arith.divf %79, %80 : vector<8x128xf32>
    %cst_43 = arith.constant dense<0.000000e+00> : vector<256x128xf32>
    %82 = tpu.matmul %69, %81, %cst_43 {dimension_numbers = #tpu.dot_dimension_numbers<[1], [0], [0], [1], [0, 0, 1, 1], [], []>} : vector<256x8xf32>, vector<8x128xf32>, vector<256x128xf32> -> vector<256x128xf32>
    %83 = arith.mulf %67, %82 : vector<256x128xf32>
    %c0_44 = arith.constant 0 : index
    %c0_45 = arith.constant 0 : index
    %c0_46 = arith.constant 0 : index
    %84 = vector.load %arg10[%c0_44, %c0_45, %c0_46] : memref<5x128x256xf32, #tpu.memory_space<vmem>>, vector<5x128x256xf32>
    %c0_47 = arith.constant 0 : index
    %c0_48 = arith.constant 0 : index
    %85 = vector.load %arg11[%c0_47, %c0_48] : memref<1x256xf32, #tpu.memory_space<vmem>>, vector<1x256xf32>
    %c0_49 = arith.constant 0 : index
    %c0_50 = arith.constant 0 : index
    %86 = vector.load %arg12[%c0_49, %c0_50] : memref<1x256xf32, #tpu.memory_space<vmem>>, vector<1x256xf32>
    %87 = vector.extract_strided_slice %84 {offsets = [0, 0, 0], sizes = [1, 128, 256], strides = [1, 1, 1]} : vector<5x128x256xf32> to vector<1x128x256xf32>
    %88 = vector.shape_cast %87 : vector<1x128x256xf32> to vector<128x256xf32>
    %cst_51 = arith.constant dense<0.000000e+00> : vector<256x256xf32>
    %89 = tpu.matmul %83, %88, %cst_51 {dimension_numbers = #tpu.dot_dimension_numbers<[1], [0], [0], [1], [0, 0, 1, 1], [], []>} : vector<256x128xf32>, vector<128x256xf32>, vector<256x256xf32> -> vector<256x256xf32>
    %90 = vector.extract_strided_slice %83 {offsets = [8, 0], sizes = [248, 128], strides = [1, 1]} : vector<256x128xf32> to vector<248x128xf32>
    %cst_52 = arith.constant 0.000000e+00 : f32
    %91 = vector.broadcast %cst_52 : f32 to vector<8x128xf32>
    %92 = tpu.concatenate %90, %91 in 0 : vector<248x128xf32>, vector<8x128xf32> -> vector<256x128xf32>
    %93 = vector.extract_strided_slice %84 {offsets = [1, 0, 0], sizes = [1, 128, 256], strides = [1, 1, 1]} : vector<5x128x256xf32> to vector<1x128x256xf32>
    %94 = vector.shape_cast %93 : vector<1x128x256xf32> to vector<128x256xf32>
    %cst_53 = arith.constant dense<0.000000e+00> : vector<256x256xf32>
    %95 = tpu.matmul %92, %94, %cst_53 {dimension_numbers = #tpu.dot_dimension_numbers<[1], [0], [0], [1], [0, 0, 1, 1], [], []>} : vector<256x128xf32>, vector<128x256xf32>, vector<256x256xf32> -> vector<256x256xf32>
    %96 = arith.addf %89, %95 : vector<256x256xf32>
    %97 = vector.extract_strided_slice %83 {offsets = [16, 0], sizes = [240, 128], strides = [1, 1]} : vector<256x128xf32> to vector<240x128xf32>
    %cst_54 = arith.constant 0.000000e+00 : f32
    %98 = vector.broadcast %cst_54 : f32 to vector<16x128xf32>
    %99 = tpu.concatenate %97, %98 in 0 : vector<240x128xf32>, vector<16x128xf32> -> vector<256x128xf32>
    %100 = vector.extract_strided_slice %84 {offsets = [2, 0, 0], sizes = [1, 128, 256], strides = [1, 1, 1]} : vector<5x128x256xf32> to vector<1x128x256xf32>
    %101 = vector.shape_cast %100 : vector<1x128x256xf32> to vector<128x256xf32>
    %cst_55 = arith.constant dense<0.000000e+00> : vector<256x256xf32>
    %102 = tpu.matmul %99, %101, %cst_55 {dimension_numbers = #tpu.dot_dimension_numbers<[1], [0], [0], [1], [0, 0, 1, 1], [], []>} : vector<256x128xf32>, vector<128x256xf32>, vector<256x256xf32> -> vector<256x256xf32>
    %103 = arith.addf %96, %102 : vector<256x256xf32>
    %104 = vector.extract_strided_slice %83 {offsets = [24, 0], sizes = [232, 128], strides = [1, 1]} : vector<256x128xf32> to vector<232x128xf32>
    %cst_56 = arith.constant 0.000000e+00 : f32
    %105 = vector.broadcast %cst_56 : f32 to vector<24x128xf32>
    %106 = tpu.concatenate %104, %105 in 0 : vector<232x128xf32>, vector<24x128xf32> -> vector<256x128xf32>
    %107 = vector.extract_strided_slice %84 {offsets = [3, 0, 0], sizes = [1, 128, 256], strides = [1, 1, 1]} : vector<5x128x256xf32> to vector<1x128x256xf32>
    %108 = vector.shape_cast %107 : vector<1x128x256xf32> to vector<128x256xf32>
    %cst_57 = arith.constant dense<0.000000e+00> : vector<256x256xf32>
    %109 = tpu.matmul %106, %108, %cst_57 {dimension_numbers = #tpu.dot_dimension_numbers<[1], [0], [0], [1], [0, 0, 1, 1], [], []>} : vector<256x128xf32>, vector<128x256xf32>, vector<256x256xf32> -> vector<256x256xf32>
    %110 = arith.addf %103, %109 : vector<256x256xf32>
    %111 = vector.extract_strided_slice %83 {offsets = [32, 0], sizes = [224, 128], strides = [1, 1]} : vector<256x128xf32> to vector<224x128xf32>
    %cst_58 = arith.constant 0.000000e+00 : f32
    %112 = vector.broadcast %cst_58 : f32 to vector<32x128xf32>
    %113 = tpu.concatenate %111, %112 in 0 : vector<224x128xf32>, vector<32x128xf32> -> vector<256x128xf32>
    %114 = vector.extract_strided_slice %84 {offsets = [4, 0, 0], sizes = [1, 128, 256], strides = [1, 1, 1]} : vector<5x128x256xf32> to vector<1x128x256xf32>
    %115 = vector.shape_cast %114 : vector<1x128x256xf32> to vector<128x256xf32>
    %cst_59 = arith.constant dense<0.000000e+00> : vector<256x256xf32>
    %116 = tpu.matmul %113, %115, %cst_59 {dimension_numbers = #tpu.dot_dimension_numbers<[1], [0], [0], [1], [0, 0, 1, 1], [], []>} : vector<256x128xf32>, vector<128x256xf32>, vector<256x256xf32> -> vector<256x256xf32>
    %117 = arith.addf %110, %116 : vector<256x256xf32>
    %118 = vector.broadcast %85 : vector<1x256xf32> to vector<256x256xf32>
    %119 = arith.mulf %117, %118 : vector<256x256xf32>
    %120 = vector.broadcast %86 : vector<1x256xf32> to vector<256x256xf32>
    %121 = arith.addf %119, %120 : vector<256x256xf32>
    %cst_60 = arith.constant 0.000000e+00 : f32
    %122 = vector.broadcast %cst_60 : f32 to vector<256x256xf32>
    %123 = arith.maximumf %121, %122 : vector<256x256xf32>
    %c0_61 = arith.constant 0 : index
    %c0_62 = arith.constant 0 : index
    %124 = vector.load %arg15[%c0_61, %c0_62] : memref<8x256xf32, #tpu.memory_space<vmem>>, vector<8x256xf32>
    %c0_63 = arith.constant 0 : index
    %c0_64 = arith.constant 0 : index
    %125 = vector.load %arg20[%c0_63, %c0_64] : memref<256x8xf32, #tpu.memory_space<vmem>>, vector<256x8xf32>
    %c0_65 = arith.constant 0 : index
    %c0_66 = arith.constant 0 : index
    %126 = vector.load %arg13[%c0_65, %c0_66] : memref<256x16xf32, #tpu.memory_space<vmem>>, vector<256x16xf32>
    %c0_67 = arith.constant 0 : index
    %c0_68 = arith.constant 0 : index
    %127 = vector.load %arg14[%c0_67, %c0_68] : memref<16x256xf32, #tpu.memory_space<vmem>>, vector<16x256xf32>
    %cst_69 = arith.constant dense<0.000000e+00> : vector<8x256xf32>
    %128 = tpu.matmul %124, %123, %cst_69 {dimension_numbers = #tpu.dot_dimension_numbers<[1], [0], [0], [1], [0, 0, 1, 1], [], []>} : vector<8x256xf32>, vector<256x256xf32>, vector<8x256xf32> -> vector<8x256xf32>
    %cst_70 = arith.constant dense<0.000000e+00> : vector<8x16xf32>
    %129 = tpu.matmul %128, %126, %cst_70 {dimension_numbers = #tpu.dot_dimension_numbers<[1], [0], [0], [1], [0, 0, 1, 1], [], []>} : vector<8x256xf32>, vector<256x16xf32>, vector<8x16xf32> -> vector<8x16xf32>
    %cst_71 = arith.constant 0.000000e+00 : f32
    %130 = vector.broadcast %cst_71 : f32 to vector<8x16xf32>
    %131 = arith.maximumf %129, %130 : vector<8x16xf32>
    %cst_72 = arith.constant dense<0.000000e+00> : vector<8x256xf32>
    %132 = tpu.matmul %131, %127, %cst_72 {dimension_numbers = #tpu.dot_dimension_numbers<[1], [0], [0], [1], [0, 0, 1, 1], [], []>} : vector<8x16xf32>, vector<16x256xf32>, vector<8x256xf32> -> vector<8x256xf32>
    %133 = arith.negf %132 : vector<8x256xf32>
    %134 = math.exp %133 : vector<8x256xf32>
    %cst_73 = arith.constant 1.000000e+00 : f32
    %135 = vector.broadcast %cst_73 : f32 to vector<8x256xf32>
    %136 = arith.addf %135, %134 : vector<8x256xf32>
    %137 = arith.divf %135, %136 : vector<8x256xf32>
    %cst_74 = arith.constant dense<0.000000e+00> : vector<256x256xf32>
    %138 = tpu.matmul %125, %137, %cst_74 {dimension_numbers = #tpu.dot_dimension_numbers<[1], [0], [0], [1], [0, 0, 1, 1], [], []>} : vector<256x8xf32>, vector<8x256xf32>, vector<256x256xf32> -> vector<256x256xf32>
    %139 = arith.mulf %123, %138 : vector<256x256xf32>
    %c0_75 = arith.constant 0 : index
    %c0_76 = arith.constant 0 : index
    %c0_77 = arith.constant 0 : index
    %140 = vector.load %arg16[%c0_75, %c0_76, %c0_77] : memref<3x256x128xf32, #tpu.memory_space<vmem>>, vector<3x256x128xf32>
    %c0_78 = arith.constant 0 : index
    %c0_79 = arith.constant 0 : index
    %141 = vector.load %arg17[%c0_78, %c0_79] : memref<1x128xf32, #tpu.memory_space<vmem>>, vector<1x128xf32>
    %c0_80 = arith.constant 0 : index
    %c0_81 = arith.constant 0 : index
    %142 = vector.load %arg18[%c0_80, %c0_81] : memref<1x128xf32, #tpu.memory_space<vmem>>, vector<1x128xf32>
    %143 = vector.extract_strided_slice %140 {offsets = [0, 0, 0], sizes = [1, 256, 128], strides = [1, 1, 1]} : vector<3x256x128xf32> to vector<1x256x128xf32>
    %144 = vector.shape_cast %143 : vector<1x256x128xf32> to vector<256x128xf32>
    %cst_82 = arith.constant dense<0.000000e+00> : vector<256x128xf32>
    %145 = tpu.matmul %139, %144, %cst_82 {dimension_numbers = #tpu.dot_dimension_numbers<[1], [0], [0], [1], [0, 0, 1, 1], [], []>} : vector<256x256xf32>, vector<256x128xf32>, vector<256x128xf32> -> vector<256x128xf32>
    %146 = vector.extract_strided_slice %139 {offsets = [8, 0], sizes = [248, 256], strides = [1, 1]} : vector<256x256xf32> to vector<248x256xf32>
    %cst_83 = arith.constant 0.000000e+00 : f32
    %147 = vector.broadcast %cst_83 : f32 to vector<8x256xf32>
    %148 = tpu.concatenate %146, %147 in 0 : vector<248x256xf32>, vector<8x256xf32> -> vector<256x256xf32>
    %149 = vector.extract_strided_slice %140 {offsets = [1, 0, 0], sizes = [1, 256, 128], strides = [1, 1, 1]} : vector<3x256x128xf32> to vector<1x256x128xf32>
    %150 = vector.shape_cast %149 : vector<1x256x128xf32> to vector<256x128xf32>
    %cst_84 = arith.constant dense<0.000000e+00> : vector<256x128xf32>
    %151 = tpu.matmul %148, %150, %cst_84 {dimension_numbers = #tpu.dot_dimension_numbers<[1], [0], [0], [1], [0, 0, 1, 1], [], []>} : vector<256x256xf32>, vector<256x128xf32>, vector<256x128xf32> -> vector<256x128xf32>
    %152 = arith.addf %145, %151 : vector<256x128xf32>
    %153 = vector.extract_strided_slice %139 {offsets = [16, 0], sizes = [240, 256], strides = [1, 1]} : vector<256x256xf32> to vector<240x256xf32>
    %cst_85 = arith.constant 0.000000e+00 : f32
    %154 = vector.broadcast %cst_85 : f32 to vector<16x256xf32>
    %155 = tpu.concatenate %153, %154 in 0 : vector<240x256xf32>, vector<16x256xf32> -> vector<256x256xf32>
    %156 = vector.extract_strided_slice %140 {offsets = [2, 0, 0], sizes = [1, 256, 128], strides = [1, 1, 1]} : vector<3x256x128xf32> to vector<1x256x128xf32>
    %157 = vector.shape_cast %156 : vector<1x256x128xf32> to vector<256x128xf32>
    %cst_86 = arith.constant dense<0.000000e+00> : vector<256x128xf32>
    %158 = tpu.matmul %155, %157, %cst_86 {dimension_numbers = #tpu.dot_dimension_numbers<[1], [0], [0], [1], [0, 0, 1, 1], [], []>} : vector<256x256xf32>, vector<256x128xf32>, vector<256x128xf32> -> vector<256x128xf32>
    %159 = arith.addf %152, %158 : vector<256x128xf32>
    %160 = vector.broadcast %141 : vector<1x128xf32> to vector<256x128xf32>
    %161 = arith.mulf %159, %160 : vector<256x128xf32>
    %162 = vector.broadcast %142 : vector<1x128xf32> to vector<256x128xf32>
    %163 = arith.addf %161, %162 : vector<256x128xf32>
    %cst_87 = arith.constant 0.000000e+00 : f32
    %164 = vector.broadcast %cst_87 : f32 to vector<256x128xf32>
    %165 = arith.maximumf %163, %164 : vector<256x128xf32>
    %c0_88 = arith.constant 0 : index
    %c0_89 = arith.constant 0 : index
    %166 = vector.load %arg19[%c0_88, %c0_89] : memref<8x256xf32, #tpu.memory_space<vmem>>, vector<8x256xf32>
    %cst_90 = arith.constant dense<0.000000e+00> : vector<8x128xf32>
    %167 = tpu.matmul %166, %165, %cst_90 {dimension_numbers = #tpu.dot_dimension_numbers<[1], [0], [0], [1], [0, 0, 1, 1], [], []>} : vector<8x256xf32>, vector<256x128xf32>, vector<8x128xf32> -> vector<8x128xf32>
    %c0_91 = arith.constant 0 : index
    %c0_92 = arith.constant 0 : index
    %168 = vector.load %arg2[%c0_91, %c0_92] : memref<32x128xf32, #tpu.memory_space<vmem>>, vector<32x128xf32>
    %cst_93 = arith.constant 0.000000e+00 : f32
    %169 = vector.broadcast %cst_93 : f32 to vector<8x32xf32>
    %cst_94 = arith.constant 0.000000e+00 : f32
    %170 = vector.broadcast %cst_94 : f32 to vector<8x32xf32>
    %c0_i32 = arith.constant 0 : i32
    %c8_i32 = arith.constant 8 : i32
    %171 = arith.muli %c0_i32, %c8_i32 : i32
    %172 = tpu.assume_multiple %171, 8 : i32
    %173 = arith.index_cast %172 : i32 to index
    %c0_95 = arith.constant 0 : index
    %174 = vector.load %arg25[%173, %c0_95] : memref<256x128xf32, #tpu.memory_space<vmem>>, vector<8x128xf32>
    %cst_96 = arith.constant dense<0.000000e+00> : vector<8x128xf32>
    %175 = tpu.matmul %169, %168, %cst_96 {dimension_numbers = #tpu.dot_dimension_numbers<[1], [0], [0], [1], [0, 0, 1, 1], [], []>} : vector<8x32xf32>, vector<32x128xf32>, vector<8x128xf32> -> vector<8x128xf32>
    %176 = arith.addf %174, %175 : vector<8x128xf32>
    %177 = arith.negf %176 : vector<8x128xf32>
    %178 = math.exp %177 : vector<8x128xf32>
    %cst_97 = arith.constant 1.000000e+00 : f32
    %179 = vector.broadcast %cst_97 : f32 to vector<8x128xf32>
    %180 = arith.addf %179, %178 : vector<8x128xf32>
    %181 = arith.divf %179, %180 : vector<8x128xf32>
    %182 = math.tanh %176 : vector<8x128xf32>
    %183 = vector.extract_strided_slice %181 {offsets = [0, 0], sizes = [8, 32], strides = [1, 1]} : vector<8x128xf32> to vector<8x32xf32>
    %184 = vector.extract_strided_slice %181 {offsets = [0, 32], sizes = [8, 32], strides = [1, 1]} : vector<8x128xf32> to vector<8x32xf32>
    %185 = vector.extract_strided_slice %182 {offsets = [0, 64], sizes = [8, 32], strides = [1, 1]} : vector<8x128xf32> to vector<8x32xf32>
    %186 = vector.extract_strided_slice %181 {offsets = [0, 96], sizes = [8, 32], strides = [1, 1]} : vector<8x128xf32> to vector<8x32xf32>
    %187 = arith.mulf %184, %170 : vector<8x32xf32>
    %188 = arith.mulf %183, %185 : vector<8x32xf32>
    %189 = arith.addf %187, %188 : vector<8x32xf32>
    %190 = math.tanh %189 : vector<8x32xf32>
    %191 = arith.mulf %186, %190 : vector<8x32xf32>
    %c1_i32 = arith.constant 1 : i32
    %c8_i32_98 = arith.constant 8 : i32
    %192 = arith.muli %c1_i32, %c8_i32_98 : i32
    %193 = tpu.assume_multiple %192, 8 : i32
    %194 = arith.index_cast %193 : i32 to index
    %c0_99 = arith.constant 0 : index
    %195 = vector.load %arg25[%194, %c0_99] : memref<256x128xf32, #tpu.memory_space<vmem>>, vector<8x128xf32>
    %cst_100 = arith.constant dense<0.000000e+00> : vector<8x128xf32>
    %196 = tpu.matmul %191, %168, %cst_100 {dimension_numbers = #tpu.dot_dimension_numbers<[1], [0], [0], [1], [0, 0, 1, 1], [], []>} : vector<8x32xf32>, vector<32x128xf32>, vector<8x128xf32> -> vector<8x128xf32>
    %197 = arith.addf %195, %196 : vector<8x128xf32>
    %198 = arith.negf %197 : vector<8x128xf32>
    %199 = math.exp %198 : vector<8x128xf32>
    %cst_101 = arith.constant 1.000000e+00 : f32
    %200 = vector.broadcast %cst_101 : f32 to vector<8x128xf32>
    %201 = arith.addf %200, %199 : vector<8x128xf32>
    %202 = arith.divf %200, %201 : vector<8x128xf32>
    %203 = math.tanh %197 : vector<8x128xf32>
    %204 = vector.extract_strided_slice %202 {offsets = [0, 0], sizes = [8, 32], strides = [1, 1]} : vector<8x128xf32> to vector<8x32xf32>
    %205 = vector.extract_strided_slice %202 {offsets = [0, 32], sizes = [8, 32], strides = [1, 1]} : vector<8x128xf32> to vector<8x32xf32>
    %206 = vector.extract_strided_slice %203 {offsets = [0, 64], sizes = [8, 32], strides = [1, 1]} : vector<8x128xf32> to vector<8x32xf32>
    %207 = vector.extract_strided_slice %202 {offsets = [0, 96], sizes = [8, 32], strides = [1, 1]} : vector<8x128xf32> to vector<8x32xf32>
    %208 = arith.mulf %205, %189 : vector<8x32xf32>
    %209 = arith.mulf %204, %206 : vector<8x32xf32>
    %210 = arith.addf %208, %209 : vector<8x32xf32>
    %211 = math.tanh %210 : vector<8x32xf32>
    %212 = arith.mulf %207, %211 : vector<8x32xf32>
    %c2_i32 = arith.constant 2 : i32
    %c8_i32_102 = arith.constant 8 : i32
    %213 = arith.muli %c2_i32, %c8_i32_102 : i32
    %214 = tpu.assume_multiple %213, 8 : i32
    %215 = arith.index_cast %214 : i32 to index
    %c0_103 = arith.constant 0 : index
    %216 = vector.load %arg25[%215, %c0_103] : memref<256x128xf32, #tpu.memory_space<vmem>>, vector<8x128xf32>
    %cst_104 = arith.constant dense<0.000000e+00> : vector<8x128xf32>
    %217 = tpu.matmul %212, %168, %cst_104 {dimension_numbers = #tpu.dot_dimension_numbers<[1], [0], [0], [1], [0, 0, 1, 1], [], []>} : vector<8x32xf32>, vector<32x128xf32>, vector<8x128xf32> -> vector<8x128xf32>
    %218 = arith.addf %216, %217 : vector<8x128xf32>
    %219 = arith.negf %218 : vector<8x128xf32>
    %220 = math.exp %219 : vector<8x128xf32>
    %cst_105 = arith.constant 1.000000e+00 : f32
    %221 = vector.broadcast %cst_105 : f32 to vector<8x128xf32>
    %222 = arith.addf %221, %220 : vector<8x128xf32>
    %223 = arith.divf %221, %222 : vector<8x128xf32>
    %224 = math.tanh %218 : vector<8x128xf32>
    %225 = vector.extract_strided_slice %223 {offsets = [0, 0], sizes = [8, 32], strides = [1, 1]} : vector<8x128xf32> to vector<8x32xf32>
    %226 = vector.extract_strided_slice %223 {offsets = [0, 32], sizes = [8, 32], strides = [1, 1]} : vector<8x128xf32> to vector<8x32xf32>
    %227 = vector.extract_strided_slice %224 {offsets = [0, 64], sizes = [8, 32], strides = [1, 1]} : vector<8x128xf32> to vector<8x32xf32>
    %228 = vector.extract_strided_slice %223 {offsets = [0, 96], sizes = [8, 32], strides = [1, 1]} : vector<8x128xf32> to vector<8x32xf32>
    %229 = arith.mulf %226, %210 : vector<8x32xf32>
    %230 = arith.mulf %225, %227 : vector<8x32xf32>
    %231 = arith.addf %229, %230 : vector<8x32xf32>
    %232 = math.tanh %231 : vector<8x32xf32>
    %233 = arith.mulf %228, %232 : vector<8x32xf32>
    %c3_i32 = arith.constant 3 : i32
    %c8_i32_106 = arith.constant 8 : i32
    %234 = arith.muli %c3_i32, %c8_i32_106 : i32
    %235 = tpu.assume_multiple %234, 8 : i32
    %236 = arith.index_cast %235 : i32 to index
    %c0_107 = arith.constant 0 : index
    %237 = vector.load %arg25[%236, %c0_107] : memref<256x128xf32, #tpu.memory_space<vmem>>, vector<8x128xf32>
    %cst_108 = arith.constant dense<0.000000e+00> : vector<8x128xf32>
    %238 = tpu.matmul %233, %168, %cst_108 {dimension_numbers = #tpu.dot_dimension_numbers<[1], [0], [0], [1], [0, 0, 1, 1], [], []>} : vector<8x32xf32>, vector<32x128xf32>, vector<8x128xf32> -> vector<8x128xf32>
    %239 = arith.addf %237, %238 : vector<8x128xf32>
    %240 = arith.negf %239 : vector<8x128xf32>
    %241 = math.exp %240 : vector<8x128xf32>
    %cst_109 = arith.constant 1.000000e+00 : f32
    %242 = vector.broadcast %cst_109 : f32 to vector<8x128xf32>
    %243 = arith.addf %242, %241 : vector<8x128xf32>
    %244 = arith.divf %242, %243 : vector<8x128xf32>
    %245 = math.tanh %239 : vector<8x128xf32>
    %246 = vector.extract_strided_slice %244 {offsets = [0, 0], sizes = [8, 32], strides = [1, 1]} : vector<8x128xf32> to vector<8x32xf32>
    %247 = vector.extract_strided_slice %244 {offsets = [0, 32], sizes = [8, 32], strides = [1, 1]} : vector<8x128xf32> to vector<8x32xf32>
    %248 = vector.extract_strided_slice %245 {offsets = [0, 64], sizes = [8, 32], strides = [1, 1]} : vector<8x128xf32> to vector<8x32xf32>
    %249 = vector.extract_strided_slice %244 {offsets = [0, 96], sizes = [8, 32], strides = [1, 1]} : vector<8x128xf32> to vector<8x32xf32>
    %250 = arith.mulf %247, %231 : vector<8x32xf32>
    %251 = arith.mulf %246, %248 : vector<8x32xf32>
    %252 = arith.addf %250, %251 : vector<8x32xf32>
    %253 = math.tanh %252 : vector<8x32xf32>
    %254 = arith.mulf %249, %253 : vector<8x32xf32>
    %c4_i32 = arith.constant 4 : i32
    %c8_i32_110 = arith.constant 8 : i32
    %255 = arith.muli %c4_i32, %c8_i32_110 : i32
    %256 = tpu.assume_multiple %255, 8 : i32
    %257 = arith.index_cast %256 : i32 to index
    %c0_111 = arith.constant 0 : index
    %258 = vector.load %arg25[%257, %c0_111] : memref<256x128xf32, #tpu.memory_space<vmem>>, vector<8x128xf32>
    %cst_112 = arith.constant dense<0.000000e+00> : vector<8x128xf32>
    %259 = tpu.matmul %254, %168, %cst_112 {dimension_numbers = #tpu.dot_dimension_numbers<[1], [0], [0], [1], [0, 0, 1, 1], [], []>} : vector<8x32xf32>, vector<32x128xf32>, vector<8x128xf32> -> vector<8x128xf32>
    %260 = arith.addf %258, %259 : vector<8x128xf32>
    %261 = arith.negf %260 : vector<8x128xf32>
    %262 = math.exp %261 : vector<8x128xf32>
    %cst_113 = arith.constant 1.000000e+00 : f32
    %263 = vector.broadcast %cst_113 : f32 to vector<8x128xf32>
    %264 = arith.addf %263, %262 : vector<8x128xf32>
    %265 = arith.divf %263, %264 : vector<8x128xf32>
    %266 = math.tanh %260 : vector<8x128xf32>
    %267 = vector.extract_strided_slice %265 {offsets = [0, 0], sizes = [8, 32], strides = [1, 1]} : vector<8x128xf32> to vector<8x32xf32>
    %268 = vector.extract_strided_slice %265 {offsets = [0, 32], sizes = [8, 32], strides = [1, 1]} : vector<8x128xf32> to vector<8x32xf32>
    %269 = vector.extract_strided_slice %266 {offsets = [0, 64], sizes = [8, 32], strides = [1, 1]} : vector<8x128xf32> to vector<8x32xf32>
    %270 = vector.extract_strided_slice %265 {offsets = [0, 96], sizes = [8, 32], strides = [1, 1]} : vector<8x128xf32> to vector<8x32xf32>
    %271 = arith.mulf %268, %252 : vector<8x32xf32>
    %272 = arith.mulf %267, %269 : vector<8x32xf32>
    %273 = arith.addf %271, %272 : vector<8x32xf32>
    %274 = math.tanh %273 : vector<8x32xf32>
    %275 = arith.mulf %270, %274 : vector<8x32xf32>
    %c5_i32 = arith.constant 5 : i32
    %c8_i32_114 = arith.constant 8 : i32
    %276 = arith.muli %c5_i32, %c8_i32_114 : i32
    %277 = tpu.assume_multiple %276, 8 : i32
    %278 = arith.index_cast %277 : i32 to index
    %c0_115 = arith.constant 0 : index
    %279 = vector.load %arg25[%278, %c0_115] : memref<256x128xf32, #tpu.memory_space<vmem>>, vector<8x128xf32>
    %cst_116 = arith.constant dense<0.000000e+00> : vector<8x128xf32>
    %280 = tpu.matmul %275, %168, %cst_116 {dimension_numbers = #tpu.dot_dimension_numbers<[1], [0], [0], [1], [0, 0, 1, 1], [], []>} : vector<8x32xf32>, vector<32x128xf32>, vector<8x128xf32> -> vector<8x128xf32>
    %281 = arith.addf %279, %280 : vector<8x128xf32>
    %282 = arith.negf %281 : vector<8x128xf32>
    %283 = math.exp %282 : vector<8x128xf32>
    %cst_117 = arith.constant 1.000000e+00 : f32
    %284 = vector.broadcast %cst_117 : f32 to vector<8x128xf32>
    %285 = arith.addf %284, %283 : vector<8x128xf32>
    %286 = arith.divf %284, %285 : vector<8x128xf32>
    %287 = math.tanh %281 : vector<8x128xf32>
    %288 = vector.extract_strided_slice %286 {offsets = [0, 0], sizes = [8, 32], strides = [1, 1]} : vector<8x128xf32> to vector<8x32xf32>
    %289 = vector.extract_strided_slice %286 {offsets = [0, 32], sizes = [8, 32], strides = [1, 1]} : vector<8x128xf32> to vector<8x32xf32>
    %290 = vector.extract_strided_slice %287 {offsets = [0, 64], sizes = [8, 32], strides = [1, 1]} : vector<8x128xf32> to vector<8x32xf32>
    %291 = vector.extract_strided_slice %286 {offsets = [0, 96], sizes = [8, 32], strides = [1, 1]} : vector<8x128xf32> to vector<8x32xf32>
    %292 = arith.mulf %289, %273 : vector<8x32xf32>
    %293 = arith.mulf %288, %290 : vector<8x32xf32>
    %294 = arith.addf %292, %293 : vector<8x32xf32>
    %295 = math.tanh %294 : vector<8x32xf32>
    %296 = arith.mulf %291, %295 : vector<8x32xf32>
    %c6_i32 = arith.constant 6 : i32
    %c8_i32_118 = arith.constant 8 : i32
    %297 = arith.muli %c6_i32, %c8_i32_118 : i32
    %298 = tpu.assume_multiple %297, 8 : i32
    %299 = arith.index_cast %298 : i32 to index
    %c0_119 = arith.constant 0 : index
    %300 = vector.load %arg25[%299, %c0_119] : memref<256x128xf32, #tpu.memory_space<vmem>>, vector<8x128xf32>
    %cst_120 = arith.constant dense<0.000000e+00> : vector<8x128xf32>
    %301 = tpu.matmul %296, %168, %cst_120 {dimension_numbers = #tpu.dot_dimension_numbers<[1], [0], [0], [1], [0, 0, 1, 1], [], []>} : vector<8x32xf32>, vector<32x128xf32>, vector<8x128xf32> -> vector<8x128xf32>
    %302 = arith.addf %300, %301 : vector<8x128xf32>
    %303 = arith.negf %302 : vector<8x128xf32>
    %304 = math.exp %303 : vector<8x128xf32>
    %cst_121 = arith.constant 1.000000e+00 : f32
    %305 = vector.broadcast %cst_121 : f32 to vector<8x128xf32>
    %306 = arith.addf %305, %304 : vector<8x128xf32>
    %307 = arith.divf %305, %306 : vector<8x128xf32>
    %308 = math.tanh %302 : vector<8x128xf32>
    %309 = vector.extract_strided_slice %307 {offsets = [0, 0], sizes = [8, 32], strides = [1, 1]} : vector<8x128xf32> to vector<8x32xf32>
    %310 = vector.extract_strided_slice %307 {offsets = [0, 32], sizes = [8, 32], strides = [1, 1]} : vector<8x128xf32> to vector<8x32xf32>
    %311 = vector.extract_strided_slice %308 {offsets = [0, 64], sizes = [8, 32], strides = [1, 1]} : vector<8x128xf32> to vector<8x32xf32>
    %312 = vector.extract_strided_slice %307 {offsets = [0, 96], sizes = [8, 32], strides = [1, 1]} : vector<8x128xf32> to vector<8x32xf32>
    %313 = arith.mulf %310, %294 : vector<8x32xf32>
    %314 = arith.mulf %309, %311 : vector<8x32xf32>
    %315 = arith.addf %313, %314 : vector<8x32xf32>
    %316 = math.tanh %315 : vector<8x32xf32>
    %317 = arith.mulf %312, %316 : vector<8x32xf32>
    %c7_i32 = arith.constant 7 : i32
    %c8_i32_122 = arith.constant 8 : i32
    %318 = arith.muli %c7_i32, %c8_i32_122 : i32
    %319 = tpu.assume_multiple %318, 8 : i32
    %320 = arith.index_cast %319 : i32 to index
    %c0_123 = arith.constant 0 : index
    %321 = vector.load %arg25[%320, %c0_123] : memref<256x128xf32, #tpu.memory_space<vmem>>, vector<8x128xf32>
    %cst_124 = arith.constant dense<0.000000e+00> : vector<8x128xf32>
    %322 = tpu.matmul %317, %168, %cst_124 {dimension_numbers = #tpu.dot_dimension_numbers<[1], [0], [0], [1], [0, 0, 1, 1], [], []>} : vector<8x32xf32>, vector<32x128xf32>, vector<8x128xf32> -> vector<8x128xf32>
    %323 = arith.addf %321, %322 : vector<8x128xf32>
    %324 = arith.negf %323 : vector<8x128xf32>
    %325 = math.exp %324 : vector<8x128xf32>
    %cst_125 = arith.constant 1.000000e+00 : f32
    %326 = vector.broadcast %cst_125 : f32 to vector<8x128xf32>
    %327 = arith.addf %326, %325 : vector<8x128xf32>
    %328 = arith.divf %326, %327 : vector<8x128xf32>
    %329 = math.tanh %323 : vector<8x128xf32>
    %330 = vector.extract_strided_slice %328 {offsets = [0, 0], sizes = [8, 32], strides = [1, 1]} : vector<8x128xf32> to vector<8x32xf32>
    %331 = vector.extract_strided_slice %328 {offsets = [0, 32], sizes = [8, 32], strides = [1, 1]} : vector<8x128xf32> to vector<8x32xf32>
    %332 = vector.extract_strided_slice %329 {offsets = [0, 64], sizes = [8, 32], strides = [1, 1]} : vector<8x128xf32> to vector<8x32xf32>
    %333 = vector.extract_strided_slice %328 {offsets = [0, 96], sizes = [8, 32], strides = [1, 1]} : vector<8x128xf32> to vector<8x32xf32>
    %334 = arith.mulf %331, %315 : vector<8x32xf32>
    %335 = arith.mulf %330, %332 : vector<8x32xf32>
    %336 = arith.addf %334, %335 : vector<8x32xf32>
    %337 = math.tanh %336 : vector<8x32xf32>
    %338 = arith.mulf %333, %337 : vector<8x32xf32>
    %c8_i32_126 = arith.constant 8 : i32
    %c8_i32_127 = arith.constant 8 : i32
    %339 = arith.muli %c8_i32_126, %c8_i32_127 : i32
    %340 = tpu.assume_multiple %339, 8 : i32
    %341 = arith.index_cast %340 : i32 to index
    %c0_128 = arith.constant 0 : index
    %342 = vector.load %arg25[%341, %c0_128] : memref<256x128xf32, #tpu.memory_space<vmem>>, vector<8x128xf32>
    %cst_129 = arith.constant dense<0.000000e+00> : vector<8x128xf32>
    %343 = tpu.matmul %338, %168, %cst_129 {dimension_numbers = #tpu.dot_dimension_numbers<[1], [0], [0], [1], [0, 0, 1, 1], [], []>} : vector<8x32xf32>, vector<32x128xf32>, vector<8x128xf32> -> vector<8x128xf32>
    %344 = arith.addf %342, %343 : vector<8x128xf32>
    %345 = arith.negf %344 : vector<8x128xf32>
    %346 = math.exp %345 : vector<8x128xf32>
    %cst_130 = arith.constant 1.000000e+00 : f32
    %347 = vector.broadcast %cst_130 : f32 to vector<8x128xf32>
    %348 = arith.addf %347, %346 : vector<8x128xf32>
    %349 = arith.divf %347, %348 : vector<8x128xf32>
    %350 = math.tanh %344 : vector<8x128xf32>
    %351 = vector.extract_strided_slice %349 {offsets = [0, 0], sizes = [8, 32], strides = [1, 1]} : vector<8x128xf32> to vector<8x32xf32>
    %352 = vector.extract_strided_slice %349 {offsets = [0, 32], sizes = [8, 32], strides = [1, 1]} : vector<8x128xf32> to vector<8x32xf32>
    %353 = vector.extract_strided_slice %350 {offsets = [0, 64], sizes = [8, 32], strides = [1, 1]} : vector<8x128xf32> to vector<8x32xf32>
    %354 = vector.extract_strided_slice %349 {offsets = [0, 96], sizes = [8, 32], strides = [1, 1]} : vector<8x128xf32> to vector<8x32xf32>
    %355 = arith.mulf %352, %336 : vector<8x32xf32>
    %356 = arith.mulf %351, %353 : vector<8x32xf32>
    %357 = arith.addf %355, %356 : vector<8x32xf32>
    %358 = math.tanh %357 : vector<8x32xf32>
    %359 = arith.mulf %354, %358 : vector<8x32xf32>
    %c9_i32 = arith.constant 9 : i32
    %c8_i32_131 = arith.constant 8 : i32
    %360 = arith.muli %c9_i32, %c8_i32_131 : i32
    %361 = tpu.assume_multiple %360, 8 : i32
    %362 = arith.index_cast %361 : i32 to index
    %c0_132 = arith.constant 0 : index
    %363 = vector.load %arg25[%362, %c0_132] : memref<256x128xf32, #tpu.memory_space<vmem>>, vector<8x128xf32>
    %cst_133 = arith.constant dense<0.000000e+00> : vector<8x128xf32>
    %364 = tpu.matmul %359, %168, %cst_133 {dimension_numbers = #tpu.dot_dimension_numbers<[1], [0], [0], [1], [0, 0, 1, 1], [], []>} : vector<8x32xf32>, vector<32x128xf32>, vector<8x128xf32> -> vector<8x128xf32>
    %365 = arith.addf %363, %364 : vector<8x128xf32>
    %366 = arith.negf %365 : vector<8x128xf32>
    %367 = math.exp %366 : vector<8x128xf32>
    %cst_134 = arith.constant 1.000000e+00 : f32
    %368 = vector.broadcast %cst_134 : f32 to vector<8x128xf32>
    %369 = arith.addf %368, %367 : vector<8x128xf32>
    %370 = arith.divf %368, %369 : vector<8x128xf32>
    %371 = math.tanh %365 : vector<8x128xf32>
    %372 = vector.extract_strided_slice %370 {offsets = [0, 0], sizes = [8, 32], strides = [1, 1]} : vector<8x128xf32> to vector<8x32xf32>
    %373 = vector.extract_strided_slice %370 {offsets = [0, 32], sizes = [8, 32], strides = [1, 1]} : vector<8x128xf32> to vector<8x32xf32>
    %374 = vector.extract_strided_slice %371 {offsets = [0, 64], sizes = [8, 32], strides = [1, 1]} : vector<8x128xf32> to vector<8x32xf32>
    %375 = vector.extract_strided_slice %370 {offsets = [0, 96], sizes = [8, 32], strides = [1, 1]} : vector<8x128xf32> to vector<8x32xf32>
    %376 = arith.mulf %373, %357 : vector<8x32xf32>
    %377 = arith.mulf %372, %374 : vector<8x32xf32>
    %378 = arith.addf %376, %377 : vector<8x32xf32>
    %379 = math.tanh %378 : vector<8x32xf32>
    %380 = arith.mulf %375, %379 : vector<8x32xf32>
    %c10_i32 = arith.constant 10 : i32
    %c8_i32_135 = arith.constant 8 : i32
    %381 = arith.muli %c10_i32, %c8_i32_135 : i32
    %382 = tpu.assume_multiple %381, 8 : i32
    %383 = arith.index_cast %382 : i32 to index
    %c0_136 = arith.constant 0 : index
    %384 = vector.load %arg25[%383, %c0_136] : memref<256x128xf32, #tpu.memory_space<vmem>>, vector<8x128xf32>
    %cst_137 = arith.constant dense<0.000000e+00> : vector<8x128xf32>
    %385 = tpu.matmul %380, %168, %cst_137 {dimension_numbers = #tpu.dot_dimension_numbers<[1], [0], [0], [1], [0, 0, 1, 1], [], []>} : vector<8x32xf32>, vector<32x128xf32>, vector<8x128xf32> -> vector<8x128xf32>
    %386 = arith.addf %384, %385 : vector<8x128xf32>
    %387 = arith.negf %386 : vector<8x128xf32>
    %388 = math.exp %387 : vector<8x128xf32>
    %cst_138 = arith.constant 1.000000e+00 : f32
    %389 = vector.broadcast %cst_138 : f32 to vector<8x128xf32>
    %390 = arith.addf %389, %388 : vector<8x128xf32>
    %391 = arith.divf %389, %390 : vector<8x128xf32>
    %392 = math.tanh %386 : vector<8x128xf32>
    %393 = vector.extract_strided_slice %391 {offsets = [0, 0], sizes = [8, 32], strides = [1, 1]} : vector<8x128xf32> to vector<8x32xf32>
    %394 = vector.extract_strided_slice %391 {offsets = [0, 32], sizes = [8, 32], strides = [1, 1]} : vector<8x128xf32> to vector<8x32xf32>
    %395 = vector.extract_strided_slice %392 {offsets = [0, 64], sizes = [8, 32], strides = [1, 1]} : vector<8x128xf32> to vector<8x32xf32>
    %396 = vector.extract_strided_slice %391 {offsets = [0, 96], sizes = [8, 32], strides = [1, 1]} : vector<8x128xf32> to vector<8x32xf32>
    %397 = arith.mulf %394, %378 : vector<8x32xf32>
    %398 = arith.mulf %393, %395 : vector<8x32xf32>
    %399 = arith.addf %397, %398 : vector<8x32xf32>
    %400 = math.tanh %399 : vector<8x32xf32>
    %401 = arith.mulf %396, %400 : vector<8x32xf32>
    %c11_i32 = arith.constant 11 : i32
    %c8_i32_139 = arith.constant 8 : i32
    %402 = arith.muli %c11_i32, %c8_i32_139 : i32
    %403 = tpu.assume_multiple %402, 8 : i32
    %404 = arith.index_cast %403 : i32 to index
    %c0_140 = arith.constant 0 : index
    %405 = vector.load %arg25[%404, %c0_140] : memref<256x128xf32, #tpu.memory_space<vmem>>, vector<8x128xf32>
    %cst_141 = arith.constant dense<0.000000e+00> : vector<8x128xf32>
    %406 = tpu.matmul %401, %168, %cst_141 {dimension_numbers = #tpu.dot_dimension_numbers<[1], [0], [0], [1], [0, 0, 1, 1], [], []>} : vector<8x32xf32>, vector<32x128xf32>, vector<8x128xf32> -> vector<8x128xf32>
    %407 = arith.addf %405, %406 : vector<8x128xf32>
    %408 = arith.negf %407 : vector<8x128xf32>
    %409 = math.exp %408 : vector<8x128xf32>
    %cst_142 = arith.constant 1.000000e+00 : f32
    %410 = vector.broadcast %cst_142 : f32 to vector<8x128xf32>
    %411 = arith.addf %410, %409 : vector<8x128xf32>
    %412 = arith.divf %410, %411 : vector<8x128xf32>
    %413 = math.tanh %407 : vector<8x128xf32>
    %414 = vector.extract_strided_slice %412 {offsets = [0, 0], sizes = [8, 32], strides = [1, 1]} : vector<8x128xf32> to vector<8x32xf32>
    %415 = vector.extract_strided_slice %412 {offsets = [0, 32], sizes = [8, 32], strides = [1, 1]} : vector<8x128xf32> to vector<8x32xf32>
    %416 = vector.extract_strided_slice %413 {offsets = [0, 64], sizes = [8, 32], strides = [1, 1]} : vector<8x128xf32> to vector<8x32xf32>
    %417 = vector.extract_strided_slice %412 {offsets = [0, 96], sizes = [8, 32], strides = [1, 1]} : vector<8x128xf32> to vector<8x32xf32>
    %418 = arith.mulf %415, %399 : vector<8x32xf32>
    %419 = arith.mulf %414, %416 : vector<8x32xf32>
    %420 = arith.addf %418, %419 : vector<8x32xf32>
    %421 = math.tanh %420 : vector<8x32xf32>
    %422 = arith.mulf %417, %421 : vector<8x32xf32>
    %c12_i32 = arith.constant 12 : i32
    %c8_i32_143 = arith.constant 8 : i32
    %423 = arith.muli %c12_i32, %c8_i32_143 : i32
    %424 = tpu.assume_multiple %423, 8 : i32
    %425 = arith.index_cast %424 : i32 to index
    %c0_144 = arith.constant 0 : index
    %426 = vector.load %arg25[%425, %c0_144] : memref<256x128xf32, #tpu.memory_space<vmem>>, vector<8x128xf32>
    %cst_145 = arith.constant dense<0.000000e+00> : vector<8x128xf32>
    %427 = tpu.matmul %422, %168, %cst_145 {dimension_numbers = #tpu.dot_dimension_numbers<[1], [0], [0], [1], [0, 0, 1, 1], [], []>} : vector<8x32xf32>, vector<32x128xf32>, vector<8x128xf32> -> vector<8x128xf32>
    %428 = arith.addf %426, %427 : vector<8x128xf32>
    %429 = arith.negf %428 : vector<8x128xf32>
    %430 = math.exp %429 : vector<8x128xf32>
    %cst_146 = arith.constant 1.000000e+00 : f32
    %431 = vector.broadcast %cst_146 : f32 to vector<8x128xf32>
    %432 = arith.addf %431, %430 : vector<8x128xf32>
    %433 = arith.divf %431, %432 : vector<8x128xf32>
    %434 = math.tanh %428 : vector<8x128xf32>
    %435 = vector.extract_strided_slice %433 {offsets = [0, 0], sizes = [8, 32], strides = [1, 1]} : vector<8x128xf32> to vector<8x32xf32>
    %436 = vector.extract_strided_slice %433 {offsets = [0, 32], sizes = [8, 32], strides = [1, 1]} : vector<8x128xf32> to vector<8x32xf32>
    %437 = vector.extract_strided_slice %434 {offsets = [0, 64], sizes = [8, 32], strides = [1, 1]} : vector<8x128xf32> to vector<8x32xf32>
    %438 = vector.extract_strided_slice %433 {offsets = [0, 96], sizes = [8, 32], strides = [1, 1]} : vector<8x128xf32> to vector<8x32xf32>
    %439 = arith.mulf %436, %420 : vector<8x32xf32>
    %440 = arith.mulf %435, %437 : vector<8x32xf32>
    %441 = arith.addf %439, %440 : vector<8x32xf32>
    %442 = math.tanh %441 : vector<8x32xf32>
    %443 = arith.mulf %438, %442 : vector<8x32xf32>
    %c13_i32 = arith.constant 13 : i32
    %c8_i32_147 = arith.constant 8 : i32
    %444 = arith.muli %c13_i32, %c8_i32_147 : i32
    %445 = tpu.assume_multiple %444, 8 : i32
    %446 = arith.index_cast %445 : i32 to index
    %c0_148 = arith.constant 0 : index
    %447 = vector.load %arg25[%446, %c0_148] : memref<256x128xf32, #tpu.memory_space<vmem>>, vector<8x128xf32>
    %cst_149 = arith.constant dense<0.000000e+00> : vector<8x128xf32>
    %448 = tpu.matmul %443, %168, %cst_149 {dimension_numbers = #tpu.dot_dimension_numbers<[1], [0], [0], [1], [0, 0, 1, 1], [], []>} : vector<8x32xf32>, vector<32x128xf32>, vector<8x128xf32> -> vector<8x128xf32>
    %449 = arith.addf %447, %448 : vector<8x128xf32>
    %450 = arith.negf %449 : vector<8x128xf32>
    %451 = math.exp %450 : vector<8x128xf32>
    %cst_150 = arith.constant 1.000000e+00 : f32
    %452 = vector.broadcast %cst_150 : f32 to vector<8x128xf32>
    %453 = arith.addf %452, %451 : vector<8x128xf32>
    %454 = arith.divf %452, %453 : vector<8x128xf32>
    %455 = math.tanh %449 : vector<8x128xf32>
    %456 = vector.extract_strided_slice %454 {offsets = [0, 0], sizes = [8, 32], strides = [1, 1]} : vector<8x128xf32> to vector<8x32xf32>
    %457 = vector.extract_strided_slice %454 {offsets = [0, 32], sizes = [8, 32], strides = [1, 1]} : vector<8x128xf32> to vector<8x32xf32>
    %458 = vector.extract_strided_slice %455 {offsets = [0, 64], sizes = [8, 32], strides = [1, 1]} : vector<8x128xf32> to vector<8x32xf32>
    %459 = vector.extract_strided_slice %454 {offsets = [0, 96], sizes = [8, 32], strides = [1, 1]} : vector<8x128xf32> to vector<8x32xf32>
    %460 = arith.mulf %457, %441 : vector<8x32xf32>
    %461 = arith.mulf %456, %458 : vector<8x32xf32>
    %462 = arith.addf %460, %461 : vector<8x32xf32>
    %463 = math.tanh %462 : vector<8x32xf32>
    %464 = arith.mulf %459, %463 : vector<8x32xf32>
    %c14_i32 = arith.constant 14 : i32
    %c8_i32_151 = arith.constant 8 : i32
    %465 = arith.muli %c14_i32, %c8_i32_151 : i32
    %466 = tpu.assume_multiple %465, 8 : i32
    %467 = arith.index_cast %466 : i32 to index
    %c0_152 = arith.constant 0 : index
    %468 = vector.load %arg25[%467, %c0_152] : memref<256x128xf32, #tpu.memory_space<vmem>>, vector<8x128xf32>
    %cst_153 = arith.constant dense<0.000000e+00> : vector<8x128xf32>
    %469 = tpu.matmul %464, %168, %cst_153 {dimension_numbers = #tpu.dot_dimension_numbers<[1], [0], [0], [1], [0, 0, 1, 1], [], []>} : vector<8x32xf32>, vector<32x128xf32>, vector<8x128xf32> -> vector<8x128xf32>
    %470 = arith.addf %468, %469 : vector<8x128xf32>
    %471 = arith.negf %470 : vector<8x128xf32>
    %472 = math.exp %471 : vector<8x128xf32>
    %cst_154 = arith.constant 1.000000e+00 : f32
    %473 = vector.broadcast %cst_154 : f32 to vector<8x128xf32>
    %474 = arith.addf %473, %472 : vector<8x128xf32>
    %475 = arith.divf %473, %474 : vector<8x128xf32>
    %476 = math.tanh %470 : vector<8x128xf32>
    %477 = vector.extract_strided_slice %475 {offsets = [0, 0], sizes = [8, 32], strides = [1, 1]} : vector<8x128xf32> to vector<8x32xf32>
    %478 = vector.extract_strided_slice %475 {offsets = [0, 32], sizes = [8, 32], strides = [1, 1]} : vector<8x128xf32> to vector<8x32xf32>
    %479 = vector.extract_strided_slice %476 {offsets = [0, 64], sizes = [8, 32], strides = [1, 1]} : vector<8x128xf32> to vector<8x32xf32>
    %480 = vector.extract_strided_slice %475 {offsets = [0, 96], sizes = [8, 32], strides = [1, 1]} : vector<8x128xf32> to vector<8x32xf32>
    %481 = arith.mulf %478, %462 : vector<8x32xf32>
    %482 = arith.mulf %477, %479 : vector<8x32xf32>
    %483 = arith.addf %481, %482 : vector<8x32xf32>
    %484 = math.tanh %483 : vector<8x32xf32>
    %485 = arith.mulf %480, %484 : vector<8x32xf32>
    %c15_i32 = arith.constant 15 : i32
    %c8_i32_155 = arith.constant 8 : i32
    %486 = arith.muli %c15_i32, %c8_i32_155 : i32
    %487 = tpu.assume_multiple %486, 8 : i32
    %488 = arith.index_cast %487 : i32 to index
    %c0_156 = arith.constant 0 : index
    %489 = vector.load %arg25[%488, %c0_156] : memref<256x128xf32, #tpu.memory_space<vmem>>, vector<8x128xf32>
    %cst_157 = arith.constant dense<0.000000e+00> : vector<8x128xf32>
    %490 = tpu.matmul %485, %168, %cst_157 {dimension_numbers = #tpu.dot_dimension_numbers<[1], [0], [0], [1], [0, 0, 1, 1], [], []>} : vector<8x32xf32>, vector<32x128xf32>, vector<8x128xf32> -> vector<8x128xf32>
    %491 = arith.addf %489, %490 : vector<8x128xf32>
    %492 = arith.negf %491 : vector<8x128xf32>
    %493 = math.exp %492 : vector<8x128xf32>
    %cst_158 = arith.constant 1.000000e+00 : f32
    %494 = vector.broadcast %cst_158 : f32 to vector<8x128xf32>
    %495 = arith.addf %494, %493 : vector<8x128xf32>
    %496 = arith.divf %494, %495 : vector<8x128xf32>
    %497 = math.tanh %491 : vector<8x128xf32>
    %498 = vector.extract_strided_slice %496 {offsets = [0, 0], sizes = [8, 32], strides = [1, 1]} : vector<8x128xf32> to vector<8x32xf32>
    %499 = vector.extract_strided_slice %496 {offsets = [0, 32], sizes = [8, 32], strides = [1, 1]} : vector<8x128xf32> to vector<8x32xf32>
    %500 = vector.extract_strided_slice %497 {offsets = [0, 64], sizes = [8, 32], strides = [1, 1]} : vector<8x128xf32> to vector<8x32xf32>
    %501 = vector.extract_strided_slice %496 {offsets = [0, 96], sizes = [8, 32], strides = [1, 1]} : vector<8x128xf32> to vector<8x32xf32>
    %502 = arith.mulf %499, %483 : vector<8x32xf32>
    %503 = arith.mulf %498, %500 : vector<8x32xf32>
    %504 = arith.addf %502, %503 : vector<8x32xf32>
    %505 = math.tanh %504 : vector<8x32xf32>
    %506 = arith.mulf %501, %505 : vector<8x32xf32>
    %c16_i32 = arith.constant 16 : i32
    %c8_i32_159 = arith.constant 8 : i32
    %507 = arith.muli %c16_i32, %c8_i32_159 : i32
    %508 = tpu.assume_multiple %507, 8 : i32
    %509 = arith.index_cast %508 : i32 to index
    %c0_160 = arith.constant 0 : index
    %510 = vector.load %arg25[%509, %c0_160] : memref<256x128xf32, #tpu.memory_space<vmem>>, vector<8x128xf32>
    %cst_161 = arith.constant dense<0.000000e+00> : vector<8x128xf32>
    %511 = tpu.matmul %506, %168, %cst_161 {dimension_numbers = #tpu.dot_dimension_numbers<[1], [0], [0], [1], [0, 0, 1, 1], [], []>} : vector<8x32xf32>, vector<32x128xf32>, vector<8x128xf32> -> vector<8x128xf32>
    %512 = arith.addf %510, %511 : vector<8x128xf32>
    %513 = arith.negf %512 : vector<8x128xf32>
    %514 = math.exp %513 : vector<8x128xf32>
    %cst_162 = arith.constant 1.000000e+00 : f32
    %515 = vector.broadcast %cst_162 : f32 to vector<8x128xf32>
    %516 = arith.addf %515, %514 : vector<8x128xf32>
    %517 = arith.divf %515, %516 : vector<8x128xf32>
    %518 = math.tanh %512 : vector<8x128xf32>
    %519 = vector.extract_strided_slice %517 {offsets = [0, 0], sizes = [8, 32], strides = [1, 1]} : vector<8x128xf32> to vector<8x32xf32>
    %520 = vector.extract_strided_slice %517 {offsets = [0, 32], sizes = [8, 32], strides = [1, 1]} : vector<8x128xf32> to vector<8x32xf32>
    %521 = vector.extract_strided_slice %518 {offsets = [0, 64], sizes = [8, 32], strides = [1, 1]} : vector<8x128xf32> to vector<8x32xf32>
    %522 = vector.extract_strided_slice %517 {offsets = [0, 96], sizes = [8, 32], strides = [1, 1]} : vector<8x128xf32> to vector<8x32xf32>
    %523 = arith.mulf %520, %504 : vector<8x32xf32>
    %524 = arith.mulf %519, %521 : vector<8x32xf32>
    %525 = arith.addf %523, %524 : vector<8x32xf32>
    %526 = math.tanh %525 : vector<8x32xf32>
    %527 = arith.mulf %522, %526 : vector<8x32xf32>
    %c17_i32 = arith.constant 17 : i32
    %c8_i32_163 = arith.constant 8 : i32
    %528 = arith.muli %c17_i32, %c8_i32_163 : i32
    %529 = tpu.assume_multiple %528, 8 : i32
    %530 = arith.index_cast %529 : i32 to index
    %c0_164 = arith.constant 0 : index
    %531 = vector.load %arg25[%530, %c0_164] : memref<256x128xf32, #tpu.memory_space<vmem>>, vector<8x128xf32>
    %cst_165 = arith.constant dense<0.000000e+00> : vector<8x128xf32>
    %532 = tpu.matmul %527, %168, %cst_165 {dimension_numbers = #tpu.dot_dimension_numbers<[1], [0], [0], [1], [0, 0, 1, 1], [], []>} : vector<8x32xf32>, vector<32x128xf32>, vector<8x128xf32> -> vector<8x128xf32>
    %533 = arith.addf %531, %532 : vector<8x128xf32>
    %534 = arith.negf %533 : vector<8x128xf32>
    %535 = math.exp %534 : vector<8x128xf32>
    %cst_166 = arith.constant 1.000000e+00 : f32
    %536 = vector.broadcast %cst_166 : f32 to vector<8x128xf32>
    %537 = arith.addf %536, %535 : vector<8x128xf32>
    %538 = arith.divf %536, %537 : vector<8x128xf32>
    %539 = math.tanh %533 : vector<8x128xf32>
    %540 = vector.extract_strided_slice %538 {offsets = [0, 0], sizes = [8, 32], strides = [1, 1]} : vector<8x128xf32> to vector<8x32xf32>
    %541 = vector.extract_strided_slice %538 {offsets = [0, 32], sizes = [8, 32], strides = [1, 1]} : vector<8x128xf32> to vector<8x32xf32>
    %542 = vector.extract_strided_slice %539 {offsets = [0, 64], sizes = [8, 32], strides = [1, 1]} : vector<8x128xf32> to vector<8x32xf32>
    %543 = vector.extract_strided_slice %538 {offsets = [0, 96], sizes = [8, 32], strides = [1, 1]} : vector<8x128xf32> to vector<8x32xf32>
    %544 = arith.mulf %541, %525 : vector<8x32xf32>
    %545 = arith.mulf %540, %542 : vector<8x32xf32>
    %546 = arith.addf %544, %545 : vector<8x32xf32>
    %547 = math.tanh %546 : vector<8x32xf32>
    %548 = arith.mulf %543, %547 : vector<8x32xf32>
    %c18_i32 = arith.constant 18 : i32
    %c8_i32_167 = arith.constant 8 : i32
    %549 = arith.muli %c18_i32, %c8_i32_167 : i32
    %550 = tpu.assume_multiple %549, 8 : i32
    %551 = arith.index_cast %550 : i32 to index
    %c0_168 = arith.constant 0 : index
    %552 = vector.load %arg25[%551, %c0_168] : memref<256x128xf32, #tpu.memory_space<vmem>>, vector<8x128xf32>
    %cst_169 = arith.constant dense<0.000000e+00> : vector<8x128xf32>
    %553 = tpu.matmul %548, %168, %cst_169 {dimension_numbers = #tpu.dot_dimension_numbers<[1], [0], [0], [1], [0, 0, 1, 1], [], []>} : vector<8x32xf32>, vector<32x128xf32>, vector<8x128xf32> -> vector<8x128xf32>
    %554 = arith.addf %552, %553 : vector<8x128xf32>
    %555 = arith.negf %554 : vector<8x128xf32>
    %556 = math.exp %555 : vector<8x128xf32>
    %cst_170 = arith.constant 1.000000e+00 : f32
    %557 = vector.broadcast %cst_170 : f32 to vector<8x128xf32>
    %558 = arith.addf %557, %556 : vector<8x128xf32>
    %559 = arith.divf %557, %558 : vector<8x128xf32>
    %560 = math.tanh %554 : vector<8x128xf32>
    %561 = vector.extract_strided_slice %559 {offsets = [0, 0], sizes = [8, 32], strides = [1, 1]} : vector<8x128xf32> to vector<8x32xf32>
    %562 = vector.extract_strided_slice %559 {offsets = [0, 32], sizes = [8, 32], strides = [1, 1]} : vector<8x128xf32> to vector<8x32xf32>
    %563 = vector.extract_strided_slice %560 {offsets = [0, 64], sizes = [8, 32], strides = [1, 1]} : vector<8x128xf32> to vector<8x32xf32>
    %564 = vector.extract_strided_slice %559 {offsets = [0, 96], sizes = [8, 32], strides = [1, 1]} : vector<8x128xf32> to vector<8x32xf32>
    %565 = arith.mulf %562, %546 : vector<8x32xf32>
    %566 = arith.mulf %561, %563 : vector<8x32xf32>
    %567 = arith.addf %565, %566 : vector<8x32xf32>
    %568 = math.tanh %567 : vector<8x32xf32>
    %569 = arith.mulf %564, %568 : vector<8x32xf32>
    %c19_i32 = arith.constant 19 : i32
    %c8_i32_171 = arith.constant 8 : i32
    %570 = arith.muli %c19_i32, %c8_i32_171 : i32
    %571 = tpu.assume_multiple %570, 8 : i32
    %572 = arith.index_cast %571 : i32 to index
    %c0_172 = arith.constant 0 : index
    %573 = vector.load %arg25[%572, %c0_172] : memref<256x128xf32, #tpu.memory_space<vmem>>, vector<8x128xf32>
    %cst_173 = arith.constant dense<0.000000e+00> : vector<8x128xf32>
    %574 = tpu.matmul %569, %168, %cst_173 {dimension_numbers = #tpu.dot_dimension_numbers<[1], [0], [0], [1], [0, 0, 1, 1], [], []>} : vector<8x32xf32>, vector<32x128xf32>, vector<8x128xf32> -> vector<8x128xf32>
    %575 = arith.addf %573, %574 : vector<8x128xf32>
    %576 = arith.negf %575 : vector<8x128xf32>
    %577 = math.exp %576 : vector<8x128xf32>
    %cst_174 = arith.constant 1.000000e+00 : f32
    %578 = vector.broadcast %cst_174 : f32 to vector<8x128xf32>
    %579 = arith.addf %578, %577 : vector<8x128xf32>
    %580 = arith.divf %578, %579 : vector<8x128xf32>
    %581 = math.tanh %575 : vector<8x128xf32>
    %582 = vector.extract_strided_slice %580 {offsets = [0, 0], sizes = [8, 32], strides = [1, 1]} : vector<8x128xf32> to vector<8x32xf32>
    %583 = vector.extract_strided_slice %580 {offsets = [0, 32], sizes = [8, 32], strides = [1, 1]} : vector<8x128xf32> to vector<8x32xf32>
    %584 = vector.extract_strided_slice %581 {offsets = [0, 64], sizes = [8, 32], strides = [1, 1]} : vector<8x128xf32> to vector<8x32xf32>
    %585 = vector.extract_strided_slice %580 {offsets = [0, 96], sizes = [8, 32], strides = [1, 1]} : vector<8x128xf32> to vector<8x32xf32>
    %586 = arith.mulf %583, %567 : vector<8x32xf32>
    %587 = arith.mulf %582, %584 : vector<8x32xf32>
    %588 = arith.addf %586, %587 : vector<8x32xf32>
    %589 = math.tanh %588 : vector<8x32xf32>
    %590 = arith.mulf %585, %589 : vector<8x32xf32>
    %c20_i32 = arith.constant 20 : i32
    %c8_i32_175 = arith.constant 8 : i32
    %591 = arith.muli %c20_i32, %c8_i32_175 : i32
    %592 = tpu.assume_multiple %591, 8 : i32
    %593 = arith.index_cast %592 : i32 to index
    %c0_176 = arith.constant 0 : index
    %594 = vector.load %arg25[%593, %c0_176] : memref<256x128xf32, #tpu.memory_space<vmem>>, vector<8x128xf32>
    %cst_177 = arith.constant dense<0.000000e+00> : vector<8x128xf32>
    %595 = tpu.matmul %590, %168, %cst_177 {dimension_numbers = #tpu.dot_dimension_numbers<[1], [0], [0], [1], [0, 0, 1, 1], [], []>} : vector<8x32xf32>, vector<32x128xf32>, vector<8x128xf32> -> vector<8x128xf32>
    %596 = arith.addf %594, %595 : vector<8x128xf32>
    %597 = arith.negf %596 : vector<8x128xf32>
    %598 = math.exp %597 : vector<8x128xf32>
    %cst_178 = arith.constant 1.000000e+00 : f32
    %599 = vector.broadcast %cst_178 : f32 to vector<8x128xf32>
    %600 = arith.addf %599, %598 : vector<8x128xf32>
    %601 = arith.divf %599, %600 : vector<8x128xf32>
    %602 = math.tanh %596 : vector<8x128xf32>
    %603 = vector.extract_strided_slice %601 {offsets = [0, 0], sizes = [8, 32], strides = [1, 1]} : vector<8x128xf32> to vector<8x32xf32>
    %604 = vector.extract_strided_slice %601 {offsets = [0, 32], sizes = [8, 32], strides = [1, 1]} : vector<8x128xf32> to vector<8x32xf32>
    %605 = vector.extract_strided_slice %602 {offsets = [0, 64], sizes = [8, 32], strides = [1, 1]} : vector<8x128xf32> to vector<8x32xf32>
    %606 = vector.extract_strided_slice %601 {offsets = [0, 96], sizes = [8, 32], strides = [1, 1]} : vector<8x128xf32> to vector<8x32xf32>
    %607 = arith.mulf %604, %588 : vector<8x32xf32>
    %608 = arith.mulf %603, %605 : vector<8x32xf32>
    %609 = arith.addf %607, %608 : vector<8x32xf32>
    %610 = math.tanh %609 : vector<8x32xf32>
    %611 = arith.mulf %606, %610 : vector<8x32xf32>
    %c21_i32 = arith.constant 21 : i32
    %c8_i32_179 = arith.constant 8 : i32
    %612 = arith.muli %c21_i32, %c8_i32_179 : i32
    %613 = tpu.assume_multiple %612, 8 : i32
    %614 = arith.index_cast %613 : i32 to index
    %c0_180 = arith.constant 0 : index
    %615 = vector.load %arg25[%614, %c0_180] : memref<256x128xf32, #tpu.memory_space<vmem>>, vector<8x128xf32>
    %cst_181 = arith.constant dense<0.000000e+00> : vector<8x128xf32>
    %616 = tpu.matmul %611, %168, %cst_181 {dimension_numbers = #tpu.dot_dimension_numbers<[1], [0], [0], [1], [0, 0, 1, 1], [], []>} : vector<8x32xf32>, vector<32x128xf32>, vector<8x128xf32> -> vector<8x128xf32>
    %617 = arith.addf %615, %616 : vector<8x128xf32>
    %618 = arith.negf %617 : vector<8x128xf32>
    %619 = math.exp %618 : vector<8x128xf32>
    %cst_182 = arith.constant 1.000000e+00 : f32
    %620 = vector.broadcast %cst_182 : f32 to vector<8x128xf32>
    %621 = arith.addf %620, %619 : vector<8x128xf32>
    %622 = arith.divf %620, %621 : vector<8x128xf32>
    %623 = math.tanh %617 : vector<8x128xf32>
    %624 = vector.extract_strided_slice %622 {offsets = [0, 0], sizes = [8, 32], strides = [1, 1]} : vector<8x128xf32> to vector<8x32xf32>
    %625 = vector.extract_strided_slice %622 {offsets = [0, 32], sizes = [8, 32], strides = [1, 1]} : vector<8x128xf32> to vector<8x32xf32>
    %626 = vector.extract_strided_slice %623 {offsets = [0, 64], sizes = [8, 32], strides = [1, 1]} : vector<8x128xf32> to vector<8x32xf32>
    %627 = vector.extract_strided_slice %622 {offsets = [0, 96], sizes = [8, 32], strides = [1, 1]} : vector<8x128xf32> to vector<8x32xf32>
    %628 = arith.mulf %625, %609 : vector<8x32xf32>
    %629 = arith.mulf %624, %626 : vector<8x32xf32>
    %630 = arith.addf %628, %629 : vector<8x32xf32>
    %631 = math.tanh %630 : vector<8x32xf32>
    %632 = arith.mulf %627, %631 : vector<8x32xf32>
    %c22_i32 = arith.constant 22 : i32
    %c8_i32_183 = arith.constant 8 : i32
    %633 = arith.muli %c22_i32, %c8_i32_183 : i32
    %634 = tpu.assume_multiple %633, 8 : i32
    %635 = arith.index_cast %634 : i32 to index
    %c0_184 = arith.constant 0 : index
    %636 = vector.load %arg25[%635, %c0_184] : memref<256x128xf32, #tpu.memory_space<vmem>>, vector<8x128xf32>
    %cst_185 = arith.constant dense<0.000000e+00> : vector<8x128xf32>
    %637 = tpu.matmul %632, %168, %cst_185 {dimension_numbers = #tpu.dot_dimension_numbers<[1], [0], [0], [1], [0, 0, 1, 1], [], []>} : vector<8x32xf32>, vector<32x128xf32>, vector<8x128xf32> -> vector<8x128xf32>
    %638 = arith.addf %636, %637 : vector<8x128xf32>
    %639 = arith.negf %638 : vector<8x128xf32>
    %640 = math.exp %639 : vector<8x128xf32>
    %cst_186 = arith.constant 1.000000e+00 : f32
    %641 = vector.broadcast %cst_186 : f32 to vector<8x128xf32>
    %642 = arith.addf %641, %640 : vector<8x128xf32>
    %643 = arith.divf %641, %642 : vector<8x128xf32>
    %644 = math.tanh %638 : vector<8x128xf32>
    %645 = vector.extract_strided_slice %643 {offsets = [0, 0], sizes = [8, 32], strides = [1, 1]} : vector<8x128xf32> to vector<8x32xf32>
    %646 = vector.extract_strided_slice %643 {offsets = [0, 32], sizes = [8, 32], strides = [1, 1]} : vector<8x128xf32> to vector<8x32xf32>
    %647 = vector.extract_strided_slice %644 {offsets = [0, 64], sizes = [8, 32], strides = [1, 1]} : vector<8x128xf32> to vector<8x32xf32>
    %648 = vector.extract_strided_slice %643 {offsets = [0, 96], sizes = [8, 32], strides = [1, 1]} : vector<8x128xf32> to vector<8x32xf32>
    %649 = arith.mulf %646, %630 : vector<8x32xf32>
    %650 = arith.mulf %645, %647 : vector<8x32xf32>
    %651 = arith.addf %649, %650 : vector<8x32xf32>
    %652 = math.tanh %651 : vector<8x32xf32>
    %653 = arith.mulf %648, %652 : vector<8x32xf32>
    %c23_i32 = arith.constant 23 : i32
    %c8_i32_187 = arith.constant 8 : i32
    %654 = arith.muli %c23_i32, %c8_i32_187 : i32
    %655 = tpu.assume_multiple %654, 8 : i32
    %656 = arith.index_cast %655 : i32 to index
    %c0_188 = arith.constant 0 : index
    %657 = vector.load %arg25[%656, %c0_188] : memref<256x128xf32, #tpu.memory_space<vmem>>, vector<8x128xf32>
    %cst_189 = arith.constant dense<0.000000e+00> : vector<8x128xf32>
    %658 = tpu.matmul %653, %168, %cst_189 {dimension_numbers = #tpu.dot_dimension_numbers<[1], [0], [0], [1], [0, 0, 1, 1], [], []>} : vector<8x32xf32>, vector<32x128xf32>, vector<8x128xf32> -> vector<8x128xf32>
    %659 = arith.addf %657, %658 : vector<8x128xf32>
    %660 = arith.negf %659 : vector<8x128xf32>
    %661 = math.exp %660 : vector<8x128xf32>
    %cst_190 = arith.constant 1.000000e+00 : f32
    %662 = vector.broadcast %cst_190 : f32 to vector<8x128xf32>
    %663 = arith.addf %662, %661 : vector<8x128xf32>
    %664 = arith.divf %662, %663 : vector<8x128xf32>
    %665 = math.tanh %659 : vector<8x128xf32>
    %666 = vector.extract_strided_slice %664 {offsets = [0, 0], sizes = [8, 32], strides = [1, 1]} : vector<8x128xf32> to vector<8x32xf32>
    %667 = vector.extract_strided_slice %664 {offsets = [0, 32], sizes = [8, 32], strides = [1, 1]} : vector<8x128xf32> to vector<8x32xf32>
    %668 = vector.extract_strided_slice %665 {offsets = [0, 64], sizes = [8, 32], strides = [1, 1]} : vector<8x128xf32> to vector<8x32xf32>
    %669 = vector.extract_strided_slice %664 {offsets = [0, 96], sizes = [8, 32], strides = [1, 1]} : vector<8x128xf32> to vector<8x32xf32>
    %670 = arith.mulf %667, %651 : vector<8x32xf32>
    %671 = arith.mulf %666, %668 : vector<8x32xf32>
    %672 = arith.addf %670, %671 : vector<8x32xf32>
    %673 = math.tanh %672 : vector<8x32xf32>
    %674 = arith.mulf %669, %673 : vector<8x32xf32>
    %c24_i32 = arith.constant 24 : i32
    %c8_i32_191 = arith.constant 8 : i32
    %675 = arith.muli %c24_i32, %c8_i32_191 : i32
    %676 = tpu.assume_multiple %675, 8 : i32
    %677 = arith.index_cast %676 : i32 to index
    %c0_192 = arith.constant 0 : index
    %678 = vector.load %arg25[%677, %c0_192] : memref<256x128xf32, #tpu.memory_space<vmem>>, vector<8x128xf32>
    %cst_193 = arith.constant dense<0.000000e+00> : vector<8x128xf32>
    %679 = tpu.matmul %674, %168, %cst_193 {dimension_numbers = #tpu.dot_dimension_numbers<[1], [0], [0], [1], [0, 0, 1, 1], [], []>} : vector<8x32xf32>, vector<32x128xf32>, vector<8x128xf32> -> vector<8x128xf32>
    %680 = arith.addf %678, %679 : vector<8x128xf32>
    %681 = arith.negf %680 : vector<8x128xf32>
    %682 = math.exp %681 : vector<8x128xf32>
    %cst_194 = arith.constant 1.000000e+00 : f32
    %683 = vector.broadcast %cst_194 : f32 to vector<8x128xf32>
    %684 = arith.addf %683, %682 : vector<8x128xf32>
    %685 = arith.divf %683, %684 : vector<8x128xf32>
    %686 = math.tanh %680 : vector<8x128xf32>
    %687 = vector.extract_strided_slice %685 {offsets = [0, 0], sizes = [8, 32], strides = [1, 1]} : vector<8x128xf32> to vector<8x32xf32>
    %688 = vector.extract_strided_slice %685 {offsets = [0, 32], sizes = [8, 32], strides = [1, 1]} : vector<8x128xf32> to vector<8x32xf32>
    %689 = vector.extract_strided_slice %686 {offsets = [0, 64], sizes = [8, 32], strides = [1, 1]} : vector<8x128xf32> to vector<8x32xf32>
    %690 = vector.extract_strided_slice %685 {offsets = [0, 96], sizes = [8, 32], strides = [1, 1]} : vector<8x128xf32> to vector<8x32xf32>
    %691 = arith.mulf %688, %672 : vector<8x32xf32>
    %692 = arith.mulf %687, %689 : vector<8x32xf32>
    %693 = arith.addf %691, %692 : vector<8x32xf32>
    %694 = math.tanh %693 : vector<8x32xf32>
    %695 = arith.mulf %690, %694 : vector<8x32xf32>
    %c25_i32 = arith.constant 25 : i32
    %c8_i32_195 = arith.constant 8 : i32
    %696 = arith.muli %c25_i32, %c8_i32_195 : i32
    %697 = tpu.assume_multiple %696, 8 : i32
    %698 = arith.index_cast %697 : i32 to index
    %c0_196 = arith.constant 0 : index
    %699 = vector.load %arg25[%698, %c0_196] : memref<256x128xf32, #tpu.memory_space<vmem>>, vector<8x128xf32>
    %cst_197 = arith.constant dense<0.000000e+00> : vector<8x128xf32>
    %700 = tpu.matmul %695, %168, %cst_197 {dimension_numbers = #tpu.dot_dimension_numbers<[1], [0], [0], [1], [0, 0, 1, 1], [], []>} : vector<8x32xf32>, vector<32x128xf32>, vector<8x128xf32> -> vector<8x128xf32>
    %701 = arith.addf %699, %700 : vector<8x128xf32>
    %702 = arith.negf %701 : vector<8x128xf32>
    %703 = math.exp %702 : vector<8x128xf32>
    %cst_198 = arith.constant 1.000000e+00 : f32
    %704 = vector.broadcast %cst_198 : f32 to vector<8x128xf32>
    %705 = arith.addf %704, %703 : vector<8x128xf32>
    %706 = arith.divf %704, %705 : vector<8x128xf32>
    %707 = math.tanh %701 : vector<8x128xf32>
    %708 = vector.extract_strided_slice %706 {offsets = [0, 0], sizes = [8, 32], strides = [1, 1]} : vector<8x128xf32> to vector<8x32xf32>
    %709 = vector.extract_strided_slice %706 {offsets = [0, 32], sizes = [8, 32], strides = [1, 1]} : vector<8x128xf32> to vector<8x32xf32>
    %710 = vector.extract_strided_slice %707 {offsets = [0, 64], sizes = [8, 32], strides = [1, 1]} : vector<8x128xf32> to vector<8x32xf32>
    %711 = vector.extract_strided_slice %706 {offsets = [0, 96], sizes = [8, 32], strides = [1, 1]} : vector<8x128xf32> to vector<8x32xf32>
    %712 = arith.mulf %709, %693 : vector<8x32xf32>
    %713 = arith.mulf %708, %710 : vector<8x32xf32>
    %714 = arith.addf %712, %713 : vector<8x32xf32>
    %715 = math.tanh %714 : vector<8x32xf32>
    %716 = arith.mulf %711, %715 : vector<8x32xf32>
    %c26_i32 = arith.constant 26 : i32
    %c8_i32_199 = arith.constant 8 : i32
    %717 = arith.muli %c26_i32, %c8_i32_199 : i32
    %718 = tpu.assume_multiple %717, 8 : i32
    %719 = arith.index_cast %718 : i32 to index
    %c0_200 = arith.constant 0 : index
    %720 = vector.load %arg25[%719, %c0_200] : memref<256x128xf32, #tpu.memory_space<vmem>>, vector<8x128xf32>
    %cst_201 = arith.constant dense<0.000000e+00> : vector<8x128xf32>
    %721 = tpu.matmul %716, %168, %cst_201 {dimension_numbers = #tpu.dot_dimension_numbers<[1], [0], [0], [1], [0, 0, 1, 1], [], []>} : vector<8x32xf32>, vector<32x128xf32>, vector<8x128xf32> -> vector<8x128xf32>
    %722 = arith.addf %720, %721 : vector<8x128xf32>
    %723 = arith.negf %722 : vector<8x128xf32>
    %724 = math.exp %723 : vector<8x128xf32>
    %cst_202 = arith.constant 1.000000e+00 : f32
    %725 = vector.broadcast %cst_202 : f32 to vector<8x128xf32>
    %726 = arith.addf %725, %724 : vector<8x128xf32>
    %727 = arith.divf %725, %726 : vector<8x128xf32>
    %728 = math.tanh %722 : vector<8x128xf32>
    %729 = vector.extract_strided_slice %727 {offsets = [0, 0], sizes = [8, 32], strides = [1, 1]} : vector<8x128xf32> to vector<8x32xf32>
    %730 = vector.extract_strided_slice %727 {offsets = [0, 32], sizes = [8, 32], strides = [1, 1]} : vector<8x128xf32> to vector<8x32xf32>
    %731 = vector.extract_strided_slice %728 {offsets = [0, 64], sizes = [8, 32], strides = [1, 1]} : vector<8x128xf32> to vector<8x32xf32>
    %732 = vector.extract_strided_slice %727 {offsets = [0, 96], sizes = [8, 32], strides = [1, 1]} : vector<8x128xf32> to vector<8x32xf32>
    %733 = arith.mulf %730, %714 : vector<8x32xf32>
    %734 = arith.mulf %729, %731 : vector<8x32xf32>
    %735 = arith.addf %733, %734 : vector<8x32xf32>
    %736 = math.tanh %735 : vector<8x32xf32>
    %737 = arith.mulf %732, %736 : vector<8x32xf32>
    %c27_i32 = arith.constant 27 : i32
    %c8_i32_203 = arith.constant 8 : i32
    %738 = arith.muli %c27_i32, %c8_i32_203 : i32
    %739 = tpu.assume_multiple %738, 8 : i32
    %740 = arith.index_cast %739 : i32 to index
    %c0_204 = arith.constant 0 : index
    %741 = vector.load %arg25[%740, %c0_204] : memref<256x128xf32, #tpu.memory_space<vmem>>, vector<8x128xf32>
    %cst_205 = arith.constant dense<0.000000e+00> : vector<8x128xf32>
    %742 = tpu.matmul %737, %168, %cst_205 {dimension_numbers = #tpu.dot_dimension_numbers<[1], [0], [0], [1], [0, 0, 1, 1], [], []>} : vector<8x32xf32>, vector<32x128xf32>, vector<8x128xf32> -> vector<8x128xf32>
    %743 = arith.addf %741, %742 : vector<8x128xf32>
    %744 = arith.negf %743 : vector<8x128xf32>
    %745 = math.exp %744 : vector<8x128xf32>
    %cst_206 = arith.constant 1.000000e+00 : f32
    %746 = vector.broadcast %cst_206 : f32 to vector<8x128xf32>
    %747 = arith.addf %746, %745 : vector<8x128xf32>
    %748 = arith.divf %746, %747 : vector<8x128xf32>
    %749 = math.tanh %743 : vector<8x128xf32>
    %750 = vector.extract_strided_slice %748 {offsets = [0, 0], sizes = [8, 32], strides = [1, 1]} : vector<8x128xf32> to vector<8x32xf32>
    %751 = vector.extract_strided_slice %748 {offsets = [0, 32], sizes = [8, 32], strides = [1, 1]} : vector<8x128xf32> to vector<8x32xf32>
    %752 = vector.extract_strided_slice %749 {offsets = [0, 64], sizes = [8, 32], strides = [1, 1]} : vector<8x128xf32> to vector<8x32xf32>
    %753 = vector.extract_strided_slice %748 {offsets = [0, 96], sizes = [8, 32], strides = [1, 1]} : vector<8x128xf32> to vector<8x32xf32>
    %754 = arith.mulf %751, %735 : vector<8x32xf32>
    %755 = arith.mulf %750, %752 : vector<8x32xf32>
    %756 = arith.addf %754, %755 : vector<8x32xf32>
    %757 = math.tanh %756 : vector<8x32xf32>
    %758 = arith.mulf %753, %757 : vector<8x32xf32>
    %c28_i32 = arith.constant 28 : i32
    %c8_i32_207 = arith.constant 8 : i32
    %759 = arith.muli %c28_i32, %c8_i32_207 : i32
    %760 = tpu.assume_multiple %759, 8 : i32
    %761 = arith.index_cast %760 : i32 to index
    %c0_208 = arith.constant 0 : index
    %762 = vector.load %arg25[%761, %c0_208] : memref<256x128xf32, #tpu.memory_space<vmem>>, vector<8x128xf32>
    %cst_209 = arith.constant dense<0.000000e+00> : vector<8x128xf32>
    %763 = tpu.matmul %758, %168, %cst_209 {dimension_numbers = #tpu.dot_dimension_numbers<[1], [0], [0], [1], [0, 0, 1, 1], [], []>} : vector<8x32xf32>, vector<32x128xf32>, vector<8x128xf32> -> vector<8x128xf32>
    %764 = arith.addf %762, %763 : vector<8x128xf32>
    %765 = arith.negf %764 : vector<8x128xf32>
    %766 = math.exp %765 : vector<8x128xf32>
    %cst_210 = arith.constant 1.000000e+00 : f32
    %767 = vector.broadcast %cst_210 : f32 to vector<8x128xf32>
    %768 = arith.addf %767, %766 : vector<8x128xf32>
    %769 = arith.divf %767, %768 : vector<8x128xf32>
    %770 = math.tanh %764 : vector<8x128xf32>
    %771 = vector.extract_strided_slice %769 {offsets = [0, 0], sizes = [8, 32], strides = [1, 1]} : vector<8x128xf32> to vector<8x32xf32>
    %772 = vector.extract_strided_slice %769 {offsets = [0, 32], sizes = [8, 32], strides = [1, 1]} : vector<8x128xf32> to vector<8x32xf32>
    %773 = vector.extract_strided_slice %770 {offsets = [0, 64], sizes = [8, 32], strides = [1, 1]} : vector<8x128xf32> to vector<8x32xf32>
    %774 = vector.extract_strided_slice %769 {offsets = [0, 96], sizes = [8, 32], strides = [1, 1]} : vector<8x128xf32> to vector<8x32xf32>
    %775 = arith.mulf %772, %756 : vector<8x32xf32>
    %776 = arith.mulf %771, %773 : vector<8x32xf32>
    %777 = arith.addf %775, %776 : vector<8x32xf32>
    %778 = math.tanh %777 : vector<8x32xf32>
    %779 = arith.mulf %774, %778 : vector<8x32xf32>
    %c29_i32 = arith.constant 29 : i32
    %c8_i32_211 = arith.constant 8 : i32
    %780 = arith.muli %c29_i32, %c8_i32_211 : i32
    %781 = tpu.assume_multiple %780, 8 : i32
    %782 = arith.index_cast %781 : i32 to index
    %c0_212 = arith.constant 0 : index
    %783 = vector.load %arg25[%782, %c0_212] : memref<256x128xf32, #tpu.memory_space<vmem>>, vector<8x128xf32>
    %cst_213 = arith.constant dense<0.000000e+00> : vector<8x128xf32>
    %784 = tpu.matmul %779, %168, %cst_213 {dimension_numbers = #tpu.dot_dimension_numbers<[1], [0], [0], [1], [0, 0, 1, 1], [], []>} : vector<8x32xf32>, vector<32x128xf32>, vector<8x128xf32> -> vector<8x128xf32>
    %785 = arith.addf %783, %784 : vector<8x128xf32>
    %786 = arith.negf %785 : vector<8x128xf32>
    %787 = math.exp %786 : vector<8x128xf32>
    %cst_214 = arith.constant 1.000000e+00 : f32
    %788 = vector.broadcast %cst_214 : f32 to vector<8x128xf32>
    %789 = arith.addf %788, %787 : vector<8x128xf32>
    %790 = arith.divf %788, %789 : vector<8x128xf32>
    %791 = math.tanh %785 : vector<8x128xf32>
    %792 = vector.extract_strided_slice %790 {offsets = [0, 0], sizes = [8, 32], strides = [1, 1]} : vector<8x128xf32> to vector<8x32xf32>
    %793 = vector.extract_strided_slice %790 {offsets = [0, 32], sizes = [8, 32], strides = [1, 1]} : vector<8x128xf32> to vector<8x32xf32>
    %794 = vector.extract_strided_slice %791 {offsets = [0, 64], sizes = [8, 32], strides = [1, 1]} : vector<8x128xf32> to vector<8x32xf32>
    %795 = vector.extract_strided_slice %790 {offsets = [0, 96], sizes = [8, 32], strides = [1, 1]} : vector<8x128xf32> to vector<8x32xf32>
    %796 = arith.mulf %793, %777 : vector<8x32xf32>
    %797 = arith.mulf %792, %794 : vector<8x32xf32>
    %798 = arith.addf %796, %797 : vector<8x32xf32>
    %799 = math.tanh %798 : vector<8x32xf32>
    %800 = arith.mulf %795, %799 : vector<8x32xf32>
    %c30_i32 = arith.constant 30 : i32
    %c8_i32_215 = arith.constant 8 : i32
    %801 = arith.muli %c30_i32, %c8_i32_215 : i32
    %802 = tpu.assume_multiple %801, 8 : i32
    %803 = arith.index_cast %802 : i32 to index
    %c0_216 = arith.constant 0 : index
    %804 = vector.load %arg25[%803, %c0_216] : memref<256x128xf32, #tpu.memory_space<vmem>>, vector<8x128xf32>
    %cst_217 = arith.constant dense<0.000000e+00> : vector<8x128xf32>
    %805 = tpu.matmul %800, %168, %cst_217 {dimension_numbers = #tpu.dot_dimension_numbers<[1], [0], [0], [1], [0, 0, 1, 1], [], []>} : vector<8x32xf32>, vector<32x128xf32>, vector<8x128xf32> -> vector<8x128xf32>
    %806 = arith.addf %804, %805 : vector<8x128xf32>
    %807 = arith.negf %806 : vector<8x128xf32>
    %808 = math.exp %807 : vector<8x128xf32>
    %cst_218 = arith.constant 1.000000e+00 : f32
    %809 = vector.broadcast %cst_218 : f32 to vector<8x128xf32>
    %810 = arith.addf %809, %808 : vector<8x128xf32>
    %811 = arith.divf %809, %810 : vector<8x128xf32>
    %812 = math.tanh %806 : vector<8x128xf32>
    %813 = vector.extract_strided_slice %811 {offsets = [0, 0], sizes = [8, 32], strides = [1, 1]} : vector<8x128xf32> to vector<8x32xf32>
    %814 = vector.extract_strided_slice %811 {offsets = [0, 32], sizes = [8, 32], strides = [1, 1]} : vector<8x128xf32> to vector<8x32xf32>
    %815 = vector.extract_strided_slice %812 {offsets = [0, 64], sizes = [8, 32], strides = [1, 1]} : vector<8x128xf32> to vector<8x32xf32>
    %816 = vector.extract_strided_slice %811 {offsets = [0, 96], sizes = [8, 32], strides = [1, 1]} : vector<8x128xf32> to vector<8x32xf32>
    %817 = arith.mulf %814, %798 : vector<8x32xf32>
    %818 = arith.mulf %813, %815 : vector<8x32xf32>
    %819 = arith.addf %817, %818 : vector<8x32xf32>
    %820 = math.tanh %819 : vector<8x32xf32>
    %821 = arith.mulf %816, %820 : vector<8x32xf32>
    %c31_i32 = arith.constant 31 : i32
    %c8_i32_219 = arith.constant 8 : i32
    %822 = arith.muli %c31_i32, %c8_i32_219 : i32
    %823 = tpu.assume_multiple %822, 8 : i32
    %824 = arith.index_cast %823 : i32 to index
    %c0_220 = arith.constant 0 : index
    %825 = vector.load %arg25[%824, %c0_220] : memref<256x128xf32, #tpu.memory_space<vmem>>, vector<8x128xf32>
    %cst_221 = arith.constant dense<0.000000e+00> : vector<8x128xf32>
    %826 = tpu.matmul %821, %168, %cst_221 {dimension_numbers = #tpu.dot_dimension_numbers<[1], [0], [0], [1], [0, 0, 1, 1], [], []>} : vector<8x32xf32>, vector<32x128xf32>, vector<8x128xf32> -> vector<8x128xf32>
    %827 = arith.addf %825, %826 : vector<8x128xf32>
    %828 = arith.negf %827 : vector<8x128xf32>
    %829 = math.exp %828 : vector<8x128xf32>
    %cst_222 = arith.constant 1.000000e+00 : f32
    %830 = vector.broadcast %cst_222 : f32 to vector<8x128xf32>
    %831 = arith.addf %830, %829 : vector<8x128xf32>
    %832 = arith.divf %830, %831 : vector<8x128xf32>
    %833 = math.tanh %827 : vector<8x128xf32>
    %834 = vector.extract_strided_slice %832 {offsets = [0, 0], sizes = [8, 32], strides = [1, 1]} : vector<8x128xf32> to vector<8x32xf32>
    %835 = vector.extract_strided_slice %832 {offsets = [0, 32], sizes = [8, 32], strides = [1, 1]} : vector<8x128xf32> to vector<8x32xf32>
    %836 = vector.extract_strided_slice %833 {offsets = [0, 64], sizes = [8, 32], strides = [1, 1]} : vector<8x128xf32> to vector<8x32xf32>
    %837 = vector.extract_strided_slice %832 {offsets = [0, 96], sizes = [8, 32], strides = [1, 1]} : vector<8x128xf32> to vector<8x32xf32>
    %838 = arith.mulf %835, %819 : vector<8x32xf32>
    %839 = arith.mulf %834, %836 : vector<8x32xf32>
    %840 = arith.addf %838, %839 : vector<8x32xf32>
    %841 = math.tanh %840 : vector<8x32xf32>
    %842 = arith.mulf %837, %841 : vector<8x32xf32>
    %c32_i32 = arith.constant 32 : i32
    %c0_223 = arith.constant 0 : index
    %c0_224 = arith.constant 0 : index
    %843 = vector.load %arg21[%c0_223, %c0_224] : memref<32x128xf32, #tpu.memory_space<vmem>>, vector<32x128xf32>
    %cst_225 = arith.constant dense<0.000000e+00> : vector<8x128xf32>
    %844 = tpu.matmul %842, %843, %cst_225 {dimension_numbers = #tpu.dot_dimension_numbers<[1], [0], [0], [1], [0, 0, 1, 1], [], []>} : vector<8x32xf32>, vector<32x128xf32>, vector<8x128xf32> -> vector<8x128xf32>
    %c0_226 = arith.constant 0 : index
    %c0_227 = arith.constant 0 : index
    %845 = vector.load %arg22[%c0_226, %c0_227] : memref<128x128xf32, #tpu.memory_space<vmem>>, vector<128x128xf32>
    %cst_228 = arith.constant dense<0.000000e+00> : vector<8x128xf32>
    %846 = tpu.matmul %167, %845, %cst_228 {dimension_numbers = #tpu.dot_dimension_numbers<[1], [0], [0], [1], [0, 0, 1, 1], [], []>} : vector<8x128xf32>, vector<128x128xf32>, vector<8x128xf32> -> vector<8x128xf32>
    %847 = arith.addf %844, %846 : vector<8x128xf32>
    %c0_229 = arith.constant 0 : index
    %c0_230 = arith.constant 0 : index
    %848 = vector.load %arg23[%c0_229, %c0_230] : memref<1x128xf32, #tpu.memory_space<vmem>>, vector<1x128xf32>
    %849 = vector.broadcast %848 : vector<1x128xf32> to vector<8x128xf32>
    %850 = arith.addf %847, %849 : vector<8x128xf32>
    %851 = tpu.iota {dimensions = array<i32: 1>} : vector<8x128xi32>
    %c5_i32_231 = arith.constant 5 : i32
    %852 = vector.broadcast %c5_i32_231 : i32 to vector<8x128xi32>
    %853 = arith.cmpi slt, %851, %852 : vector<8x128xi32>
    %cst_232 = arith.constant -1.000000e+30 : f32
    %854 = vector.broadcast %cst_232 : f32 to vector<8x128xf32>
    %855 = arith.select %853, %850, %854 : vector<8x128xi1>, vector<8x128xf32>
    %cst_233 = arith.constant dense<0xFF800000> : vector<8xf32>
    %856 = vector.multi_reduction <maximumf>, %855, %cst_233 [1] : vector<8x128xf32> to vector<8xf32>
    %857 = vector.shape_cast %856 : vector<8xf32> to vector<8x1xf32>
    %858 = vector.broadcast %857 : vector<8x1xf32> to vector<8x128xf32>
    %859 = arith.subf %855, %858 : vector<8x128xf32>
    %860 = math.exp %859 : vector<8x128xf32>
    %cst_234 = arith.constant dense<0.000000e+00> : vector<8xf32>
    %861 = vector.multi_reduction <add>, %860, %cst_234 [1] : vector<8x128xf32> to vector<8xf32>
    %862 = vector.shape_cast %861 : vector<8xf32> to vector<8x1xf32>
    %863 = math.log %862 : vector<8x1xf32>
    %864 = vector.broadcast %863 : vector<8x1xf32> to vector<8x128xf32>
    %865 = arith.subf %859, %864 : vector<8x128xf32>
    %c0_235 = arith.constant 0 : index
    %c0_236 = arith.constant 0 : index
    %866 = vector.load %arg24[%c0_235, %c0_236] : memref<8x128xf32, #tpu.memory_space<vmem>>, vector<8x128xf32>
    tpu.vector_store %arg24[%c0_235, %c0_236], %865 {strides = array<i32>} : memref<8x128xf32, #tpu.memory_space<vmem>>, vector<8x128xf32>,
    return
  }
}

</mosaic_0001>

<bundles_post_ra>
// kernel: tpu_custom_call.1
= control target key start
LH: loop header
LB: loop body
LE: loop exit
PB: predicated region body
PF: predicated region fallthrough
CT: control target
= control target key end

     0   :  { %s13285_s0 = inlined_call_operand.vmem [shape: f32[256,4], index: 0, kind: input, shape index: {}]   ;;  %s13286_s1 = inlined_call_operand.vmem [shape: f32[4,128], index: 1, kind: input, shape index: {}]   ;;  %s13287_s2 = inlined_call_operand.vmem [shape: f32[32,128], index: 2, kind: input, shape index: {}]   ;;  %s13288_s3 = inlined_call_operand.vmem [shape: f32[1,128], index: 3, kind: input, shape index: {}]   ;;  %s13289_s4 = inlined_call_operand.vmem [shape: f32[8,4,128], index: 4, kind: input, shape index: {}]   ;;  %s13290_s5 = inlined_call_operand.vmem [shape: f32[1,128], index: 5, kind: input, shape index: {}]   ;;  %s13291_s6 = inlined_call_operand.vmem [shape: f32[1,128], index: 6, kind: input, shape index: {}]   ;;  %s13292_s7 = inlined_call_operand.vmem [shape: f32[128,8], index: 7, kind: input, shape index: {}]   ;;  %s13293_s8 = inlined_call_operand.vmem [shape: f32[8,128], index: 8, kind: input, shape index: {}]   ;;  %s13294_s9 = inlined_call_operand.vmem [shape: f32[8,256], index: 9, kind: input, shape index: {}]   ;;  %s13295_s10 = inlined_call_operand.hbm [shape: f32[5,128,256], index: 10, kind: input, shape index: {}]   ;;  %s13296_s11 = inlined_call_operand.vmem [shape: f32[1,256], index: 11, kind: input, shape index: {}]   ;;  %s13297_s12 = inlined_call_operand.vmem [shape: f32[1,256], index: 12, kind: input, shape index: {}]   ;;  %s13298_s13 = inlined_call_operand.vmem [shape: f32[256,16], index: 13, kind: input, shape index: {}]   ;;  %s13299_s14 = inlined_call_operand.vmem [shape: f32[16,256], index: 14, kind: input, shape index: {}]   ;;  %s13300_s15 = inlined_call_operand.vmem [shape: f32[8,256], index: 15, kind: input, shape index: {}]   ;;  %s13301_s16 = inlined_call_operand.hbm [shape: f32[3,256,128], index: 16, kind: input, shape index: {}]   ;;  %s13302_s17 = inlined_call_operand.vmem [shape: f32[1,128], index: 17, kind: input, shape index: {}]   ;;  %s13303_s18 = inlined_call_operand.vmem [shape: f32[1,128], index: 18, kind: input, shape index: {}]   ;;  %s13304_s19 = inlined_call_operand.vmem [shape: f32[8,256], index: 19, kind: input, shape index: {}]   ;;  %s13305_s20 = inlined_call_operand.vmem [shape: f32[256,8], index: 20, kind: input, shape index: {}]   ;;  %s13306_s21 = inlined_call_operand.vmem [shape: f32[32,128], index: 21, kind: input, shape index: {}]   ;;  %s13307_s22 = inlined_call_operand.vmem [shape: f32[128,128], index: 22, kind: input, shape index: {}]   ;;  %s13308_s23 = inlined_call_operand.vmem [shape: f32[1,128], index: 23, kind: input, shape index: {}]   ;;  %s13309_s24 = inlined_call_operand.hbm [shape: f32[8,128], index: 24, kind: output, shape index: {}]  }
   0x1   :  { %13489 = sst [smem:[#allocation174_spill]] %s13285_s0 }
   0x2   :  { %13490 = sst [smem:[#allocation175_spill]] %s13286_s1 }
   0x3   :  { %13491 = sst [smem:[#allocation176_spill]] %s13287_s2 }
   0x4   :  { %13492 = sst [smem:[#allocation177_spill]] %s13288_s3 }
   0x5   :  { %13493 = sst [smem:[#allocation178_spill]] %s13289_s4 }
   0x6   :  { %13494 = sst [smem:[#allocation179_spill]] %s13290_s5 }
   0x7   :  { %13495 = sst [smem:[#allocation180_spill]] %s13291_s6 }
   0x8   :  { %13496 = sst [smem:[#allocation181_spill]] %s13292_s7 }
   0x9   :  { %13497 = sst [smem:[#allocation182_spill]] %s13293_s8 }
   0xa   :  { %29 = vsyncpa [#allocation4], 0 }
   0xb   :  { %30 = vsyncpa [#allocation7], 0 }
   0xc   :  { %31 = vsyncpa [#allocation5], 0  ;;  %s56_s27 = sshll.u32 %s13295_s10, 4  ;;  %s8230_s28 = smov [#allocation3]   ;;  %s57_s27 = int_to_ptr.hbm [resolvable:$true] %s56_s27 }
   0xd   :  { %s58_s6 = sshll.u32 %s8230_s28, 4  ;;  %s79_s0 = sshll.u32 %s13301_s16, 4  ;;  %s59_s6 = int_to_ptr.vmem [resolvable:$true] %s58_s6  ;;  %s80_s0 = int_to_ptr.hbm [resolvable:$true] %s79_s0 }
   0xe   :  { %s8231_s7 = smov 256   ;;  %s8232_s30 = smov 16  }
   0xf   :  { %64 = dma.hbm_to_vmem [thread:$0]  %s57_s27, 20480, %s59_s6, [#allocation4], %s8231_s7, %s8231_s7, %s8232_s30  }
  0x10   :  { %s8233_s3 = smov [#allocation6]   ;;  %s8234_s8 = smov 128  }
  0x11   :  { %s81_s25 = sshll.u32 %s8233_s3, 4  ;;  %s8235_s4 = smov 8   ;;  %s82_s25 = int_to_ptr.vmem [resolvable:$true] %s81_s25 }
  0x12   :  { %87 = dma.hbm_to_vmem [thread:$0]  %s80_s0, 12288, %s82_s25, [#allocation7], %s8234_s8, %s8234_s8, %s8235_s4  }
  0x13   :  { %8224 = dma.done.wait [#allocation4], 20480  }
  0x14   :  { %8225 = vsyncadd [#allocation4], 4294946816 }
  0x15   :  { %8226 = dma.done.wait [#allocation7], 12288  }
  0x16   :  { %8227 = vsyncadd [#allocation7], 4294955008  ;;  %vm244_vm0 = vcmask 1043456   ;;  %vm147_vm1 = vcmask 31744   ;;  %s13498_s5 = sld [smem:[#allocation175_spill]]  ;;  %vm1740_vm2 = vcmask 64512  }
  0x17   :  { %s13499_s27 = sld [smem:[#allocation178_spill]]  ;;  %vm3869_vm7 = vcmask 130048  }
  0x18   :  { %s13500_s2 = sld [smem:[#allocation174_spill]] }
  0x19   :  { %s13585_s30 = sld [smem:[#allocation179_spill]] }
  0x1a   :  { %s13587_s8 = sld [smem:[#allocation180_spill]] }
  0x1b   :  { %s13653_s16 = sld [smem:[#allocation181_spill]] }
  0x1c   :  { %v142_v0 = vld [vmem:[%s13498_s5] sm:$0xf]  ;;  %s13683_s28 = sld [smem:[#allocation182_spill]]  ;;  %s8238_s5 = smov 32  }
  0x1d   :  { %v394_v1 = vld [vmem:[%s13499_s27 + $0x4] sm:$0xf]  ;;  %7377 = vmatpush.msk.msra.mxu0 %vm244_vm0, %v142_v0  ;;  %7812 = vmatpush.msk.msra.mxu2 %vm244_vm0, %v142_v0  ;;  %v393_v5 = vld [vmem:[%s13499_s27] sm:$0xf]  ;;  %v395_v7 = vld [vmem:[%s13499_s27 + $0x8] sm:$0xf] }
  0x1e   :  { %v110_v2 = vld [vmem:[%s13500_s2] sm:$0xff]  ;;  %v8385_v3 = vld [vmem:[%s13500_s2 + $0xf0] sm:$0xff]  ;;  %v111_v4 = vld [vmem:[%s13500_s2 + $0x8] sm:$0xff]  ;;  %7410 = vmatpush.msk.msra.mxu1 %vm244_vm0, %v394_v1  ;;  %7475 = vmatpush.msk.msra.mxu3 %vm244_vm0, %v395_v7  ;;  %s14297_s0 = sld [smem:[#allocation176_spill]] }
  0x1f   :  { %7378 = vmatmul.msk.f32.vlgmr.msra.gmra.mxu0 %vm147_vm1, %v110_v2  ;;  %7408 = vmatmul.msk.f32.vlgmr.msra.gmra.mxu2 %vm147_vm1, %v8385_v3  ;;  %v112_v6 = vld [vmem:[%s13500_s2 + $0x10] sm:$0xff]  ;;  %v8410_v8 = vld [vmem:[%s13500_s2 + $0xf8] sm:$0xff]  ;;  %v8430_v10 = vld [vmem:[%s13500_s2 + $0x20] sm:$0xff]  ;;  %s14309_s1 = sld [smem:[#allocation177_spill]] }
  0x20   :  { %7411 = vmatmul.msk.f32.vlgmr.msra.gmra.mxu1 %vm147_vm1, %v111_v4  ;;  %7442 = vmatpush.msk.msrb.mxu2 %vm244_vm0, %v393_v5  ;;  %v8419_v9 = vld [vmem:[%s13500_s2 + $0x18] sm:$0xff]  ;;  %v8442_v11 = vld [vmem:[%s13500_s2 + $0x28] sm:$0xff]  ;;  %v8454_v12 = vld [vmem:[%s13500_s2 + $0x30] sm:$0xff] }
  0x21   :  { %7476 = vmatmul.msk.f32.vlgmr.msra.gmra.mxu3 %vm147_vm1, %v112_v6  ;;  %v8467_v13 = vld [vmem:[%s13500_s2 + $0x38] sm:$0xff]  ;;  %v8480_v14 = vld [vmem:[%s13500_s2 + $0x40] sm:$0xff]  ;;  %v8493_v15 = vld [vmem:[%s13500_s2 + $0x48] sm:$0xff] }
  0x22   :  { %v8506_v16 = vld [vmem:[%s13500_s2 + $0x50] sm:$0xff]  ;;  %v8519_v17 = vld [vmem:[%s13500_s2 + $0x58] sm:$0xff]  ;;  %v8532_v18 = vld [vmem:[%s13500_s2 + $0x60] sm:$0xff] }
  0x23   :  { %v8545_v19 = vld [vmem:[%s13500_s2 + $0x68] sm:$0xff]  ;;  %v8558_v20 = vld [vmem:[%s13500_s2 + $0x70] sm:$0xff]  ;;  %v8571_v21 = vld [vmem:[%s13500_s2 + $0x78] sm:$0xff] }
  0x24   :  { %v8584_v22 = vld [vmem:[%s13500_s2 + $0x80] sm:$0xff]  ;;  %v8597_v23 = vld [vmem:[%s13500_s2 + $0x88] sm:$0xff]  ;;  %v8612_v26 = vld [vmem:[%s13500_s2 + $0x90] sm:$0xff] }
  0x25   :  { %v8629_v31 = vld [vmem:[%s13500_s2 + $0x98] sm:$0xff]  ;;  %v8646_v36 = vld [vmem:[%s13500_s2 + $0xa0] sm:$0xff]  ;;  %v8663_v43 = vld [vmem:[%s13500_s2 + $0xa8] sm:$0xff] }
  0x26   :  { %v8680_v50 = vld [vmem:[%s13500_s2 + $0xb0] sm:$0xff]  ;;  %v8697_v57 = vld [vmem:[%s13500_s2 + $0xb8] sm:$0xff]  ;;  %v8714_v0 = vld [vmem:[%s13500_s2 + $0xc0] sm:$0xff] }
  0x27   :  { %7379 = vmatmul.msk.f32.gmra.mxu0 %vm147_vm1, %v111_v4  ;;  %7409 = vmatmul.msk.f32.gmra.mxu2 %vm147_vm1, %v8410_v8 }
  0x28   :  { %7412 = vmatmul.msk.f32.gmra.mxu1 %vm147_vm1, %v112_v6 }
  0x29   :  { %7477 = vmatmul.msk.f32.gmra.mxu3 %vm147_vm1, %v8419_v9 }
  0x2f   :  { %7380 = vmatmul.msk.f32.gmra.mxu0 %vm147_vm1, %v112_v6  ;;  %7443 = vmatmul.msk.f32.vlgmr.msrb.gmra.mxu2 %vm147_vm1, %v110_v2 }
  0x30   :  { %7413 = vmatmul.msk.f32.gmra.mxu1 %vm147_vm1, %v8419_v9 }
  0x31   :  { %7478 = vmatmul.msk.f32.gmra.mxu3 %vm147_vm1, %v8430_v10 }
  0x37   :  { %7381 = vmatmul.msk.f32.gmra.mxu0 %vm147_vm1, %v8419_v9  ;;  %7444 = vmatmul.msk.f32.gmra.mxu2 %vm147_vm1, %v111_v4 }
  0x38   :  { %7414 = vmatmul.msk.f32.gmra.mxu1 %vm147_vm1, %v8430_v10 }
  0x39   :  { %7479 = vmatmul.msk.f32.gmra.mxu3 %vm147_vm1, %v8442_v11 }
  0x3f   :  { %7382 = vmatmul.msk.f32.gmra.mxu0 %vm147_vm1, %v8430_v10  ;;  %7445 = vmatmul.msk.f32.gmra.mxu2 %vm147_vm1, %v112_v6 }
  0x40   :  { %7415 = vmatmul.msk.f32.gmra.mxu1 %vm147_vm1, %v8442_v11 }
  0x41   :  { %7480 = vmatmul.msk.f32.gmra.mxu3 %vm147_vm1, %v8454_v12 }
  0x47   :  { %7383 = vmatmul.msk.f32.gmra.mxu0 %vm147_vm1, %v8442_v11  ;;  %7446 = vmatmul.msk.f32.gmra.mxu2 %vm147_vm1, %v8419_v9 }
  0x48   :  { %7416 = vmatmul.msk.f32.gmra.mxu1 %vm147_vm1, %v8454_v12 }
  0x49   :  { %7481 = vmatmul.msk.f32.gmra.mxu3 %vm147_vm1, %v8467_v13 }
  0x4f   :  { %7384 = vmatmul.msk.f32.gmra.mxu0 %vm147_vm1, %v8454_v12  ;;  %7447 = vmatmul.msk.f32.gmra.mxu2 %vm147_vm1, %v8430_v10 }
  0x50   :  { %7417 = vmatmul.msk.f32.gmra.mxu1 %vm147_vm1, %v8467_v13 }
  0x51   :  { %7482 = vmatmul.msk.f32.gmra.mxu3 %vm147_vm1, %v8480_v14 }
  0x57   :  { %7385 = vmatmul.msk.f32.gmra.mxu0 %vm147_vm1, %v8467_v13  ;;  %7448 = vmatmul.msk.f32.gmra.mxu2 %vm147_vm1, %v8442_v11 }
  0x58   :  { %7418 = vmatmul.msk.f32.gmra.mxu1 %vm147_vm1, %v8480_v14 }
  0x59   :  { %7483 = vmatmul.msk.f32.gmra.mxu3 %vm147_vm1, %v8493_v15 }
  0x5f   :  { %7386 = vmatmul.msk.f32.gmra.mxu0 %vm147_vm1, %v8480_v14  ;;  %7449 = vmatmul.msk.f32.gmra.mxu2 %vm147_vm1, %v8454_v12 }
  0x60   :  { %7419 = vmatmul.msk.f32.gmra.mxu1 %vm147_vm1, %v8493_v15 }
  0x61   :  { %7484 = vmatmul.msk.f32.gmra.mxu3 %vm147_vm1, %v8506_v16 }
  0x67   :  { %7387 = vmatmul.msk.f32.gmra.mxu0 %vm147_vm1, %v8493_v15  ;;  %7450 = vmatmul.msk.f32.gmra.mxu2 %vm147_vm1, %v8467_v13 }
  0x68   :  { %7420 = vmatmul.msk.f32.gmra.mxu1 %vm147_vm1, %v8506_v16 }
  0x69   :  { %7485 = vmatmul.msk.f32.gmra.mxu3 %vm147_vm1, %v8519_v17 }
  0x6f   :  { %7388 = vmatmul.msk.f32.gmra.mxu0 %vm147_vm1, %v8506_v16  ;;  %7451 = vmatmul.msk.f32.gmra.mxu2 %vm147_vm1, %v8480_v14 }
  0x70   :  { %7421 = vmatmul.msk.f32.gmra.mxu1 %vm147_vm1, %v8519_v17 }
  0x71   :  { %7486 = vmatmul.msk.f32.gmra.mxu3 %vm147_vm1, %v8532_v18 }
  0x77   :  { %7389 = vmatmul.msk.f32.gmra.mxu0 %vm147_vm1, %v8519_v17  ;;  %7452 = vmatmul.msk.f32.gmra.mxu2 %vm147_vm1, %v8493_v15 }
  0x78   :  { %7422 = vmatmul.msk.f32.gmra.mxu1 %vm147_vm1, %v8532_v18 }
  0x79   :  { %7487 = vmatmul.msk.f32.gmra.mxu3 %vm147_vm1, %v8545_v19 }
  0x7f   :  { %7390 = vmatmul.msk.f32.gmra.mxu0 %vm147_vm1, %v8532_v18  ;;  %7453 = vmatmul.msk.f32.gmra.mxu2 %vm147_vm1, %v8506_v16 }
  0x80   :  { %7423 = vmatmul.msk.f32.gmra.mxu1 %vm147_vm1, %v8545_v19 }
  0x81   :  { %7488 = vmatmul.msk.f32.gmra.mxu3 %vm147_vm1, %v8558_v20 }
  0x87   :  { %7391 = vmatmul.msk.f32.gmra.mxu0 %vm147_vm1, %v8545_v19  ;;  %7454 = vmatmul.msk.f32.gmra.mxu2 %vm147_vm1, %v8519_v17 }
  0x88   :  { %7424 = vmatmul.msk.f32.gmra.mxu1 %vm147_vm1, %v8558_v20 }
  0x89   :  { %7489 = vmatmul.msk.f32.gmra.mxu3 %vm147_vm1, %v8571_v21 }
  0x8f   :  { %7392 = vmatmul.msk.f32.gmra.mxu0 %vm147_vm1, %v8558_v20  ;;  %7455 = vmatmul.msk.f32.gmra.mxu2 %vm147_vm1, %v8532_v18 }
  0x90   :  { %7425 = vmatmul.msk.f32.gmra.mxu1 %vm147_vm1, %v8571_v21 }
  0x91   :  { %7490 = vmatmul.msk.f32.gmra.mxu3 %vm147_vm1, %v8584_v22 }
  0x97   :  { %7393 = vmatmul.msk.f32.gmra.mxu0 %vm147_vm1, %v8571_v21  ;;  %7456 = vmatmul.msk.f32.gmra.mxu2 %vm147_vm1, %v8545_v19 }
  0x98   :  { %7426 = vmatmul.msk.f32.gmra.mxu1 %vm147_vm1, %v8584_v22 }
  0x99   :  { %7491 = vmatmul.msk.f32.gmra.mxu3 %vm147_vm1, %v8597_v23 }
  0x9c   :  { %v8601_v24 = vpop.f32.mrf.mxu0 }
  0x9d   :  { %13501 = vst [vmem:[#allocation12_spill] sm:$0xff] %v8601_v24  ;;  %v426_v25 = vpop.f32.mrf.mxu1 }
  0x9f   :  { %7394 = vmatmul.msk.f32.gmra.mxu0 %vm147_vm1, %v8584_v22  ;;  %7457 = vmatmul.msk.f32.gmra.mxu2 %vm147_vm1, %v8558_v20 }
  0xa0   :  { %7427 = vmatmul.msk.f32.gmra.mxu1 %vm147_vm1, %v8597_v23 }
  0xa1   :  { %7492 = vmatmul.msk.f32.gmra.mxu3 %vm147_vm1, %v8612_v26 }
  0xa2   :  { %v8616_v27 = vpop.f32.mrf.mxu2 }
  0xa3   :  { %13502 = vst [vmem:[#allocation13_spill] sm:$0xff] %v8616_v27 }
  0xa4   :  { %v8618_v28 = vpop.f32.mrf.mxu0  ;;  %v658_v30 = vpop.f32.mrf.mxu3 }
  0xa5   :  { %13503 = vst [vmem:[#allocation14_spill] sm:$0xff] %v8618_v28  ;;  %v429_v29 = vpop.f32.mrf.mxu1 }
  0xa7   :  { %7395 = vmatmul.msk.f32.gmra.mxu0 %vm147_vm1, %v8597_v23  ;;  %7458 = vmatmul.msk.f32.gmra.mxu2 %vm147_vm1, %v8571_v21 }
  0xa8   :  { %7428 = vmatmul.msk.f32.gmra.mxu1 %vm147_vm1, %v8612_v26 }
  0xa9   :  { %7493 = vmatmul.msk.f32.gmra.mxu3 %vm147_vm1, %v8629_v31 }
  0xaa   :  { %v8633_v32 = vpop.f32.mrf.mxu2 }
  0xab   :  { %13504 = vst [vmem:[#allocation15_spill] sm:$0xff] %v8633_v32 }
  0xac   :  { %v8635_v33 = vpop.f32.mrf.mxu0  ;;  %v661_v35 = vpop.f32.mrf.mxu3 }
  0xad   :  { %13505 = vst [vmem:[#allocation16_spill] sm:$0xff] %v8635_v33  ;;  %v432_v34 = vpop.f32.mrf.mxu1 }
  0xaf   :  { %7396 = vmatmul.msk.f32.gmra.mxu0 %vm147_vm1, %v8612_v26  ;;  %7459 = vmatmul.msk.f32.gmra.mxu2 %vm147_vm1, %v8584_v22 }
  0xb0   :  { %7429 = vmatmul.msk.f32.gmra.mxu1 %vm147_vm1, %v8629_v31 }
  0xb1   :  { %7494 = vmatmul.msk.f32.gmra.mxu3 %vm147_vm1, %v8646_v36 }
  0xb2   :  { %v542_v37 = vpop.f32.mrf.mxu2 }
  0xb3   :  { %v543_v38 = vadd.f32 %v542_v37, %v426_v25  ;;  %v8731_v25 = vld [vmem:[%s13500_s2 + $0xc8] sm:$0xff] }
  0xb4   :  { %v8650_v39 = vpop.f32.mrf.mxu0  ;;  %v664_v41 = vpop.f32.mrf.mxu3 }
  0xb5   :  { %13506 = vst [vmem:[#allocation17_spill] sm:$0xff] %v8650_v39  ;;  %v435_v40 = vpop.f32.mrf.mxu1  ;;  %v8652_v42 = vadd.f32 %v658_v30, %v543_v38 }
  0xb7   :  { %7397 = vmatmul.msk.f32.gmra.mxu0 %vm147_vm1, %v8629_v31  ;;  %7460 = vmatmul.msk.f32.gmra.mxu2 %vm147_vm1, %v8597_v23 }
  0xb8   :  { %7430 = vmatmul.msk.f32.gmra.mxu1 %vm147_vm1, %v8646_v36 }
  0xb9   :  { %7495 = vmatmul.msk.f32.gmra.mxu3 %vm147_vm1, %v8663_v43 }
  0xba   :  { %v545_v44 = vpop.f32.mrf.mxu2 }
  0xbb   :  { %v546_v45 = vadd.f32 %v545_v44, %v429_v29 }
  0xbc   :  { %v8667_v46 = vpop.f32.mrf.mxu0  ;;  %v667_v48 = vpop.f32.mrf.mxu3 }
  0xbd   :  { %13507 = vst [vmem:[#allocation18_spill] sm:$0xff] %v8667_v46  ;;  %v438_v47 = vpop.f32.mrf.mxu1  ;;  %v8669_v49 = vadd.f32 %v661_v35, %v546_v45 }
  0xbf   :  { %7398 = vmatmul.msk.f32.gmra.mxu0 %vm147_vm1, %v8646_v36  ;;  %7461 = vmatmul.msk.f32.gmra.mxu2 %vm147_vm1, %v8612_v26 }
  0xc0   :  { %7431 = vmatmul.msk.f32.gmra.mxu1 %vm147_vm1, %v8663_v43 }
  0xc1   :  { %7496 = vmatmul.msk.f32.gmra.mxu3 %vm147_vm1, %v8680_v50 }
  0xc2   :  { %v548_v51 = vpop.f32.mrf.mxu2 }
  0xc3   :  { %v549_v52 = vadd.f32 %v548_v51, %v432_v34 }
  0xc4   :  { %v8684_v53 = vpop.f32.mrf.mxu0  ;;  %v670_v55 = vpop.f32.mrf.mxu3 }
  0xc5   :  { %13508 = vst [vmem:[#allocation19_spill] sm:$0xff] %v8684_v53  ;;  %v441_v54 = vpop.f32.mrf.mxu1  ;;  %v8686_v56 = vadd.f32 %v664_v41, %v549_v52  ;;  %v8751_v41 = vld [vmem:[%s13500_s2 + $0xd0] sm:$0xff] }
  0xc7   :  { %7399 = vmatmul.msk.f32.gmra.mxu0 %vm147_vm1, %v8663_v43  ;;  %7462 = vmatmul.msk.f32.gmra.mxu2 %vm147_vm1, %v8629_v31 }
  0xc8   :  { %7432 = vmatmul.msk.f32.gmra.mxu1 %vm147_vm1, %v8680_v50 }
  0xc9   :  { %7497 = vmatmul.msk.f32.gmra.mxu3 %vm147_vm1, %v8697_v57 }
  0xca   :  { %v551_v58 = vpop.f32.mrf.mxu2 }
  0xcb   :  { %v552_v59 = vadd.f32 %v551_v58, %v435_v40  ;;  %v396_v40 = vld [vmem:[%s13499_s27 + $0xc] sm:$0xf] }
  0xcc   :  { %v8701_v60 = vpop.f32.mrf.mxu0  ;;  %v673_v62 = vpop.f32.mrf.mxu3  ;;  %7506 = vmatpush.msk.msrb.mxu0 %vm244_vm0, %v396_v40 }
  0xcd   :  { %13509 = vst [vmem:[#allocation20_spill] sm:$0xff] %v8701_v60  ;;  %v444_v61 = vpop.f32.mrf.mxu1  ;;  %v8703_v63 = vadd.f32 %v667_v48, %v552_v59 }
  0xcf   :  { %7400 = vmatmul.msk.f32.gmra.mxu0 %vm147_vm1, %v8680_v50  ;;  %7463 = vmatmul.msk.f32.gmra.mxu2 %vm147_vm1, %v8646_v36 }
  0xd0   :  { %7433 = vmatmul.msk.f32.gmra.mxu1 %vm147_vm1, %v8697_v57 }
  0xd1   :  { %7498 = vmatmul.msk.f32.gmra.mxu3 %vm147_vm1, %v8714_v0 }
  0xd2   :  { %v554_v1 = vpop.f32.mrf.mxu2 }
  0xd3   :  { %v555_v2 = vadd.f32 %v554_v1, %v438_v47 }
  0xd4   :  { %v8718_v4 = vpop.f32.mrf.mxu0  ;;  %v676_v6 = vpop.f32.mrf.mxu3 }
  0xd5   :  { %13510 = vst [vmem:[#allocation21_spill] sm:$0xff] %v8718_v4  ;;  %v447_v5 = vpop.f32.mrf.mxu1  ;;  %v8720_v7 = vadd.f32 %v670_v55, %v555_v2  ;;  %v8786_v2 = vld [vmem:[%s13500_s2 + $0xe0] sm:$0xff] }
  0xd7   :  { %7401 = vmatmul.msk.f32.gmra.mxu0 %vm147_vm1, %v8697_v57  ;;  %7464 = vmatmul.msk.f32.gmra.mxu2 %vm147_vm1, %v8663_v43 }
  0xd8   :  { %7434 = vmatmul.msk.f32.gmra.mxu1 %vm147_vm1, %v8714_v0 }
  0xd9   :  { %7499 = vmatmul.msk.f32.gmra.mxu3 %vm147_vm1, %v8731_v25 }
  0xda   :  { %v557_v29 = vpop.f32.mrf.mxu2 }
  0xdb   :  { %v558_v30 = vadd.f32 %v557_v29, %v441_v54  ;;  %v8769_v54 = vld [vmem:[%s13500_s2 + $0xd8] sm:$0xff] }
  0xdc   :  { %v8735_v34 = vpop.f32.mrf.mxu0  ;;  %v679_v37 = vpop.f32.mrf.mxu3 }
  0xdd   :  { %13511 = vst [vmem:[#allocation22_spill] sm:$0xff] %v8735_v34  ;;  %v450_v35 = vpop.f32.mrf.mxu1  ;;  %v8737_v38 = vadd.f32 %v673_v62, %v558_v30 }
  0xdf   :  { %7402 = vmatmul.msk.f32.gmra.mxu0 %vm147_vm1, %v8714_v0  ;;  %7465 = vmatmul.msk.f32.gmra.mxu2 %vm147_vm1, %v8680_v50 }
  0xe0   :  { %7435 = vmatmul.msk.f32.gmra.mxu1 %vm147_vm1, %v8731_v25 }
  0xe1   :  { %7500 = vmatmul.msk.f32.gmra.mxu3 %vm147_vm1, %v8751_v41 }
  0xe2   :  { %v560_v44 = vpop.f32.mrf.mxu2 }
  0xe3   :  { %v561_v45 = vadd.f32 %v560_v44, %v444_v61  ;;  %v8803_v44 = vld [vmem:[%s13500_s2 + $0xe8] sm:$0xff] }
  0xe4   :  { %v8756_v47 = vpop.f32.mrf.mxu0  ;;  %v682_v51 = vpop.f32.mrf.mxu3 }
  0xe5   :  { %13512 = vst [vmem:[#allocation23_spill] sm:$0xff] %v8756_v47  ;;  %v453_v48 = vpop.f32.mrf.mxu1  ;;  %v8758_v52 = vadd.f32 %v676_v6, %v561_v45 }
  0xe7   :  { %7403 = vmatmul.msk.f32.gmra.mxu0 %vm147_vm1, %v8731_v25  ;;  %7466 = vmatmul.msk.f32.gmra.mxu2 %vm147_vm1, %v8697_v57 }
  0xe8   :  { %7436 = vmatmul.msk.f32.gmra.mxu1 %vm147_vm1, %v8751_v41 }
  0xe9   :  { %7501 = vmatmul.msk.f32.gmra.mxu3 %vm147_vm1, %v8769_v54 }
  0xea   :  { %v563_v55 = vpop.f32.mrf.mxu2 }
  0xeb   :  { %v564_v58 = vadd.f32 %v563_v55, %v447_v5 }
  0xec   :  { %v8773_v59 = vpop.f32.mrf.mxu0  ;;  %v685_v62 = vpop.f32.mrf.mxu3 }
  0xed   :  { %13513 = vst [vmem:[#allocation24_spill] sm:$0xff] %v8773_v59  ;;  %v456_v61 = vpop.f32.mrf.mxu1  ;;  %v8775_v1 = vadd.f32 %v679_v37, %v564_v58 }
  0xef   :  { %7404 = vmatmul.msk.f32.gmra.mxu0 %vm147_vm1, %v8751_v41  ;;  %7467 = vmatmul.msk.f32.gmra.mxu2 %vm147_vm1, %v8714_v0 }
  0xf0   :  { %7437 = vmatmul.msk.f32.gmra.mxu1 %vm147_vm1, %v8769_v54 }
  0xf1   :  { %7502 = vmatmul.msk.f32.gmra.mxu3 %vm147_vm1, %v8786_v2 }
  0xf2   :  { %v566_v5 = vpop.f32.mrf.mxu2 }
  0xf3   :  { %v567_v6 = vadd.f32 %v566_v5, %v450_v35 }
  0xf4   :  { %v8790_v29 = vpop.f32.mrf.mxu0  ;;  %v688_v37 = vpop.f32.mrf.mxu3 }
  0xf5   :  { %13514 = vst [vmem:[#allocation25_spill] sm:$0xff] %v8790_v29  ;;  %v459_v30 = vpop.f32.mrf.mxu1  ;;  %v8792_v40 = vadd.f32 %v682_v51, %v567_v6  ;;  %v397_v6 = vld [vmem:[%s13499_s27 + $0x10] sm:$0xf] }
  0xf6   :  { %7536 = vmatpush.msk.msrb.mxu1 %vm244_vm0, %v397_v6 }
  0xf7   :  { %7405 = vmatmul.msk.f32.gmra.mxu0 %vm147_vm1, %v8769_v54  ;;  %7468 = vmatmul.msk.f32.gmra.mxu2 %vm147_vm1, %v8731_v25 }
  0xf8   :  { %7438 = vmatmul.msk.f32.gmra.mxu1 %vm147_vm1, %v8786_v2 }
  0xf9   :  { %7503 = vmatmul.msk.f32.gmra.mxu3 %vm147_vm1, %v8803_v44 }
  0xfa   :  { %v569_v35 = vpop.f32.mrf.mxu2 }
  0xfb   :  { %v570_v45 = vadd.f32 %v569_v35, %v453_v48 }
  0xfc   :  { %v8807_v51 = vpop.f32.mrf.mxu0  ;;  %v691_v58 = vpop.f32.mrf.mxu3 }
  0xfd   :  { %13515 = vst [vmem:[#allocation26_spill] sm:$0xff] %v8807_v51  ;;  %v462_v55 = vpop.f32.mrf.mxu1  ;;  %v8809_v5 = vadd.f32 %v685_v62, %v570_v45 }
  0xff   :  { %7406 = vmatmul.msk.f32.gmra.mxu0 %vm147_vm1, %v8786_v2  ;;  %7469 = vmatmul.msk.f32.gmra.mxu2 %vm147_vm1, %v8751_v41 }
 0x100   :  { %7439 = vmatmul.msk.f32.gmra.mxu1 %vm147_vm1, %v8803_v44 }
 0x101   :  { %7504 = vmatmul.msk.f32.gmra.mxu3 %vm147_vm1, %v8385_v3 }
 0x102   :  { %v572_v48 = vpop.f32.mrf.mxu2 }
 0x103   :  { %v573_v62 = vadd.f32 %v572_v48, %v456_v61 }
 0x104   :  { %v8823_v35 = vpop.f32.mrf.mxu0  ;;  %v694_v32 = vpop.f32.mrf.mxu3 }
 0x105   :  { %13516 = vst [vmem:[#allocation27_spill] sm:$0xff] %v8823_v35  ;;  %v465_v45 = vpop.f32.mrf.mxu1  ;;  %v8825_v27 = vadd.f32 %v688_v37, %v573_v62  ;;  %v398_v62 = vld [vmem:[%s13499_s27 + $0x14] sm:$0xf] }
 0x106   :  { %7565 = vmatpush.msk.msra.mxu2 %vm244_vm0, %v398_v62 }
 0x107   :  { %7407 = vmatmul.msk.f32.gmra.mxu0 %vm147_vm1, %v8803_v44  ;;  %7470 = vmatmul.msk.f32.gmra.mxu2 %vm147_vm1, %v8769_v54 }
 0x108   :  { %7440 = vmatmul.msk.f32.gmra.mxu1 %vm147_vm1, %v8385_v3 }
 0x109   :  { %7505 = vmatmul.msk.f32.gmra.mxu3 %vm147_vm1, %v8410_v8 }
 0x10a   :  { %v575_v6 = vpop.f32.mrf.mxu2 }
 0x10b   :  { %v576_v61 = vadd.f32 %v575_v6, %v459_v30  ;;  %v399_v30 = vld [vmem:[%s13499_s27 + $0x18] sm:$0xf] }
 0x10c   :  { %v8835_v48 = vpop.f32.mrf.mxu0  ;;  %v697_v51 = vpop.f32.mrf.mxu3  ;;  %7593 = vmatpush.msk.msrb.mxu3 %vm244_vm0, %v399_v30 }
 0x10d   :  { %13517 = vst [vmem:[#allocation28_spill] sm:$0xff] %v8835_v48  ;;  %v468_v35 = vpop.f32.mrf.mxu1  ;;  %v8837_v37 = vadd.f32 %v691_v58, %v576_v61  ;;  %v13315_v58 = vmov 0.0  }
 0x10f   :  { %7507 = vmatmul.msk.f32.vlgmr.msrb.gmra.mxu0 %vm147_vm1, %v8419_v9  ;;  %7471 = vmatmul.msk.f32.gmra.mxu2 %vm147_vm1, %v8786_v2 }
 0x110   :  { %7441 = vmatmul.msk.f32.gmra.mxu1 %vm147_vm1, %v8410_v8 }
 0x111   :  { %747 = vmatmul.f32.gmra.mxu3 %v13315_v58 }
 0x112   :  { %v578_v6 = vpop.f32.mrf.mxu2 }
 0x113   :  { %v579_v61 = vadd.f32 %v578_v6, %v462_v55 }
 0x114   :  { %v8854_v9 = vpop.f32.mrf.mxu0  ;;  %v700_v48 = vpop.f32.mrf.mxu3 }
 0x115   :  { %13518 = vst [vmem:[#allocation29_spill] sm:$0xff] %v8854_v9  ;;  %v471_v62 = vpop.f32.mrf.mxu1  ;;  %v8856_v29 = vadd.f32 %v694_v32, %v579_v61 }
 0x117   :  { %7508 = vmatmul.msk.f32.gmra.mxu0 %vm147_vm1, %v8430_v10  ;;  %7472 = vmatmul.msk.f32.gmra.mxu2 %vm147_vm1, %v8803_v44 }
 0x118   :  { %518 = vmatmul.f32.gmra.mxu1 %v13315_v58 }
 0x119   :  { %750 = vmatmul.f32.gmra.mxu3 %v13315_v58 }
 0x11a   :  { %v581_v30 = vpop.f32.mrf.mxu2 }
 0x11b   :  { %v582_v59 = vadd.f32 %v581_v30, %v465_v45 }
 0x11c   :  { %v8864_v47 = vpop.f32.mrf.mxu0  ;;  %v703_v6 = vpop.f32.mrf.mxu3 }
 0x11d   :  { %13519 = vst [vmem:[#allocation30_spill] sm:$0xff] %v8864_v47  ;;  %v474_v55 = vpop.f32.mrf.mxu1  ;;  %v8866_v9 = vadd.f32 %v697_v51, %v582_v59 }
 0x11f   :  { %7509 = vmatmul.msk.f32.gmra.mxu0 %vm147_vm1, %v8442_v11  ;;  %7473 = vmatmul.msk.f32.gmra.mxu2 %vm147_vm1, %v8385_v3 }
 0x120   :  { %7537 = vmatmul.msk.f32.vlgmr.msrb.gmra.mxu1 %vm147_vm1, %v8430_v10 }
 0x121   :  { %7594 = vmatmul.msk.f32.vlgmr.msrb.gmra.mxu3 %vm147_vm1, %v8454_v12 }
 0x122   :  { %v584_v32 = vpop.f32.mrf.mxu2 }
 0x123   :  { %v585_v45 = vadd.f32 %v584_v32, %v468_v35 }
 0x124   :  { %v8876_v61 = vpop.f32.mrf.mxu0  ;;  %v706_v58 = vpop.f32.mrf.mxu3 }
 0x125   :  { %13520 = vst [vmem:[#allocation31_spill] sm:$0xff] %v8876_v61  ;;  %v477_v30 = vpop.f32.mrf.mxu1  ;;  %v8878_v59 = vadd.f32 %v700_v48, %v585_v45 }
 0x127   :  { %7510 = vmatmul.msk.f32.gmra.mxu0 %vm147_vm1, %v8454_v12  ;;  %7474 = vmatmul.msk.f32.gmra.mxu2 %vm147_vm1, %v8410_v8 }
 0x128   :  { %7538 = vmatmul.msk.f32.gmra.mxu1 %vm147_vm1, %v8442_v11 }
 0x129   :  { %7595 = vmatmul.msk.f32.gmra.mxu3 %vm147_vm1, %v8467_v13 }
 0x12a   :  { %v587_v3 = vpop.f32.mrf.mxu2 }
 0x12b   :  { %v588_v10 = vadd.f32 %v587_v3, %v471_v62 }
 0x12c   :  { %v8888_v51 = vpop.f32.mrf.mxu0  ;;  %v709_v32 = vpop.f32.mrf.mxu3 }
 0x12d   :  { %13521 = vst [vmem:[#allocation32_spill] sm:$0xff] %v8888_v51  ;;  %v480_v35 = vpop.f32.mrf.mxu1  ;;  %v8890_v48 = vadd.f32 %v703_v6, %v588_v10 }
 0x12f   :  { %7511 = vmatmul.msk.f32.gmra.mxu0 %vm147_vm1, %v8467_v13  ;;  %7566 = vmatmul.msk.f32.vlgmr.msra.gmra.mxu2 %vm147_vm1, %v8442_v11 }
 0x130   :  { %7539 = vmatmul.msk.f32.gmra.mxu1 %vm147_vm1, %v8454_v12 }
 0x131   :  { %7596 = vmatmul.msk.f32.gmra.mxu3 %vm147_vm1, %v8480_v14 }
 0x132   :  { %v590_v8 = vpop.f32.mrf.mxu2 }
 0x133   :  { %v591_v62 = vadd.f32 %v590_v8, %v474_v55 }
 0x134   :  { %v8900_v45 = vpop.f32.mrf.mxu0  ;;  %v712_v51 = vpop.f32.mrf.mxu3 }
 0x135   :  { %13522 = vst [vmem:[#allocation33_spill] sm:$0xff] %v8900_v45  ;;  %v483_v3 = vpop.f32.mrf.mxu1  ;;  %v8902_v6 = vadd.f32 %v706_v58, %v591_v62 }
 0x137   :  { %13523 = vst [vmem:[#allocation34_spill] sm:$0xff] %v8902_v6  ;;  %7512 = vmatmul.msk.f32.gmra.mxu0 %vm147_vm1, %v8480_v14  ;;  %7567 = vmatmul.msk.f32.gmra.mxu2 %vm147_vm1, %v8454_v12 }
 0x138   :  { %7540 = vmatmul.msk.f32.gmra.mxu1 %vm147_vm1, %v8467_v13 }
 0x139   :  { %7597 = vmatmul.msk.f32.gmra.mxu3 %vm147_vm1, %v8493_v15 }
 0x13a   :  { %v593_v11 = vpop.f32.mrf.mxu2 }
 0x13b   :  { %v594_v55 = vadd.f32 %v593_v11, %v477_v30 }
 0x13c   :  { %v8912_v10 = vpop.f32.mrf.mxu0  ;;  %v715_v45 = vpop.f32.mrf.mxu3 }
 0x13d   :  { %13524 = vst [vmem:[#allocation35_spill] sm:$0xff] %v8912_v10  ;;  %v486_v8 = vpop.f32.mrf.mxu1  ;;  %v8914_v58 = vadd.f32 %v709_v32, %v594_v55 }
 0x13f   :  { %13525 = vst [vmem:[#allocation36_spill] sm:$0xff] %v8914_v58  ;;  %7513 = vmatmul.msk.f32.gmra.mxu0 %vm147_vm1, %v8493_v15  ;;  %7568 = vmatmul.msk.f32.gmra.mxu2 %vm147_vm1, %v8467_v13  ;;  %v8108_v58 = vld [vmem:[%s13500_s2 + $0x60] sm:$0xff] }
 0x140   :  { %7541 = vmatmul.msk.f32.gmra.mxu1 %vm147_vm1, %v8480_v14 }
 0x141   :  { %7598 = vmatmul.msk.f32.gmra.mxu3 %vm147_vm1, %v8506_v16 }
 0x142   :  { %v596_v12 = vpop.f32.mrf.mxu2 }
 0x143   :  { %v597_v30 = vadd.f32 %v596_v12, %v480_v35 }
 0x144   :  { %v8924_v62 = vpop.f32.mrf.mxu0  ;;  %v718_v10 = vpop.f32.mrf.mxu3 }
 0x145   :  { %13526 = vst [vmem:[#allocation37_spill] sm:$0xff] %v8924_v62  ;;  %v489_v11 = vpop.f32.mrf.mxu1  ;;  %v8926_v32 = vadd.f32 %v712_v51, %v597_v30 }
 0x147   :  { %13527 = vst [vmem:[#allocation38_spill] sm:$0xff] %v8926_v32  ;;  %7514 = vmatmul.msk.f32.gmra.mxu0 %vm147_vm1, %v8506_v16  ;;  %7569 = vmatmul.msk.f32.gmra.mxu2 %vm147_vm1, %v8480_v14 }
 0x148   :  { %7542 = vmatmul.msk.f32.gmra.mxu1 %vm147_vm1, %v8493_v15 }
 0x149   :  { %7599 = vmatmul.msk.f32.gmra.mxu3 %vm147_vm1, %v8519_v17 }
 0x14a   :  { %v599_v13 = vpop.f32.mrf.mxu2 }
 0x14b   :  { %v600_v35 = vadd.f32 %v599_v13, %v483_v3 }
 0x14c   :  { %v8936_v55 = vpop.f32.mrf.mxu0  ;;  %v721_v62 = vpop.f32.mrf.mxu3 }
 0x14d   :  { %13528 = vst [vmem:[#allocation39_spill] sm:$0xff] %v8936_v55  ;;  %v492_v12 = vpop.f32.mrf.mxu1  ;;  %v8938_v51 = vadd.f32 %v715_v45, %v600_v35 }
 0x14f   :  { %13529 = vst [vmem:[#allocation40_spill] sm:$0xff] %v8938_v51  ;;  %7515 = vmatmul.msk.f32.gmra.mxu0 %vm147_vm1, %v8519_v17  ;;  %7570 = vmatmul.msk.f32.gmra.mxu2 %vm147_vm1, %v8493_v15 }
 0x150   :  { %7543 = vmatmul.msk.f32.gmra.mxu1 %vm147_vm1, %v8506_v16 }
 0x151   :  { %7600 = vmatmul.msk.f32.gmra.mxu3 %vm147_vm1, %v8532_v18 }
 0x152   :  { %v602_v14 = vpop.f32.mrf.mxu2 }
 0x153   :  { %v603_v3 = vadd.f32 %v602_v14, %v486_v8 }
 0x154   :  { %v8948_v30 = vpop.f32.mrf.mxu0  ;;  %v724_v55 = vpop.f32.mrf.mxu3 }
 0x155   :  { %13530 = vst [vmem:[#allocation41_spill] sm:$0xff] %v8948_v30  ;;  %v495_v13 = vpop.f32.mrf.mxu1  ;;  %v8950_v45 = vadd.f32 %v718_v10, %v603_v3 }
 0x157   :  { %13531 = vst [vmem:[#allocation42_spill] sm:$0xff] %v8950_v45  ;;  %7516 = vmatmul.msk.f32.gmra.mxu0 %vm147_vm1, %v8532_v18  ;;  %7571 = vmatmul.msk.f32.gmra.mxu2 %vm147_vm1, %v8506_v16 }
 0x158   :  { %7544 = vmatmul.msk.f32.gmra.mxu1 %vm147_vm1, %v8519_v17 }
 0x159   :  { %7601 = vmatmul.msk.f32.gmra.mxu3 %vm147_vm1, %v8545_v19 }
 0x15a   :  { %v605_v15 = vpop.f32.mrf.mxu2 }
 0x15b   :  { %v606_v8 = vadd.f32 %v605_v15, %v489_v11 }
 0x15c   :  { %v8960_v35 = vpop.f32.mrf.mxu0  ;;  %v727_v30 = vpop.f32.mrf.mxu3 }
 0x15d   :  { %13532 = vst [vmem:[#allocation43_spill] sm:$0xff] %v8960_v35  ;;  %v498_v14 = vpop.f32.mrf.mxu1  ;;  %v8962_v10 = vadd.f32 %v721_v62, %v606_v8 }
 0x15f   :  { %13533 = vst [vmem:[#allocation44_spill] sm:$0xff] %v8962_v10  ;;  %7517 = vmatmul.msk.f32.gmra.mxu0 %vm147_vm1, %v8545_v19  ;;  %7572 = vmatmul.msk.f32.gmra.mxu2 %vm147_vm1, %v8519_v17 }
 0x160   :  { %7545 = vmatmul.msk.f32.gmra.mxu1 %vm147_vm1, %v8532_v18 }
 0x161   :  { %7602 = vmatmul.msk.f32.gmra.mxu3 %vm147_vm1, %v8558_v20 }
 0x162   :  { %v608_v16 = vpop.f32.mrf.mxu2 }
 0x163   :  { %v609_v11 = vadd.f32 %v608_v16, %v492_v12 }
 0x164   :  { %v8972_v3 = vpop.f32.mrf.mxu0  ;;  %v730_v35 = vpop.f32.mrf.mxu3 }
 0x165   :  { %13534 = vst [vmem:[#allocation45_spill] sm:$0xff] %v8972_v3  ;;  %v501_v15 = vpop.f32.mrf.mxu1  ;;  %v8974_v62 = vadd.f32 %v724_v55, %v609_v11 }
 0x167   :  { %13535 = vst [vmem:[#allocation46_spill] sm:$0xff] %v8974_v62  ;;  %7518 = vmatmul.msk.f32.gmra.mxu0 %vm147_vm1, %v8558_v20  ;;  %7573 = vmatmul.msk.f32.gmra.mxu2 %vm147_vm1, %v8532_v18 }
 0x168   :  { %7546 = vmatmul.msk.f32.gmra.mxu1 %vm147_vm1, %v8545_v19 }
 0x169   :  { %7603 = vmatmul.msk.f32.gmra.mxu3 %vm147_vm1, %v8571_v21 }
 0x16a   :  { %v611_v17 = vpop.f32.mrf.mxu2 }
 0x16b   :  { %v612_v12 = vadd.f32 %v611_v17, %v495_v13 }
 0x16c   :  { %v8984_v8 = vpop.f32.mrf.mxu0  ;;  %v733_v3 = vpop.f32.mrf.mxu3 }
 0x16d   :  { %13536 = vst [vmem:[#allocation47_spill] sm:$0xff] %v8984_v8  ;;  %v504_v16 = vpop.f32.mrf.mxu1  ;;  %v8986_v55 = vadd.f32 %v727_v30, %v612_v12 }
 0x16f   :  { %13537 = vst [vmem:[#allocation48_spill] sm:$0xff] %v8986_v55  ;;  %7519 = vmatmul.msk.f32.gmra.mxu0 %vm147_vm1, %v8571_v21  ;;  %7574 = vmatmul.msk.f32.gmra.mxu2 %vm147_vm1, %v8545_v19 }
 0x170   :  { %7547 = vmatmul.msk.f32.gmra.mxu1 %vm147_vm1, %v8558_v20 }
 0x171   :  { %7604 = vmatmul.msk.f32.gmra.mxu3 %vm147_vm1, %v8584_v22 }
 0x172   :  { %v614_v18 = vpop.f32.mrf.mxu2 }
 0x173   :  { %v615_v13 = vadd.f32 %v614_v18, %v498_v14 }
 0x174   :  { %v8996_v11 = vpop.f32.mrf.mxu0  ;;  %v736_v8 = vpop.f32.mrf.mxu3 }
 0x175   :  { %13538 = vst [vmem:[#allocation49_spill] sm:$0xff] %v8996_v11  ;;  %v507_v17 = vpop.f32.mrf.mxu1  ;;  %v8998_v30 = vadd.f32 %v730_v35, %v615_v13 }
 0x177   :  { %13539 = vst [vmem:[#allocation50_spill] sm:$0xff] %v8998_v30  ;;  %7520 = vmatmul.msk.f32.gmra.mxu0 %vm147_vm1, %v8584_v22  ;;  %7575 = vmatmul.msk.f32.gmra.mxu2 %vm147_vm1, %v8558_v20 }
 0x178   :  { %7548 = vmatmul.msk.f32.gmra.mxu1 %vm147_vm1, %v8571_v21 }
 0x179   :  { %7605 = vmatmul.msk.f32.gmra.mxu3 %vm147_vm1, %v8597_v23 }
 0x17a   :  { %v617_v19 = vpop.f32.mrf.mxu2 }
 0x17b   :  { %v618_v14 = vadd.f32 %v617_v19, %v501_v15 }
 0x17c   :  { %v9008_v12 = vpop.f32.mrf.mxu0  ;;  %v739_v11 = vpop.f32.mrf.mxu3 }
 0x17d   :  { %13540 = vst [vmem:[#allocation51_spill] sm:$0xff] %v9008_v12  ;;  %v510_v18 = vpop.f32.mrf.mxu1  ;;  %v9010_v35 = vadd.f32 %v733_v3, %v618_v14 }
 0x17f   :  { %13541 = vst [vmem:[#allocation52_spill] sm:$0xff] %v9010_v35  ;;  %7521 = vmatmul.msk.f32.gmra.mxu0 %vm147_vm1, %v8597_v23  ;;  %7576 = vmatmul.msk.f32.gmra.mxu2 %vm147_vm1, %v8571_v21 }
 0x180   :  { %7549 = vmatmul.msk.f32.gmra.mxu1 %vm147_vm1, %v8584_v22 }
 0x181   :  { %7606 = vmatmul.msk.f32.gmra.mxu3 %vm147_vm1, %v8612_v26 }
 0x182   :  { %v620_v13 = vpop.f32.mrf.mxu2 }
 0x183   :  { %v621_v15 = vadd.f32 %v620_v13, %v504_v16 }
 0x184   :  { %v9020_v19 = vpop.f32.mrf.mxu0  ;;  %v742_v61 = vpop.f32.mrf.mxu3 }
 0x185   :  { %13542 = vst [vmem:[#allocation53_spill] sm:$0xff] %v9020_v19  ;;  %v513_v12 = vpop.f32.mrf.mxu1  ;;  %v9022_v3 = vadd.f32 %v736_v8, %v621_v15 }
 0x187   :  { %13543 = vst [vmem:[#allocation54_spill] sm:$0xff] %v9022_v3  ;;  %7522 = vmatmul.msk.f32.gmra.mxu0 %vm147_vm1, %v8612_v26  ;;  %7577 = vmatmul.msk.f32.gmra.mxu2 %vm147_vm1, %v8584_v22 }
 0x188   :  { %7550 = vmatmul.msk.f32.gmra.mxu1 %vm147_vm1, %v8597_v23 }
 0x189   :  { %7607 = vmatmul.msk.f32.gmra.mxu3 %vm147_vm1, %v8629_v31 }
 0x18a   :  { %v623_v14 = vpop.f32.mrf.mxu2 }
 0x18b   :  { %v624_v16 = vadd.f32 %v623_v14, %v507_v17 }
 0x18c   :  { %v806_v13 = vpop.f32.mrf.mxu0  ;;  %v745_v47 = vpop.f32.mrf.mxu3 }
 0x18d   :  { %v516_v19 = vpop.f32.mrf.mxu1  ;;  %v9032_v34 = vadd.f32 %v739_v11, %v624_v16 }
 0x18f   :  { %13544 = vst [vmem:[#allocation55_spill] sm:$0xff] %v9032_v34  ;;  %7523 = vmatmul.msk.f32.gmra.mxu0 %vm147_vm1, %v8629_v31  ;;  %7578 = vmatmul.msk.f32.gmra.mxu2 %vm147_vm1, %v8597_v23 }
 0x190   :  { %7551 = vmatmul.msk.f32.gmra.mxu1 %vm147_vm1, %v8612_v26 }
 0x191   :  { %7608 = vmatmul.msk.f32.gmra.mxu3 %vm147_vm1, %v8646_v36 }
 0x192   :  { %v626_v8 = vpop.f32.mrf.mxu2 }
 0x193   :  { %v627_v15 = vadd.f32 %v626_v8, %v510_v18 }
 0x194   :  { %v809_v17 = vpop.f32.mrf.mxu0  ;;  %v748_v14 = vpop.f32.mrf.mxu3 }
 0x195   :  { %v9042_v4 = vadd.f32 %v742_v61, %v627_v15  ;;  %v519_v11 = vpop.f32.mrf.mxu1 }
 0x197   :  { %13545 = vst [vmem:[#allocation56_spill] sm:$0xff] %v9042_v4  ;;  %7524 = vmatmul.msk.f32.gmra.mxu0 %vm147_vm1, %v8646_v36  ;;  %7579 = vmatmul.msk.f32.gmra.mxu2 %vm147_vm1, %v8612_v26 }
 0x198   :  { %7552 = vmatmul.msk.f32.gmra.mxu1 %vm147_vm1, %v8629_v31 }
 0x199   :  { %7609 = vmatmul.msk.f32.gmra.mxu3 %vm147_vm1, %v8663_v43 }
 0x19a   :  { %v629_v16 = vpop.f32.mrf.mxu2 }
 0x19b   :  { %v630_v60 = vadd.f32 %v629_v16, %v513_v12 }
 0x19c   :  { %v812_v18 = vpop.f32.mrf.mxu0  ;;  %v751_v8 = vpop.f32.mrf.mxu3 }
 0x19d   :  { %v9052_v53 = vadd.f32 %v745_v47, %v630_v60  ;;  %v954_v61 = vpop.f32.mrf.mxu1 }
 0x19f   :  { %13546 = vst [vmem:[#allocation57_spill] sm:$0xff] %v9052_v53  ;;  %7525 = vmatmul.msk.f32.gmra.mxu0 %vm147_vm1, %v8663_v43  ;;  %7580 = vmatmul.msk.f32.gmra.mxu2 %vm147_vm1, %v8629_v31 }
 0x1a0   :  { %7553 = vmatmul.msk.f32.gmra.mxu1 %vm147_vm1, %v8646_v36 }
 0x1a1   :  { %7610 = vmatmul.msk.f32.gmra.mxu3 %vm147_vm1, %v8680_v50 }
 0x1a2   :  { %v632_v15 = vpop.f32.mrf.mxu2 }
 0x1a3   :  { %v633_v46 = vadd.f32 %v632_v15, %v516_v19 }
 0x1a4   :  { %v815_v12 = vpop.f32.mrf.mxu0  ;;  %v1250_v16 = vpop.f32.mrf.mxu3 }
 0x1a5   :  { %v9062_v39 = vadd.f32 %v748_v14, %v633_v46  ;;  %v957_v60 = vpop.f32.mrf.mxu1  ;;  %v902_v14 = vadd.f32 %v806_v13, %v8652_v42  ;;  %v903_v42 = vadd.f32 %v809_v17, %v8669_v49  ;;  %v904_v49 = vadd.f32 %v812_v18, %v8686_v56 }
 0x1a6   :  { %v905_v56 = vadd.f32 %v815_v12, %v8703_v63  ;;  %v400_v12 = vld [vmem:[%s13499_s27 + $0x1c] sm:$0xf] }
 0x1a7   :  { %13547 = vst [vmem:[#allocation58_spill] sm:$0xff] %v9062_v39  ;;  %7526 = vmatmul.msk.f32.gmra.mxu0 %vm147_vm1, %v8680_v50  ;;  %7581 = vmatmul.msk.f32.gmra.mxu2 %vm147_vm1, %v8646_v36  ;;  %v1050_v28 = vadd.f32 %v954_v61, %v902_v14  ;;  %v1051_v61 = vadd.f32 %v957_v60, %v903_v42 }
 0x1a8   :  { %7554 = vmatmul.msk.f32.gmra.mxu1 %vm147_vm1, %v8663_v43  ;;  %7620 = vmatpush.msk.msra.mxu0 %vm244_vm0, %v400_v12 }
 0x1a9   :  { %7611 = vmatmul.msk.f32.gmra.mxu3 %vm147_vm1, %v8697_v57 }
 0x1aa   :  { %v635_v47 = vpop.f32.mrf.mxu2 }
 0x1ab   :  { %v636_v33 = vadd.f32 %v635_v47, %v519_v11 }
 0x1ac   :  { %v818_v19 = vpop.f32.mrf.mxu0  ;;  %v1253_v46 = vpop.f32.mrf.mxu3 }
 0x1ad   :  { %v9072_v15 = vadd.f32 %v751_v8, %v636_v33  ;;  %v960_v8 = vpop.f32.mrf.mxu1  ;;  %v906_v63 = vadd.f32 %v818_v19, %v8720_v7 }
 0x1ae   :  { %v1052_v17 = vadd.f32 %v960_v8, %v904_v49 }
 0x1af   :  { %13548 = vst [vmem:[#allocation59_spill] sm:$0xff] %v9072_v15  ;;  %7527 = vmatmul.msk.f32.gmra.mxu0 %vm147_vm1, %v8697_v57  ;;  %7582 = vmatmul.msk.f32.gmra.mxu2 %vm147_vm1, %v8663_v43 }
 0x1b0   :  { %7555 = vmatmul.msk.f32.gmra.mxu1 %vm147_vm1, %v8680_v50 }
 0x1b1   :  { %7612 = vmatmul.msk.f32.gmra.mxu3 %vm147_vm1, %v8714_v0 }
 0x1b2   :  { %v1102_v11 = vpop.f32.mrf.mxu2 }
 0x1b3   :  { %v1198_v47 = vadd.f32 %v1102_v11, %v1050_v28 }
 0x1b4   :  { %v821_v33 = vpop.f32.mrf.mxu0  ;;  %v1256_v13 = vpop.f32.mrf.mxu3 }
 0x1b5   :  { %v9083_v24 = vadd.f32 %v1250_v16, %v1198_v47  ;;  %v963_v47 = vpop.f32.mrf.mxu1 }
 0x1b6   :  { %v1053_v8 = vadd.f32 %v963_v47, %v905_v56 }
 0x1b7   :  { %13549 = vst [vmem:[#allocation60_spill] sm:$0xff] %v9083_v24  ;;  %7528 = vmatmul.msk.f32.gmra.mxu0 %vm147_vm1, %v8714_v0  ;;  %7583 = vmatmul.msk.f32.gmra.mxu2 %vm147_vm1, %v8680_v50 }
 0x1b8   :  { %7556 = vmatmul.msk.f32.gmra.mxu1 %vm147_vm1, %v8697_v57 }
 0x1b9   :  { %7613 = vmatmul.msk.f32.gmra.mxu3 %vm147_vm1, %v8731_v25 }
 0x1ba   :  { %v1105_v28 = vpop.f32.mrf.mxu2 }
 0x1bb   :  { %v1199_v14 = vadd.f32 %v1105_v28, %v1051_v61 }
 0x1bc   :  { %v824_v16 = vpop.f32.mrf.mxu0  ;;  %v1259_v42 = vpop.f32.mrf.mxu3 }
 0x1bd   :  { %v9094_v11 = vadd.f32 %v1253_v46, %v1199_v14  ;;  %v966_v18 = vpop.f32.mrf.mxu1 }
 0x1be   :  { %v1054_v47 = vadd.f32 %v966_v18, %v906_v63 }
 0x1bf   :  { %13550 = vst [vmem:[#allocation61_spill] sm:$0xff] %v9094_v11  ;;  %7529 = vmatmul.msk.f32.gmra.mxu0 %vm147_vm1, %v8731_v25  ;;  %7584 = vmatmul.msk.f32.gmra.mxu2 %vm147_vm1, %v8697_v57 }
 0x1c0   :  { %7557 = vmatmul.msk.f32.gmra.mxu1 %vm147_vm1, %v8714_v0 }
 0x1c1   :  { %7614 = vmatmul.msk.f32.gmra.mxu3 %vm147_vm1, %v8751_v41 }
 0x1c2   :  { %v1108_v60 = vpop.f32.mrf.mxu2 }
 0x1c3   :  { %v1200_v46 = vadd.f32 %v1108_v60, %v1052_v17 }
 0x1c4   :  { %v827_v61 = vpop.f32.mrf.mxu0  ;;  %v1262_v17 = vpop.f32.mrf.mxu3 }
 0x1c5   :  { %v9105_v28 = vadd.f32 %v1256_v13, %v1200_v46 }
 0x1c7   :  { %13551 = vst [vmem:[#allocation62_spill] sm:$0xff] %v9105_v28  ;;  %7530 = vmatmul.msk.f32.gmra.mxu0 %vm147_vm1, %v8751_v41  ;;  %7585 = vmatmul.msk.f32.gmra.mxu2 %vm147_vm1, %v8714_v0 }
 0x1c8   :  { %7558 = vmatmul.msk.f32.gmra.mxu1 %vm147_vm1, %v8731_v25 }
 0x1c9   :  { %7615 = vmatmul.msk.f32.gmra.mxu3 %vm147_vm1, %v8769_v54 }
 0x1ca   :  { %v1111_v14 = vpop.f32.mrf.mxu2 }
 0x1cb   :  { %v1201_v49 = vadd.f32 %v1111_v14, %v1053_v8  ;;  %v907_v14 = vadd.f32 %v821_v33, %v8737_v38  ;;  %v908_v38 = vadd.f32 %v824_v16, %v8758_v52 }
 0x1cc   :  { %v9116_v13 = vpop.f32.mrf.mxu0  ;;  %v1265_v8 = vpop.f32.mrf.mxu3 }
 0x1cd   :  { %v9118_v60 = vadd.f32 %v1259_v42, %v1201_v49  ;;  %v969_v42 = vpop.f32.mrf.mxu1 }
 0x1ce   :  { %v1055_v18 = vadd.f32 %v969_v42, %v907_v14 }
 0x1cf   :  { %13552 = vst [vmem:[#allocation63_spill] sm:$0xff] %v9118_v60  ;;  %7531 = vmatmul.msk.f32.gmra.mxu0 %vm147_vm1, %v8769_v54  ;;  %7586 = vmatmul.msk.f32.gmra.mxu2 %vm147_vm1, %v8731_v25 }
 0x1d0   :  { %7559 = vmatmul.msk.f32.gmra.mxu1 %vm147_vm1, %v8751_v41 }
 0x1d1   :  { %7616 = vmatmul.msk.f32.gmra.mxu3 %vm147_vm1, %v8786_v2 }
 0x1d2   :  { %v1114_v46 = vpop.f32.mrf.mxu2 }
 0x1d3   :  { %v1202_v56 = vadd.f32 %v1114_v46, %v1054_v47  ;;  %v9160_v46 = vld [vmem:[%s13500_s2 + $0xf0] sm:$0xff] }
 0x1d4   :  { %v9133_v7 = vpop.f32.mrf.mxu0  ;;  %v1268_v33 = vpop.f32.mrf.mxu3 }
 0x1d5   :  { %v9135_v19 = vadd.f32 %v1262_v17, %v1202_v56  ;;  %v972_v12 = vpop.f32.mrf.mxu1 }
 0x1d6   :  { %v1056_v42 = vadd.f32 %v972_v12, %v908_v38 }
 0x1d7   :  { %13553 = vst [vmem:[#allocation64_spill] sm:$0xff] %v9135_v19  ;;  %7532 = vmatmul.msk.f32.gmra.mxu0 %vm147_vm1, %v8786_v2  ;;  %7587 = vmatmul.msk.f32.gmra.mxu2 %vm147_vm1, %v8751_v41 }
 0x1d8   :  { %7560 = vmatmul.msk.f32.gmra.mxu1 %vm147_vm1, %v8769_v54 }
 0x1d9   :  { %7617 = vmatmul.msk.f32.gmra.mxu3 %vm147_vm1, %v8803_v44 }
 0x1da   :  { %v1117_v49 = vpop.f32.mrf.mxu2 }
 0x1db   :  { %v1203_v63 = vadd.f32 %v1117_v49, %v1055_v18  ;;  %v909_v18 = vadd.f32 %v827_v61, %v8775_v1  ;;  %v13554_v61 = vmov 0.0  }
 0x1dc   :  { %v9146_v17 = vpop.f32.mrf.mxu0  ;;  %v1271_v38 = vpop.f32.mrf.mxu3 }
 0x1dd   :  { %v9148_v47 = vadd.f32 %v1265_v8, %v1203_v63  ;;  %v975_v16 = vpop.f32.mrf.mxu1  ;;  %v9178_v63 = vld [vmem:[%s13500_s2 + $0xf8] sm:$0xff] }
 0x1de   :  { %v1057_v49 = vadd.f32 %v975_v16, %v909_v18 }
 0x1df   :  { %7533 = vmatmul.msk.f32.gmra.mxu0 %vm147_vm1, %v8803_v44  ;;  %7588 = vmatmul.msk.f32.gmra.mxu2 %vm147_vm1, %v8769_v54 }
 0x1e0   :  { %7561 = vmatmul.msk.f32.gmra.mxu1 %vm147_vm1, %v8786_v2 }
 0x1e1   :  { %7618 = vmatmul.msk.f32.gmra.mxu3 %vm147_vm1, %v9160_v46 }
 0x1e2   :  { %v1120_v56 = vpop.f32.mrf.mxu2 }
 0x1e3   :  { %v1204_v8 = vadd.f32 %v1120_v56, %v1056_v42 }
 0x1e4   :  { %v9164_v14 = vpop.f32.mrf.mxu0 }
 0x1e5   :  { %v9166_v52 = vadd.f32 %v1268_v33, %v1204_v8 }
 0x1e7   :  { %7534 = vmatmul.msk.f32.gmra.mxu0 %vm147_vm1, %v9160_v46  ;;  %7589 = vmatmul.msk.f32.gmra.mxu2 %vm147_vm1, %v8786_v2 }
 0x1e8   :  { %7562 = vmatmul.msk.f32.gmra.mxu1 %vm147_vm1, %v8803_v44 }
 0x1e9   :  { %7619 = vmatmul.msk.f32.gmra.mxu3 %vm147_vm1, %v9178_v63 }
 0x1ea   :  { %v1123_v12 = vpop.f32.mrf.mxu2 }
 0x1eb   :  { %v1205_v33 = vadd.f32 %v1123_v12, %v1057_v49  ;;  %v8103_v49 = vld [vmem:[%s13500_s2 + $0x38] sm:$0xff] }
 0x1ec   :  { %v9182_v42 = vpop.f32.mrf.mxu0 }
 0x1ed   :  { %v9184_v1 = vadd.f32 %v1271_v38, %v1205_v33  ;;  %v8104_v38 = vld [vmem:[%s13500_s2 + $0x40] sm:$0xff] }
 0x1ef   :  { %7535 = vmatmul.msk.f32.gmra.mxu0 %vm147_vm1, %v9178_v63  ;;  %7590 = vmatmul.msk.f32.gmra.mxu2 %vm147_vm1, %v8803_v44 }
 0x1f0   :  { %7563 = vmatmul.msk.f32.gmra.mxu1 %vm147_vm1, %v9160_v46 }
 0x1f1   :  { %1327 = vmatmul.f32.gmra.mxu3 %v13554_v61 }
 0x1f4   :  { %v9193_v56 = vpop.f32.mrf.mxu0 }
 0x1f7   :  { %892 = vmatmul.f32.gmra.mxu0 %v13554_v61  ;;  %7591 = vmatmul.msk.f32.gmra.mxu2 %vm147_vm1, %v9160_v46 }
 0x1f8   :  { %7564 = vmatmul.msk.f32.gmra.mxu1 %vm147_vm1, %v9178_v63 }
 0x1f9   :  { %1330 = vmatmul.f32.gmra.mxu3 %v13554_v61 }
 0x1fc   :  { %v9201_v8 = vpop.f32.mrf.mxu0 }
 0x1ff   :  { %895 = vmatmul.f32.gmra.mxu0 %v13554_v61  ;;  %7592 = vmatmul.msk.f32.gmra.mxu2 %vm147_vm1, %v9178_v63 }
 0x200   :  { %1037 = vmatmul.f32.gmra.mxu1 %v13554_v61 }
 0x201   :  { %1333 = vmatmul.f32.gmra.mxu3 %v13554_v61 }
 0x204   :  { %v9208_v16 = vpop.f32.mrf.mxu0 }
 0x207   :  { %898 = vmatmul.f32.gmra.mxu0 %v13554_v61  ;;  %1182 = vmatmul.f32.gmra.mxu2 %v13554_v61 }
 0x208   :  { %1040 = vmatmul.f32.gmra.mxu1 %v13554_v61 }
 0x209   :  { %1336 = vmatmul.f32.gmra.mxu3 %v13554_v61 }
 0x20c   :  { %v9214_v18 = vpop.f32.mrf.mxu0 }
 0x20d   :  { %13555 = vst [vmem:[#allocation65_spill] sm:$0xff] %v9214_v18 }
 0x20f   :  { %7621 = vmatmul.msk.f32.vlgmr.msra.gmra.mxu0 %vm147_vm1, %v8103_v49  ;;  %1185 = vmatmul.f32.gmra.mxu2 %v13554_v61  ;;  %v8105_v49 = vld [vmem:[%s13500_s2 + $0x48] sm:$0xff] }
 0x210   :  { %1043 = vmatmul.f32.gmra.mxu1 %v13554_v61 }
 0x211   :  { %1339 = vmatmul.f32.gmra.mxu3 %v13554_v61 }
 0x214   :  { %v9223_v12 = vpop.f32.mrf.mxu0 }
 0x215   :  { %13556 = vst [vmem:[#allocation66_spill] sm:$0xff] %v9223_v12  ;;  %v8107_v12 = vld [vmem:[%s13500_s2 + $0x58] sm:$0xff] }
 0x217   :  { %7622 = vmatmul.msk.f32.gmra.mxu0 %vm147_vm1, %v8104_v38  ;;  %1188 = vmatmul.f32.gmra.mxu2 %v13554_v61  ;;  %v8106_v38 = vld [vmem:[%s13500_s2 + $0x50] sm:$0xff] }
 0x218   :  { %1046 = vmatmul.f32.gmra.mxu1 %v13554_v61 }
 0x219   :  { %1342 = vmatmul.f32.gmra.mxu3 %v13554_v61 }
 0x21c   :  { %v9232_v33 = vpop.f32.mrf.mxu0 }
 0x21d   :  { %13557 = vst [vmem:[#allocation67_spill] sm:$0xff] %v9232_v33 }
 0x21f   :  { %7623 = vmatmul.msk.f32.gmra.mxu0 %vm147_vm1, %v8105_v49  ;;  %1191 = vmatmul.f32.gmra.mxu2 %v13554_v61 }
 0x224   :  { %v9239_v18 = vpop.f32.mrf.mxu0 }
 0x225   :  { %13558 = vst [vmem:[#allocation68_spill] sm:$0xff] %v9239_v18 }
 0x227   :  { %7624 = vmatmul.msk.f32.gmra.mxu0 %vm147_vm1, %v8106_v38  ;;  %1194 = vmatmul.f32.gmra.mxu2 %v13554_v61  ;;  %v8109_v38 = vld [vmem:[%s13500_s2 + $0x68] sm:$0xff]  ;;  %s7366_s2 = sshll.u32 %s13309_s24, 4  ;;  %s7367_s2 = int_to_ptr.hbm [resolvable:$true] %s7366_s2 }
 0x22c   :  { %v9246_v6 = vpop.f32.mrf.mxu0 }
 0x22d   :  { %13559 = vst [vmem:[#allocation69_spill] sm:$0xff] %v9246_v6 }
 0x22f   :  { %7625 = vmatmul.msk.f32.gmra.mxu0 %vm147_vm1, %v8107_v12 }
 0x234   :  { %v9252_v49 = vpop.f32.mrf.mxu0 }
 0x235   :  { %13560 = vst [vmem:[#allocation70_spill] sm:$0xff] %v9252_v49 }
 0x237   :  { %7626 = vmatmul.msk.f32.gmra.mxu0 %vm147_vm1, %v8108_v58 }
 0x23c   :  { %v9258_v33 = vpop.f32.mrf.mxu0 }
 0x23d   :  { %13561 = vst [vmem:[#allocation71_spill] sm:$0xff] %v9258_v33 }
 0x23f   :  { %7627 = vmatmul.msk.f32.gmra.mxu0 %vm147_vm1, %v8109_v38 }
 0x244   :  { %v9264_v32 = vpop.f32.mrf.mxu0 }
 0x245   :  { %13562 = vst [vmem:[#allocation72_spill] sm:$0xff] %v9264_v32 }
 0x247   :  { %7628 = vmatmul.msk.f32.gmra.mxu0 %vm147_vm1, %v8558_v20 }
 0x24c   :  { %v9268_v12 = vpop.f32.mrf.mxu0 }
 0x24d   :  { %13563 = vst [vmem:[#allocation73_spill] sm:$0xff] %v9268_v12 }
 0x24f   :  { %7629 = vmatmul.msk.f32.gmra.mxu0 %vm147_vm1, %v8571_v21 }
 0x254   :  { %v9272_v18 = vpop.f32.mrf.mxu0 }
 0x255   :  { %13564 = vst [vmem:[#allocation74_spill] sm:$0xff] %v9272_v18 }
 0x257   :  { %7630 = vmatmul.msk.f32.gmra.mxu0 %vm147_vm1, %v8584_v22 }
 0x25c   :  { %v9276_v58 = vpop.f32.mrf.mxu0 }
 0x25d   :  { %13565 = vst [vmem:[#allocation75_spill] sm:$0xff] %v9276_v58 }
 0x25f   :  { %7631 = vmatmul.msk.f32.gmra.mxu0 %vm147_vm1, %v8597_v23 }
 0x264   :  { %v9280_v38 = vpop.f32.mrf.mxu0 }
 0x265   :  { %13566 = vst [vmem:[#allocation76_spill] sm:$0xff] %v9280_v38 }
 0x267   :  { %7632 = vmatmul.msk.f32.gmra.mxu0 %vm147_vm1, %v8612_v26 }
 0x26c   :  { %v9284_v20 = vpop.f32.mrf.mxu0 }
 0x26d   :  { %13567 = vst [vmem:[#allocation77_spill] sm:$0xff] %v9284_v20 }
 0x26f   :  { %7633 = vmatmul.msk.f32.gmra.mxu0 %vm147_vm1, %v8629_v31  ;;  %v9304_v31 = vpop.f32.mrf.mxu1 }
 0x274   :  { %v9288_v21 = vpop.f32.mrf.mxu0 }
 0x275   :  { %13568 = vst [vmem:[#allocation78_spill] sm:$0xff] %v9288_v21 }
 0x277   :  { %7634 = vmatmul.msk.f32.gmra.mxu0 %vm147_vm1, %v8646_v36  ;;  %v9308_v36 = vpop.f32.mrf.mxu2  ;;  %v9316_v45 = vpop.f32.mrf.mxu1 }
 0x27c   :  { %v9292_v22 = vpop.f32.mrf.mxu0 }
 0x27d   :  { %13569 = vst [vmem:[#allocation79_spill] sm:$0xff] %v9292_v22 }
 0x27f   :  { %7635 = vmatmul.msk.f32.gmra.mxu0 %vm147_vm1, %v8663_v43  ;;  %v9312_v43 = vpop.f32.mrf.mxu3  ;;  %v9328_v10 = vpop.f32.mrf.mxu1 }
 0x284   :  { %v9296_v23 = vpop.f32.mrf.mxu0 }
 0x285   :  { %13570 = vst [vmem:[#allocation80_spill] sm:$0xff] %v9296_v23 }
 0x287   :  { %7636 = vmatmul.msk.f32.gmra.mxu0 %vm147_vm1, %v8680_v50  ;;  %v9320_v50 = vpop.f32.mrf.mxu2 }
 0x28c   :  { %v9300_v26 = vpop.f32.mrf.mxu0 }
 0x28d   :  { %13571 = vst [vmem:[#allocation81_spill] sm:$0xff] %v9300_v26 }
 0x28f   :  { %7637 = vmatmul.msk.f32.gmra.mxu0 %vm147_vm1, %v8697_v57  ;;  %v9322_v57 = vpop.f32.mrf.mxu3 }
 0x294   :  { %v9306_v51 = vpop.f32.mrf.mxu0 }
 0x295   :  { %13572 = vst [vmem:[#allocation82_spill] sm:$0xff] %v9306_v51 }
 0x297   :  { %7638 = vmatmul.msk.f32.gmra.mxu0 %vm147_vm1, %v8714_v0  ;;  %v9330_v0 = vpop.f32.mrf.mxu2  ;;  %v9334_v62 = vpop.f32.mrf.mxu3 }
 0x29c   :  { %v9314_v6 = vpop.f32.mrf.mxu0 }
 0x29d   :  { %13573 = vst [vmem:[#allocation83_spill] sm:$0xff] %v9314_v6 }
 0x29f   :  { %7639 = vmatmul.msk.f32.gmra.mxu0 %vm147_vm1, %v8731_v25  ;;  %v987_v25 = vpop.f32.mrf.mxu1  ;;  %v1135_v32 = vpop.f32.mrf.mxu2 }
 0x2a0   :  { %v9342_v12 = vpop.f32.mrf.mxu3 }
 0x2a4   :  { %v9324_v49 = vpop.f32.mrf.mxu0 }
 0x2a5   :  { %13574 = vst [vmem:[#allocation84_spill] sm:$0xff] %v9324_v49 }
 0x2a7   :  { %7640 = vmatmul.msk.f32.gmra.mxu0 %vm147_vm1, %v8751_v41  ;;  %v990_v41 = vpop.f32.mrf.mxu1  ;;  %v1138_v18 = vpop.f32.mrf.mxu2 }
 0x2a8   :  { %v1286_v35 = vpop.f32.mrf.mxu3 }
 0x2ac   :  { %v9332_v33 = vpop.f32.mrf.mxu0 }
 0x2ad   :  { %13575 = vst [vmem:[#allocation85_spill] sm:$0xff] %v9332_v33 }
 0x2af   :  { %7641 = vmatmul.msk.f32.gmra.mxu0 %vm147_vm1, %v8769_v54  ;;  %v993_v54 = vpop.f32.mrf.mxu1  ;;  %v1141_v3 = vpop.f32.mrf.mxu2 }
 0x2b0   :  { %v1289_v38 = vpop.f32.mrf.mxu3 }
 0x2b4   :  { %v9338_v55 = vpop.f32.mrf.mxu0 }
 0x2b7   :  { %7642 = vmatmul.msk.f32.gmra.mxu0 %vm147_vm1, %v8786_v2  ;;  %v996_v2 = vpop.f32.mrf.mxu1  ;;  %v1144_v23 = vpop.f32.mrf.mxu2 }
 0x2b8   :  { %v1292_v20 = vpop.f32.mrf.mxu3 }
 0x2bc   :  { %v9344_v30 = vpop.f32.mrf.mxu0 }
 0x2bf   :  { %7643 = vmatmul.msk.f32.gmra.mxu0 %vm147_vm1, %v8803_v44  ;;  %v999_v44 = vpop.f32.mrf.mxu1  ;;  %v1147_v4 = vpop.f32.mrf.mxu2 }
 0x2c4   :  { %v9348_v58 = vpop.f32.mrf.mxu0 }
 0x2c7   :  { %7644 = vmatmul.msk.f32.gmra.mxu0 %vm147_vm1, %v9160_v46  ;;  %v1295_v46 = vpop.f32.mrf.mxu3  ;;  %v9362_v53 = vpop.f32.mrf.mxu1 }
 0x2c8   :  { %13576 = vst [vmem:[#allocation86_spill] sm:$0xff] %v9362_v53  ;;  %v9364_v39 = vpop.f32.mrf.mxu2  ;;  %v916_v53 = vadd.f32 %v9201_v8, %v8878_v59  ;;  %v913_v59 = vadd.f32 %v9164_v14, %v8837_v37 }
 0x2c9   :  { %13577 = vst [vmem:[#allocation87_spill] sm:$0xff] %v9364_v39 }
 0x2ca   :  { %v1064_v28 = vadd.f32 %v996_v2, %v916_v53  ;;  %v912_v53 = vadd.f32 %v9146_v17, %v8825_v27 }
 0x2cc   :  { %v9352_v34 = vpop.f32.mrf.mxu0  ;;  %v1212_v60 = vadd.f32 %v1144_v23, %v1064_v28  ;;  %v1060_v28 = vadd.f32 %v9328_v10, %v912_v53 }
 0x2cf   :  { %7645 = vmatmul.msk.f32.gmra.mxu0 %vm147_vm1, %v9178_v63  ;;  %v9367_v63 = vpop.f32.mrf.mxu3  ;;  %v9369_v24 = vpop.f32.mrf.mxu1 }
 0x2d0   :  { %13578 = vst [vmem:[#allocation88_spill] sm:$0xff] %v9367_v63  ;;  %v9372_v51 = vpop.f32.mrf.mxu2  ;;  %v915_v63 = vadd.f32 %v9193_v56, %v8866_v9  ;;  %v1061_v56 = vadd.f32 %v987_v25, %v913_v59 }
 0x2d1   :  { %13579 = vst [vmem:[#allocation89_spill] sm:$0xff] %v9369_v24  ;;  %v914_v24 = vadd.f32 %v9182_v42, %v8856_v29  ;;  %v1360_v29 = vadd.f32 %v1292_v20, %v1212_v60  ;;  %v1208_v60 = vadd.f32 %v9330_v0, %v1060_v28  ;;  %v13601_v28 = vld [vmem:[#allocation85_spill] sm:$0xff] }
 0x2d2   :  { %13580 = vst [vmem:[#allocation90_spill] sm:$0xff] %v9372_v51  ;;  %v1063_v51 = vadd.f32 %v993_v54, %v915_v63  ;;  %v1209_v37 = vadd.f32 %v1135_v32, %v1061_v56 }
 0x2d3   :  { %v1062_v8 = vadd.f32 %v990_v41, %v914_v24 }
 0x2d4   :  { %v9356_v15 = vpop.f32.mrf.mxu0  ;;  %v1211_v19 = vadd.f32 %v1141_v3, %v1063_v51  ;;  %v910_v51 = vadd.f32 %v9116_v13, %v8792_v40 }
 0x2d5   :  { %v1210_v2 = vadd.f32 %v1138_v18, %v1062_v8  ;;  %v1500_v8 = vadd.f32 %v9344_v30, %v9166_v52 }
 0x2d6   :  { %v1359_v24 = vadd.f32 %v1289_v38, %v1211_v19  ;;  %v1058_v32 = vadd.f32 %v9304_v31, %v910_v51  ;;  %v9423_v38 = vld [vmem:[%s13587_s8] ss:$0 sm:$0xff] }
 0x2d7   :  { %1472 = vmatmul.f32.gmra.mxu0 %v13554_v61  ;;  %v9374_v11 = vpop.f32.mrf.mxu3  ;;  %v9379_v39 = vpop.f32.mrf.mxu1  ;;  %v13603_v51 = vld [vmem:[#allocation63_spill] sm:$0xff] }
 0x2d8   :  { %13581 = vst [vmem:[#allocation91_spill] sm:$0xff] %v9374_v11  ;;  %v9383_v49 = vpop.f32.mrf.mxu2  ;;  %v917_v11 = vadd.f32 %v9208_v16, %v8890_v48  ;;  %v911_v48 = vadd.f32 %v9133_v7, %v8809_v5  ;;  %v9408_v5 = vld [vmem:[%s13585_s30] ss:$0 sm:$0xff]  ;;  %v1206_v14 = vadd.f32 %v9308_v36, %v1058_v32  ;;  %v1356_v16 = vadd.f32 %v9334_v62, %v1208_v60 }
 0x2d9   :  { %13582 = vst [vmem:[#allocation92_spill] sm:$0xff] %v9379_v39 }
 0x2da   :  { %13583 = vst [vmem:[#allocation93_spill] sm:$0xff] %v9383_v49  ;;  %v1065_v39 = vadd.f32 %v999_v44, %v917_v11  ;;  %v1059_v27 = vadd.f32 %v9316_v45, %v911_v48  ;;  %v1357_v45 = vadd.f32 %v9342_v12, %v1209_v37  ;;  %v1354_v31 = vadd.f32 %v9312_v43, %v1206_v14  ;;  %v13600_v48 = vld [vmem:[#allocation64_spill] sm:$0xff]  ;;  %v13609_v14 = vld [vmem:[#allocation61_spill] sm:$0xff] }
 0x2db   :  { %v1498_v37 = vadd.f32 %v13601_v28, %v13600_v48  ;;  %v13636_v49 = vld [vmem:[#allocation76_spill] sm:$0xff] }
 0x2dc   :  { %v9359_v21 = vpop.f32.mrf.mxu0  ;;  %v1213_v42 = vadd.f32 %v1147_v4, %v1065_v39  ;;  %v1358_v39 = vadd.f32 %v1286_v35, %v1210_v2  ;;  %v1207_v7 = vadd.f32 %v9320_v50, %v1059_v27  ;;  %v1502_v41 = vadd.f32 %v9352_v34, %v1354_v31  ;;  %v13604_v27 = vld [vmem:[#allocation84_spill] sm:$0xff] }
 0x2dd   :  { %v1504_v23 = vadd.f32 %v9359_v21, %v1356_v16  ;;  %v1499_v2 = vadd.f32 %v9338_v55, %v9148_v47  ;;  %v1497_v60 = vadd.f32 %v13604_v27, %v13603_v51  ;;  %v13610_v16 = vld [vmem:[#allocation82_spill] sm:$0xff]  ;;  %v13614_v31 = vld [vmem:[#allocation60_spill] sm:$0xff] }
 0x2de   :  { %v1361_v4 = vadd.f32 %v1295_v46, %v1213_v42  ;;  %v1355_v12 = vadd.f32 %v9322_v57, %v1207_v7  ;;  %v1501_v46 = vadd.f32 %v9348_v58, %v9184_v1  ;;  %v1537_v53 = vmul.f32 %v9408_v5, %v1502_v41  ;;  %v13606_v7 = vld [vmem:[#allocation62_spill] sm:$0xff] }
 0x2df   :  { %1475 = vmatmul.f32.gmra.mxu0 %v13554_v61  ;;  %v9393_v9 = vpop.f32.mrf.mxu3  ;;  %v9402_v3 = vpop.f32.mrf.mxu1  ;;  %v1539_v54 = vmul.f32 %v9408_v5, %v1504_v23 }
 0x2e0   :  { %13584 = vst [vmem:[#allocation94_spill] sm:$0xff] %v9393_v9  ;;  %v9412_v19 = vpop.f32.mrf.mxu2  ;;  %v1503_v36 = vadd.f32 %v9356_v15, %v1355_v12  ;;  %v9496_v47 = vadd.f32 %v9423_v38, %v1537_v53 }
 0x2e1   :  { %13586 = vst [vmem:[#allocation95_spill] sm:$0xff] %v9412_v19  ;;  %v9474_v58 = vadd.f32 %v9423_v38, %v1539_v54  ;;  %v13637_v19 = vld [vmem:[#allocation54_spill] sm:$0xff] }
 0x2e2   :  { %v1538_v63 = vmul.f32 %v9408_v5, %v1503_v36  ;;  %13602 = vst [vmem:[#allocation64_spill] sm:$0xff] %v9496_v47  ;;  %v13615_v36 = vld [vmem:[#allocation81_spill] sm:$0xff] }
 0x2e3   :  { %13596 = vst [vmem:[#allocation104_spill] sm:$0xff] %v9474_v58  ;;  %v13322_v55 = vmax.f32 %v9474_v58, 0.0 }
 0x2e4   :  { %v1431_v22 = vpop.f32.mrf.mxu0  ;;  %v9485_v52 = vadd.f32 %v9423_v38, %v1538_v63 }
 0x2e5   :  { %v1505_v18 = vadd.f32 %v1431_v22, %v1357_v45 }
 0x2e6   :  { %13598 = vst [vmem:[#allocation106_spill] sm:$0xff] %v9485_v52 }
 0x2e7   :  { %1478 = vmatmul.f32.gmra.mxu0 %v13554_v61  ;;  %v9427_v20 = vpop.f32.mrf.mxu3  ;;  %v1540_v50 = vmul.f32 %v9408_v5, %v1505_v18  ;;  %v9444_v21 = vpop.f32.mrf.mxu1  ;;  %v1495_v18 = vadd.f32 %v13610_v16, %v13609_v14 }
 0x2e8   :  { %13588 = vst [vmem:[#allocation96_spill] sm:$0xff] %v9427_v20  ;;  %v9456_v44 = vpop.f32.mrf.mxu2 }
 0x2e9   :  { %13594 = vst [vmem:[#allocation102_spill] sm:$0xff] %v9456_v44  ;;  %v9465_v59 = vadd.f32 %v9423_v38, %v1540_v50  ;;  %v1494_v50 = vadd.f32 %v13615_v36, %v13614_v31  ;;  %v1530_v63 = vmul.f32 %v9408_v5, %v1495_v18  ;;  %v13641_v44 = vld [vmem:[#allocation50_spill] sm:$0xff] }
 0x2eb   :  { %13595 = vst [vmem:[#allocation103_spill] sm:$0xff] %v9465_v59  ;;  %v13321_v30 = vmax.f32 %v9465_v59, 0.0  ;;  %v9564_v51 = vadd.f32 %v9423_v38, %v1530_v63 }
 0x2ec   :  { %v1434_v26 = vpop.f32.mrf.mxu0 }
 0x2ed   :  { %v1506_v13 = vadd.f32 %v1434_v26, %v1358_v39  ;;  %v1534_v39 = vmul.f32 %v9408_v5, %v1499_v2  ;;  %13619 = vst [vmem:[#allocation81_spill] sm:$0xff] %v9564_v51 }
 0x2ef   :  { %1481 = vmatmul.f32.gmra.mxu0 %v13554_v61  ;;  %v1541_v62 = vmul.f32 %v9408_v5, %v1506_v13  ;;  %v9476_v56 = vpop.f32.mrf.mxu3  ;;  %v1533_v13 = vmul.f32 %v9408_v5, %v1498_v37  ;;  %v9527_v12 = vadd.f32 %v9423_v38, %v1534_v39 }
 0x2f0   :  { %13597 = vst [vmem:[#allocation105_spill] sm:$0xff] %v9476_v56  ;;  %v9509_v32 = vpop.f32.mrf.mxu2  ;;  %v13635_v56 = vld [vmem:[#allocation55_spill] sm:$0xff] }
 0x2f1   :  { %v9454_v43 = vadd.f32 %v9423_v38, %v1541_v62  ;;  %13611 = vst [vmem:[#allocation84_spill] sm:$0xff] %v9527_v12 }
 0x2f3   :  { %13593 = vst [vmem:[#allocation101_spill] sm:$0xff] %v9454_v43  ;;  %v13320_v1 = vmax.f32 %v9454_v43, 0.0 }
 0x2f4   :  { %v1437_v6 = vpop.f32.mrf.mxu0 }
 0x2f5   :  { %v1507_v10 = vadd.f32 %v1437_v6, %v1359_v24  ;;  %v1535_v24 = vmul.f32 %v9408_v5, %v1500_v8  ;;  %v13327_v8 = vmax.f32 %v9527_v12, 0.0  ;;  %v13630_v12 = vld [vmem:[#allocation78_spill] sm:$0xff] }
 0x2f7   :  { %1484 = vmatmul.f32.gmra.mxu0 %v13554_v61  ;;  %v1542_v6 = vmul.f32 %v9408_v5, %v1507_v10  ;;  %v9529_v23 = vpop.f32.mrf.mxu3 }
 0x2f8   :  { %13612 = vst [vmem:[#allocation62_spill] sm:$0xff] %v9529_v23  ;;  %v9558_v37 = vpop.f32.mrf.mxu2 }
 0x2f9   :  { %v9442_v0 = vadd.f32 %v9423_v38, %v1542_v6  ;;  %v1532_v6 = vmul.f32 %v9408_v5, %v1497_v60 }
 0x2fb   :  { %13591 = vst [vmem:[#allocation99_spill] sm:$0xff] %v9442_v0  ;;  %v13319_v34 = vmax.f32 %v9442_v0, 0.0  ;;  %v9547_v53 = vadd.f32 %v9423_v38, %v1532_v6 }
 0x2fc   :  { %v1440_v33 = vpop.f32.mrf.mxu0 }
 0x2fd   :  { %v1508_v11 = vadd.f32 %v1440_v33, %v1360_v29  ;;  %v1536_v29 = vmul.f32 %v9408_v5, %v1501_v46  ;;  %v9540_v46 = vadd.f32 %v9423_v38, %v1533_v13  ;;  %13617 = vst [vmem:[#allocation82_spill] sm:$0xff] %v9547_v53 }
 0x2ff   :  { %1487 = vmatmul.f32.gmra.mxu0 %v13554_v61  ;;  %v1543_v17 = vmul.f32 %v9408_v5, %v1508_v11  ;;  %v9498_v11 = vpop.f32.mrf.mxu1  ;;  %v9507_v10 = vadd.f32 %v9423_v38, %v1536_v29  ;;  %13616 = vst [vmem:[#allocation61_spill] sm:$0xff] %v9540_v46  ;;  %v1529_v29 = vmul.f32 %v9408_v5, %v1494_v50  ;;  %v13328_v48 = vmax.f32 %v9540_v46, 0.0 }
 0x300   :  { %v9586_v14 = vpop.f32.mrf.mxu2 }
 0x301   :  { %v9435_v26 = vadd.f32 %v9423_v38, %v1543_v17  ;;  %13605 = vst [vmem:[#allocation85_spill] sm:$0xff] %v9507_v10  ;;  %v13324_v17 = vmax.f32 %v9496_v47, 0.0  ;;  %v9572_v39 = vadd.f32 %v9423_v38, %v1529_v29  ;;  %v13628_v47 = vld [vmem:[#allocation79_spill] sm:$0xff] }
 0x303   :  { %13590 = vst [vmem:[#allocation98_spill] sm:$0xff] %v9435_v26  ;;  %v13318_v15 = vmax.f32 %v9435_v26, 0.0 }
 0x304   :  { %v1443_v40 = vpop.f32.mrf.mxu0  ;;  %13621 = vst [vmem:[#allocation109_spill] sm:$0xff] %v9572_v39 }
 0x305   :  { %v1509_v35 = vadd.f32 %v1443_v40, %v1361_v4  ;;  %v13323_v4 = vmax.f32 %v9485_v52, 0.0  ;;  %v13607_v40 = vld [vmem:[#allocation83_spill] sm:$0xff]  ;;  %v13627_v52 = vld [vmem:[#allocation58_spill] sm:$0xff] }
 0x306   :  { %v1496_v45 = vadd.f32 %v13607_v40, %v13606_v7  ;;  %v9574_v7 = vpop.f32.mrf.mxu3  ;;  %v13331_v40 = vmax.f32 %v9564_v51, 0.0  ;;  %v13631_v51 = vld [vmem:[#allocation56_spill] sm:$0xff] }
 0x307   :  { %v1544_v33 = vmul.f32 %v9408_v5, %v1509_v35  ;;  %1490 = vmatmul.f32.gmra.mxu0 %v13554_v61  ;;  %v9518_v35 = vadd.f32 %v9423_v38, %v1535_v24  ;;  %v9549_v2 = vpop.f32.mrf.mxu1  ;;  %v13329_v24 = vmax.f32 %v9547_v53, 0.0  ;;  %13622 = vst [vmem:[#allocation110_spill] sm:$0xff] %v9574_v7  ;;  %v13640_v7 = vld [vmem:[#allocation74_spill] sm:$0xff] }
 0x308   :  { %v1531_v41 = vmul.f32 %v9408_v5, %v1496_v45  ;;  %v13332_v45 = vmax.f32 %v9572_v39, 0.0  ;;  %v9594_v36 = vpop.f32.mrf.mxu2  ;;  %v13632_v39 = vld [vmem:[#allocation77_spill] sm:$0xff] }
 0x309   :  { %v9432_v22 = vadd.f32 %v9423_v38, %v1544_v33  ;;  %13608 = vst [vmem:[#allocation63_spill] sm:$0xff] %v9518_v35  ;;  %v13325_v33 = vmax.f32 %v9507_v10, 0.0  ;;  %v13326_v54 = vmax.f32 %v9518_v35, 0.0  ;;  %v932_v10 = vadd.f32 %v13628_v47, %v13627_v52  ;;  %v13629_v35 = vld [vmem:[#allocation57_spill] sm:$0xff] }
 0x30a   :  { %v9556_v28 = vadd.f32 %v9423_v38, %v1531_v41  ;;  %v931_v46 = vadd.f32 %v13630_v12, %v13629_v35  ;;  %v13638_v35 = vld [vmem:[#allocation75_spill] sm:$0xff] }
 0x30b   :  { %13589 = vst [vmem:[#allocation97_spill] sm:$0xff] %v9432_v22  ;;  %v13317_v57 = vmax.f32 %v9432_v22, 0.0 }
 0x30c   :  { %v9446_v25 = vpop.f32.mrf.mxu0  ;;  %13618 = vst [vmem:[#allocation60_spill] sm:$0xff] %v9556_v28  ;;  %v13330_v60 = vmax.f32 %v9556_v28, 0.0 }
 0x30d   :  { %13592 = vst [vmem:[#allocation100_spill] sm:$0xff] %v9446_v25  ;;  %1679 = vmatpush.msra.mxu1 %v13317_v57  ;;  %v930_v25 = vadd.f32 %v13632_v39, %v13631_v51  ;;  %v13639_v39 = vld [vmem:[#allocation52_spill] sm:$0xff] }
 0x30e   :  { %v9590_v18 = vpop.f32.mrf.mxu3 }
 0x30f   :  { %1680 = vmatpush.msra.mxu1 %v13318_v15  ;;  %v9582_v13 = vpop.f32.mrf.mxu1 }
 0x310   :  { %v1177_v29 = vpop.f32.mrf.mxu2 }
 0x311   :  { %1681 = vmatpush.msra.mxu1 %v13319_v34 }
 0x313   :  { %1682 = vmatpush.msra.mxu1 %v13320_v1 }
 0x314   :  { %v9487_v42 = vpop.f32.mrf.mxu0 }
 0x315   :  { %13599 = vst [vmem:[#allocation107_spill] sm:$0xff] %v9487_v42  ;;  %1683 = vmatpush.msra.mxu1 %v13321_v30  ;;  %v13633_v42 = vld [vmem:[#allocation59_spill] sm:$0xff] }
 0x316   :  { %v9596_v50 = vpop.f32.mrf.mxu3 }
 0x317   :  { %1684 = vmatpush.msra.mxu1 %v13322_v55  ;;  %v1026_v6 = vpop.f32.mrf.mxu1 }
 0x318   :  { %v1180_v1 = vpop.f32.mrf.mxu2 }
 0x319   :  { %1685 = vmatpush.msra.mxu1 %v13323_v4 }
 0x31b   :  { %1686 = vmatpush.msra.mxu1 %v13324_v17 }
 0x31c   :  { %v9531_v62 = vpop.f32.mrf.mxu0 }
 0x31d   :  { %13613 = vst [vmem:[#allocation83_spill] sm:$0xff] %v9531_v62  ;;  %1687 = vmatpush.msra.mxu1 %v13325_v33  ;;  %v13634_v62 = vld [vmem:[#allocation80_spill] sm:$0xff] }
 0x31e   :  { %v9600_v57 = vpop.f32.mrf.mxu3 }
 0x31f   :  { %1688 = vmatpush.msra.mxu1 %v13326_v54  ;;  %v1029_v63 = vpop.f32.mrf.mxu1 }
 0x320   :  { %v1183_v17 = vpop.f32.mrf.mxu2 }
 0x321   :  { %1689 = vmatpush.msra.mxu1 %v13327_v8 }
 0x323   :  { %1690 = vmatpush.msra.mxu1 %v13328_v48 }
 0x324   :  { %v9566_v27 = vpop.f32.mrf.mxu0 }
 0x325   :  { %13620 = vst [vmem:[#allocation108_spill] sm:$0xff] %v9566_v27  ;;  %1691 = vmatpush.msra.mxu1 %v13329_v24  ;;  %v933_v27 = vadd.f32 %v13634_v62, %v13633_v42  ;;  %v927_v42 = vadd.f32 %v13640_v7, %v13639_v39  ;;  %v13651_v39 = vld [vmem:[#allocation40_spill] sm:$0xff] }
 0x326   :  { %v1328_v55 = vpop.f32.mrf.mxu3 }
 0x327   :  { %1692 = vmatpush.msra.mxu1 %v13330_v60  ;;  %v1032_v34 = vpop.f32.mrf.mxu1 }
 0x328   :  { %v1186_v24 = vpop.f32.mrf.mxu2 }
 0x329   :  { %1693 = vmatpush.msra.mxu1 %v13331_v40 }
 0x32b   :  { %1694 = vmatpush.msra.mxu1 %v13332_v45 }
 0x32c   :  { %v9588_v16 = vpop.f32.mrf.mxu0 }
 0x32d   :  { %13623 = vst [vmem:[#allocation111_spill] sm:$0xff] %v9588_v16 }
 0x32e   :  { %v1331_v54 = vpop.f32.mrf.mxu3 }
 0x32f   :  { %v1035_v4 = vpop.f32.mrf.mxu1 }
 0x330   :  { %v1189_v61 = vpop.f32.mrf.mxu2 }
 0x334   :  { %v9592_v31 = vpop.f32.mrf.mxu0 }
 0x335   :  { %13624 = vst [vmem:[#allocation112_spill] sm:$0xff] %v9592_v31 }
 0x336   :  { %v1334_v60 = vpop.f32.mrf.mxu3 }
 0x337   :  { %v1038_v8 = vpop.f32.mrf.mxu1 }
 0x338   :  { %v1192_v43 = vpop.f32.mrf.mxu2  ;;  %v1078_v23 = vadd.f32 %v1038_v8, %v930_v25 }
 0x33a   :  { %v1226_v12 = vadd.f32 %v1186_v24, %v1078_v23  ;;  %v13644_v23 = vld [vmem:[#allocation72_spill] sm:$0xff] }
 0x33c   :  { %v9598_v41 = vpop.f32.mrf.mxu0 }
 0x33d   :  { %13625 = vst [vmem:[#allocation113_spill] sm:$0xff] %v9598_v41  ;;  %v929_v41 = vadd.f32 %v13636_v49, %v13635_v56  ;;  %v13642_v49 = vld [vmem:[#allocation73_spill] sm:$0xff]  ;;  %v1075_v56 = vadd.f32 %v1029_v63, %v927_v42  ;;  %v13648_v63 = vld [vmem:[#allocation70_spill] sm:$0xff]  ;;  %v13652_v42 = vld [vmem:[#allocation68_spill] sm:$0xff] }
 0x33e   :  { %v1337_v22 = vpop.f32.mrf.mxu3  ;;  %v926_v25 = vadd.f32 %v13642_v49, %v13641_v44  ;;  %v13655_v49 = vld [vmem:[#allocation67_spill] sm:$0xff] }
 0x33f   :  { %v1041_v45 = vpop.f32.mrf.mxu1 }
 0x340   :  { %v1079_v9 = vadd.f32 %v1041_v45, %v931_v46  ;;  %v1195_v20 = vpop.f32.mrf.mxu2 }
 0x342   :  { %v1227_v47 = vadd.f32 %v1189_v61, %v1079_v9  ;;  %v1374_v9 = vadd.f32 %v1334_v60, %v1226_v12 }
 0x344   :  { %v9602_v15 = vpop.f32.mrf.mxu0 }
 0x345   :  { %13626 = vst [vmem:[#allocation114_spill] sm:$0xff] %v9602_v15 }
 0x346   :  { %v1340_v58 = vpop.f32.mrf.mxu3 }
 0x347   :  { %v1044_v0 = vpop.f32.mrf.mxu1 }
 0x348   :  { %v1080_v53 = vadd.f32 %v1044_v0, %v932_v10  ;;  %v928_v0 = vadd.f32 %v13638_v35, %v13637_v19  ;;  %v1077_v10 = vadd.f32 %v1035_v4, %v929_v41  ;;  %v13643_v4 = vld [vmem:[#allocation48_spill] sm:$0xff]  ;;  %v13650_v35 = vld [vmem:[#allocation69_spill] sm:$0xff] }
 0x349   :  { %v13647_v41 = vld [vmem:[#allocation44_spill] sm:$0xff] }
 0x34a   :  { %v1228_v16 = vadd.f32 %v1192_v43, %v1080_v53  ;;  %v1076_v43 = vadd.f32 %v1032_v34, %v928_v0  ;;  %v1225_v46 = vadd.f32 %v1183_v17, %v1077_v10  ;;  %v1375_v53 = vadd.f32 %v1337_v22, %v1227_v47  ;;  %v13646_v17 = vld [vmem:[#allocation71_spill] sm:$0xff] }
 0x34c   :  { %v9604_v30 = vpop.f32.mrf.mxu0  ;;  %v1376_v15 = vadd.f32 %v1340_v58, %v1228_v16  ;;  %v1224_v61 = vadd.f32 %v1180_v1, %v1076_v43  ;;  %v925_v58 = vadd.f32 %v13644_v23, %v13643_v4 }
 0x34e   :  { %v1343_v62 = vpop.f32.mrf.mxu3  ;;  %v1073_v44 = vadd.f32 %v9582_v13, %v925_v58  ;;  %v1372_v60 = vadd.f32 %v1328_v55, %v1224_v61 }
 0x34f   :  { %v1047_v28 = vpop.f32.mrf.mxu1 }
 0x350   :  { %v1081_v52 = vadd.f32 %v1047_v28, %v933_v27  ;;  %v1223_v28 = vadd.f32 %v1177_v29, %v1075_v56  ;;  %v1373_v27 = vadd.f32 %v1331_v54, %v1225_v46  ;;  %v923_v54 = vadd.f32 %v13648_v63, %v13647_v41  ;;  %v13656_v56 = vld [vmem:[#allocation102_spill] sm:$0xff]  ;;  %v13666_v63 = vld [vmem:[#allocation65_spill] sm:$0xff] }
 0x351   :  { %v1221_v29 = vadd.f32 %v9586_v14, %v1073_v44  ;;  %v13664_v44 = vld [vmem:[#allocation113_spill] sm:$0xff]  ;;  %v13665_v41 = vld [vmem:[#allocation34_spill] sm:$0xff] }
 0x352   :  { %v1229_v51 = vadd.f32 %v1195_v20, %v1081_v52  ;;  %v1074_v20 = vadd.f32 %v1026_v6, %v926_v25  ;;  %v1371_v52 = vadd.f32 %v9600_v57, %v1223_v28  ;;  %v1071_v10 = vadd.f32 %v9498_v11, %v923_v54  ;;  %v13659_v28 = vld [vmem:[#allocation36_spill] sm:$0xff] }
 0x353   :  { %v918_v54 = vadd.f32 %v13666_v63, %v13665_v41  ;;  %v1669_v41 = vld [vmem:[%s13653_s16 + $0x38] sm:$0xff]  ;;  %v13682_v63 = vld [vmem:[#allocation100_spill] sm:$0xff] }
 0x354   :  { %v9606_v33 = vpop.f32.mrf.mxu0  ;;  %v1377_v8 = vadd.f32 %v1343_v62, %v1229_v51  ;;  %v1222_v1 = vadd.f32 %v9594_v36, %v1074_v20  ;;  %v921_v62 = vadd.f32 %v13652_v42, %v13651_v39  ;;  %v1219_v11 = vadd.f32 %v9509_v32, %v1071_v10  ;;  %v13672_v42 = vld [vmem:[#allocation90_spill] sm:$0xff] }
 0x355   :  { %v1519_v57 = vadd.f32 %v9606_v33, %v1371_v52  ;;  %v1628_v33 = vld [vmem:[%s13294_s9] sm:$0xff]  ;;  %v13668_v52 = vld [vmem:[#allocation93_spill] sm:$0xff] }
 0x356   :  { %v1370_v14 = vadd.f32 %v9596_v50, %v1222_v1  ;;  %v1677_v50 = vld [vmem:[%s13653_s16 + $0x78] sm:$0xff]  ;;  %1695 = vmatmul.f32.vlgmr.msra.gmra.mxu1 %v1628_v33 }
 0x357   :  { %1719 = vmatpush.msra.mxu3 %v1677_v50  ;;  %v1554_v23 = vmul.f32 %v9408_v5, %v1519_v57  ;;  %v1673_v57 = vld [vmem:[%s13653_s16 + $0x58] sm:$0xff] }
 0x358   :  { %v1518_v46 = vadd.f32 %v9604_v30, %v1370_v14  ;;  %v1069_v30 = vadd.f32 %v9402_v3, %v921_v62  ;;  %v1675_v3 = vld [vmem:[%s13653_s16 + $0x68] sm:$0xff] }
 0x359   :  { %v9721_v14 = vadd.f32 %v9423_v38, %v1554_v23  ;;  %v13678_v23 = vld [vmem:[#allocation91_spill] sm:$0xff] }
 0x35c   :  { %v1476_v48 = vpop.f32.mrf.mxu0 }
 0x35d   :  { %v1520_v47 = vadd.f32 %v1476_v48, %v1372_v60  ;;  %v1553_v60 = vmul.f32 %v9408_v5, %v1518_v46 }
 0x364   :  { %v1479_v40 = vpop.f32.mrf.mxu0 }
 0x36c   :  { %v1482_v26 = vpop.f32.mrf.mxu0 }
 0x36d   :  { %v1522_v7 = vadd.f32 %v1482_v26, %v1374_v9  ;;  %v13657_v9 = vld [vmem:[#allocation110_spill] sm:$0xff] }
 0x36f   :  { %v1557_v13 = vmul.f32 %v9408_v5, %v1522_v7  ;;  %v13661_v7 = vld [vmem:[#allocation92_spill] sm:$0xff] }
 0x371   :  { %v9673_v32 = vadd.f32 %v9423_v38, %v1557_v13  ;;  %v13669_v13 = vld [vmem:[#allocation105_spill] sm:$0xff] }
 0x374   :  { %v1485_v59 = vpop.f32.mrf.mxu0 }
 0x375   :  { %v1523_v19 = vadd.f32 %v1485_v59, %v1375_v53  ;;  %v1521_v59 = vadd.f32 %v1479_v40, %v1373_v27  ;;  %v13649_v40 = vld [vmem:[#allocation42_spill] sm:$0xff]  ;;  %v1555_v53 = vmul.f32 %v9408_v5, %v1520_v47 }
 0x376   :  { %v922_v0 = vadd.f32 %v13650_v35, %v13649_v40  ;;  %v13670_v35 = vld [vmem:[#allocation112_spill] sm:$0xff] }
 0x377   :  { %v1556_v48 = vmul.f32 %v9408_v5, %v1521_v59  ;;  %v13353_v59 = vmax.f32 %v9673_v32, 0.0 }
 0x378   :  { %v1070_v43 = vadd.f32 %v9444_v21, %v922_v0 }
 0x379   :  { %v9689_v20 = vadd.f32 %v9423_v38, %v1556_v48  ;;  %v13671_v48 = vld [vmem:[#allocation86_spill] sm:$0xff] }
 0x37a   :  { %v1218_v61 = vadd.f32 %v13656_v56, %v1070_v43  ;;  %v1066_v39 = vadd.f32 %v13671_v48, %v918_v54  ;;  %v13673_v43 = vld [vmem:[#allocation96_spill] sm:$0xff] }
 0x37b   :  { %v13677_v56 = vld [vmem:[#allocation108_spill] sm:$0xff] }
 0x37c   :  { %v1488_v31 = vpop.f32.mrf.mxu0  ;;  %v1366_v40 = vadd.f32 %v13669_v13, %v1218_v61 }
 0x37d   :  { %v1524_v45 = vadd.f32 %v1488_v31, %v1376_v15  ;;  %v13645_v15 = vld [vmem:[#allocation46_spill] sm:$0xff]  ;;  %v1558_v31 = vmul.f32 %v9408_v5, %v1523_v19 }
 0x37e   :  { %v924_v16 = vadd.f32 %v13646_v17, %v13645_v15  ;;  %v13658_v19 = vld [vmem:[#allocation114_spill] sm:$0xff] }
 0x37f   :  { %v1559_v34 = vmul.f32 %v9408_v5, %v1524_v45  ;;  %v9654_v51 = vadd.f32 %v9423_v38, %v1558_v31  ;;  %v13654_v45 = vld [vmem:[#allocation38_spill] sm:$0xff]  ;;  %v9705_v31 = vadd.f32 %v9423_v38, %v1555_v53  ;;  %v9735_v53 = vadd.f32 %v9423_v38, %v1553_v60 }
 0x380   :  { %v1072_v26 = vadd.f32 %v9549_v2, %v924_v16  ;;  %v920_v25 = vadd.f32 %v13655_v49, %v13654_v45  ;;  %v13663_v17 = vld [vmem:[#allocation62_spill] sm:$0xff]  ;;  %v13675_v45 = vld [vmem:[#allocation87_spill] sm:$0xff] }
 0x381   :  { %v9643_v55 = vadd.f32 %v9423_v38, %v1559_v34  ;;  %v13352_v58 = vmax.f32 %v9654_v51, 0.0  ;;  %v1367_v16 = vadd.f32 %v13663_v17, %v1219_v11  ;;  %v1622_v46 = vmax.f32 %v9705_v31, 0.0 }
 0x382   :  { %v1220_v2 = vadd.f32 %v9558_v37, %v1072_v26  ;;  %v1369_v37 = vadd.f32 %v9590_v18, %v1221_v29  ;;  %v1676_v18 = vld [vmem:[%s13653_s16 + $0x70] sm:$0xff]  ;;  %v1068_v34 = vadd.f32 %v13661_v7, %v920_v25  ;;  %v1214_v49 = vadd.f32 %v13675_v45, %v1066_v39  ;;  %v13676_v25 = vld [vmem:[#allocation94_spill] sm:$0xff]  ;;  %v1666_v39 = vld [vmem:[%s13653_s16 + $0x20] sm:$0xff] }
 0x383   :  { %v13351_v21 = vmax.f32 %v9643_v55, 0.0  ;;  %1720 = vmatpush.msra.mxu3 %v1676_v18  ;;  %v13667_v26 = vld [vmem:[#allocation89_spill] sm:$0xff]  ;;  %v1515_v0 = vadd.f32 %v13670_v35, %v1367_v16  ;;  %v1620_v7 = vmax.f32 %v9735_v53, 0.0  ;;  %v13681_v16 = vld [vmem:[#allocation107_spill] sm:$0xff] }
 0x384   :  { %v1491_v24 = vpop.f32.mrf.mxu0  ;;  %v1517_v4 = vadd.f32 %v13658_v19, %v1369_v37  ;;  %v1216_v47 = vadd.f32 %v13668_v52, %v1068_v34  ;;  %v13674_v37 = vld [vmem:[#allocation111_spill] sm:$0xff]  ;;  %v1672_v18 = vld [vmem:[%s13653_s16 + $0x50] sm:$0xff] }
 0x385   :  { %v1525_v22 = vadd.f32 %v1491_v24, %v1377_v8  ;;  %v1368_v8 = vadd.f32 %v13657_v9, %v1220_v2  ;;  %v13660_v24 = vld [vmem:[#allocation66_spill] sm:$0xff]  ;;  %1721 = vmatpush.msra.mxu3 %v1675_v3  ;;  %v13354_v2 = vmax.f32 %v9689_v20, 0.0  ;;  %v1514_v33 = vadd.f32 %v13674_v37, %v1366_v40  ;;  %v1664_v37 = vld [vmem:[%s13653_s16 + $0x10] sm:$0xff]  ;;  %v1662_v45 = vld [vmem:[%s13653_s16] sm:$0xff] }
 0x386   :  { %v919_v27 = vadd.f32 %v13660_v24, %v13659_v28  ;;  %v1552_v10 = vmul.f32 %v9408_v5, %v1517_v4  ;;  %v1550_v9 = vmul.f32 %v9408_v5, %v1515_v0  ;;  %v1671_v4 = vld [vmem:[%s13653_s16 + $0x48] sm:$0xff]  ;;  %v13679_v28 = vld [vmem:[#allocation83_spill] sm:$0xff] }
 0x387   :  { %v1560_v6 = vmul.f32 %v9408_v5, %v1525_v22  ;;  %v13662_v22 = vld [vmem:[#allocation95_spill] sm:$0xff]  ;;  %v1516_v1 = vadd.f32 %v13664_v44, %v1368_v8  ;;  %v1621_v8 = vmax.f32 %v9721_v14, 0.0  ;;  %v1667_v0 = vld [vmem:[%s13653_s16 + $0x28] sm:$0xff] }
 0x388   :  { %v1217_v15 = vadd.f32 %v13662_v22, %v1069_v30  ;;  %v1067_v29 = vadd.f32 %v13667_v26, %v919_v27  ;;  %v1364_v30 = vadd.f32 %v13676_v25, %v1216_v47  ;;  %v9748_v19 = vadd.f32 %v9423_v38, %v1552_v10  ;;  %v1670_v22 = vld [vmem:[%s13653_s16 + $0x40] sm:$0xff]  ;;  %v1668_v47 = vld [vmem:[%s13653_s16 + $0x30] sm:$0xff] }
 0x389   :  { %v9640_v36 = vadd.f32 %v9423_v38, %v1560_v6  ;;  %v1674_v6 = vld [vmem:[%s13653_s16 + $0x60] sm:$0xff]  ;;  %v1551_v50 = vmul.f32 %v9408_v5, %v1516_v1  ;;  %v1549_v27 = vmul.f32 %v9408_v5, %v1514_v33 }
 0x38a   :  { %v1215_v62 = vadd.f32 %v13672_v42, %v1067_v29  ;;  %v1365_v11 = vadd.f32 %v13673_v43, %v1217_v15  ;;  %1722 = vmatpush.msra.mxu3 %v1674_v6  ;;  %v1512_v24 = vadd.f32 %v13679_v28, %v1364_v30  ;;  %v13680_v15 = vld [vmem:[#allocation88_spill] sm:$0xff]  ;;  %v1619_v60 = vmax.f32 %v9748_v19, 0.0  ;;  %v2116_v14 = vld [vmem:[#allocation3 + $0x2e0] sm:$0xff] }
 0x38b   :  { %v13350_v12 = vmax.f32 %v9640_v36, 0.0  ;;  %v9760_v34 = vadd.f32 %v9423_v38, %v1551_v50  ;;  %v1362_v17 = vadd.f32 %v13680_v15, %v1214_v49  ;;  %v9772_v6 = vadd.f32 %v9423_v38, %v1550_v9 }
 0x38c   :  { %1723 = vmatpush.msra.mxu3 %v1673_v57  ;;  %v1513_v61 = vadd.f32 %v13677_v56, %v1365_v11  ;;  %v1363_v3 = vadd.f32 %v13678_v23, %v1215_v62  ;;  %v1547_v26 = vmul.f32 %v9408_v5, %v1512_v24  ;;  %v9783_v52 = vadd.f32 %v9423_v38, %v1549_v27  ;;  %v1665_v62 = vld [vmem:[%s13653_s16 + $0x18] sm:$0xff]  ;;  %v1678_v56 = vld [vmem:[%s13683_s28] sm:$0xff] }
 0x38d   :  { %1699 = vmatpush.msrb.mxu2 %v13350_v12  ;;  %v1510_v54 = vadd.f32 %v13682_v63, %v1362_v17  ;;  %v1618_v29 = vmax.f32 %v9760_v34, 0.0  ;;  %v1617_v40 = vmax.f32 %v9772_v6, 0.0  ;;  %1759 = vmatpush.msrb.mxu1 %v1678_v56  ;;  %v1630_v63 = vld [vmem:[%s13305_s20] sm:$0xff] }
 0x38e   :  { %1724 = vmatpush.msra.mxu3 %v1672_v18  ;;  %v1511_v44 = vadd.f32 %v13681_v16, %v1363_v3  ;;  %v1548_v1 = vmul.f32 %v9408_v5, %v1513_v61  ;;  %v1616_v57 = vmax.f32 %v9783_v52, 0.0  ;;  %v9803_v48 = vadd.f32 %v9423_v38, %v1547_v26  ;;  %v1663_v18 = vld [vmem:[%s13653_s16 + $0x8] sm:$0xff]  ;;  %v2048_v56 = vld [vmem:[#allocation3 + $0xc0] sm:$0xff] }
 0x38f   :  { %1700 = vmatpush.msrb.mxu2 %v13351_v21  ;;  %v1545_v10 = vmul.f32 %v9408_v5, %v1510_v54  ;;  %v1631_v26 = vld [vmem:[%s13305_s20 + $0x8] sm:$0xff] }
 0x390   :  { %1725 = vmatpush.msra.mxu3 %v1671_v4  ;;  %v1546_v13 = vmul.f32 %v9408_v5, %v1511_v44  ;;  %v9793_v35 = vadd.f32 %v9423_v38, %v1548_v1  ;;  %v1614_v43 = vmax.f32 %v9803_v48, 0.0 }
 0x391   :  { %1701 = vmatpush.msrb.mxu2 %v13352_v58  ;;  %v9821_v11 = vadd.f32 %v9423_v38, %v1545_v10  ;;  %v1635_v10 = vld [vmem:[%s13305_s20 + $0x28] sm:$0xff]  ;;  %v2114_v58 = vld [vmem:[#allocation3 + $0x2d0] sm:$0xff] }
 0x392   :  { %1726 = vmatpush.msra.mxu3 %v1670_v22  ;;  %v1615_v42 = vmax.f32 %v9793_v35, 0.0  ;;  %v9812_v5 = vadd.f32 %v9423_v38, %v1546_v13  ;;  %v1629_v38 = vld [vmem:[%s13294_s9 + $0x8] sm:$0xff]  ;;  %v1633_v13 = vld [vmem:[%s13305_s20 + $0x18] sm:$0xff] }
 0x393   :  { %1702 = vmatpush.msrb.mxu2 %v13353_v59  ;;  %v1612_v50 = vmax.f32 %v9821_v11, 0.0  ;;  %v2115_v59 = vld [vmem:[#allocation3 + $0x2d8] sm:$0xff] }
 0x394   :  { %1727 = vmatpush.msra.mxu3 %v1669_v41  ;;  %v1613_v33 = vmax.f32 %v9812_v5, 0.0 }
 0x395   :  { %1703 = vmatpush.msrb.mxu2 %v13354_v2 }
 0x396   :  { %1728 = vmatpush.msra.mxu3 %v1668_v47  ;;  %v1632_v47 = vld [vmem:[%s13305_s20 + $0x10] sm:$0xff] }
 0x397   :  { %1704 = vmatpush.msrb.mxu2 %v1622_v46 }
 0x398   :  { %1729 = vmatpush.msra.mxu3 %v1667_v0  ;;  %v1634_v0 = vld [vmem:[%s13305_s20 + $0x20] sm:$0xff] }
 0x399   :  { %1705 = vmatpush.msrb.mxu2 %v1621_v8 }
 0x39a   :  { %1730 = vmatpush.msra.mxu3 %v1666_v39  ;;  %v1636_v39 = vld [vmem:[%s13305_s20 + $0x30] sm:$0xff] }
 0x39b   :  { %1706 = vmatpush.msrb.mxu2 %v1620_v7 }
 0x39c   :  { %1731 = vmatpush.msra.mxu3 %v1665_v62  ;;  %v1637_v62 = vld [vmem:[%s13305_s20 + $0x38] sm:$0xff] }
 0x39d   :  { %1707 = vmatpush.msrb.mxu2 %v1619_v60 }
 0x39e   :  { %1732 = vmatpush.msra.mxu3 %v1664_v37  ;;  %v1638_v37 = vld [vmem:[%s13305_s20 + $0x40] sm:$0xff] }
 0x39f   :  { %1708 = vmatpush.msrb.mxu2 %v1618_v29 }
 0x3a0   :  { %1733 = vmatpush.msra.mxu3 %v1663_v18  ;;  %v1639_v18 = vld [vmem:[%s13305_s20 + $0x48] sm:$0xff] }
 0x3a1   :  { %1709 = vmatpush.msrb.mxu2 %v1617_v40 }
 0x3a2   :  { %1734 = vmatpush.msra.mxu3 %v1662_v45  ;;  %v2052_v45 = vld [vmem:[#allocation3 + $0xe0] sm:$0xff] }
 0x3a3   :  { %1710 = vmatpush.msrb.mxu2 %v1616_v57 }
 0x3a5   :  { %1711 = vmatpush.msrb.mxu2 %v1615_v42 }
 0x3a7   :  { %1712 = vmatpush.msrb.mxu2 %v1614_v43 }
 0x3a9   :  { %1713 = vmatpush.msrb.mxu2 %v1613_v33 }
 0x3ab   :  { %1714 = vmatpush.msrb.mxu2 %v1612_v50 }
 0x3ac   :  { %1715 = vmatmul.f32.vlgmr.msrb.gmra.mxu2 %v1629_v38  ;;  %v2054_v38 = vld [vmem:[#allocation3 + $0xf0] sm:$0xff] }
 0x3ad   :  { %2412 = vmatpush.msrb.mxu0 %v2054_v38  ;;  %v2071_v38 = vld [vmem:[#allocation3 + $0x178] sm:$0xff] }
 0x3af   :  { %2413 = vmatpush.msrb.mxu0 %v2052_v45  ;;  %v2030_v45 = vld [vmem:[#allocation3 + $0x30] sm:$0xff] }
 0x3d3   :  { %v1696_v49 = vpop.f32.mrf.mxu1 }
 0x42f   :  { %v1716_v25 = vpop.f32.mrf.mxu2 }
 0x430   :  { %v1717_v30 = vadd.f32 %v1716_v25, %v1696_v49  ;;  %v2050_v49 = vld [vmem:[#allocation3 + $0xd0] sm:$0xff] }
 0x431   :  { %v2086_v25 = vld [vmem:[#allocation3 + $0x1f0] sm:$0xff]  ;;  %2414 = vmatpush.msrb.mxu0 %v2050_v49  ;;  %v2068_v49 = vld [vmem:[#allocation3 + $0x160] sm:$0xff] }
 0x432   :  { %1735 = vmatmul.f32.vlgmr.msra.gmra.mxu3 %v1717_v30  ;;  %v2087_v30 = vld [vmem:[#allocation3 + $0x1f8] sm:$0xff] }
 0x433   :  { %2186 = vmatpush.msrb.mxu3 %v2086_v25  ;;  %2299 = vmatpush.msra.mxu1 %v2087_v30  ;;  %v2069_v25 = vld [vmem:[#allocation3 + $0x168] sm:$0xff]  ;;  %v2028_v30 = vld [vmem:[#allocation3 + $0x20] sm:$0xff] }
 0x434   :  { %2415 = vmatpush.msrb.mxu0 %v2048_v56  ;;  %v2066_v56 = vld [vmem:[#allocation3 + $0x150] sm:$0xff] }
 0x4b5   :  { %v1736_v61 = vpop.f32.mrf.mxu3 }
 0x4b6   :  { %v1739_v9 = vmax.f32 %v1736_v61, 0.0  ;;  %v2046_v61 = vld [vmem:[#allocation3 + $0xb0] sm:$0xff] }
 0x4b7   :  { %2416 = vmatpush.msrb.mxu0 %v2046_v61  ;;  %v2067_v61 = vld [vmem:[#allocation3 + $0x158] sm:$0xff] }
 0x4b8   :  { %7646 = vmatmul.msk.f32.vlgmr.msrb.gmra.mxu1 %vm1740_vm2, %v1739_v9  ;;  %v1640_v9 = vld [vmem:[%s13305_s20 + $0x50] sm:$0xff] }
 0x535   :  { %v1761_v4 = vpop.f32.mrf.mxu1 }
 0x536   :  { %v7647_v23 = vmul.f32 -1.442695, %v1761_v4  ;;  %v2084_v4 = vld [vmem:[#allocation3 + $0x1e0] sm:$0xff] }
 0x537   :  { %2187 = vmatpush.msrb.mxu3 %v2084_v4  ;;  %v2064_v4 = vld [vmem:[#allocation3 + $0x140] sm:$0xff] }
 0x538   :  { %7829 = vpow2.f32 %v7647_v23  ;;  %v2085_v23 = vld [vmem:[#allocation3 + $0x1e8] sm:$0xff] }
 0x539   :  { %2300 = vmatpush.msra.mxu1 %v2085_v23  ;;  %v2065_v23 = vld [vmem:[#allocation3 + $0x148] sm:$0xff] }
 0x53e   :  { %v7830_v3 = vpop.eup %7829 }
 0x53f   :  { %v1767_v28 = vadd.f32 1.0, %v7830_v3  ;;  %v2044_v3 = vld [vmem:[#allocation3 + $0xa0] sm:$0xff] }
 0x540   :  { %2417 = vmatpush.msrb.mxu0 %v2044_v3  ;;  %v2024_v3 = vld [vmem:[#allocation3] sm:$0xff] }
 0x541   :  { %7831 = vrcp.f32 %v1767_v28  ;;  %v1779_v15 = vand.u32 2147483648, %v1767_v28  ;;  %v1777_v16 = vand.u32 2147483647, %v1767_v28  ;;  %vm1773_vm4 = vweird.f32 %v1767_v28 }
 0x543   :  { %v1780_v1 = vor.u32 1.1754944e-38, %v1779_v15  ;;  %vm1778_vm6 = vcmp.eq.f32.partialorder %v1777_v16, 8.507059e+37  ;;  %v2081_v15 = vld [vmem:[#allocation3 + $0x1c8] sm:$0xff]  ;;  %v2078_v16 = vld [vmem:[#allocation3 + $0x1b0] sm:$0xff] }
 0x547   :  { %v7832_v24 = vpop.eup %7831 }
 0x548   :  { %v1769_v27 = vmul.f32 %v7832_v24, %v1767_v28  ;;  %vm1774_vm3 = vweird.f32 %v7832_v24  ;;  %v2082_v28 = vld [vmem:[#allocation3 + $0x1d0] sm:$0xff] }
 0x549   :  { %vm1775_vm5 = vmor %vm1773_vm4, %vm1774_vm3  ;;  %2188 = vmatpush.msrb.mxu3 %v2082_v28  ;;  %v1643_v28 = vld [vmem:[%s13305_s20 + $0x68] sm:$0xff]  ;;  %vm5198_vm4 = vcmask 261120  }
 0x54a   :  { %v1770_v22 = vsub.f32 1.0, %v1769_v27  ;;  %v2042_v27 = vld [vmem:[#allocation3 + $0x90] sm:$0xff] }
 0x54b   :  { %2418 = vmatpush.msrb.mxu0 %v2042_v27  ;;  %v2063_v27 = vld [vmem:[#allocation3 + $0x138] sm:$0xff] }
 0x54c   :  { %v1771_v17 = vmul.f32 %v7832_v24, %v1770_v22  ;;  %v2080_v22 = vld [vmem:[#allocation3 + $0x1c0] sm:$0xff] }
 0x54d   :  { %2189 = vmatpush.msrb.mxu3 %v2080_v22  ;;  %v2060_v22 = vld [vmem:[#allocation3 + $0x120] sm:$0xff] }
 0x54e   :  { %v1772_v44 = vadd.f32 %v7832_v24, %v1771_v17  ;;  %v2040_v17 = vld [vmem:[#allocation3 + $0x80] sm:$0xff] }
 0x54f   :  { %2419 = vmatpush.msrb.mxu0 %v2040_v17  ;;  %2190 = vmatpush.msrb.mxu3 %v2078_v16  ;;  %v2058_v17 = vld [vmem:[#allocation3 + $0x110] sm:$0xff]  ;;  %v2059_v16 = vld [vmem:[#allocation3 + $0x118] sm:$0xff] }
 0x550   :  { %v1776_v41 = vsel %vm1775_vm5, %v7832_v24, %v1772_v44  ;;  %v2083_v24 = vld [vmem:[#allocation3 + $0x1d8] sm:$0xff] }
 0x551   :  { %v1781_v54 = vsel %vm1778_vm6, %v1780_v1, %v1776_v41  ;;  %2301 = vmatpush.msra.mxu1 %v2083_v24  ;;  %v2079_v44 = vld [vmem:[#allocation3 + $0x1b8] sm:$0xff]  ;;  %v2038_v41 = vld [vmem:[#allocation3 + $0x70] sm:$0xff] }
 0x552   :  { %1894 = vmatpush.msra.mxu2 %v1781_v54  ;;  %v1641_v1 = vld [vmem:[%s13305_s20 + $0x58] sm:$0xff]  ;;  %2420 = vmatpush.msrb.mxu0 %v2038_v41  ;;  %v2077_v54 = vld [vmem:[#allocation3 + $0x1a8] sm:$0xff]  ;;  %v2062_v24 = vld [vmem:[#allocation3 + $0x130] sm:$0xff] }
 0x553   :  { %7648 = vmatmul.msk.f32.vlgmr.msra.gmra.mxu2 %vm1740_vm2, %v1630_v63  ;;  %2302 = vmatpush.msra.mxu1 %v2081_v15  ;;  %v2076_v63 = vld [vmem:[#allocation3 + $0x1a0] sm:$0xff]  ;;  %v2061_v15 = vld [vmem:[#allocation3 + $0x128] sm:$0xff]  ;;  %v1644_v41 = vld [vmem:[%s13305_s20 + $0x70] sm:$0xff] }
 0x554   :  { %2191 = vmatpush.msrb.mxu3 %v2076_v63  ;;  %v1645_v63 = vld [vmem:[%s13305_s20 + $0x78] sm:$0xff] }
 0x555   :  { %2303 = vmatpush.msra.mxu1 %v2079_v44  ;;  %v2056_v44 = vld [vmem:[#allocation3 + $0x100] sm:$0xff] }
 0x557   :  { %2304 = vmatpush.msra.mxu1 %v2077_v54  ;;  %v1646_v54 = vld [vmem:[%s13305_s20 + $0x80] sm:$0xff] }
 0x55b   :  { %7649 = vmatmul.msk.f32.gmra.mxu2 %vm1740_vm2, %v1631_v26  ;;  %v2036_v26 = vld [vmem:[#allocation3 + $0x60] sm:$0xff] }
 0x55c   :  { %2421 = vmatpush.msrb.mxu0 %v2036_v26 }
 0x563   :  { %7650 = vmatmul.msk.f32.gmra.mxu2 %vm1740_vm2, %v1632_v47  ;;  %v2074_v47 = vld [vmem:[#allocation3 + $0x190] sm:$0xff] }
 0x564   :  { %2192 = vmatpush.msrb.mxu3 %v2074_v47  ;;  %v13684_v47 = vld [vmem:[#allocation109_spill] sm:$0xff] }
 0x56b   :  { %7651 = vmatmul.msk.f32.gmra.mxu2 %vm1740_vm2, %v1633_v13  ;;  %v2075_v13 = vld [vmem:[#allocation3 + $0x198] sm:$0xff] }
 0x56c   :  { %2305 = vmatpush.msra.mxu1 %v2075_v13  ;;  %v13685_v13 = vmax.f32 %v13684_v47, 0.0 }
 0x573   :  { %7652 = vmatmul.msk.f32.gmra.mxu2 %vm1740_vm2, %v1634_v0  ;;  %v2034_v0 = vld [vmem:[#allocation3 + $0x50] sm:$0xff] }
 0x574   :  { %2422 = vmatpush.msrb.mxu0 %v2034_v0 }
 0x57b   :  { %7653 = vmatmul.msk.f32.gmra.mxu2 %vm1740_vm2, %v1635_v10  ;;  %v2072_v10 = vld [vmem:[#allocation3 + $0x180] sm:$0xff] }
 0x57c   :  { %2193 = vmatpush.msrb.mxu3 %v2072_v10  ;;  %v1647_v10 = vld [vmem:[%s13305_s20 + $0x88] sm:$0xff] }
 0x583   :  { %7654 = vmatmul.msk.f32.gmra.mxu2 %vm1740_vm2, %v1636_v39  ;;  %v2073_v39 = vld [vmem:[#allocation3 + $0x188] sm:$0xff] }
 0x584   :  { %2306 = vmatpush.msra.mxu1 %v2073_v39 }
 0x586   :  { %2307 = vmatpush.msra.mxu1 %v2071_v38 }
 0x588   :  { %2308 = vmatpush.msra.mxu1 %v2069_v25 }
 0x58a   :  { %2309 = vmatpush.msra.mxu1 %v2067_v61 }
 0x58b   :  { %7655 = vmatmul.msk.f32.gmra.mxu2 %vm1740_vm2, %v1637_v62  ;;  %v2032_v62 = vld [vmem:[#allocation3 + $0x40] sm:$0xff] }
 0x58c   :  { %2423 = vmatpush.msrb.mxu0 %v2032_v62  ;;  %2310 = vmatpush.msra.mxu1 %v2065_v23  ;;  %v13686_v62 = vld [vmem:[#allocation81_spill] sm:$0xff] }
 0x58e   :  { %2424 = vmatpush.msrb.mxu0 %v2030_v45  ;;  %2311 = vmatpush.msra.mxu1 %v2063_v27 }
 0x590   :  { %2425 = vmatpush.msrb.mxu0 %v2028_v30  ;;  %2312 = vmatpush.msra.mxu1 %v2061_v15  ;;  %v1651_v15 = vld [vmem:[%s13305_s20 + $0xa8] sm:$0xff] }
 0x592   :  { %2313 = vmatpush.msra.mxu1 %v2059_v16  ;;  %v13694_v16 = vld [vmem:[#allocation84_spill] sm:$0xff] }
 0x593   :  { %7656 = vmatmul.msk.f32.gmra.mxu2 %vm1740_vm2, %v1638_v37  ;;  %v2070_v37 = vld [vmem:[#allocation3 + $0x170] sm:$0xff] }
 0x594   :  { %2194 = vmatpush.msrb.mxu3 %v2070_v37  ;;  %v13687_v37 = vmax.f32 %v13686_v62, 0.0 }
 0x596   :  { %2195 = vmatpush.msrb.mxu3 %v2068_v49  ;;  %v13688_v49 = vld [vmem:[#allocation60_spill] sm:$0xff] }
 0x597   :  { %v13689_v25 = vmax.f32 %v13688_v49, 0.0 }
 0x598   :  { %2196 = vmatpush.msrb.mxu3 %v2066_v56  ;;  %v1649_v56 = vld [vmem:[%s13305_s20 + $0x98] sm:$0xff] }
 0x59a   :  { %2197 = vmatpush.msrb.mxu3 %v2064_v4 }
 0x59b   :  { %7657 = vmatmul.msk.f32.gmra.mxu2 %vm1740_vm2, %v1639_v18  ;;  %v1642_v18 = vld [vmem:[%s13305_s20 + $0x60] sm:$0xff] }
 0x59c   :  { %2198 = vmatpush.msrb.mxu3 %v2062_v24  ;;  %v13692_v24 = vld [vmem:[#allocation61_spill] sm:$0xff] }
 0x59d   :  { %v13693_v27 = vmax.f32 %v13692_v24, 0.0  ;;  %v2047_v24 = vld [vmem:[#allocation3 + $0xb8] sm:$0xff] }
 0x59e   :  { %2199 = vmatpush.msrb.mxu3 %v2060_v22 }
 0x5a0   :  { %2200 = vmatpush.msrb.mxu3 %v2058_v17 }
 0x5a2   :  { %2201 = vmatpush.msrb.mxu3 %v2056_v44  ;;  %v13695_v44 = vmax.f32 %v13694_v16, 0.0 }
 0x5a3   :  { %7658 = vmatmul.msk.f32.gmra.mxu2 %vm1740_vm2, %v1640_v9  ;;  %v2026_v9 = vld [vmem:[#allocation3 + $0x10] sm:$0xff] }
 0x5a4   :  { %2426 = vmatpush.msrb.mxu0 %v2026_v9  ;;  %v13690_v9 = vld [vmem:[#allocation82_spill] sm:$0xff] }
 0x5a5   :  { %v13691_v4 = vmax.f32 %v13690_v9, 0.0 }
 0x5a6   :  { %2427 = vmatpush.msrb.mxu0 %v2024_v3  ;;  %v1650_v3 = vld [vmem:[%s13305_s20 + $0xa0] sm:$0xff] }
 0x5ab   :  { %7659 = vmatmul.msk.f32.gmra.mxu2 %vm1740_vm2, %v1641_v1  ;;  %v2057_v1 = vld [vmem:[#allocation3 + $0x108] sm:$0xff] }
 0x5ac   :  { %2314 = vmatpush.msra.mxu1 %v2057_v1 }
 0x5b3   :  { %7660 = vmatmul.msk.f32.gmra.mxu2 %vm1740_vm2, %v1642_v18  ;;  %v1648_v18 = vld [vmem:[%s13305_s20 + $0x90] sm:$0xff] }
 0x5bb   :  { %7661 = vmatmul.msk.f32.gmra.mxu2 %vm1740_vm2, %v1643_v28 }
 0x5c3   :  { %7662 = vmatmul.msk.f32.gmra.mxu2 %vm1740_vm2, %v1644_v41  ;;  %v1652_v41 = vld [vmem:[%s13305_s20 + $0xb0] sm:$0xff] }
 0x5cb   :  { %7663 = vmatmul.msk.f32.gmra.mxu2 %vm1740_vm2, %v1645_v63 }
 0x5d3   :  { %7664 = vmatmul.msk.f32.gmra.mxu2 %vm1740_vm2, %v1646_v54  ;;  %v13696_v54 = vld [vmem:[#allocation63_spill] sm:$0xff] }
 0x5d6   :  { %v1896_v26 = vpop.f32.mrf.mxu2 }
 0x5d7   :  { %v9917_v0 = vmul.f32 %v1896_v26, %v13685_v13  ;;  %v13697_v26 = vmax.f32 %v13696_v54, 0.0  ;;  %v1653_v13 = vld [vmem:[%s13305_s20 + $0xb8] sm:$0xff]  ;;  %v2041_v54 = vld [vmem:[#allocation3 + $0x88] sm:$0xff] }
 0x5d9   :  { %2428 = vmatmul.f32.vlgmr.msrb.gmra.mxu0 %v9917_v0 }
 0x5db   :  { %7665 = vmatmul.msk.f32.gmra.mxu2 %vm1740_vm2, %v1647_v10 }
 0x5de   :  { %v1899_v39 = vpop.f32.mrf.mxu2 }
 0x5df   :  { %v9926_v38 = vmul.f32 %v1899_v39, %v13687_v37  ;;  %v13698_v39 = vld [vmem:[#allocation85_spill] sm:$0xff] }
 0x5e0   :  { %v13699_v62 = vmax.f32 %v13698_v39, 0.0  ;;  %v13704_v39 = vld [vmem:[#allocation104_spill] sm:$0xff] }
 0x5e1   :  { %2202 = vmatmul.f32.vlgmr.msrb.gmra.mxu3 %v9926_v38  ;;  %2315 = vmatmul.f32.vlgmr.msra.gmra.mxu1 %v9926_v38 }
 0x5e2   :  { %2431 = vmatmul.f32.gmra.mxu0 %v9926_v38 }
 0x5e3   :  { %7666 = vmatmul.msk.f32.gmra.mxu2 %vm1740_vm2, %v1648_v18  ;;  %v1654_v18 = vld [vmem:[%s13305_s20 + $0xc0] sm:$0xff] }
 0x5e6   :  { %v1902_v45 = vpop.f32.mrf.mxu2 }
 0x5e7   :  { %v9937_v30 = vmul.f32 %v1902_v45, %v13689_v25  ;;  %v2055_v45 = vld [vmem:[#allocation3 + $0xf8] sm:$0xff]  ;;  %v2053_v25 = vld [vmem:[#allocation3 + $0xe8] sm:$0xff] }
 0x5e8   :  { %2525 = vmatpush.msrb.mxu2 %v2055_v45  ;;  %v2035_v45 = vld [vmem:[#allocation3 + $0x58] sm:$0xff] }
 0x5e9   :  { %2205 = vmatmul.f32.gmra.mxu3 %v9937_v30  ;;  %2318 = vmatmul.f32.gmra.mxu1 %v9937_v30 }
 0x5ea   :  { %2434 = vmatmul.f32.gmra.mxu0 %v9937_v30  ;;  %2526 = vmatpush.msrb.mxu2 %v2053_v25  ;;  %v2033_v25 = vld [vmem:[#allocation3 + $0x48] sm:$0xff] }
 0x5eb   :  { %7667 = vmatmul.msk.f32.gmra.mxu2 %vm1740_vm2, %v1649_v56  ;;  %v13700_v56 = vld [vmem:[#allocation64_spill] sm:$0xff] }
 0x5ee   :  { %v1905_v61 = vpop.f32.mrf.mxu2 }
 0x5ef   :  { %v9948_v23 = vmul.f32 %v1905_v61, %v13691_v4  ;;  %v13701_v61 = vmax.f32 %v13700_v56, 0.0  ;;  %v2051_v4 = vld [vmem:[#allocation3 + $0xd8] sm:$0xff] }
 0x5f0   :  { %2527 = vmatpush.msrb.mxu2 %v2051_v4  ;;  %v2031_v56 = vld [vmem:[#allocation3 + $0x38] sm:$0xff]  ;;  %v2029_v4 = vld [vmem:[#allocation3 + $0x28] sm:$0xff] }
 0x5f1   :  { %2208 = vmatmul.f32.gmra.mxu3 %v9948_v23  ;;  %2321 = vmatmul.f32.gmra.mxu1 %v9948_v23 }
 0x5f2   :  { %2437 = vmatmul.f32.gmra.mxu0 %v9948_v23 }
 0x5f3   :  { %7668 = vmatmul.msk.f32.gmra.mxu2 %vm1740_vm2, %v1650_v3  ;;  %v1655_v3 = vld [vmem:[%s13305_s20 + $0xc8] sm:$0xff] }
 0x5f6   :  { %v1908_v28 = vpop.f32.mrf.mxu2 }
 0x5f7   :  { %v9959_v22 = vmul.f32 %v1908_v28, %v13693_v27  ;;  %v2049_v28 = vld [vmem:[#allocation3 + $0xc8] sm:$0xff] }
 0x5f8   :  { %2528 = vmatpush.msrb.mxu2 %v2049_v28 }
 0x5f9   :  { %2211 = vmatmul.f32.gmra.mxu3 %v9959_v22  ;;  %2324 = vmatmul.f32.gmra.mxu1 %v9959_v22 }
 0x5fa   :  { %2440 = vmatmul.f32.gmra.mxu0 %v9959_v22  ;;  %2529 = vmatpush.msrb.mxu2 %v2047_v24 }
 0x5fb   :  { %7669 = vmatmul.msk.f32.gmra.mxu2 %vm1740_vm2, %v1651_v15  ;;  %v2045_v15 = vld [vmem:[#allocation3 + $0xa8] sm:$0xff] }
 0x5fc   :  { %2530 = vmatpush.msrb.mxu2 %v2045_v15  ;;  %v1658_v15 = vld [vmem:[%s13305_s20 + $0xe0] sm:$0xff] }
 0x5fe   :  { %v1911_v17 = vpop.f32.mrf.mxu2 }
 0x5ff   :  { %v9970_v1 = vmul.f32 %v1911_v17, %v13695_v44  ;;  %v13702_v17 = vld [vmem:[#allocation106_spill] sm:$0xff] }
 0x600   :  { %v13703_v16 = vmax.f32 %v13702_v17, 0.0  ;;  %v2025_v17 = vld [vmem:[#allocation3 + $0x8] sm:$0xff] }
 0x601   :  { %2214 = vmatmul.f32.gmra.mxu3 %v9970_v1  ;;  %2327 = vmatmul.f32.gmra.mxu1 %v9970_v1 }
 0x602   :  { %2443 = vmatmul.f32.gmra.mxu0 %v9970_v1 }
 0x603   :  { %7670 = vmatmul.msk.f32.gmra.mxu2 %vm1740_vm2, %v1652_v41  ;;  %v2043_v41 = vld [vmem:[#allocation3 + $0x98] sm:$0xff] }
 0x604   :  { %2531 = vmatpush.msrb.mxu2 %v2043_v41  ;;  %v13708_v41 = vld [vmem:[#allocation101_spill] sm:$0xff] }
 0x606   :  { %v1914_v63 = vpop.f32.mrf.mxu2  ;;  %2532 = vmatpush.msrb.mxu2 %v2041_v54 }
 0x607   :  { %v9981_v47 = vmul.f32 %v1914_v63, %v13697_v26  ;;  %v1656_v63 = vld [vmem:[%s13305_s20 + $0xd0] sm:$0xff]  ;;  %v2039_v26 = vld [vmem:[#allocation3 + $0x78] sm:$0xff] }
 0x608   :  { %2533 = vmatpush.msrb.mxu2 %v2039_v26  ;;  %v1659_v26 = vld [vmem:[%s13305_s20 + $0xe8] sm:$0xff] }
 0x609   :  { %2217 = vmatmul.f32.gmra.mxu3 %v9981_v47  ;;  %2330 = vmatmul.f32.gmra.mxu1 %v9981_v47 }
 0x60a   :  { %2446 = vmatmul.f32.gmra.mxu0 %v9981_v47 }
 0x60b   :  { %7671 = vmatmul.msk.f32.gmra.mxu2 %vm1740_vm2, %v1653_v13 }
 0x60e   :  { %v1917_v10 = vpop.f32.mrf.mxu2 }
 0x60f   :  { %v9992_v37 = vmul.f32 %v1917_v10, %v13699_v62  ;;  %v2037_v10 = vld [vmem:[#allocation3 + $0x68] sm:$0xff]  ;;  %v13705_v62 = vmax.f32 %v13704_v39, 0.0 }
 0x610   :  { %2534 = vmatpush.msrb.mxu2 %v2037_v10  ;;  %v13710_v10 = vld [vmem:[#allocation99_spill] sm:$0xff] }
 0x611   :  { %2220 = vmatmul.f32.gmra.mxu3 %v9992_v37  ;;  %2333 = vmatmul.f32.gmra.mxu1 %v9992_v37  ;;  %v13711_v39 = vmax.f32 %v13710_v10, 0.0 }
 0x612   :  { %2449 = vmatmul.f32.gmra.mxu0 %v9992_v37  ;;  %2535 = vmatpush.msrb.mxu2 %v2035_v45  ;;  %v1660_v45 = vld [vmem:[%s13305_s20 + $0xf0] sm:$0xff] }
 0x613   :  { %7672 = vmatmul.msk.f32.gmra.mxu2 %vm1740_vm2, %v1654_v18 }
 0x614   :  { %2536 = vmatpush.msrb.mxu2 %v2033_v25  ;;  %v13712_v25 = vld [vmem:[#allocation98_spill] sm:$0xff] }
 0x616   :  { %v1920_v49 = vpop.f32.mrf.mxu2  ;;  %2537 = vmatpush.msrb.mxu2 %v2031_v56  ;;  %v13713_v56 = vmax.f32 %v13712_v25, 0.0 }
 0x617   :  { %v10003_v9 = vmul.f32 %v1920_v49, %v13701_v61  ;;  %v1657_v49 = vld [vmem:[%s13305_s20 + $0xd8] sm:$0xff] }
 0x618   :  { %2538 = vmatpush.msrb.mxu2 %v2029_v4  ;;  %v1661_v4 = vld [vmem:[%s13305_s20 + $0xf8] sm:$0xff] }
 0x619   :  { %2223 = vmatmul.f32.gmra.mxu3 %v10003_v9  ;;  %2336 = vmatmul.f32.gmra.mxu1 %v10003_v9 }
 0x61a   :  { %2452 = vmatmul.f32.gmra.mxu0 %v10003_v9 }
 0x61b   :  { %7673 = vmatmul.msk.f32.gmra.mxu2 %vm1740_vm2, %v1655_v3  ;;  %v13706_v3 = vld [vmem:[#allocation103_spill] sm:$0xff] }
 0x61c   :  { %v13707_v28 = vmax.f32 %v13706_v3, 0.0 }
 0x61e   :  { %v1923_v27 = vpop.f32.mrf.mxu2 }
 0x61f   :  { %v10014_v44 = vmul.f32 %v1923_v27, %v13703_v16  ;;  %v2027_v27 = vld [vmem:[#allocation3 + $0x18] sm:$0xff] }
 0x620   :  { %2539 = vmatpush.msrb.mxu2 %v2027_v27 }
 0x621   :  { %2226 = vmatmul.f32.gmra.mxu3 %v10014_v44  ;;  %2339 = vmatmul.f32.gmra.mxu1 %v10014_v44 }
 0x622   :  { %2455 = vmatmul.f32.gmra.mxu0 %v10014_v44  ;;  %2540 = vmatpush.msrb.mxu2 %v2025_v17 }
 0x623   :  { %7674 = vmatmul.msk.f32.gmra.mxu2 %vm1740_vm2, %v1656_v63  ;;  %v13709_v63 = vmax.f32 %v13708_v41, 0.0 }
 0x626   :  { %v1926_v13 = vpop.f32.mrf.mxu2 }
 0x627   :  { %v10025_v18 = vmul.f32 %v1926_v13, %v13705_v62 }
 0x629   :  { %2229 = vmatmul.f32.gmra.mxu3 %v10025_v18  ;;  %2342 = vmatmul.f32.gmra.mxu1 %v10025_v18 }
 0x62a   :  { %2458 = vmatmul.f32.gmra.mxu0 %v10025_v18 }
 0x62b   :  { %7675 = vmatmul.msk.f32.gmra.mxu2 %vm1740_vm2, %v1657_v49 }
 0x62e   :  { %v1929_v61 = vpop.f32.mrf.mxu2 }
 0x62f   :  { %v10036_v24 = vmul.f32 %v1929_v61, %v13707_v28  ;;  %v13714_v28 = vld [vmem:[#allocation97_spill] sm:$0xff] }
 0x630   :  { %v13715_v27 = vmax.f32 %v13714_v28, 0.0 }
 0x631   :  { %2232 = vmatmul.f32.gmra.mxu3 %v10036_v24  ;;  %2345 = vmatmul.f32.gmra.mxu1 %v10036_v24 }
 0x632   :  { %2461 = vmatmul.f32.gmra.mxu0 %v10036_v24 }
 0x633   :  { %7676 = vmatmul.msk.f32.gmra.mxu2 %vm1740_vm2, %v1658_v15 }
 0x636   :  { %v1932_v16 = vpop.f32.mrf.mxu2 }
 0x637   :  { %v10047_v54 = vmul.f32 %v1932_v16, %v13709_v63 }
 0x639   :  { %2235 = vmatmul.f32.gmra.mxu3 %v10047_v54  ;;  %2348 = vmatmul.f32.gmra.mxu1 %v10047_v54 }
 0x63a   :  { %2464 = vmatmul.f32.gmra.mxu0 %v10047_v54 }
 0x63b   :  { %7677 = vmatmul.msk.f32.gmra.mxu2 %vm1740_vm2, %v1659_v26 }
 0x63e   :  { %v1935_v13 = vpop.f32.mrf.mxu2 }
 0x63f   :  { %v10058_v62 = vmul.f32 %v1935_v13, %v13711_v39 }
 0x641   :  { %2238 = vmatmul.f32.gmra.mxu3 %v10058_v62  ;;  %2351 = vmatmul.f32.gmra.mxu1 %v10058_v62 }
 0x642   :  { %2467 = vmatmul.f32.gmra.mxu0 %v10058_v62 }
 0x643   :  { %7678 = vmatmul.msk.f32.gmra.mxu2 %vm1740_vm2, %v1660_v45 }
 0x646   :  { %v1938_v49 = vpop.f32.mrf.mxu2 }
 0x647   :  { %v10069_v61 = vmul.f32 %v1938_v49, %v13713_v56 }
 0x649   :  { %2241 = vmatmul.f32.gmra.mxu3 %v10069_v61  ;;  %2354 = vmatmul.f32.gmra.mxu1 %v10069_v61 }
 0x64a   :  { %2470 = vmatmul.f32.gmra.mxu0 %v10069_v61 }
 0x64b   :  { %7679 = vmatmul.msk.f32.gmra.mxu2 %vm1740_vm2, %v1661_v4 }
 0x64e   :  { %v1941_v3 = vpop.f32.mrf.mxu2 }
 0x64f   :  { %v10080_v15 = vmul.f32 %v1941_v3, %v13715_v27 }
 0x651   :  { %2244 = vmatmul.f32.gmra.mxu3 %v10080_v15  ;;  %2357 = vmatmul.f32.gmra.mxu1 %v10080_v15 }
 0x652   :  { %2473 = vmatmul.f32.gmra.mxu0 %v10080_v15 }
 0x653   :  { %2541 = vmatmul.f32.vlgmr.msrb.gmra.mxu2 %v9917_v0 }
 0x656   :  { %v1944_v17 = vpop.f32.mrf.mxu2  ;;  %v2429_v16 = vpop.f32.mrf.mxu0 }
 0x657   :  { %v10088_v41 = vmul.f32 %v1944_v17, %v1612_v50 }
 0x659   :  { %2247 = vmatmul.f32.gmra.mxu3 %v10088_v41  ;;  %2360 = vmatmul.f32.gmra.mxu1 %v10088_v41 }
 0x65a   :  { %2476 = vmatmul.f32.gmra.mxu0 %v10088_v41 }
 0x65b   :  { %2544 = vmatmul.f32.gmra.mxu2 %v9926_v38 }
 0x65e   :  { %v1947_v63 = vpop.f32.mrf.mxu2  ;;  %v10094_v26 = vpop.f32.mrf.mxu1 }
 0x65f   :  { %v10098_v0 = vmul.f32 %v1947_v63, %v1613_v33  ;;  %v2432_v13 = vpop.f32.mrf.mxu0 }
 0x661   :  { %2250 = vmatmul.f32.gmra.mxu3 %v10098_v0  ;;  %2363 = vmatmul.f32.gmra.mxu1 %v10098_v0 }
 0x662   :  { %2479 = vmatmul.f32.gmra.mxu0 %v10098_v0 }
 0x663   :  { %2547 = vmatmul.f32.gmra.mxu2 %v9937_v30 }
 0x664   :  { %v2203_v11 = vpop.f32.mrf.mxu3 }
 0x665   :  { %v10104_v50 = vadd.f32 %v2429_v16, %v2203_v11 }
 0x666   :  { %v1950_v38 = vpop.f32.mrf.mxu2  ;;  %v10106_v10 = vpop.f32.mrf.mxu1 }
 0x667   :  { %v10110_v5 = vmul.f32 %v1950_v38, %v1614_v43  ;;  %v2435_v33 = vpop.f32.mrf.mxu0 }
 0x669   :  { %2253 = vmatmul.f32.gmra.mxu3 %v10110_v5  ;;  %2366 = vmatmul.f32.gmra.mxu1 %v10110_v5 }
 0x66a   :  { %2482 = vmatmul.f32.gmra.mxu0 %v10110_v5 }
 0x66b   :  { %2550 = vmatmul.f32.gmra.mxu2 %v9948_v23 }
 0x66c   :  { %v2206_v39 = vpop.f32.mrf.mxu3 }
 0x66d   :  { %v10116_v45 = vadd.f32 %v2432_v13, %v2206_v39 }
 0x66e   :  { %v1953_v49 = vpop.f32.mrf.mxu2  ;;  %v10118_v25 = vpop.f32.mrf.mxu1 }
 0x66f   :  { %v10122_v48 = vmul.f32 %v1953_v49, %v1615_v42  ;;  %v2438_v43 = vpop.f32.mrf.mxu0 }
 0x671   :  { %2256 = vmatmul.f32.gmra.mxu3 %v10122_v48  ;;  %2369 = vmatmul.f32.gmra.mxu1 %v10122_v48 }
 0x672   :  { %2485 = vmatmul.f32.gmra.mxu0 %v10122_v48 }
 0x673   :  { %2553 = vmatmul.f32.gmra.mxu2 %v9959_v22 }
 0x674   :  { %v2209_v56 = vpop.f32.mrf.mxu3 }
 0x675   :  { %v10128_v4 = vadd.f32 %v2435_v33, %v2209_v56 }
 0x676   :  { %v1956_v3 = vpop.f32.mrf.mxu2  ;;  %v10130_v28 = vpop.f32.mrf.mxu1 }
 0x677   :  { %13716 = vst [vmem:[#allocation58_spill] sm:$0xff] %v10130_v28  ;;  %v10134_v35 = vmul.f32 %v1956_v3, %v1616_v57  ;;  %v2441_v42 = vpop.f32.mrf.mxu0  ;;  %v2145_v28 = vld [vmem:[#allocation3 + $0x3c8] sm:$0xff] }
 0x679   :  { %2259 = vmatmul.f32.gmra.mxu3 %v10134_v35  ;;  %2372 = vmatmul.f32.gmra.mxu1 %v10134_v35 }
 0x67a   :  { %2488 = vmatmul.f32.gmra.mxu0 %v10134_v35 }
 0x67b   :  { %2556 = vmatmul.f32.gmra.mxu2 %v9970_v1 }
 0x67c   :  { %v2212_v27 = vpop.f32.mrf.mxu3 }
 0x67d   :  { %v10140_v17 = vadd.f32 %v2438_v43, %v2212_v27 }
 0x67e   :  { %v1959_v16 = vpop.f32.mrf.mxu2  ;;  %v10142_v63 = vpop.f32.mrf.mxu1 }
 0x67f   :  { %13717 = vst [vmem:[#allocation79_spill] sm:$0xff] %v10142_v63  ;;  %v10146_v52 = vmul.f32 %v1959_v16, %v1617_v40  ;;  %v2444_v57 = vpop.f32.mrf.mxu0 }
 0x681   :  { %2262 = vmatmul.f32.gmra.mxu3 %v10146_v52  ;;  %2375 = vmatmul.f32.gmra.mxu1 %v10146_v52 }
 0x682   :  { %2491 = vmatmul.f32.gmra.mxu0 %v10146_v52 }
 0x683   :  { %2559 = vmatmul.f32.gmra.mxu2 %v9981_v47 }
 0x684   :  { %v2215_v13 = vpop.f32.mrf.mxu3 }
 0x685   :  { %v10152_v11 = vadd.f32 %v2441_v42, %v2215_v13 }
 0x686   :  { %v1962_v38 = vpop.f32.mrf.mxu2  ;;  %v10154_v33 = vpop.f32.mrf.mxu1 }
 0x687   :  { %13718 = vst [vmem:[#allocation57_spill] sm:$0xff] %v10154_v33  ;;  %v10158_v6 = vmul.f32 %v1962_v38, %v1618_v29  ;;  %v2447_v40 = vpop.f32.mrf.mxu0  ;;  %v2148_v38 = vld [vmem:[#allocation3 + $0x3e0] sm:$0xff]  ;;  %v2093_v33 = vld [vmem:[#allocation3 + $0x228] sm:$0xff] }
 0x689   :  { %2265 = vmatmul.f32.gmra.mxu3 %v10158_v6  ;;  %2378 = vmatmul.f32.gmra.mxu1 %v10158_v6 }
 0x68a   :  { %2494 = vmatmul.f32.gmra.mxu0 %v10158_v6 }
 0x68b   :  { %2562 = vmatmul.f32.gmra.mxu2 %v9992_v37 }
 0x68c   :  { %v2218_v39 = vpop.f32.mrf.mxu3 }
 0x68d   :  { %v10164_v49 = vadd.f32 %v2444_v57, %v2218_v39  ;;  %v2150_v57 = vld [vmem:[#allocation3 + $0x3f0] sm:$0xff] }
 0x68e   :  { %v1965_v43 = vpop.f32.mrf.mxu2  ;;  %v10166_v56 = vpop.f32.mrf.mxu1  ;;  %2928 = vmatpush.msra.mxu0 %v2150_v57  ;;  %v2119_v57 = vld [vmem:[#allocation3 + $0x2f8] sm:$0xff] }
 0x68f   :  { %13719 = vst [vmem:[#allocation78_spill] sm:$0xff] %v10166_v56  ;;  %v10170_v34 = vmul.f32 %v1965_v43, %v1619_v60  ;;  %v2450_v29 = vpop.f32.mrf.mxu0  ;;  %2751 = vmatpush.msrb.mxu1 %v2119_v57  ;;  %v2138_v57 = vld [vmem:[#allocation3 + $0x390] sm:$0xff] }
 0x690   :  { %2929 = vmatpush.msra.mxu0 %v2148_v38  ;;  %v2098_v56 = vld [vmem:[#allocation3 + $0x250] sm:$0xff] }
 0x691   :  { %2268 = vmatmul.f32.gmra.mxu3 %v10170_v34  ;;  %2381 = vmatmul.f32.gmra.mxu1 %v10170_v34 }
 0x692   :  { %2497 = vmatmul.f32.gmra.mxu0 %v10170_v34 }
 0x693   :  { %2565 = vmatmul.f32.gmra.mxu2 %v10003_v9 }
 0x694   :  { %v2221_v3 = vpop.f32.mrf.mxu3 }
 0x695   :  { %v10176_v42 = vadd.f32 %v2447_v40, %v2221_v3 }
 0x696   :  { %v1968_v27 = vpop.f32.mrf.mxu2  ;;  %v10178_v16 = vpop.f32.mrf.mxu1 }
 0x697   :  { %13720 = vst [vmem:[#allocation56_spill] sm:$0xff] %v10178_v16  ;;  %v10182_v19 = vmul.f32 %v1968_v27, %v1620_v7  ;;  %v2453_v60 = vpop.f32.mrf.mxu0  ;;  %v2146_v7 = vld [vmem:[#allocation3 + $0x3d0] sm:$0xff]  ;;  %v2144_v27 = vld [vmem:[#allocation3 + $0x3c0] sm:$0xff] }
 0x698   :  { %2930 = vmatpush.msra.mxu0 %v2146_v7 }
 0x699   :  { %2271 = vmatmul.f32.gmra.mxu3 %v10182_v19  ;;  %2384 = vmatmul.f32.gmra.mxu1 %v10182_v19 }
 0x69a   :  { %2500 = vmatmul.f32.gmra.mxu0 %v10182_v19 }
 0x69b   :  { %2568 = vmatmul.f32.gmra.mxu2 %v10014_v44  ;;  %2931 = vmatpush.msra.mxu0 %v2144_v27 }
 0x69c   :  { %v2224_v13 = vpop.f32.mrf.mxu3 }
 0x69d   :  { %v10188_v40 = vadd.f32 %v2450_v29, %v2224_v13  ;;  %v2118_v29 = vld [vmem:[#allocation3 + $0x2f0] sm:$0xff] }
 0x69e   :  { %v1971_v39 = vpop.f32.mrf.mxu2  ;;  %v10190_v53 = vpop.f32.mrf.mxu1  ;;  %v2142_v13 = vld [vmem:[#allocation3 + $0x3b0] sm:$0xff]  ;;  %2638 = vmatpush.msra.mxu3 %v2118_v29  ;;  %v2112_v29 = vld [vmem:[#allocation3 + $0x2c0] sm:$0xff] }
 0x69f   :  { %13721 = vst [vmem:[#allocation77_spill] sm:$0xff] %v10190_v53  ;;  %v10194_v43 = vmul.f32 %v1971_v39, %v1621_v8  ;;  %v2456_v3 = vpop.f32.mrf.mxu0  ;;  %v2117_v8 = vld [vmem:[#allocation3 + $0x2e8] sm:$0xff]  ;;  %v2140_v39 = vld [vmem:[#allocation3 + $0x3a0] sm:$0xff]  ;;  %2932 = vmatpush.msra.mxu0 %v2142_v13  ;;  %v13724_v53 = vmax.f32 %v9689_v20, 0.0  ;;  %v2102_v20 = vld [vmem:[#allocation3 + $0x270] sm:$0xff] }
 0x6a0   :  { %2639 = vmatpush.msra.mxu3 %v2116_v14  ;;  %2752 = vmatpush.msrb.mxu1 %v2117_v8  ;;  %v2136_v13 = vld [vmem:[#allocation3 + $0x380] sm:$0xff]  ;;  %v2109_v14 = vld [vmem:[#allocation3 + $0x2a8] sm:$0xff] }
 0x6a1   :  { %2274 = vmatmul.f32.gmra.mxu3 %v10194_v43  ;;  %2387 = vmatmul.f32.gmra.mxu1 %v10194_v43 }
 0x6a2   :  { %2503 = vmatmul.f32.gmra.mxu0 %v10194_v43  ;;  %2640 = vmatpush.msra.mxu3 %v2114_v58  ;;  %v2134_v58 = vld [vmem:[#allocation3 + $0x370] sm:$0xff] }
 0x6a3   :  { %2571 = vmatmul.f32.gmra.mxu2 %v10025_v18  ;;  %2933 = vmatpush.msra.mxu0 %v2140_v39 }
 0x6a4   :  { %v2227_v38 = vpop.f32.mrf.mxu3  ;;  %2753 = vmatpush.msrb.mxu1 %v2115_v59  ;;  %2641 = vmatpush.msra.mxu3 %v2112_v29  ;;  %v2108_v59 = vld [vmem:[#allocation3 + $0x2a0] sm:$0xff]  ;;  %v2106_v29 = vld [vmem:[#allocation3 + $0x290] sm:$0xff] }
 0x6a5   :  { %v10200_v7 = vadd.f32 %v2453_v60, %v2227_v38  ;;  %v2113_v60 = vld [vmem:[#allocation3 + $0x2c8] sm:$0xff]  ;;  %v2110_v38 = vld [vmem:[#allocation3 + $0x2b0] sm:$0xff]  ;;  %2934 = vmatpush.msra.mxu0 %v2138_v57 }
 0x6a6   :  { %v1974_v12 = vpop.f32.mrf.mxu2  ;;  %v10202_v21 = vpop.f32.mrf.mxu1  ;;  %2754 = vmatpush.msrb.mxu1 %v2113_v60  ;;  %2642 = vmatpush.msra.mxu3 %v2110_v38  ;;  %v2107_v60 = vld [vmem:[#allocation3 + $0x298] sm:$0xff]  ;;  %v2132_v38 = vld [vmem:[#allocation3 + $0x360] sm:$0xff] }
 0x6a7   :  { %13722 = vst [vmem:[#allocation59_spill] sm:$0xff] %v10202_v21  ;;  %v10206_v2 = vmul.f32 %v1974_v12, %v1622_v46  ;;  %v2459_v27 = vpop.f32.mrf.mxu0  ;;  %v2111_v12 = vld [vmem:[#allocation3 + $0x2b8] sm:$0xff]  ;;  %2935 = vmatpush.msra.mxu0 %v2136_v13  ;;  %v2105_v13 = vld [vmem:[#allocation3 + $0x288] sm:$0xff] }
 0x6a8   :  { %2755 = vmatpush.msrb.mxu1 %v2111_v12  ;;  %2643 = vmatpush.msra.mxu3 %v2108_v59  ;;  %v2130_v12 = vld [vmem:[#allocation3 + $0x350] sm:$0xff] }
 0x6a9   :  { %2277 = vmatmul.f32.gmra.mxu3 %v10206_v2  ;;  %2390 = vmatmul.f32.gmra.mxu1 %v10206_v2 }
 0x6aa   :  { %2506 = vmatmul.f32.gmra.mxu0 %v10206_v2  ;;  %2756 = vmatpush.msrb.mxu1 %v2109_v14  ;;  %v2100_v14 = vld [vmem:[#allocation3 + $0x260] sm:$0xff] }
 0x6ab   :  { %2574 = vmatmul.f32.gmra.mxu2 %v10036_v24  ;;  %2936 = vmatpush.msra.mxu0 %v2134_v58  ;;  %v2128_v58 = vld [vmem:[#allocation3 + $0x340] sm:$0xff] }
 0x6ac   :  { %v2230_v31 = vpop.f32.mrf.mxu3  ;;  %2644 = vmatpush.msra.mxu3 %v2106_v29  ;;  %2757 = vmatpush.msrb.mxu1 %v2107_v60  ;;  %v13726_v60 = vmax.f32 %v9673_v32, 0.0  ;;  %v2097_v32 = vld [vmem:[#allocation3 + $0x248] sm:$0xff] }
 0x6ad   :  { %v10212_v46 = vadd.f32 %v2456_v3, %v2230_v31  ;;  %v2104_v3 = vld [vmem:[#allocation3 + $0x280] sm:$0xff]  ;;  %2937 = vmatpush.msra.mxu0 %v2132_v38 }
 0x6ae   :  { %v1977_v8 = vpop.f32.mrf.mxu2  ;;  %v10214_v39 = vpop.f32.mrf.mxu1  ;;  %2645 = vmatpush.msra.mxu3 %v2104_v3  ;;  %2758 = vmatpush.msrb.mxu1 %v2105_v13  ;;  %v2126_v3 = vld [vmem:[#allocation3 + $0x330] sm:$0xff]  ;;  %v2096_v13 = vld [vmem:[#allocation3 + $0x240] sm:$0xff] }
 0x6af   :  { %13723 = vst [vmem:[#allocation80_spill] sm:$0xff] %v10214_v39  ;;  %v10218_v21 = vmul.f32 %v1977_v8, %v13724_v53  ;;  %v2462_v57 = vpop.f32.mrf.mxu0  ;;  %v2103_v53 = vld [vmem:[#allocation3 + $0x278] sm:$0xff]  ;;  %2938 = vmatpush.msra.mxu0 %v2130_v12  ;;  %v2101_v8 = vld [vmem:[#allocation3 + $0x268] sm:$0xff]  ;;  %v2124_v12 = vld [vmem:[#allocation3 + $0x320] sm:$0xff] }
 0x6b0   :  { %2646 = vmatpush.msra.mxu3 %v2102_v20  ;;  %2759 = vmatpush.msrb.mxu1 %v2103_v53  ;;  %v2094_v20 = vld [vmem:[#allocation3 + $0x230] sm:$0xff] }
 0x6b1   :  { %2280 = vmatmul.f32.gmra.mxu3 %v10218_v21  ;;  %2393 = vmatmul.f32.gmra.mxu1 %v10218_v21 }
 0x6b2   :  { %2509 = vmatmul.f32.gmra.mxu0 %v10218_v21  ;;  %2647 = vmatpush.msra.mxu3 %v2100_v14  ;;  %v2095_v14 = vld [vmem:[#allocation3 + $0x238] sm:$0xff] }
 0x6b3   :  { %2577 = vmatmul.f32.gmra.mxu2 %v10047_v54  ;;  %2939 = vmatpush.msra.mxu0 %v2128_v58 }
 0x6b4   :  { %v2233_v31 = vpop.f32.mrf.mxu3  ;;  %2760 = vmatpush.msrb.mxu1 %v2101_v8  ;;  %2648 = vmatpush.msra.mxu3 %v2098_v56  ;;  %v2092_v8 = vld [vmem:[#allocation3 + $0x220] sm:$0xff]  ;;  %v13728_v56 = vmax.f32 %v9654_v51, 0.0 }
 0x6b5   :  { %v10224_v59 = vadd.f32 %v2459_v27, %v2233_v31  ;;  %v2099_v27 = vld [vmem:[#allocation3 + $0x258] sm:$0xff]  ;;  %2940 = vmatpush.msra.mxu0 %v2126_v3  ;;  %v2122_v31 = vld [vmem:[#allocation3 + $0x310] sm:$0xff]  ;;  %v2088_v51 = vld [vmem:[#allocation3 + $0x200] sm:$0xff] }
 0x6b6   :  { %v1980_v29 = vpop.f32.mrf.mxu2  ;;  %v10226_v39 = vpop.f32.mrf.mxu1  ;;  %2761 = vmatpush.msrb.mxu1 %v2099_v27  ;;  %2649 = vmatpush.msra.mxu3 %v2096_v13  ;;  %v2120_v27 = vld [vmem:[#allocation3 + $0x300] sm:$0xff]  ;;  %v2091_v13 = vld [vmem:[#allocation3 + $0x218] sm:$0xff] }
 0x6b7   :  { %13725 = vst [vmem:[#allocation55_spill] sm:$0xff] %v10226_v39  ;;  %v10230_v16 = vmul.f32 %v1980_v29, %v13726_v60  ;;  %v2465_v38 = vpop.f32.mrf.mxu0  ;;  %2941 = vmatpush.msra.mxu0 %v2124_v12  ;;  %v2089_v12 = vld [vmem:[#allocation3 + $0x208] sm:$0xff] }
 0x6b8   :  { %2762 = vmatpush.msrb.mxu1 %v2097_v32  ;;  %2650 = vmatpush.msra.mxu3 %v2094_v20 }
 0x6b9   :  { %2283 = vmatmul.f32.gmra.mxu3 %v10230_v16  ;;  %2396 = vmatmul.f32.gmra.mxu1 %v10230_v16 }
 0x6ba   :  { %2512 = vmatmul.f32.gmra.mxu0 %v10230_v16  ;;  %2763 = vmatpush.msrb.mxu1 %v2095_v14  ;;  %v13730_v14 = vmax.f32 %v9643_v55, 0.0 }
 0x6bb   :  { %2580 = vmatmul.f32.gmra.mxu2 %v10058_v62  ;;  %2942 = vmatpush.msra.mxu0 %v2122_v31 }
 0x6bc   :  { %v2236_v53 = vpop.f32.mrf.mxu3  ;;  %2651 = vmatpush.msra.mxu3 %v2092_v8  ;;  %2764 = vmatpush.msrb.mxu1 %v2093_v33 }
 0x6bd   :  { %v10236_v58 = vadd.f32 %v2462_v57, %v2236_v53  ;;  %v2090_v57 = vld [vmem:[#allocation3 + $0x210] sm:$0xff]  ;;  %2943 = vmatpush.msra.mxu0 %v2120_v27 }
 0x6be   :  { %v1983_v29 = vpop.f32.mrf.mxu2  ;;  %v10238_v60 = vpop.f32.mrf.mxu1  ;;  %2652 = vmatpush.msra.mxu3 %v2090_v57  ;;  %2765 = vmatpush.msrb.mxu1 %v2091_v13  ;;  %v13732_v57 = vmax.f32 %v9640_v36, 0.0  ;;  %v13734_v36 = vmov 0.0  }
 0x6bf   :  { %13727 = vst [vmem:[#allocation76_spill] sm:$0xff] %v10238_v60  ;;  %v10242_v39 = vmul.f32 %v1983_v29, %v13728_v56  ;;  %v2468_v3 = vpop.f32.mrf.mxu0 }
 0x6c0   :  { %2653 = vmatpush.msra.mxu3 %v2088_v51  ;;  %2766 = vmatpush.msrb.mxu1 %v2089_v12 }
 0x6c1   :  { %2286 = vmatmul.f32.gmra.mxu3 %v10242_v39  ;;  %2399 = vmatmul.f32.gmra.mxu1 %v10242_v39 }
 0x6c2   :  { %2515 = vmatmul.f32.gmra.mxu0 %v10242_v39 }
 0x6c3   :  { %2583 = vmatmul.f32.gmra.mxu2 %v10069_v61 }
 0x6c4   :  { %v2239_v32 = vpop.f32.mrf.mxu3 }
 0x6c5   :  { %v10248_v20 = vadd.f32 %v2465_v38, %v2239_v32 }
 0x6c6   :  { %v1986_v53 = vpop.f32.mrf.mxu2  ;;  %v10250_v31 = vpop.f32.mrf.mxu1 }
 0x6c7   :  { %13729 = vst [vmem:[#allocation54_spill] sm:$0xff] %v10250_v31  ;;  %v10254_v8 = vmul.f32 %v1986_v53, %v13730_v14  ;;  %v2471_v33 = vpop.f32.mrf.mxu0 }
 0x6c9   :  { %2289 = vmatmul.f32.gmra.mxu3 %v10254_v8  ;;  %2402 = vmatmul.f32.gmra.mxu1 %v10254_v8 }
 0x6ca   :  { %2518 = vmatmul.f32.gmra.mxu0 %v10254_v8 }
 0x6cb   :  { %2586 = vmatmul.f32.gmra.mxu2 %v10080_v15 }
 0x6cc   :  { %v2242_v38 = vpop.f32.mrf.mxu3 }
 0x6cd   :  { %v10260_v29 = vadd.f32 %v2468_v3, %v2242_v38 }
 0x6ce   :  { %v1989_v56 = vpop.f32.mrf.mxu2  ;;  %v10262_v27 = vpop.f32.mrf.mxu1 }
 0x6cf   :  { %13731 = vst [vmem:[#allocation75_spill] sm:$0xff] %v10262_v27  ;;  %v10266_v55 = vmul.f32 %v1989_v56, %v13732_v57  ;;  %v2474_v13 = vpop.f32.mrf.mxu0 }
 0x6d1   :  { %2292 = vmatmul.f32.gmra.mxu3 %v10266_v55  ;;  %2405 = vmatmul.f32.gmra.mxu1 %v10266_v55 }
 0x6d2   :  { %2521 = vmatmul.f32.gmra.mxu0 %v10266_v55 }
 0x6d3   :  { %2589 = vmatmul.f32.gmra.mxu2 %v10088_v41 }
 0x6d4   :  { %v2245_v51 = vpop.f32.mrf.mxu3 }
 0x6d5   :  { %v10272_v12 = vadd.f32 %v2471_v33, %v2245_v51 }
 0x6d6   :  { %v10274_v3 = vpop.f32.mrf.mxu1  ;;  %v10276_v32 = vpop.f32.mrf.mxu2 }
 0x6d7   :  { %13733 = vst [vmem:[#allocation52_spill] sm:$0xff] %v10274_v3  ;;  %v2477_v53 = vpop.f32.mrf.mxu0 }
 0x6d9   :  { %2295 = vmatmul.f32.gmra.mxu3 %v13734_v36  ;;  %2408 = vmatmul.f32.gmra.mxu1 %v13734_v36 }
 0x6da   :  { %2944 = vmatmul.f32.vlgmr.msra.gmra.mxu0 %v9948_v23 }
 0x6db   :  { %2592 = vmatmul.f32.gmra.mxu2 %v10098_v0 }
 0x6dc   :  { %v2248_v14 = vpop.f32.mrf.mxu3 }
 0x6dd   :  { %v10282_v38 = vadd.f32 %v2474_v13, %v2248_v14 }
 0x6de   :  { %v10284_v56 = vpop.f32.mrf.mxu1  ;;  %v10286_v33 = vpop.f32.mrf.mxu2 }
 0x6df   :  { %13735 = vst [vmem:[#allocation74_spill] sm:$0xff] %v10284_v56  ;;  %v2480_v57 = vpop.f32.mrf.mxu0 }
 0x6e1   :  { %2654 = vmatmul.f32.vlgmr.msra.gmra.mxu3 %v9937_v30  ;;  %2767 = vmatmul.f32.vlgmr.msrb.gmra.mxu1 %v9937_v30 }
 0x6e2   :  { %2947 = vmatmul.f32.gmra.mxu0 %v9959_v22 }
 0x6e3   :  { %2595 = vmatmul.f32.gmra.mxu2 %v10110_v5 }
 0x6e4   :  { %v2251_v51 = vpop.f32.mrf.mxu3 }
 0x6e5   :  { %v10292_v60 = vadd.f32 %v2477_v53, %v2251_v51 }
 0x6e6   :  { %v10294_v31 = vpop.f32.mrf.mxu1  ;;  %v10296_v13 = vpop.f32.mrf.mxu2 }
 0x6e7   :  { %13736 = vst [vmem:[#allocation50_spill] sm:$0xff] %v10292_v60  ;;  %v2483_v14 = vpop.f32.mrf.mxu0  ;;  %v2139_v60 = vld [vmem:[#allocation3 + $0x398] sm:$0xff] }
 0x6e8   :  { %13737 = vst [vmem:[#allocation73_spill] sm:$0xff] %v10294_v31 }
 0x6e9   :  { %2657 = vmatmul.f32.gmra.mxu3 %v9948_v23  ;;  %2770 = vmatmul.f32.gmra.mxu1 %v9948_v23 }
 0x6ea   :  { %2950 = vmatmul.f32.gmra.mxu0 %v9970_v1 }
 0x6eb   :  { %2598 = vmatmul.f32.gmra.mxu2 %v10122_v48 }
 0x6ec   :  { %v2254_v30 = vpop.f32.mrf.mxu3 }
 0x6ed   :  { %v10302_v56 = vadd.f32 %v2480_v57, %v2254_v30 }
 0x6ee   :  { %v10304_v27 = vpop.f32.mrf.mxu1  ;;  %v10306_v53 = vpop.f32.mrf.mxu2 }
 0x6ef   :  { %13738 = vst [vmem:[#allocation48_spill] sm:$0xff] %v10302_v56  ;;  %v2486_v51 = vpop.f32.mrf.mxu0 }
 0x6f0   :  { %13739 = vst [vmem:[#allocation72_spill] sm:$0xff] %v10304_v27 }
 0x6f1   :  { %13740 = vst [vmem:[#allocation46_spill] sm:$0xff] %v10306_v53  ;;  %2660 = vmatmul.f32.gmra.mxu3 %v9959_v22  ;;  %2773 = vmatmul.f32.gmra.mxu1 %v9959_v22 }
 0x6f2   :  { %2953 = vmatmul.f32.gmra.mxu0 %v9981_v47 }
 0x6f3   :  { %2601 = vmatmul.f32.gmra.mxu2 %v10134_v35 }
 0x6f4   :  { %v2257_v31 = vpop.f32.mrf.mxu3 }
 0x6f5   :  { %v10312_v3 = vadd.f32 %v2483_v14, %v2257_v31 }
 0x6f6   :  { %v10314_v63 = vpop.f32.mrf.mxu1  ;;  %v10316_v57 = vpop.f32.mrf.mxu2 }
 0x6f7   :  { %13741 = vst [vmem:[#allocation71_spill] sm:$0xff] %v10312_v3  ;;  %v2489_v30 = vpop.f32.mrf.mxu0 }
 0x6f8   :  { %13742 = vst [vmem:[#allocation44_spill] sm:$0xff] %v10314_v63 }
 0x6f9   :  { %13743 = vst [vmem:[#allocation70_spill] sm:$0xff] %v10316_v57  ;;  %2663 = vmatmul.f32.gmra.mxu3 %v9970_v1  ;;  %2776 = vmatmul.f32.gmra.mxu1 %v9970_v1 }
 0x6fa   :  { %2956 = vmatmul.f32.gmra.mxu0 %v9992_v37 }
 0x6fb   :  { %2604 = vmatmul.f32.gmra.mxu2 %v10146_v52 }
 0x6fc   :  { %v2260_v27 = vpop.f32.mrf.mxu3 }
 0x6fd   :  { %v10322_v56 = vadd.f32 %v2486_v51, %v2260_v27 }
 0x6fe   :  { %v10324_v53 = vpop.f32.mrf.mxu1  ;;  %v10326_v31 = vpop.f32.mrf.mxu2 }
 0x6ff   :  { %13744 = vst [vmem:[#allocation42_spill] sm:$0xff] %v10322_v56  ;;  %v2492_v14 = vpop.f32.mrf.mxu0 }
 0x700   :  { %13745 = vst [vmem:[#allocation69_spill] sm:$0xff] %v10324_v53 }
 0x701   :  { %13746 = vst [vmem:[#allocation40_spill] sm:$0xff] %v10326_v31  ;;  %2666 = vmatmul.f32.gmra.mxu3 %v9981_v47  ;;  %2779 = vmatmul.f32.gmra.mxu1 %v9981_v47 }
 0x702   :  { %2959 = vmatmul.f32.gmra.mxu0 %v10003_v9 }
 0x703   :  { %2607 = vmatmul.f32.gmra.mxu2 %v10158_v6 }
 0x704   :  { %v2263_v63 = vpop.f32.mrf.mxu3 }
 0x705   :  { %v10332_v3 = vadd.f32 %v2489_v30, %v2263_v63 }
 0x706   :  { %v10334_v57 = vpop.f32.mrf.mxu1  ;;  %v10336_v27 = vpop.f32.mrf.mxu2 }
 0x707   :  { %13747 = vst [vmem:[#allocation68_spill] sm:$0xff] %v10332_v3  ;;  %v2495_v51 = vpop.f32.mrf.mxu0  ;;  %v2151_v3 = vld [vmem:[#allocation3 + $0x3f8] sm:$0xff] }
 0x708   :  { %13748 = vst [vmem:[#allocation38_spill] sm:$0xff] %v10334_v57  ;;  %3041 = vmatpush.msra.mxu2 %v2151_v3  ;;  %v2143_v3 = vld [vmem:[#allocation3 + $0x3b8] sm:$0xff] }
 0x709   :  { %13749 = vst [vmem:[#allocation67_spill] sm:$0xff] %v10336_v27  ;;  %2669 = vmatmul.f32.gmra.mxu3 %v9992_v37  ;;  %2782 = vmatmul.f32.gmra.mxu1 %v9992_v37 }
 0x70a   :  { %2962 = vmatmul.f32.gmra.mxu0 %v10014_v44 }
 0x70b   :  { %2610 = vmatmul.f32.gmra.mxu2 %v10170_v34 }
 0x70c   :  { %v2266_v53 = vpop.f32.mrf.mxu3 }
 0x70d   :  { %v10342_v56 = vadd.f32 %v2492_v14, %v2266_v53 }
 0x70e   :  { %v10344_v31 = vpop.f32.mrf.mxu1  ;;  %v10346_v63 = vpop.f32.mrf.mxu2 }
 0x70f   :  { %13750 = vst [vmem:[#allocation102_spill] sm:$0xff] %v10342_v56  ;;  %v2498_v30 = vpop.f32.mrf.mxu0 }
 0x710   :  { %13751 = vst [vmem:[#allocation110_spill] sm:$0xff] %v10344_v31  ;;  %v2149_v31 = vld [vmem:[#allocation3 + $0x3e8] sm:$0xff] }
 0x711   :  { %13752 = vst [vmem:[#allocation114_spill] sm:$0xff] %v10346_v63  ;;  %2672 = vmatmul.f32.gmra.mxu3 %v10003_v9  ;;  %2785 = vmatmul.f32.gmra.mxu1 %v10003_v9  ;;  %v2147_v63 = vld [vmem:[#allocation3 + $0x3d8] sm:$0xff] }
 0x712   :  { %2965 = vmatmul.f32.gmra.mxu0 %v10025_v18  ;;  %3042 = vmatpush.msra.mxu2 %v2149_v31  ;;  %v2141_v31 = vld [vmem:[#allocation3 + $0x3a8] sm:$0xff] }
 0x713   :  { %2613 = vmatmul.f32.gmra.mxu2 %v10182_v19 }
 0x714   :  { %v2269_v57 = vpop.f32.mrf.mxu3  ;;  %3043 = vmatpush.msra.mxu2 %v2147_v63 }
 0x715   :  { %v10352_v27 = vadd.f32 %v2495_v51, %v2269_v57 }
 0x716   :  { %v10354_v53 = vpop.f32.mrf.mxu1  ;;  %v10356_v14 = vpop.f32.mrf.mxu2  ;;  %3044 = vmatpush.msra.mxu2 %v2145_v28  ;;  %v2137_v28 = vld [vmem:[#allocation3 + $0x388] sm:$0xff] }
 0x717   :  { %13753 = vst [vmem:[#allocation36_spill] sm:$0xff] %v10352_v27  ;;  %v2501_v56 = vpop.f32.mrf.mxu0 }
 0x718   :  { %13754 = vst [vmem:[#allocation66_spill] sm:$0xff] %v10354_v53  ;;  %3045 = vmatpush.msra.mxu2 %v2143_v3 }
 0x719   :  { %13755 = vst [vmem:[#allocation92_spill] sm:$0xff] %v10356_v14  ;;  %2675 = vmatmul.f32.gmra.mxu3 %v10014_v44  ;;  %2788 = vmatmul.f32.gmra.mxu1 %v10014_v44 }
 0x71a   :  { %2968 = vmatmul.f32.gmra.mxu0 %v10036_v24  ;;  %3046 = vmatpush.msra.mxu2 %v2141_v31  ;;  %v2133_v31 = vld [vmem:[#allocation3 + $0x368] sm:$0xff] }
 0x71b   :  { %2616 = vmatmul.f32.gmra.mxu2 %v10194_v43 }
 0x71c   :  { %v2272_v57 = vpop.f32.mrf.mxu3  ;;  %3047 = vmatpush.msra.mxu2 %v2139_v60  ;;  %v2129_v60 = vld [vmem:[#allocation3 + $0x348] sm:$0xff] }
 0x71d   :  { %v10362_v51 = vadd.f32 %v2498_v30, %v2272_v57  ;;  %v2135_v30 = vld [vmem:[#allocation3 + $0x378] sm:$0xff] }
 0x71e   :  { %v10364_v53 = vpop.f32.mrf.mxu1  ;;  %v10366_v14 = vpop.f32.mrf.mxu2  ;;  %3048 = vmatpush.msra.mxu2 %v2137_v28  ;;  %v2127_v28 = vld [vmem:[#allocation3 + $0x338] sm:$0xff] }
 0x71f   :  { %13756 = vst [vmem:[#allocation95_spill] sm:$0xff] %v10362_v51  ;;  %v2504_v27 = vpop.f32.mrf.mxu0  ;;  %v2131_v51 = vld [vmem:[#allocation3 + $0x358] sm:$0xff] }
 0x720   :  { %13757 = vst [vmem:[#allocation62_spill] sm:$0xff] %v10364_v53  ;;  %3049 = vmatpush.msra.mxu2 %v2135_v30 }
 0x721   :  { %13758 = vst [vmem:[#allocation113_spill] sm:$0xff] %v10366_v14  ;;  %2678 = vmatmul.f32.gmra.mxu3 %v10025_v18  ;;  %2791 = vmatmul.f32.gmra.mxu1 %v10025_v18 }
 0x722   :  { %2971 = vmatmul.f32.gmra.mxu0 %v10047_v54  ;;  %3050 = vmatpush.msra.mxu2 %v2133_v31  ;;  %v2125_v31 = vld [vmem:[#allocation3 + $0x328] sm:$0xff] }
 0x723   :  { %2619 = vmatmul.f32.gmra.mxu2 %v10206_v2 }
 0x724   :  { %v2275_v63 = vpop.f32.mrf.mxu3  ;;  %3051 = vmatpush.msra.mxu2 %v2131_v51  ;;  %v2121_v51 = vld [vmem:[#allocation3 + $0x308] sm:$0xff] }
 0x725   :  { %v10372_v57 = vadd.f32 %v2501_v56, %v2275_v63 }
 0x726   :  { %v10374_v3 = vpop.f32.mrf.mxu1  ;;  %v10376_v53 = vpop.f32.mrf.mxu2  ;;  %3052 = vmatpush.msra.mxu2 %v2129_v60 }
 0x727   :  { %13759 = vst [vmem:[#allocation34_spill] sm:$0xff] %v10372_v57  ;;  %v2507_v14 = vpop.f32.mrf.mxu0  ;;  %v2123_v57 = vld [vmem:[#allocation3 + $0x318] sm:$0xff] }
 0x728   :  { %13760 = vst [vmem:[#allocation65_spill] sm:$0xff] %v10374_v3  ;;  %3053 = vmatpush.msra.mxu2 %v2127_v28 }
 0x729   :  { %13761 = vst [vmem:[#allocation89_spill] sm:$0xff] %v10376_v53  ;;  %2681 = vmatmul.f32.gmra.mxu3 %v10036_v24  ;;  %2794 = vmatmul.f32.gmra.mxu1 %v10036_v24 }
 0x72a   :  { %2974 = vmatmul.f32.gmra.mxu0 %v10058_v62  ;;  %3054 = vmatpush.msra.mxu2 %v2125_v31 }
 0x72b   :  { %2622 = vmatmul.f32.gmra.mxu2 %v10218_v21 }
 0x72c   :  { %v2278_v56 = vpop.f32.mrf.mxu3  ;;  %3055 = vmatpush.msra.mxu2 %v2123_v57 }
 0x72d   :  { %v10382_v63 = vadd.f32 %v2504_v27, %v2278_v56 }
 0x72e   :  { %v10384_v30 = vpop.f32.mrf.mxu1  ;;  %v10386_v3 = vpop.f32.mrf.mxu2  ;;  %3056 = vmatpush.msra.mxu2 %v2121_v51 }
 0x72f   :  { %13762 = vst [vmem:[#allocation93_spill] sm:$0xff] %v10384_v30  ;;  %v2510_v53 = vpop.f32.mrf.mxu0 }
 0x730   :  { %13763 = vst [vmem:[#allocation105_spill] sm:$0xff] %v10386_v3 }
 0x731   :  { %2684 = vmatmul.f32.gmra.mxu3 %v10047_v54  ;;  %2797 = vmatmul.f32.gmra.mxu1 %v10047_v54 }
 0x732   :  { %2977 = vmatmul.f32.gmra.mxu0 %v10069_v61 }
 0x733   :  { %2625 = vmatmul.f32.gmra.mxu2 %v10230_v16 }
 0x734   :  { %v2281_v27 = vpop.f32.mrf.mxu3 }
 0x735   :  { %v10392_v60 = vadd.f32 %v2507_v14, %v2281_v27 }
 0x736   :  { %v10394_v56 = vpop.f32.mrf.mxu1  ;;  %v10396_v28 = vpop.f32.mrf.mxu2 }
 0x737   :  { %13764 = vst [vmem:[#allocation112_spill] sm:$0xff] %v10392_v60  ;;  %v2513_v30 = vpop.f32.mrf.mxu0 }
 0x738   :  { %13765 = vst [vmem:[#allocation86_spill] sm:$0xff] %v10394_v56 }
 0x739   :  { %13766 = vst [vmem:[#allocation90_spill] sm:$0xff] %v10396_v28  ;;  %2687 = vmatmul.f32.gmra.mxu3 %v10058_v62  ;;  %2800 = vmatmul.f32.gmra.mxu1 %v10058_v62 }
 0x73a   :  { %2980 = vmatmul.f32.gmra.mxu0 %v10080_v15 }
 0x73b   :  { %2628 = vmatmul.f32.gmra.mxu2 %v10242_v39 }
 0x73c   :  { %v2284_v57 = vpop.f32.mrf.mxu3 }
 0x73d   :  { %v10402_v31 = vadd.f32 %v2510_v53, %v2284_v57 }
 0x73e   :  { %v10404_v3 = vpop.f32.mrf.mxu1  ;;  %v10406_v14 = vpop.f32.mrf.mxu2 }
 0x73f   :  { %13767 = vst [vmem:[#allocation96_spill] sm:$0xff] %v10402_v31  ;;  %v2516_v51 = vpop.f32.mrf.mxu0 }
 0x740   :  { %13768 = vst [vmem:[#allocation111_spill] sm:$0xff] %v10404_v3 }
 0x741   :  { %13769 = vst [vmem:[#allocation87_spill] sm:$0xff] %v10406_v14  ;;  %2690 = vmatmul.f32.gmra.mxu3 %v10069_v61  ;;  %2803 = vmatmul.f32.gmra.mxu1 %v10069_v61 }
 0x742   :  { %2983 = vmatmul.f32.gmra.mxu0 %v10088_v41 }
 0x743   :  { %2631 = vmatmul.f32.gmra.mxu2 %v10254_v8 }
 0x744   :  { %v2287_v27 = vpop.f32.mrf.mxu3 }
 0x745   :  { %v10412_v56 = vadd.f32 %v2513_v30, %v2287_v27 }
 0x746   :  { %v10414_v28 = vpop.f32.mrf.mxu1  ;;  %v10416_v53 = vpop.f32.mrf.mxu2 }
 0x747   :  { %13770 = vst [vmem:[#allocation94_spill] sm:$0xff] %v10412_v56  ;;  %v2519_v57 = vpop.f32.mrf.mxu0 }
 0x748   :  { %13771 = vst [vmem:[#allocation108_spill] sm:$0xff] %v10414_v28 }
 0x749   :  { %13772 = vst [vmem:[#allocation91_spill] sm:$0xff] %v10416_v53  ;;  %2693 = vmatmul.f32.gmra.mxu3 %v10080_v15  ;;  %2806 = vmatmul.f32.gmra.mxu1 %v10080_v15 }
 0x74a   :  { %2986 = vmatmul.f32.gmra.mxu0 %v10098_v0 }
 0x74b   :  { %2634 = vmatmul.f32.gmra.mxu2 %v10266_v55 }
 0x74c   :  { %v2290_v3 = vpop.f32.mrf.mxu3 }
 0x74d   :  { %v10422_v14 = vadd.f32 %v2516_v51, %v2290_v3 }
 0x74e   :  { %v10424_v31 = vpop.f32.mrf.mxu1  ;;  %v10426_v30 = vpop.f32.mrf.mxu2 }
 0x74f   :  { %13773 = vst [vmem:[#allocation83_spill] sm:$0xff] %v10422_v14  ;;  %v2522_v27 = vpop.f32.mrf.mxu0 }
 0x750   :  { %13774 = vst [vmem:[#allocation88_spill] sm:$0xff] %v10424_v31 }
 0x751   :  { %13775 = vst [vmem:[#allocation107_spill] sm:$0xff] %v10426_v30  ;;  %2696 = vmatmul.f32.gmra.mxu3 %v10088_v41  ;;  %2809 = vmatmul.f32.gmra.mxu1 %v10088_v41 }
 0x752   :  { %2989 = vmatmul.f32.gmra.mxu0 %v10110_v5 }
 0x753   :  { %3057 = vmatmul.f32.vlgmr.msra.gmra.mxu2 %v9948_v23 }
 0x754   :  { %v2293_v28 = vpop.f32.mrf.mxu3 }
 0x755   :  { %v10432_v53 = vadd.f32 %v2519_v57, %v2293_v28 }
 0x756   :  { %v10434_v56 = vpop.f32.mrf.mxu1  ;;  %v10436_v3 = vpop.f32.mrf.mxu2 }
 0x757   :  { %13776 = vst [vmem:[#allocation100_spill] sm:$0xff] %v10432_v53  ;;  %v2945_v51 = vpop.f32.mrf.mxu0 }
 0x758   :  { %13777 = vst [vmem:[#allocation109_spill] sm:$0xff] %v10434_v56 }
 0x759   :  { %13778 = vst [vmem:[#allocation81_spill] sm:$0xff] %v10436_v3  ;;  %2699 = vmatmul.f32.gmra.mxu3 %v10098_v0  ;;  %2812 = vmatmul.f32.gmra.mxu1 %v10098_v0 }
 0x75a   :  { %2992 = vmatmul.f32.gmra.mxu0 %v10122_v48 }
 0x75b   :  { %3060 = vmatmul.f32.gmra.mxu2 %v9959_v22 }
 0x75c   :  { %v2296_v31 = vpop.f32.mrf.mxu3 }
 0x75d   :  { %v10442_v30 = vadd.f32 %v2522_v27, %v2296_v31 }
 0x75e   :  { %v10444_v23 = vpop.f32.mrf.mxu2  ;;  %v10446_v28 = vpop.f32.mrf.mxu1 }
 0x75f   :  { %13779 = vst [vmem:[#allocation60_spill] sm:$0xff] %v10442_v30  ;;  %v2948_v57 = vpop.f32.mrf.mxu0 }
 0x760   :  { %13780 = vst [vmem:[#allocation82_spill] sm:$0xff] %v10444_v23 }
 0x761   :  { %2702 = vmatmul.f32.gmra.mxu3 %v10110_v5  ;;  %2815 = vmatmul.f32.gmra.mxu1 %v10110_v5 }
 0x762   :  { %2995 = vmatmul.f32.gmra.mxu0 %v10134_v35 }
 0x763   :  { %3063 = vmatmul.f32.gmra.mxu2 %v9970_v1 }
 0x764   :  { %v2655_v56 = vpop.f32.mrf.mxu3 }
 0x765   :  { %v2864_v3 = vadd.f32 %v2655_v56, %v10104_v50 }
 0x766   :  { %v10453_v53 = vpop.f32.mrf.mxu2  ;;  %v10455_v31 = vpop.f32.mrf.mxu1 }
 0x767   :  { %13781 = vst [vmem:[#allocation61_spill] sm:$0xff] %v10453_v53  ;;  %v10457_v27 = vadd.f32 %v2945_v51, %v2864_v3  ;;  %v2951_v23 = vpop.f32.mrf.mxu0 }
 0x769   :  { %13782 = vst [vmem:[#allocation84_spill] sm:$0xff] %v10457_v27  ;;  %2705 = vmatmul.f32.gmra.mxu3 %v10122_v48  ;;  %2818 = vmatmul.f32.gmra.mxu1 %v10122_v48 }
 0x76a   :  { %2998 = vmatmul.f32.gmra.mxu0 %v10146_v52 }
 0x76b   :  { %3066 = vmatmul.f32.gmra.mxu2 %v9981_v47 }
 0x76c   :  { %v2658_v30 = vpop.f32.mrf.mxu3 }
 0x76d   :  { %v2866_v14 = vadd.f32 %v2658_v30, %v10116_v45 }
 0x76e   :  { %v10464_v60 = vpop.f32.mrf.mxu2  ;;  %v10466_v50 = vpop.f32.mrf.mxu1 }
 0x76f   :  { %13783 = vst [vmem:[#allocation63_spill] sm:$0xff] %v10464_v60  ;;  %v10468_v56 = vadd.f32 %v2948_v57, %v2866_v14  ;;  %v2954_v51 = vpop.f32.mrf.mxu0 }
 0x771   :  { %2708 = vmatmul.f32.gmra.mxu3 %v10134_v35  ;;  %2821 = vmatmul.f32.gmra.mxu1 %v10134_v35 }
 0x772   :  { %3001 = vmatmul.f32.gmra.mxu0 %v10158_v6 }
 0x773   :  { %3069 = vmatmul.f32.gmra.mxu2 %v9992_v37 }
 0x774   :  { %v2661_v3 = vpop.f32.mrf.mxu3 }
 0x775   :  { %v2868_v53 = vadd.f32 %v2661_v3, %v10128_v4 }
 0x776   :  { %v10475_v27 = vpop.f32.mrf.mxu2  ;;  %v10477_v45 = vpop.f32.mrf.mxu1 }
 0x777   :  { %13784 = vst [vmem:[#allocation85_spill] sm:$0xff] %v10475_v27  ;;  %v10479_v30 = vadd.f32 %v2951_v23, %v2868_v53  ;;  %v2957_v3 = vpop.f32.mrf.mxu0 }
 0x779   :  { %13785 = vst [vmem:[#allocation64_spill] sm:$0xff] %v10479_v30  ;;  %2711 = vmatmul.f32.gmra.mxu3 %v10146_v52  ;;  %2824 = vmatmul.f32.gmra.mxu1 %v10146_v52 }
 0x77a   :  { %3004 = vmatmul.f32.gmra.mxu0 %v10170_v34 }
 0x77b   :  { %3072 = vmatmul.f32.gmra.mxu2 %v10003_v9 }
 0x77c   :  { %v2664_v14 = vpop.f32.mrf.mxu3 }
 0x77d   :  { %v2870_v57 = vadd.f32 %v2664_v14, %v10140_v17 }
 0x77e   :  { %v10486_v60 = vpop.f32.mrf.mxu2  ;;  %v10488_v4 = vpop.f32.mrf.mxu1 }
 0x77f   :  { %13786 = vst [vmem:[#allocation106_spill] sm:$0xff] %v10486_v60  ;;  %v10490_v27 = vadd.f32 %v2954_v51, %v2870_v57  ;;  %v2960_v60 = vpop.f32.mrf.mxu0 }
 0x781   :  { %13787 = vst [vmem:[#allocation104_spill] sm:$0xff] %v10490_v27  ;;  %2714 = vmatmul.f32.gmra.mxu3 %v10158_v6  ;;  %2827 = vmatmul.f32.gmra.mxu1 %v10158_v6 }
 0x782   :  { %3007 = vmatmul.f32.gmra.mxu0 %v10182_v19 }
 0x783   :  { %3075 = vmatmul.f32.gmra.mxu2 %v10014_v44 }
 0x784   :  { %v2667_v53 = vpop.f32.mrf.mxu3 }
 0x785   :  { %v2872_v23 = vadd.f32 %v2667_v53, %v10152_v11 }
 0x786   :  { %v10497_v30 = vpop.f32.mrf.mxu2  ;;  %v10499_v17 = vpop.f32.mrf.mxu1 }
 0x787   :  { %13788 = vst [vmem:[#allocation103_spill] sm:$0xff] %v10497_v30  ;;  %v10501_v14 = vadd.f32 %v2957_v3, %v2872_v23  ;;  %v2963_v3 = vpop.f32.mrf.mxu0 }
 0x789   :  { %13789 = vst [vmem:[#allocation101_spill] sm:$0xff] %v10501_v14  ;;  %2717 = vmatmul.f32.gmra.mxu3 %v10170_v34  ;;  %2830 = vmatmul.f32.gmra.mxu1 %v10170_v34 }
 0x78a   :  { %3010 = vmatmul.f32.gmra.mxu0 %v10194_v43 }
 0x78b   :  { %3078 = vmatmul.f32.gmra.mxu2 %v10025_v18 }
 0x78c   :  { %v2670_v51 = vpop.f32.mrf.mxu3 }
 0x78d   :  { %v2874_v57 = vadd.f32 %v2670_v51, %v10164_v49 }
 0x78e   :  { %v10508_v27 = vpop.f32.mrf.mxu2  ;;  %v10510_v11 = vpop.f32.mrf.mxu1 }
 0x78f   :  { %13790 = vst [vmem:[#allocation99_spill] sm:$0xff] %v10508_v27  ;;  %v10512_v53 = vadd.f32 %v2960_v60, %v2874_v57  ;;  %v2966_v57 = vpop.f32.mrf.mxu0 }
 0x791   :  { %13791 = vst [vmem:[#allocation98_spill] sm:$0xff] %v10512_v53  ;;  %2720 = vmatmul.f32.gmra.mxu3 %v10182_v19  ;;  %2833 = vmatmul.f32.gmra.mxu1 %v10182_v19 }
 0x792   :  { %3013 = vmatmul.f32.gmra.mxu0 %v10206_v2 }
 0x793   :  { %3081 = vmatmul.f32.gmra.mxu2 %v10036_v24 }
 0x794   :  { %v2673_v23 = vpop.f32.mrf.mxu3 }
 0x795   :  { %v2876_v30 = vadd.f32 %v2673_v23, %v10176_v42 }
 0x796   :  { %v10519_v14 = vpop.f32.mrf.mxu2  ;;  %v10521_v49 = vpop.f32.mrf.mxu1 }
 0x797   :  { %13792 = vst [vmem:[#allocation97_spill] sm:$0xff] %v10519_v14  ;;  %v10523_v51 = vadd.f32 %v2963_v3, %v2876_v30  ;;  %v2182_v30 = vld [vmem:[#allocation3 + $0x4f0] sm:$0xff]  ;;  %v2183_v3 = vld [vmem:[#allocation3 + $0x4f8] sm:$0xff] }
 0x798   :  { %3218 = vmatpush.msrb.mxu3 %v2182_v30  ;;  %3331 = vmatpush.msra.mxu1 %v2183_v3  ;;  %v2176_v30 = vld [vmem:[#allocation3 + $0x4c0] sm:$0xff]  ;;  %v2174_v3 = vld [vmem:[#allocation3 + $0x4b0] sm:$0xff] }
 0x799   :  { %13793 = vst [vmem:[#allocation115_spill] sm:$0xff] %v10523_v51  ;;  %2723 = vmatmul.f32.gmra.mxu3 %v10194_v43  ;;  %2836 = vmatmul.f32.gmra.mxu1 %v10194_v43  ;;  %v2177_v51 = vld [vmem:[#allocation3 + $0x4c8] sm:$0xff] }
 0x79a   :  { %3016 = vmatmul.f32.gmra.mxu0 %v10218_v21 }
 0x79b   :  { %3084 = vmatmul.f32.gmra.mxu2 %v10047_v54 }
 0x79c   :  { %v2676_v60 = vpop.f32.mrf.mxu3 }
 0x79d   :  { %v2878_v27 = vadd.f32 %v2676_v60, %v10188_v40  ;;  %v2180_v40 = vld [vmem:[#allocation3 + $0x4e0] sm:$0xff]  ;;  %v2181_v60 = vld [vmem:[#allocation3 + $0x4e8] sm:$0xff] }
 0x79e   :  { %v10530_v53 = vpop.f32.mrf.mxu2  ;;  %v10532_v42 = vpop.f32.mrf.mxu1  ;;  %3219 = vmatpush.msrb.mxu3 %v2180_v40  ;;  %3332 = vmatpush.msra.mxu1 %v2181_v60  ;;  %v2172_v40 = vld [vmem:[#allocation3 + $0x4a0] sm:$0xff]  ;;  %v2173_v60 = vld [vmem:[#allocation3 + $0x4a8] sm:$0xff] }
 0x79f   :  { %13794 = vst [vmem:[#allocation116_spill] sm:$0xff] %v10530_v53  ;;  %v10534_v23 = vadd.f32 %v2966_v57, %v2878_v27 }
 0x7a0   :  { %13795 = vst [vmem:[#allocation117_spill] sm:$0xff] %v10532_v42  ;;  %v2178_v42 = vld [vmem:[#allocation3 + $0x4d0] sm:$0xff] }
 0x7a1   :  { %13796 = vst [vmem:[#allocation118_spill] sm:$0xff] %v10534_v23  ;;  %2726 = vmatmul.f32.gmra.mxu3 %v10206_v2  ;;  %2839 = vmatmul.f32.gmra.mxu1 %v10206_v2  ;;  %v2179_v23 = vld [vmem:[#allocation3 + $0x4d8] sm:$0xff] }
 0x7a2   :  { %3019 = vmatmul.f32.gmra.mxu0 %v10230_v16  ;;  %3220 = vmatpush.msrb.mxu3 %v2178_v42 }
 0x7a3   :  { %3087 = vmatmul.f32.gmra.mxu2 %v10058_v62  ;;  %3333 = vmatpush.msra.mxu1 %v2179_v23 }
 0x7a4   :  { %v2679_v14 = vpop.f32.mrf.mxu3  ;;  %3221 = vmatpush.msrb.mxu3 %v2176_v30  ;;  %v2171_v30 = vld [vmem:[#allocation3 + $0x498] sm:$0xff] }
 0x7a5   :  { %v10541_v53 = vadd.f32 %v2679_v14, %v10200_v7  ;;  %v2175_v7 = vld [vmem:[#allocation3 + $0x4b8] sm:$0xff]  ;;  %3334 = vmatpush.msra.mxu1 %v2177_v51  ;;  %v2169_v51 = vld [vmem:[#allocation3 + $0x488] sm:$0xff] }
 0x7a6   :  { %v10543_v27 = vpop.f32.mrf.mxu2  ;;  %v10545_v57 = vpop.f32.mrf.mxu1  ;;  %3222 = vmatpush.msrb.mxu3 %v2174_v3  ;;  %v2167_v3 = vld [vmem:[#allocation3 + $0x478] sm:$0xff] }
 0x7a7   :  { %13797 = vst [vmem:[#allocation119_spill] sm:$0xff] %v10541_v53  ;;  %3335 = vmatpush.msra.mxu1 %v2175_v7  ;;  %v2168_v53 = vld [vmem:[#allocation3 + $0x480] sm:$0xff] }
 0x7a8   :  { %13798 = vst [vmem:[#allocation120_spill] sm:$0xff] %v10543_v27  ;;  %3223 = vmatpush.msrb.mxu3 %v2172_v40 }
 0x7a9   :  { %13799 = vst [vmem:[#allocation121_spill] sm:$0xff] %v10545_v57  ;;  %2729 = vmatmul.f32.gmra.mxu3 %v10218_v21  ;;  %2842 = vmatmul.f32.gmra.mxu1 %v10218_v21  ;;  %v2170_v57 = vld [vmem:[#allocation3 + $0x490] sm:$0xff] }
 0x7aa   :  { %3022 = vmatmul.f32.gmra.mxu0 %v10242_v39  ;;  %3336 = vmatpush.msra.mxu1 %v2173_v60 }
 0x7ab   :  { %3090 = vmatmul.f32.gmra.mxu2 %v10069_v61  ;;  %3224 = vmatpush.msrb.mxu3 %v2170_v57  ;;  %v2165_v57 = vld [vmem:[#allocation3 + $0x468] sm:$0xff] }
 0x7ac   :  { %v2682_v14 = vpop.f32.mrf.mxu3  ;;  %3337 = vmatpush.msra.mxu1 %v2171_v30  ;;  %v2162_v30 = vld [vmem:[#allocation3 + $0x450] sm:$0xff] }
 0x7ad   :  { %v10552_v42 = vadd.f32 %v2682_v14, %v10212_v46  ;;  %v2166_v46 = vld [vmem:[#allocation3 + $0x470] sm:$0xff]  ;;  %3225 = vmatpush.msrb.mxu3 %v2168_v53  ;;  %v2164_v14 = vld [vmem:[#allocation3 + $0x460] sm:$0xff] }
 0x7ae   :  { %v10554_v23 = vpop.f32.mrf.mxu2  ;;  %v10556_v27 = vpop.f32.mrf.mxu1  ;;  %3338 = vmatpush.msra.mxu1 %v2169_v51  ;;  %v2160_v53 = vld [vmem:[#allocation3 + $0x440] sm:$0xff]  ;;  %v2158_v51 = vld [vmem:[#allocation3 + $0x430] sm:$0xff] }
 0x7af   :  { %13800 = vst [vmem:[#allocation122_spill] sm:$0xff] %v10554_v23  ;;  %3226 = vmatpush.msrb.mxu3 %v2166_v46 }
 0x7b0   :  { %13801 = vst [vmem:[#allocation123_spill] sm:$0xff] %v10556_v27  ;;  %3339 = vmatpush.msra.mxu1 %v2167_v3  ;;  %v2163_v27 = vld [vmem:[#allocation3 + $0x458] sm:$0xff] }
 0x7b1   :  { %2732 = vmatmul.f32.gmra.mxu3 %v10230_v16  ;;  %2845 = vmatmul.f32.gmra.mxu1 %v10230_v16  ;;  %v2159_v3 = vld [vmem:[#allocation3 + $0x438] sm:$0xff] }
 0x7b2   :  { %3025 = vmatmul.f32.gmra.mxu0 %v10254_v8  ;;  %3227 = vmatpush.msrb.mxu3 %v2164_v14  ;;  %v2156_v14 = vld [vmem:[#allocation3 + $0x420] sm:$0xff] }
 0x7b3   :  { %3093 = vmatmul.f32.gmra.mxu2 %v10080_v15  ;;  %3340 = vmatpush.msra.mxu1 %v2165_v57 }
 0x7b4   :  { %v2685_v7 = vpop.f32.mrf.mxu3  ;;  %3228 = vmatpush.msrb.mxu3 %v2162_v30  ;;  %v2157_v30 = vld [vmem:[#allocation3 + $0x428] sm:$0xff] }
 0x7b5   :  { %v10563_v40 = vadd.f32 %v2685_v7, %v10224_v59  ;;  %v2161_v59 = vld [vmem:[#allocation3 + $0x448] sm:$0xff]  ;;  %3341 = vmatpush.msra.mxu1 %v2163_v27  ;;  %v2155_v27 = vld [vmem:[#allocation3 + $0x418] sm:$0xff] }
 0x7b6   :  { %v10565_v60 = vpop.f32.mrf.mxu2  ;;  %v10567_v23 = vpop.f32.mrf.mxu1  ;;  %3229 = vmatpush.msrb.mxu3 %v2160_v53  ;;  %v2153_v53 = vld [vmem:[#allocation3 + $0x408] sm:$0xff] }
 0x7b7   :  { %13802 = vst [vmem:[#allocation124_spill] sm:$0xff] %v10565_v60  ;;  %3342 = vmatpush.msra.mxu1 %v2161_v59 }
 0x7b8   :  { %13803 = vst [vmem:[#allocation125_spill] sm:$0xff] %v10567_v23  ;;  %3230 = vmatpush.msrb.mxu3 %v2158_v51  ;;  %v2154_v23 = vld [vmem:[#allocation3 + $0x410] sm:$0xff] }
 0x7b9   :  { %2735 = vmatmul.f32.gmra.mxu3 %v10242_v39  ;;  %2848 = vmatmul.f32.gmra.mxu1 %v10242_v39 }
 0x7ba   :  { %3028 = vmatmul.f32.gmra.mxu0 %v10266_v55  ;;  %3343 = vmatpush.msra.mxu1 %v2159_v3 }
 0x7bb   :  { %3096 = vmatmul.f32.gmra.mxu2 %v10088_v41  ;;  %3231 = vmatpush.msrb.mxu3 %v2156_v14 }
 0x7bc   :  { %v2688_v46 = vpop.f32.mrf.mxu3  ;;  %3344 = vmatpush.msra.mxu1 %v2157_v30 }
 0x7bd   :  { %v10574_v7 = vadd.f32 %v2688_v46, %v10236_v58  ;;  %v2152_v58 = vld [vmem:[#allocation3 + $0x400] sm:$0xff]  ;;  %3232 = vmatpush.msrb.mxu3 %v2154_v23 }
 0x7be   :  { %v10576_v57 = vpop.f32.mrf.mxu2  ;;  %v10578_v60 = vpop.f32.mrf.mxu1  ;;  %3345 = vmatpush.msra.mxu1 %v2155_v27  ;;  %v2543_v27 = vadd.f32 %v10276_v32, %v10094_v26  ;;  %v2546_v26 = vadd.f32 %v10286_v33, %v10106_v10  ;;  %v2549_v10 = vadd.f32 %v10296_v13, %v10118_v25 }
 0x7bf   :  { %13804 = vst [vmem:[#allocation126_spill] sm:$0xff] %v10576_v57  ;;  %3233 = vmatpush.msrb.mxu3 %v2152_v58 }
 0x7c0   :  { %3346 = vmatpush.msra.mxu1 %v2153_v53  ;;  %v2865_v53 = vadd.f32 %v10446_v28, %v2543_v27  ;;  %v2867_v28 = vadd.f32 %v10455_v31, %v2546_v26  ;;  %v2869_v31 = vadd.f32 %v10466_v50, %v2549_v10  ;;  %v13816_v10 = vld [vmem:[#allocation48_spill] sm:$0xff] }
 0x7c1   :  { %2738 = vmatmul.f32.gmra.mxu3 %v10254_v8  ;;  %2851 = vmatmul.f32.gmra.mxu1 %v10254_v8 }
 0x7c2   :  { %3031 = vmatmul.f32.gmra.mxu0 %v13734_v36 }
 0x7c3   :  { %3099 = vmatmul.f32.gmra.mxu2 %v10098_v0 }
 0x7c4   :  { %v2691_v59 = vpop.f32.mrf.mxu3 }
 0x7c5   :  { %v10585_v51 = vadd.f32 %v2691_v59, %v10248_v20 }
 0x7c6   :  { %v10587_v46 = vpop.f32.mrf.mxu2  ;;  %v10589_v3 = vpop.f32.mrf.mxu1 }
 0x7c7   :  { %13805 = vst [vmem:[#allocation127_spill] sm:$0xff] %v10587_v46 }
 0x7c9   :  { %2741 = vmatmul.f32.gmra.mxu3 %v10266_v55  ;;  %2854 = vmatmul.f32.gmra.mxu1 %v10266_v55 }
 0x7ca   :  { %3034 = vmatmul.f32.gmra.mxu0 %v13734_v36 }
 0x7cb   :  { %3102 = vmatmul.f32.gmra.mxu2 %v10110_v5 }
 0x7cc   :  { %v2694_v23 = vpop.f32.mrf.mxu3 }
 0x7cd   :  { %v10596_v14 = vadd.f32 %v2694_v23, %v10260_v29 }
 0x7ce   :  { %v10598_v20 = vpop.f32.mrf.mxu2  ;;  %v10600_v30 = vpop.f32.mrf.mxu1 }
 0x7cf   :  { %13806 = vst [vmem:[#allocation128_spill] sm:$0xff] %v10598_v20 }
 0x7d1   :  { %2744 = vmatmul.f32.gmra.mxu3 %v13734_v36  ;;  %2857 = vmatmul.f32.gmra.mxu1 %v13734_v36 }
 0x7d2   :  { %3037 = vmatmul.f32.gmra.mxu0 %v13734_v36 }
 0x7d3   :  { %3105 = vmatmul.f32.gmra.mxu2 %v10122_v48 }
 0x7d4   :  { %v2697_v58 = vpop.f32.mrf.mxu3 }
 0x7d5   :  { %v10610_v29 = vadd.f32 %v2697_v58, %v10272_v12 }
 0x7d6   :  { %v10612_v59 = vpop.f32.mrf.mxu1  ;;  %v3058_v23 = vpop.f32.mrf.mxu2 }
 0x7d7   :  { %v10614_v20 = vadd.f32 %v3058_v23, %v2865_v53  ;;  %v13810_v23 = vld [vmem:[#allocation50_spill] sm:$0xff] }
 0x7d9   :  { %13807 = vst [vmem:[#allocation129_spill] sm:$0xff] %v10614_v20  ;;  %2747 = vmatmul.f32.gmra.mxu3 %v13734_v36  ;;  %2860 = vmatmul.f32.gmra.mxu1 %v13734_v36 }
 0x7db   :  { %3108 = vmatmul.f32.gmra.mxu2 %v10134_v35 }
 0x7dc   :  { %v2700_v32 = vpop.f32.mrf.mxu3 }
 0x7dd   :  { %v10623_v12 = vadd.f32 %v2700_v32, %v10282_v38 }
 0x7de   :  { %v10625_v27 = vpop.f32.mrf.mxu1  ;;  %v3061_v58 = vpop.f32.mrf.mxu2 }
 0x7df   :  { %13808 = vst [vmem:[#allocation130_spill] sm:$0xff] %v10625_v27  ;;  %v10627_v53 = vadd.f32 %v3061_v58, %v2867_v28  ;;  %v13815_v58 = vld [vmem:[#allocation46_spill] sm:$0xff] }
 0x7e1   :  { %13809 = vst [vmem:[#allocation131_spill] sm:$0xff] %v10627_v53  ;;  %3234 = vmatmul.f32.vlgmr.msrb.gmra.mxu3 %v9959_v22  ;;  %3347 = vmatmul.f32.vlgmr.msra.gmra.mxu1 %v9959_v22  ;;  %v13814_v22 = vld [vmem:[#allocation58_spill] sm:$0xff] }
 0x7e2   :  { %v2552_v25 = vadd.f32 %v13815_v58, %v13814_v22 }
 0x7e3   :  { %3111 = vmatmul.f32.gmra.mxu2 %v10146_v52 }
 0x7e4   :  { %v2703_v33 = vpop.f32.mrf.mxu3  ;;  %v2871_v50 = vadd.f32 %v10477_v45, %v2552_v25  ;;  %v13822_v25 = vld [vmem:[#allocation71_spill] sm:$0xff] }
 0x7e5   :  { %v10636_v38 = vadd.f32 %v2703_v33, %v13810_v23 }
 0x7e6   :  { %v10638_v26 = vpop.f32.mrf.mxu1  ;;  %v3064_v32 = vpop.f32.mrf.mxu2 }
 0x7e7   :  { %13811 = vst [vmem:[#allocation50_spill] sm:$0xff] %v10636_v38  ;;  %v10640_v28 = vadd.f32 %v3064_v32, %v2869_v31  ;;  %v13821_v32 = vld [vmem:[#allocation70_spill] sm:$0xff] }
 0x7e8   :  { %13812 = vst [vmem:[#allocation132_spill] sm:$0xff] %v10638_v26 }
 0x7e9   :  { %13813 = vst [vmem:[#allocation133_spill] sm:$0xff] %v10640_v28  ;;  %3237 = vmatmul.f32.gmra.mxu3 %v9970_v1  ;;  %3350 = vmatmul.f32.gmra.mxu1 %v9970_v1  ;;  %v13820_v1 = vld [vmem:[#allocation79_spill] sm:$0xff] }
 0x7ea   :  { %v2555_v22 = vadd.f32 %v13821_v32, %v13820_v1 }
 0x7eb   :  { %3114 = vmatmul.f32.gmra.mxu2 %v10158_v6 }
 0x7ec   :  { %v2706_v13 = vpop.f32.mrf.mxu3  ;;  %v2873_v45 = vadd.f32 %v10488_v4, %v2555_v22  ;;  %v13828_v22 = vld [vmem:[#allocation42_spill] sm:$0xff] }
 0x7ed   :  { %v10649_v33 = vadd.f32 %v2706_v13, %v13816_v10 }
 0x7ee   :  { %v10651_v23 = vpop.f32.mrf.mxu1  ;;  %v3067_v38 = vpop.f32.mrf.mxu2 }
 0x7ef   :  { %13817 = vst [vmem:[#allocation58_spill] sm:$0xff] %v10649_v33  ;;  %v10653_v31 = vadd.f32 %v3067_v38, %v2871_v50  ;;  %v13827_v50 = vld [vmem:[#allocation40_spill] sm:$0xff] }
 0x7f0   :  { %13818 = vst [vmem:[#allocation46_spill] sm:$0xff] %v10651_v23 }
 0x7f1   :  { %13819 = vst [vmem:[#allocation48_spill] sm:$0xff] %v10653_v31  ;;  %3240 = vmatmul.f32.gmra.mxu3 %v9981_v47  ;;  %3353 = vmatmul.f32.gmra.mxu1 %v9981_v47  ;;  %v13826_v47 = vld [vmem:[#allocation57_spill] sm:$0xff] }
 0x7f2   :  { %v2558_v1 = vadd.f32 %v13827_v50, %v13826_v47 }
 0x7f3   :  { %3117 = vmatmul.f32.gmra.mxu2 %v10170_v34 }
 0x7f4   :  { %v2709_v58 = vpop.f32.mrf.mxu3  ;;  %v2875_v4 = vadd.f32 %v10499_v17, %v2558_v1  ;;  %v13833_v1 = vld [vmem:[#allocation68_spill] sm:$0xff] }
 0x7f5   :  { %v10662_v13 = vadd.f32 %v2709_v58, %v13822_v25 }
 0x7f6   :  { %v10664_v10 = vpop.f32.mrf.mxu1  ;;  %v3070_v33 = vpop.f32.mrf.mxu2 }
 0x7f7   :  { %13823 = vst [vmem:[#allocation79_spill] sm:$0xff] %v10662_v13  ;;  %v10666_v38 = vadd.f32 %v3070_v33, %v2873_v45  ;;  %v13832_v45 = vld [vmem:[#allocation67_spill] sm:$0xff] }
 0x7f8   :  { %13824 = vst [vmem:[#allocation70_spill] sm:$0xff] %v10664_v10 }
 0x7f9   :  { %13825 = vst [vmem:[#allocation71_spill] sm:$0xff] %v10666_v38  ;;  %3243 = vmatmul.f32.gmra.mxu3 %v9992_v37  ;;  %3356 = vmatmul.f32.gmra.mxu1 %v9992_v37  ;;  %v13831_v37 = vld [vmem:[#allocation78_spill] sm:$0xff] }
 0x7fa   :  { %v2561_v47 = vadd.f32 %v13832_v45, %v13831_v37 }
 0x7fb   :  { %3120 = vmatmul.f32.gmra.mxu2 %v10182_v19 }
 0x7fc   :  { %v2712_v32 = vpop.f32.mrf.mxu3  ;;  %v2877_v17 = vadd.f32 %v10510_v11, %v2561_v47  ;;  %v13838_v47 = vld [vmem:[#allocation102_spill] sm:$0xff] }
 0x7fd   :  { %v10675_v58 = vadd.f32 %v2712_v32, %v13828_v22 }
 0x7fe   :  { %v10677_v25 = vpop.f32.mrf.mxu1  ;;  %v3073_v13 = vpop.f32.mrf.mxu2 }
 0x7ff   :  { %13829 = vst [vmem:[#allocation57_spill] sm:$0xff] %v10675_v58  ;;  %v10679_v33 = vadd.f32 %v3073_v13, %v2875_v4  ;;  %v13837_v4 = vld [vmem:[#allocation114_spill] sm:$0xff] }
 0x800   :  { %13830 = vst [vmem:[#allocation40_spill] sm:$0xff] %v10677_v25 }
 0x801   :  { %3246 = vmatmul.f32.gmra.mxu3 %v10003_v9  ;;  %3359 = vmatmul.f32.gmra.mxu1 %v10003_v9  ;;  %v13836_v9 = vld [vmem:[#allocation56_spill] sm:$0xff] }
 0x802   :  { %v2564_v37 = vadd.f32 %v13837_v4, %v13836_v9 }
 0x803   :  { %3123 = vmatmul.f32.gmra.mxu2 %v10194_v43 }
 0x804   :  { %v2715_v50 = vpop.f32.mrf.mxu3  ;;  %v2879_v11 = vadd.f32 %v10521_v49, %v2564_v37 }
 0x805   :  { %v10688_v32 = vadd.f32 %v2715_v50, %v13833_v1 }
 0x806   :  { %v10690_v22 = vpop.f32.mrf.mxu1  ;;  %v3076_v58 = vpop.f32.mrf.mxu2 }
 0x807   :  { %13834 = vst [vmem:[#allocation42_spill] sm:$0xff] %v10688_v32  ;;  %v10692_v13 = vadd.f32 %v3076_v58, %v2877_v17  ;;  %v13841_v17 = vld [vmem:[#allocation36_spill] sm:$0xff] }
 0x808   :  { %13835 = vst [vmem:[#allocation78_spill] sm:$0xff] %v10690_v22 }
 0x809   :  { %3249 = vmatmul.f32.gmra.mxu3 %v10014_v44  ;;  %3362 = vmatmul.f32.gmra.mxu1 %v10014_v44 }
 0x80b   :  { %3126 = vmatmul.f32.gmra.mxu2 %v10206_v2 }
 0x80c   :  { %v2718_v45 = vpop.f32.mrf.mxu3 }
 0x80d   :  { %v10701_v50 = vadd.f32 %v2718_v45, %v13838_v47 }
 0x80e   :  { %v10703_v1 = vpop.f32.mrf.mxu1  ;;  %v3079_v32 = vpop.f32.mrf.mxu2 }
 0x80f   :  { %13839 = vst [vmem:[#allocation67_spill] sm:$0xff] %v10701_v50  ;;  %v10705_v58 = vadd.f32 %v3079_v32, %v2879_v11  ;;  %v13844_v32 = vld [vmem:[#allocation95_spill] sm:$0xff]  ;;  %v13847_v11 = vld [vmem:[#allocation34_spill] sm:$0xff] }
 0x810   :  { %13840 = vst [vmem:[#allocation68_spill] sm:$0xff] %v10703_v1  ;;  %v13880_v50 = vld [vmem:[#allocation115_spill] sm:$0xff] }
 0x811   :  { %3252 = vmatmul.f32.gmra.mxu3 %v10025_v18  ;;  %3365 = vmatmul.f32.gmra.mxu1 %v10025_v18 }
 0x813   :  { %3129 = vmatmul.f32.gmra.mxu2 %v10218_v21 }
 0x814   :  { %v2721_v44 = vpop.f32.mrf.mxu3 }
 0x815   :  { %v10711_v9 = vadd.f32 %v2721_v44, %v13841_v17 }
 0x816   :  { %v10713_v4 = vpop.f32.mrf.mxu1 }
 0x817   :  { %13842 = vst [vmem:[#allocation56_spill] sm:$0xff] %v10711_v9 }
 0x818   :  { %13843 = vst [vmem:[#allocation114_spill] sm:$0xff] %v10713_v4 }
 0x819   :  { %3255 = vmatmul.f32.gmra.mxu3 %v10036_v24  ;;  %3368 = vmatmul.f32.gmra.mxu1 %v10036_v24 }
 0x81b   :  { %3132 = vmatmul.f32.gmra.mxu2 %v10230_v16 }
 0x81c   :  { %v2724_v49 = vpop.f32.mrf.mxu3 }
 0x81d   :  { %v10719_v37 = vadd.f32 %v2724_v49, %v13844_v32  ;;  %v13852_v32 = vld [vmem:[#allocation112_spill] sm:$0xff] }
 0x81e   :  { %v10721_v45 = vpop.f32.mrf.mxu1 }
 0x81f   :  { %13845 = vst [vmem:[#allocation102_spill] sm:$0xff] %v10719_v37 }
 0x820   :  { %13846 = vst [vmem:[#allocation36_spill] sm:$0xff] %v10721_v45  ;;  %v13879_v45 = vld [vmem:[#allocation98_spill] sm:$0xff] }
 0x821   :  { %3258 = vmatmul.f32.gmra.mxu3 %v10047_v54  ;;  %3371 = vmatmul.f32.gmra.mxu1 %v10047_v54 }
 0x823   :  { %3135 = vmatmul.f32.gmra.mxu2 %v10242_v39 }
 0x824   :  { %v2727_v18 = vpop.f32.mrf.mxu3 }
 0x825   :  { %v10727_v47 = vadd.f32 %v2727_v18, %v13847_v11 }
 0x826   :  { %v10729_v44 = vpop.f32.mrf.mxu1 }
 0x827   :  { %13848 = vst [vmem:[#allocation95_spill] sm:$0xff] %v10727_v47 }
 0x828   :  { %13849 = vst [vmem:[#allocation34_spill] sm:$0xff] %v10729_v44  ;;  %v13877_v44 = vld [vmem:[#allocation101_spill] sm:$0xff] }
 0x829   :  { %3261 = vmatmul.f32.gmra.mxu3 %v10058_v62  ;;  %3374 = vmatmul.f32.gmra.mxu1 %v10058_v62 }
 0x82b   :  { %3138 = vmatmul.f32.gmra.mxu2 %v10254_v8 }
 0x82c   :  { %v2730_v24 = vpop.f32.mrf.mxu3 }
 0x82d   :  { %v10735_v17 = vadd.f32 %v2730_v24, %v10382_v63  ;;  %v13855_v63 = vld [vmem:[#allocation96_spill] sm:$0xff] }
 0x82e   :  { %v10737_v49 = vpop.f32.mrf.mxu1 }
 0x82f   :  { %13850 = vst [vmem:[#allocation134_spill] sm:$0xff] %v10735_v17 }
 0x830   :  { %13851 = vst [vmem:[#allocation135_spill] sm:$0xff] %v10737_v49 }
 0x831   :  { %3264 = vmatmul.f32.gmra.mxu3 %v10069_v61  ;;  %3377 = vmatmul.f32.gmra.mxu1 %v10069_v61 }
 0x833   :  { %3141 = vmatmul.f32.gmra.mxu2 %v10266_v55 }
 0x834   :  { %v2733_v54 = vpop.f32.mrf.mxu3 }
 0x835   :  { %v10743_v18 = vadd.f32 %v2733_v54, %v13852_v32  ;;  %v13858_v54 = vld [vmem:[#allocation94_spill] sm:$0xff] }
 0x836   :  { %v10745_v11 = vpop.f32.mrf.mxu1 }
 0x837   :  { %13853 = vst [vmem:[#allocation112_spill] sm:$0xff] %v10743_v18 }
 0x838   :  { %13854 = vst [vmem:[#allocation136_spill] sm:$0xff] %v10745_v11  ;;  %v13867_v11 = vld [vmem:[#allocation60_spill] sm:$0xff] }
 0x839   :  { %3267 = vmatmul.f32.gmra.mxu3 %v10080_v15  ;;  %3380 = vmatmul.f32.gmra.mxu1 %v10080_v15 }
 0x83b   :  { %3144 = vmatmul.f32.gmra.mxu2 %v13734_v36 }
 0x83c   :  { %v2736_v62 = vpop.f32.mrf.mxu3 }
 0x83d   :  { %v10751_v24 = vadd.f32 %v2736_v62, %v13855_v63  ;;  %v13861_v62 = vld [vmem:[#allocation83_spill] sm:$0xff] }
 0x83e   :  { %v10753_v17 = vpop.f32.mrf.mxu1 }
 0x83f   :  { %13856 = vst [vmem:[#allocation96_spill] sm:$0xff] %v10751_v24 }
 0x840   :  { %13857 = vst [vmem:[#allocation137_spill] sm:$0xff] %v10753_v17 }
 0x841   :  { %3270 = vmatmul.f32.gmra.mxu3 %v10088_v41  ;;  %3383 = vmatmul.f32.gmra.mxu1 %v10088_v41 }
 0x843   :  { %3147 = vmatmul.f32.gmra.mxu2 %v13734_v36 }
 0x844   :  { %v2739_v61 = vpop.f32.mrf.mxu3 }
 0x845   :  { %v10759_v32 = vadd.f32 %v2739_v61, %v13858_v54  ;;  %v13864_v61 = vld [vmem:[#allocation100_spill] sm:$0xff] }
 0x846   :  { %v10761_v18 = vpop.f32.mrf.mxu1 }
 0x847   :  { %13859 = vst [vmem:[#allocation94_spill] sm:$0xff] %v10759_v32 }
 0x848   :  { %13860 = vst [vmem:[#allocation138_spill] sm:$0xff] %v10761_v18 }
 0x849   :  { %3273 = vmatmul.f32.gmra.mxu3 %v10098_v0  ;;  %3386 = vmatmul.f32.gmra.mxu1 %v10098_v0 }
 0x84b   :  { %3150 = vmatmul.f32.gmra.mxu2 %v13734_v36 }
 0x84c   :  { %v2742_v15 = vpop.f32.mrf.mxu3 }
 0x84d   :  { %v10767_v63 = vadd.f32 %v2742_v15, %v13861_v62 }
 0x84e   :  { %v10769_v24 = vpop.f32.mrf.mxu1 }
 0x84f   :  { %13862 = vst [vmem:[#allocation83_spill] sm:$0xff] %v10767_v63  ;;  %v13870_v63 = vld [vmem:[#allocation84_spill] sm:$0xff] }
 0x850   :  { %13863 = vst [vmem:[#allocation139_spill] sm:$0xff] %v10769_v24 }
 0x851   :  { %3276 = vmatmul.f32.gmra.mxu3 %v10110_v5  ;;  %3389 = vmatmul.f32.gmra.mxu1 %v10110_v5 }
 0x854   :  { %v2745_v41 = vpop.f32.mrf.mxu3 }
 0x855   :  { %v10774_v54 = vadd.f32 %v2745_v41, %v13864_v61 }
 0x856   :  { %v10776_v32 = vpop.f32.mrf.mxu1 }
 0x857   :  { %13865 = vst [vmem:[#allocation100_spill] sm:$0xff] %v10774_v54  ;;  %v10801_v54 = vpop.f32.mrf.mxu0 }
 0x858   :  { %13866 = vst [vmem:[#allocation140_spill] sm:$0xff] %v10776_v32 }
 0x859   :  { %3279 = vmatmul.f32.gmra.mxu3 %v10122_v48  ;;  %3392 = vmatmul.f32.gmra.mxu1 %v10122_v48  ;;  %v10794_v48 = vpop.f32.mrf.mxu2 }
 0x85c   :  { %v2748_v0 = vpop.f32.mrf.mxu3 }
 0x85d   :  { %v10781_v15 = vadd.f32 %v2748_v0, %v13867_v11 }
 0x85e   :  { %v10783_v62 = vpop.f32.mrf.mxu1 }
 0x85f   :  { %13868 = vst [vmem:[#allocation60_spill] sm:$0xff] %v10781_v15  ;;  %v10812_v17 = vpop.f32.mrf.mxu0 }
 0x860   :  { %13869 = vst [vmem:[#allocation141_spill] sm:$0xff] %v10783_v62 }
 0x861   :  { %3282 = vmatmul.f32.gmra.mxu3 %v10134_v35  ;;  %3395 = vmatmul.f32.gmra.mxu1 %v10134_v35  ;;  %v10808_v32 = vpop.f32.mrf.mxu2 }
 0x864   :  { %v3235_v5 = vpop.f32.mrf.mxu3 }
 0x865   :  { %v10788_v41 = vadd.f32 %v3235_v5, %v13870_v63  ;;  %v13873_v63 = vld [vmem:[#allocation64_spill] sm:$0xff] }
 0x866   :  { %v10790_v61 = vpop.f32.mrf.mxu1 }
 0x867   :  { %13871 = vst [vmem:[#allocation84_spill] sm:$0xff] %v10790_v61 }
 0x869   :  { %3285 = vmatmul.f32.gmra.mxu3 %v10146_v52  ;;  %3398 = vmatmul.f32.gmra.mxu1 %v10146_v52 }
 0x86c   :  { %v3238_v11 = vpop.f32.mrf.mxu3 }
 0x86d   :  { %v10797_v0 = vadd.f32 %v3238_v11, %v10468_v56  ;;  %v13875_v11 = vld [vmem:[#allocation104_spill] sm:$0xff] }
 0x86e   :  { %v10799_v15 = vpop.f32.mrf.mxu1 }
 0x86f   :  { %13872 = vst [vmem:[#allocation142_spill] sm:$0xff] %v10799_v15 }
 0x871   :  { %3288 = vmatmul.f32.gmra.mxu3 %v10158_v6  ;;  %3401 = vmatmul.f32.gmra.mxu1 %v10158_v6  ;;  %v10821_v6 = vpop.f32.mrf.mxu2 }
 0x874   :  { %v3241_v35 = vpop.f32.mrf.mxu3 }
 0x875   :  { %v10806_v5 = vadd.f32 %v3241_v35, %v13873_v63  ;;  %v10825_v35 = vpop.f32.mrf.mxu0 }
 0x876   :  { %v10810_v52 = vpop.f32.mrf.mxu1 }
 0x877   :  { %13874 = vst [vmem:[#allocation64_spill] sm:$0xff] %v10810_v52 }
 0x879   :  { %3291 = vmatmul.f32.gmra.mxu3 %v10170_v34  ;;  %3404 = vmatmul.f32.gmra.mxu1 %v10170_v34  ;;  %v10834_v34 = vpop.f32.mrf.mxu2 }
 0x87c   :  { %v3244_v56 = vpop.f32.mrf.mxu3 }
 0x87d   :  { %v10817_v47 = vadd.f32 %v3244_v56, %v13875_v11  ;;  %v10836_v11 = vpop.f32.mrf.mxu0 }
 0x87e   :  { %v10819_v49 = vpop.f32.mrf.mxu1 }
 0x87f   :  { %13876 = vst [vmem:[#allocation104_spill] sm:$0xff] %v10819_v49 }
 0x881   :  { %3294 = vmatmul.f32.gmra.mxu3 %v10182_v19  ;;  %3407 = vmatmul.f32.gmra.mxu1 %v10182_v19 }
 0x884   :  { %v3247_v63 = vpop.f32.mrf.mxu3 }
 0x885   :  { %v10828_v37 = vadd.f32 %v3247_v63, %v13877_v44  ;;  %v10845_v44 = vpop.f32.mrf.mxu2  ;;  %v2981_v1 = vpop.f32.mrf.mxu0 }
 0x886   :  { %v10830_v18 = vpop.f32.mrf.mxu1  ;;  %v3178_v38 = vadd.f32 %v2981_v1, %v10585_v51  ;;  %v10933_v51 = vld [vmem:[%s13297_s12] sm:$0x3] }
 0x887   :  { %13878 = vst [vmem:[#allocation101_spill] sm:$0xff] %v10830_v18 }
 0x889   :  { %3297 = vmatmul.f32.gmra.mxu3 %v10194_v43  ;;  %3410 = vmatmul.f32.gmra.mxu1 %v10194_v43 }
 0x88c   :  { %v3250_v56 = vpop.f32.mrf.mxu3 }
 0x88d   :  { %v10839_v9 = vadd.f32 %v3250_v56, %v13879_v45  ;;  %v13881_v56 = vld [vmem:[#allocation118_spill] sm:$0xff]  ;;  %v10857_v22 = vpop.f32.mrf.mxu2  ;;  %v2984_v25 = vpop.f32.mrf.mxu0 }
 0x88e   :  { %v10841_v19 = vpop.f32.mrf.mxu1  ;;  %v3180_v52 = vadd.f32 %v2984_v25, %v10596_v14  ;;  %v3176_v25 = vadd.f32 %v10836_v11, %v10574_v7  ;;  %v10940_v7 = vperm.slane %v10933_v51, 0 }
 0x890   :  { %13891 = vst [vmem:[#allocation149_spill] sm:$0xff] %v10940_v7 }
 0x891   :  { %3300 = vmatmul.f32.gmra.mxu3 %v10206_v2  ;;  %3413 = vmatmul.f32.gmra.mxu1 %v10206_v2 }
 0x894   :  { %v3253_v63 = vpop.f32.mrf.mxu3 }
 0x895   :  { %v10848_v4 = vadd.f32 %v3253_v63, %v13880_v50  ;;  %v10867_v10 = vpop.f32.mrf.mxu2 }
 0x896   :  { %v10850_v43 = vpop.f32.mrf.mxu1 }
 0x899   :  { %3303 = vmatmul.f32.gmra.mxu3 %v10218_v21  ;;  %3416 = vmatmul.f32.gmra.mxu1 %v10218_v21  ;;  %v2987_v21 = vpop.f32.mrf.mxu0 }
 0x89c   :  { %v3256_v45 = vpop.f32.mrf.mxu3 }
 0x89d   :  { %v10855_v24 = vadd.f32 %v3256_v45, %v13881_v56  ;;  %v10875_v23 = vpop.f32.mrf.mxu2 }
 0x89e   :  { %v10859_v2 = vpop.f32.mrf.mxu1 }
 0x8a1   :  { %3306 = vmatmul.f32.gmra.mxu3 %v10230_v16  ;;  %3419 = vmatmul.f32.gmra.mxu1 %v10230_v16  ;;  %v2990_v26 = vpop.f32.mrf.mxu0 }
 0x8a2   :  { %v3184_v14 = vadd.f32 %v2990_v26, %v10623_v12 }
 0x8a4   :  { %v10863_v50 = vpop.f32.mrf.mxu3 }
 0x8a5   :  { %v10881_v46 = vpop.f32.mrf.mxu2 }
 0x8a6   :  { %v10865_v63 = vpop.f32.mrf.mxu1  ;;  %13882 = vst [vmem:[#allocation98_spill] sm:$0xff] %v10881_v46 }
 0x8a9   :  { %3309 = vmatmul.f32.gmra.mxu3 %v10242_v39  ;;  %3422 = vmatmul.f32.gmra.mxu1 %v10242_v39  ;;  %v10885_v62 = vpop.f32.mrf.mxu0 }
 0x8aa   :  { %13883 = vst [vmem:[#allocation115_spill] sm:$0xff] %v10885_v62 }
 0x8ac   :  { %v3262_v45 = vpop.f32.mrf.mxu3 }
 0x8ad   :  { %v10889_v20 = vpop.f32.mrf.mxu2 }
 0x8ae   :  { %v10871_v56 = vpop.f32.mrf.mxu1  ;;  %13884 = vst [vmem:[#allocation118_spill] sm:$0xff] %v10889_v20 }
 0x8b1   :  { %3312 = vmatmul.f32.gmra.mxu3 %v10254_v8  ;;  %3425 = vmatmul.f32.gmra.mxu1 %v10254_v8  ;;  %v10893_v53 = vpop.f32.mrf.mxu0 }
 0x8b2   :  { %13885 = vst [vmem:[#allocation143_spill] sm:$0xff] %v10893_v53  ;;  %v3182_v53 = vadd.f32 %v2987_v21, %v10610_v29 }
 0x8b4   :  { %v3265_v16 = vpop.f32.mrf.mxu3 }
 0x8b5   :  { %v10899_v15 = vpop.f32.mrf.mxu2 }
 0x8b6   :  { %v10877_v27 = vpop.f32.mrf.mxu1  ;;  %13886 = vst [vmem:[#allocation144_spill] sm:$0xff] %v10899_v15  ;;  %v10914_v15 = vld [vmem:[%s13296_s11] sm:$0x3] }
 0x8b9   :  { %3315 = vmatmul.f32.gmra.mxu3 %v10266_v55  ;;  %3428 = vmatmul.f32.gmra.mxu1 %v10266_v55  ;;  %v10903_v62 = vpop.f32.mrf.mxu0 }
 0x8ba   :  { %13887 = vst [vmem:[#allocation145_spill] sm:$0xff] %v10903_v62  ;;  %v10919_v62 = vperm.slane %v10914_v15, 0 }
 0x8bc   :  { %v3268_v39 = vpop.f32.mrf.mxu3  ;;  %13889 = vst [vmem:[#allocation147_spill] sm:$0xff] %v10919_v62 }
 0x8bd   :  { %v10916_v49 = vpop.f32.mrf.mxu2  ;;  %v3466_v12 = vadd.f32 %v3268_v39, %v3176_v25  ;;  %v13894_v39 = vld [vmem:[#allocation119_spill] sm:$0xff] }
 0x8be   :  { %v10883_v57 = vpop.f32.mrf.mxu1  ;;  %13888 = vst [vmem:[#allocation146_spill] sm:$0xff] %v10916_v49  ;;  %v3174_v49 = vadd.f32 %v10825_v35, %v10563_v40 }
 0x8c1   :  { %3318 = vmatmul.f32.gmra.mxu3 %v13734_v36  ;;  %3431 = vmatmul.f32.gmra.mxu1 %v13734_v36 }
 0x8c4   :  { %v3271_v8 = vpop.f32.mrf.mxu3 }
 0x8c5   :  { %v3468_v21 = vadd.f32 %v3271_v8, %v3178_v38  ;;  %v3464_v38 = vadd.f32 %v3265_v16, %v3174_v49  ;;  %v3170_v8 = vadd.f32 %v10801_v54, %v13894_v39 }
 0x8c6   :  { %v10891_v61 = vpop.f32.mrf.mxu1 }
 0x8c7   :  { %v3537_v40 = vmul.f32 %v10919_v62, %v3468_v21  ;;  %v3460_v49 = vadd.f32 %v10863_v50, %v3170_v8  ;;  %v3525_v8 = vmul.f32 %v10919_v62, %v10848_v4 }
 0x8c9   :  { %3321 = vmatmul.f32.gmra.mxu3 %v13734_v36  ;;  %3434 = vmatmul.f32.gmra.mxu1 %v13734_v36 }
 0x8cc   :  { %v3274_v55 = vpop.f32.mrf.mxu3 }
 0x8cd   :  { %v3470_v29 = vadd.f32 %v3274_v55, %v3180_v52 }
 0x8ce   :  { %v10897_v46 = vpop.f32.mrf.mxu1 }
 0x8cf   :  { %v3539_v26 = vmul.f32 %v10919_v62, %v3470_v29 }
 0x8d1   :  { %3324 = vmatmul.f32.gmra.mxu3 %v13734_v36  ;;  %3437 = vmatmul.f32.gmra.mxu1 %v13734_v36 }
 0x8d4   :  { %v3277_v20 = vpop.f32.mrf.mxu3 }
 0x8d5   :  { %v3472_v31 = vadd.f32 %v3277_v20, %v3182_v53  ;;  %v10923_v53 = vpop.f32.mrf.mxu0 }
 0x8d6   :  { %v10905_v28 = vpop.f32.mrf.mxu1 }
 0x8d9   :  { %3327 = vmatmul.f32.gmra.mxu3 %v13734_v36  ;;  %3440 = vmatmul.f32.gmra.mxu1 %v13734_v36  ;;  %v3541_v36 = vmul.f32 %v10919_v62, %v3472_v31  ;;  %v3172_v31 = vadd.f32 %v10812_v17, %v10552_v42  ;;  %v10958_v42 = vpop.f32.mrf.mxu2 }
 0x8db   :  { %v10949_v11 = vadd.f32 %v10940_v7, %v3541_v36  ;;  %v3462_v55 = vadd.f32 %v3262_v45, %v3172_v31  ;;  %v3533_v36 = vmul.f32 %v10919_v62, %v3464_v38  ;;  %v10968_v45 = vadd.f32 %v10940_v7, %v3537_v40 }
 0x8dc   :  { %v3280_v20 = vpop.f32.mrf.mxu3  ;;  %v3527_v31 = vmul.f32 %v10919_v62, %v10855_v24 }
 0x8dd   :  { %v3474_v18 = vadd.f32 %v3280_v20, %v3184_v14  ;;  %13893 = vst [vmem:[#allocation151_spill] sm:$0xff] %v10949_v11  ;;  %v10956_v14 = vadd.f32 %v10940_v7, %v3539_v26  ;;  %v13357_v54 = vmax.f32 %v10949_v11, 0.0  ;;  %v10972_v20 = vpop.f32.mrf.mxu0  ;;  %v3531_v25 = vmul.f32 %v10919_v62, %v3462_v55 }
 0x8de   :  { %v10935_v1 = vpop.f32.mrf.mxu1  ;;  %13897 = vst [vmem:[#allocation153_spill] sm:$0xff] %v10968_v45  ;;  %v13359_v26 = vmax.f32 %v10968_v45, 0.0 }
 0x8df   :  { %13890 = vst [vmem:[#allocation148_spill] sm:$0xff] %v10935_v1  ;;  %v3543_v52 = vmul.f32 %v10919_v62, %v3474_v18  ;;  %v3535_v18 = vmul.f32 %v10919_v62, %v3466_v12  ;;  %v13358_v50 = vmax.f32 %v10956_v14, 0.0  ;;  %v3529_v12 = vmul.f32 %v10919_v62, %v3460_v49 }
 0x8e0   :  { %13895 = vst [vmem:[#allocation119_spill] sm:$0xff] %v10956_v14  ;;  %v10994_v40 = vadd.f32 %v10940_v7, %v3531_v25  ;;  %v11016_v25 = vadd.f32 %v10940_v7, %v3527_v31  ;;  %v13913_v14 = vld [vmem:[#allocation87_spill] sm:$0xff] }
 0x8e1   :  { %v10946_v35 = vadd.f32 %v10940_v7, %v3543_v52  ;;  %v10979_v21 = vadd.f32 %v10940_v7, %v3535_v18  ;;  %v10986_v52 = vadd.f32 %v10940_v7, %v3533_v36  ;;  %v11004_v24 = vadd.f32 %v10940_v7, %v3529_v12  ;;  %v11006_v18 = vpop.f32.mrf.mxu2 }
 0x8e2   :  { %13901 = vst [vmem:[#allocation157_spill] sm:$0xff] %v10994_v40  ;;  %v3523_v36 = vmul.f32 %v10919_v62, %v10839_v9  ;;  %v13364_v4 = vmax.f32 %v10994_v40, 0.0 }
 0x8e3   :  { %13892 = vst [vmem:[#allocation150_spill] sm:$0xff] %v10946_v35  ;;  %v13356_v29 = vmax.f32 %v10946_v35, 0.0  ;;  %v13360_v38 = vmax.f32 %v10979_v21, 0.0  ;;  %v13361_v55 = vmax.f32 %v10986_v52, 0.0  ;;  %v13367_v9 = vmax.f32 %v11004_v24, 0.0  ;;  %v13910_v35 = vld [vmem:[#allocation91_spill] sm:$0xff] }
 0x8e4   :  { %v10960_v17 = vpop.f32.mrf.mxu3  ;;  %13899 = vst [vmem:[#allocation155_spill] sm:$0xff] %v10979_v21 }
 0x8e5   :  { %13896 = vst [vmem:[#allocation152_spill] sm:$0xff] %v10960_v17  ;;  %3748 = vmatpush.msrb.mxu0 %v13356_v29  ;;  %v13906_v29 = vld [vmem:[#allocation52_spill] sm:$0xff]  ;;  %v11020_v12 = vpop.f32.mrf.mxu0  ;;  %v13987_v17 = vld [vmem:[#allocation63_spill] sm:$0xff] }
 0x8e6   :  { %v10970_v16 = vpop.f32.mrf.mxu1  ;;  %13900 = vst [vmem:[#allocation156_spill] sm:$0xff] %v10986_v52 }
 0x8e7   :  { %13898 = vst [vmem:[#allocation154_spill] sm:$0xff] %v10970_v16  ;;  %3749 = vmatpush.msrb.mxu0 %v13357_v54  ;;  %v13907_v54 = vld [vmem:[#allocation107_spill] sm:$0xff]  ;;  %v13991_v16 = vld [vmem:[#allocation106_spill] sm:$0xff] }
 0x8e8   :  { %13903 = vst [vmem:[#allocation159_spill] sm:$0xff] %v11004_v24 }
 0x8e9   :  { %3750 = vmatpush.msrb.mxu0 %v13358_v50  ;;  %13905 = vst [vmem:[#allocation161_spill] sm:$0xff] %v11016_v25  ;;  %v2588_v50 = vadd.f32 %v13907_v54, %v13906_v29  ;;  %v3519_v29 = vmul.f32 %v10919_v62, %v10817_v47  ;;  %v11039_v54 = vadd.f32 %v10940_v7, %v3523_v36  ;;  %v13916_v36 = vld [vmem:[#allocation76_spill] sm:$0xff] }
 0x8eb   :  { %3751 = vmatpush.msrb.mxu0 %v13359_v26  ;;  %v3521_v26 = vmul.f32 %v10919_v62, %v10828_v37  ;;  %v2895_v11 = vadd.f32 %v10612_v59, %v2588_v50  ;;  %v13369_v37 = vmax.f32 %v11016_v25, 0.0  ;;  %13911 = vst [vmem:[#allocation107_spill] sm:$0xff] %v11039_v54  ;;  %v3517_v59 = vmul.f32 %v10919_v62, %v10806_v5  ;;  %v13919_v5 = vld [vmem:[#allocation55_spill] sm:$0xff] }
 0x8ec   :  { %v10996_v39 = vpop.f32.mrf.mxu3 }
 0x8ed   :  { %13902 = vst [vmem:[#allocation158_spill] sm:$0xff] %v10996_v39  ;;  %3752 = vmatpush.msrb.mxu0 %v13360_v38  ;;  %v11028_v38 = vadd.f32 %v10940_v7, %v3525_v8  ;;  %v11053_v50 = vadd.f32 %v10940_v7, %v3521_v26  ;;  %v13377_v26 = vmax.f32 %v11039_v54, 0.0  ;;  %v13982_v54 = vld [vmem:[#allocation73_spill] sm:$0xff] }
 0x8ee   :  { %v11008_v49 = vpop.f32.mrf.mxu1 }
 0x8ef   :  { %13904 = vst [vmem:[#allocation160_spill] sm:$0xff] %v11008_v49  ;;  %3753 = vmatpush.msrb.mxu0 %v13361_v55  ;;  %v13909_v55 = vld [vmem:[#allocation75_spill] sm:$0xff]  ;;  %v13370_v47 = vmax.f32 %v11028_v38, 0.0  ;;  %v13992_v49 = vld [vmem:[#allocation110_spill] sm:$0xff] }
 0x8f0   :  { %13908 = vst [vmem:[#allocation52_spill] sm:$0xff] %v11028_v38  ;;  %v2585_v31 = vadd.f32 %v13910_v35, %v13909_v55  ;;  %v3185_v35 = vadd.f32 %v10875_v23, %v2895_v11  ;;  %v13981_v38 = vld [vmem:[#allocation81_spill] sm:$0xff] }
 0x8f1   :  { %3754 = vmatpush.msrb.mxu0 %v13364_v4  ;;  %v13912_v4 = vld [vmem:[#allocation54_spill] sm:$0xff]  ;;  %13915 = vst [vmem:[#allocation91_spill] sm:$0xff] %v11053_v50 }
 0x8f2   :  { %v2582_v8 = vadd.f32 %v13913_v14, %v13912_v4  ;;  %v2893_v45 = vadd.f32 %v10600_v30, %v2585_v31  ;;  %v3475_v11 = vadd.f32 %v10905_v28, %v3185_v35  ;;  %v13920_v31 = vld [vmem:[#allocation105_spill] sm:$0xff] }
 0x8f3   :  { %3755 = vmatpush.msrb.mxu0 %v13367_v9  ;;  %v13917_v9 = vld [vmem:[#allocation90_spill] sm:$0xff]  ;;  %v2576_v21 = vadd.f32 %v13920_v31, %v13919_v5  ;;  %v13923_v35 = vld [vmem:[#allocation89_spill] sm:$0xff]  ;;  %v3513_v5 = vmul.f32 %v10919_v62, %v10788_v41  ;;  %v13928_v41 = vld [vmem:[#allocation123_spill] sm:$0xff] }
 0x8f4   :  { %v11045_v55 = vpop.f32.mrf.mxu3  ;;  %v2579_v14 = vadd.f32 %v13917_v9, %v13916_v36  ;;  %v2891_v30 = vadd.f32 %v10589_v3, %v2582_v8  ;;  %v3183_v23 = vadd.f32 %v10867_v10, %v2893_v45  ;;  %v11070_v9 = vadd.f32 %v10940_v7, %v3519_v29  ;;  %v11077_v45 = vpop.f32.mrf.mxu2  ;;  %v13927_v31 = vld [vmem:[#allocation113_spill] sm:$0xff] }
 0x8f5   :  { %13914 = vst [vmem:[#allocation75_spill] sm:$0xff] %v11045_v55  ;;  %3756 = vmatpush.msrb.mxu0 %v13369_v37  ;;  %v3515_v37 = vmul.f32 %v10919_v62, %v10797_v0  ;;  %v11075_v10 = vperm.slane %v10914_v15, 1  ;;  %v13922_v0 = vld [vmem:[#allocation80_spill] sm:$0xff]  ;;  %v13925_v15 = vld [vmem:[#allocation125_spill] sm:$0xff]  ;;  %v14017_v62 = vld [vmem:[#allocation79_spill] sm:$0xff] }
 0x8f6   :  { %v11060_v4 = vpop.f32.mrf.mxu1  ;;  %13921 = vst [vmem:[#allocation87_spill] sm:$0xff] %v11070_v9  ;;  %v2889_v3 = vadd.f32 %v10578_v60, %v2579_v14  ;;  %v3181_v28 = vadd.f32 %v10857_v22, %v2891_v30  ;;  %v3473_v8 = vadd.f32 %v10897_v46, %v3183_v23  ;;  %v2573_v36 = vadd.f32 %v13923_v35, %v13922_v0  ;;  %v13926_v23 = vld [vmem:[#allocation59_spill] sm:$0xff]  ;;  %v13988_v55 = vld [vmem:[#allocation69_spill] sm:$0xff] }
 0x8f7   :  { %13918 = vst [vmem:[#allocation54_spill] sm:$0xff] %v11060_v4  ;;  %3757 = vmatpush.msrb.mxu0 %v13370_v47  ;;  %v13378_v60 = vmax.f32 %v11053_v50, 0.0  ;;  %v11088_v22 = vadd.f32 %v10940_v7, %v3517_v59  ;;  %v2887_v29 = vadd.f32 %v13925_v15, %v2576_v21  ;;  %v3544_v30 = vmul.f32 %v11075_v10, %v3475_v11  ;;  %v11097_v47 = vpop.f32.mrf.mxu0  ;;  %v13932_v15 = vld [vmem:[#allocation92_spill] sm:$0xff] }
 0x8f8   :  { %v3179_v14 = vadd.f32 %v10845_v44, %v2889_v3  ;;  %v3471_v46 = vadd.f32 %v10891_v61, %v3181_v28  ;;  %v2570_v0 = vadd.f32 %v13927_v31, %v13926_v23  ;;  %v2885_v35 = vadd.f32 %v13928_v41, %v2573_v36  ;;  %v13931_v36 = vld [vmem:[#allocation77_spill] sm:$0xff] }
 0x8f9   :  { %3758 = vmatpush.msrb.mxu0 %v13377_v26  ;;  %13924 = vst [vmem:[#allocation76_spill] sm:$0xff] %v11088_v22  ;;  %v13379_v59 = vmax.f32 %v11070_v9, 0.0  ;;  %v11103_v21 = vadd.f32 %v10940_v7, %v3515_v37  ;;  %v3177_v44 = vadd.f32 %v10834_v34, %v2887_v29  ;;  %v3542_v11 = vmul.f32 %v11075_v10, %v3473_v8  ;;  %v13933_v31 = vld [vmem:[#allocation121_spill] sm:$0xff]  ;;  %v13984_v9 = vld [vmem:[#allocation72_spill] sm:$0xff] }
 0x8fa   :  { %v3469_v61 = vadd.f32 %v10883_v57, %v3179_v14  ;;  %v11109_v3 = vperm.slane %v10933_v51, 1  ;;  %v2567_v23 = vadd.f32 %v13932_v15, %v13931_v36  ;;  %v2883_v41 = vadd.f32 %v13933_v31, %v2570_v0  ;;  %v13937_v0 = vld [vmem:[#allocation117_spill] sm:$0xff] }
 0x8fb   :  { %3759 = vmatpush.msrb.mxu0 %v13378_v60  ;;  %13929 = vst [vmem:[#allocation90_spill] sm:$0xff] %v11103_v21  ;;  %v13381_v37 = vmax.f32 %v11088_v22, 0.0  ;;  %v11120_v34 = vadd.f32 %v10940_v7, %v3513_v5  ;;  %v3175_v57 = vadd.f32 %v10821_v6, %v2885_v35  ;;  %v3467_v51 = vadd.f32 %v10877_v27, %v3177_v44  ;;  %v13957_v26 = vld [vmem:[#allocation133_spill] sm:$0xff]  ;;  %v14006_v7 = vld [vmem:[#allocation108_spill] sm:$0xff] }
 0x8fc   :  { %v11111_v28 = vpop.f32.mrf.mxu3  ;;  %v3540_v8 = vmul.f32 %v11075_v10, %v3471_v46  ;;  %v11126_v29 = vadd.f32 %v11109_v3, %v3544_v30  ;;  %v2881_v36 = vadd.f32 %v13937_v0, %v2567_v23  ;;  %v13383_v15 = vmax.f32 %v11103_v21, 0.0  ;;  %v11144_v44 = vpop.f32.mrf.mxu2  ;;  %v13986_v21 = vld [vmem:[#allocation44_spill] sm:$0xff] }
 0x8fd   :  { %13930 = vst [vmem:[#allocation55_spill] sm:$0xff] %v11111_v28  ;;  %3760 = vmatpush.msrb.mxu0 %v13379_v59  ;;  %v3173_v5 = vadd.f32 %v10808_v32, %v2883_v41  ;;  %v3465_v6 = vadd.f32 %v10871_v56, %v3175_v57  ;;  %v3538_v27 = vmul.f32 %v11075_v10, %v3469_v61  ;;  %v13372_v35 = vmax.f32 %v11120_v34, 0.0  ;;  %v13989_v28 = vld [vmem:[#allocation85_spill] sm:$0xff] }
 0x8fe   :  { %13934 = vst [vmem:[#allocation105_spill] sm:$0xff] %v11120_v34  ;;  %v11128_v14 = vpop.f32.mrf.mxu1  ;;  %v11138_v46 = vadd.f32 %v11109_v3, %v3542_v11  ;;  %v3171_v30 = vadd.f32 %v10794_v48, %v2881_v36  ;;  %v3536_v32 = vmul.f32 %v11075_v10, %v3467_v51  ;;  %v13371_v56 = vmax.f32 %v11126_v29, 0.0 }
 0x8ff   :  { %13935 = vst [vmem:[#allocation80_spill] sm:$0xff] %v11126_v29  ;;  %3761 = vmatpush.msrb.mxu0 %v13381_v37  ;;  %v3463_v23 = vadd.f32 %v10865_v63, %v3173_v5  ;;  %v11150_v61 = vadd.f32 %v11109_v3, %v3540_v8  ;;  %v3534_v11 = vmul.f32 %v11075_v10, %v3465_v6  ;;  %v11164_v57 = vpop.f32.mrf.mxu0 }
 0x900   :  { %13936 = vst [vmem:[#allocation89_spill] sm:$0xff] %v11128_v14  ;;  %v3461_v48 = vadd.f32 %v10859_v2, %v3171_v30  ;;  %v13373_v63 = vmax.f32 %v11138_v46, 0.0  ;;  %v11162_v41 = vadd.f32 %v11109_v3, %v3538_v27  ;;  %v3459_v51 = vadd.f32 %v10850_v43, %v10705_v58  ;;  %v13946_v27 = vld [vmem:[#allocation101_spill] sm:$0xff] }
 0x901   :  { %13938 = vst [vmem:[#allocation125_spill] sm:$0xff] %v11138_v46  ;;  %3762 = vmatpush.msrb.mxu0 %v13383_v15  ;;  %v3532_v8 = vmul.f32 %v11075_v10, %v3463_v23  ;;  %v13374_v0 = vmax.f32 %v11150_v61, 0.0  ;;  %v11175_v36 = vadd.f32 %v11109_v3, %v3536_v32  ;;  %v3457_v5 = vadd.f32 %v10841_v19, %v10692_v13  ;;  %v13948_v32 = vld [vmem:[#allocation71_spill] sm:$0xff] }
 0x902   :  { %13939 = vst [vmem:[#allocation59_spill] sm:$0xff] %v11144_v44  ;;  %v3530_v6 = vmul.f32 %v11075_v10, %v3461_v48  ;;  %v13375_v58 = vmax.f32 %v11162_v41, 0.0  ;;  %v11184_v43 = vadd.f32 %v11109_v3, %v3534_v11  ;;  %v3455_v30 = vadd.f32 %v13946_v27, %v10679_v33  ;;  %v13949_v48 = vld [vmem:[#allocation104_spill] sm:$0xff] }
 0x903   :  { %13940 = vst [vmem:[#allocation113_spill] sm:$0xff] %v11150_v61  ;;  %3763 = vmatpush.msrb.mxu0 %v13372_v35  ;;  %v3528_v23 = vmul.f32 %v11075_v10, %v3459_v51  ;;  %v13376_v13 = vmax.f32 %v11175_v36, 0.0  ;;  %v11193_v19 = vadd.f32 %v11109_v3, %v3532_v8  ;;  %v3526_v35 = vmul.f32 %v11075_v10, %v3457_v5  ;;  %v13953_v27 = vld [vmem:[#allocation48_spill] sm:$0xff] }
 0x904   :  { %v11156_v31 = vpop.f32.mrf.mxu3  ;;  %13942 = vst [vmem:[#allocation77_spill] sm:$0xff] %v11162_v41  ;;  %v11198_v11 = vpop.f32.mrf.mxu2  ;;  %v13380_v33 = vmax.f32 %v11184_v43, 0.0  ;;  %v11206_v51 = vadd.f32 %v11109_v3, %v3530_v6  ;;  %v13954_v8 = vld [vmem:[#allocation64_spill] sm:$0xff]  ;;  %v13958_v6 = vld [vmem:[#allocation142_spill] sm:$0xff]  ;;  %v2600_v39 = vadd.f32 %v13987_v17, %v13986_v21  ;;  %v2603_v1 = vadd.f32 %v13989_v28, %v13988_v55 }
 0x905   :  { %13941 = vst [vmem:[#allocation123_spill] sm:$0xff] %v11156_v31  ;;  %3788 = vmatpush.msra.mxu0 %v13371_v56  ;;  %v3453_v56 = vadd.f32 %v13949_v48, %v13948_v32  ;;  %v13382_v5 = vmax.f32 %v11193_v19, 0.0  ;;  %v11217_v48 = vadd.f32 %v11109_v3, %v3528_v23  ;;  %v3449_v60 = vadd.f32 %v13958_v6, %v13957_v26  ;;  %v13963_v6 = vld [vmem:[#allocation129_spill] sm:$0xff]  ;;  %v13990_v31 = vld [vmem:[#allocation38_spill] sm:$0xff]  ;;  %v14001_v17 = vld [vmem:[#allocation120_spill] sm:$0xff] }
 0x906   :  { %v11169_v2 = vpop.f32.mrf.mxu1  ;;  %13944 = vst [vmem:[#allocation121_spill] sm:$0xff] %v11175_v36  ;;  %v14003_v55 = vld [vmem:[#allocation122_spill] sm:$0xff] }
 0x907   :  { %13943 = vst [vmem:[#allocation92_spill] sm:$0xff] %v11169_v2  ;;  %3789 = vmatpush.msra.mxu0 %v13373_v63  ;;  %v3522_v59 = vmul.f32 %v11075_v10, %v3453_v56  ;;  %v13386_v26 = vmax.f32 %v11217_v48, 0.0  ;;  %v3518_v29 = vmul.f32 %v11075_v10, %v3449_v60  ;;  %v14000_v2 = vld [vmem:[#allocation93_spill] sm:$0xff] }
 0x908   :  { %13945 = vst [vmem:[#allocation117_spill] sm:$0xff] %v11184_v43  ;;  %v2621_v21 = vadd.f32 %v14001_v17, %v14000_v2  ;;  %v14013_v2 = vld [vmem:[#allocation132_spill] sm:$0xff] }
 0x909   :  { %3790 = vmatpush.msra.mxu0 %v13374_v0  ;;  %13947 = vst [vmem:[#allocation101_spill] sm:$0xff] %v11193_v19  ;;  %v3451_v0 = vadd.f32 %v13954_v8, %v13953_v27  ;;  %v11228_v27 = vadd.f32 %v11109_v3, %v3526_v35  ;;  %v13960_v8 = vld [vmem:[#allocation131_spill] sm:$0xff] }
 0x90a   :  { %13950 = vst [vmem:[#allocation71_spill] sm:$0xff] %v11198_v11 }
 0x90b   :  { %3791 = vmatpush.msra.mxu0 %v13375_v58  ;;  %13952 = vst [vmem:[#allocation162_spill] sm:$0xff] %v11206_v51  ;;  %v3524_v58 = vmul.f32 %v11075_v10, %v3455_v30  ;;  %v13385_v30 = vmax.f32 %v11206_v51, 0.0  ;;  %v3520_v23 = vmul.f32 %v11075_v10, %v3451_v0  ;;  %v13387_v0 = vmax.f32 %v11228_v27, 0.0 }
 0x90c   :  { %v11200_v63 = vpop.f32.mrf.mxu3  ;;  %13956 = vst [vmem:[#allocation64_spill] sm:$0xff] %v11217_v48 }
 0x90d   :  { %13951 = vst [vmem:[#allocation104_spill] sm:$0xff] %v11200_v63  ;;  %3792 = vmatpush.msra.mxu0 %v13376_v13  ;;  %v11219_v13 = vpop.f32.mrf.mxu0  ;;  %v11237_v56 = vadd.f32 %v11109_v3, %v3524_v58  ;;  %v2606_v63 = vadd.f32 %v13991_v16, %v13990_v31  ;;  %v14005_v16 = vld [vmem:[#allocation124_spill] sm:$0xff] }
 0x90e   :  { %v11211_v32 = vpop.f32.mrf.mxu1  ;;  %13959 = vst [vmem:[#allocation133_spill] sm:$0xff] %v11228_v27 }
 0x90f   :  { %13955 = vst [vmem:[#allocation48_spill] sm:$0xff] %v11211_v32  ;;  %3793 = vmatpush.msra.mxu0 %v13380_v33  ;;  %v13961_v33 = vld [vmem:[#allocation84_spill] sm:$0xff]  ;;  %v13389_v60 = vmax.f32 %v11237_v56, 0.0  ;;  %v14004_v32 = vld [vmem:[#allocation111_spill] sm:$0xff] }
 0x910   :  { %v3447_v37 = vadd.f32 %v13961_v33, %v13960_v8  ;;  %13962 = vst [vmem:[#allocation142_spill] sm:$0xff] %v11237_v56  ;;  %v11248_v33 = vadd.f32 %v11109_v3, %v3522_v59  ;;  %v13980_v56 = vld [vmem:[#allocation74_spill] sm:$0xff]  ;;  %v2627_v31 = vadd.f32 %v14005_v16, %v14004_v32  ;;  %v14016_v32 = vld [vmem:[#allocation40_spill] sm:$0xff] }
 0x911   :  { %3794 = vmatpush.msra.mxu0 %v13382_v5  ;;  %v13964_v5 = vld [vmem:[#allocation141_spill] sm:$0xff]  ;;  %v2905_v16 = vadd.f32 %v14016_v32, %v2603_v1  ;;  %v14025_v1 = vld [vmem:[#allocation114_spill] sm:$0xff] }
 0x912   :  { %v3445_v15 = vadd.f32 %v13964_v5, %v13963_v6  ;;  %13966 = vst [vmem:[#allocation84_spill] sm:$0xff] %v11248_v33  ;;  %v3516_v8 = vmul.f32 %v11075_v10, %v3447_v37  ;;  %v11259_v5 = vadd.f32 %v11109_v3, %v3520_v23  ;;  %v13390_v59 = vmax.f32 %v11248_v33, 0.0 }
 0x913   :  { %3795 = vmatpush.msra.mxu0 %v13385_v30  ;;  %v11251_v30 = vpop.f32.mrf.mxu2  ;;  %v11266_v37 = vadd.f32 %v11109_v3, %v3518_v29  ;;  %v2591_v33 = vadd.f32 %v13981_v38, %v13980_v56  ;;  %v13994_v38 = vld [vmem:[#allocation66_spill] sm:$0xff]  ;;  %v13995_v56 = vld [vmem:[#allocation99_spill] sm:$0xff] }
 0x914   :  { %v11242_v35 = vpop.f32.mrf.mxu3  ;;  %13968 = vst [vmem:[#allocation141_spill] sm:$0xff] %v11259_v5  ;;  %v3514_v6 = vmul.f32 %v11075_v10, %v3445_v15  ;;  %v11274_v23 = vadd.f32 %v11109_v3, %v3516_v8 }
 0x915   :  { %13965 = vst [vmem:[#allocation131_spill] sm:$0xff] %v11242_v35  ;;  %3796 = vmatpush.msra.mxu0 %v13386_v26  ;;  %v11268_v26 = vpop.f32.mrf.mxu0  ;;  %v13395_v15 = vmax.f32 %v11266_v37, 0.0  ;;  %v13993_v35 = vld [vmem:[#allocation103_spill] sm:$0xff] }
 0x916   :  { %v11253_v58 = vpop.f32.mrf.mxu1  ;;  %13969 = vst [vmem:[#allocation163_spill] sm:$0xff] %v11266_v37  ;;  %v11282_v29 = vadd.f32 %v11109_v3, %v3514_v6  ;;  %v2609_v4 = vadd.f32 %v13993_v35, %v13992_v49  ;;  %v14007_v49 = vld [vmem:[#allocation126_spill] sm:$0xff] }
 0x917   :  { %13967 = vst [vmem:[#allocation129_spill] sm:$0xff] %v11253_v58  ;;  %3797 = vmatpush.msra.mxu0 %v13387_v0  ;;  %v13392_v0 = vmax.f32 %v11259_v5, 0.0  ;;  %v13983_v5 = vld [vmem:[#allocation82_spill] sm:$0xff]  ;;  %v2630_v35 = vadd.f32 %v14007_v49, %v14006_v7  ;;  %v14011_v58 = vld [vmem:[#allocation128_spill] sm:$0xff]  ;;  %v14018_v7 = vld [vmem:[#allocation145_spill] sm:$0xff] }
 0x918   :  { %13970 = vst [vmem:[#allocation164_spill] sm:$0xff] %v11274_v23  ;;  %v13401_v8 = vmax.f32 %v11282_v29, 0.0  ;;  %v2594_v50 = vadd.f32 %v13983_v5, %v13982_v54  ;;  %v13996_v54 = vld [vmem:[#allocation62_spill] sm:$0xff]  ;;  %v13997_v5 = vld [vmem:[#allocation97_spill] sm:$0xff]  ;;  %v11361_v49 = vadd.f32 %v14018_v7, %v14017_v62 }
 0x919   :  { %3798 = vmatpush.msra.mxu0 %v13389_v60  ;;  %13972 = vst [vmem:[#allocation166_spill] sm:$0xff] %v11282_v29  ;;  %v2615_v14 = vadd.f32 %v13997_v5, %v13996_v54  ;;  %v14010_v5 = vld [vmem:[#allocation109_spill] sm:$0xff]  ;;  %v14030_v7 = vld [vmem:[#allocation102_spill] sm:$0xff] }
 0x91a   :  { %v2899_v17 = vadd.f32 %v14013_v2, %v2594_v50  ;;  %14019 = vst [vmem:[#allocation74_spill] sm:$0xff] %v11361_v49  ;;  %v14023_v50 = vld [vmem:[#allocation42_spill] sm:$0xff]  ;;  %v14027_v2 = vld [vmem:[#allocation56_spill] sm:$0xff]  ;;  %v14041_v49 = vld [vmem:[#allocation83_spill] sm:$0xff] }
 0x91b   :  { %3799 = vmatpush.msra.mxu0 %v13390_v59  ;;  %v13399_v59 = vmax.f32 %v11274_v23, 0.0  ;;  %v11289_v46 = vpop.f32.mrf.mxu2  ;;  %v13985_v23 = vld [vmem:[#allocation61_spill] sm:$0xff] }
 0x91c   :  { %v11276_v34 = vpop.f32.mrf.mxu3  ;;  %v2597_v22 = vadd.f32 %v13985_v23, %v13984_v9  ;;  %v13999_v9 = vld [vmem:[#allocation116_spill] sm:$0xff] }
 0x91d   :  { %13971 = vst [vmem:[#allocation165_spill] sm:$0xff] %v11276_v34  ;;  %3800 = vmatpush.msra.mxu0 %v13392_v0  ;;  %v11296_v0 = vpop.f32.mrf.mxu0  ;;  %v2612_v34 = vadd.f32 %v13995_v56, %v13994_v38  ;;  %v14008_v38 = vld [vmem:[#allocation88_spill] sm:$0xff]  ;;  %v14009_v56 = vld [vmem:[#allocation127_spill] sm:$0xff] }
 0x91e   :  { %v11284_v60 = vpop.f32.mrf.mxu1  ;;  %v2633_v54 = vadd.f32 %v14009_v56, %v14008_v38  ;;  %v14021_v56 = vld [vmem:[#allocation139_spill] sm:$0xff] }
 0x91f   :  { %13973 = vst [vmem:[#allocation167_spill] sm:$0xff] %v11284_v60  ;;  %3801 = vmatpush.msra.mxu0 %v13395_v15  ;;  %v14014_v60 = vld [vmem:[#allocation46_spill] sm:$0xff] }
 0x920   :  { %v2925_v11 = vadd.f32 %v14021_v56, %v2633_v54 }
 0x921   :  { %3802 = vmatpush.msra.mxu0 %v13399_v59 }
 0x923   :  { %3803 = vmatpush.msra.mxu0 %v13401_v8  ;;  %v11302_v41 = vpop.f32.mrf.mxu2 }
 0x924   :  { %v11298_v6 = vpop.f32.mrf.mxu3 }
 0x925   :  { %13974 = vst [vmem:[#allocation168_spill] sm:$0xff] %v11298_v6  ;;  %v3026_v36 = vpop.f32.mrf.mxu0  ;;  %v13998_v6 = vld [vmem:[#allocation65_spill] sm:$0xff] }
 0x926   :  { %v11300_v61 = vpop.f32.mrf.mxu1  ;;  %v2618_v23 = vadd.f32 %v13999_v9, %v13998_v6  ;;  %v2636_v6 = vadd.f32 %v14011_v58, %v14010_v5  ;;  %v14012_v9 = vld [vmem:[#allocation130_spill] sm:$0xff]  ;;  %v14022_v58 = vld [vmem:[#allocation57_spill] sm:$0xff]  ;;  %v2911_v5 = vadd.f32 %v14025_v1, %v2612_v34  ;;  %v14032_v34 = vld [vmem:[#allocation135_spill] sm:$0xff] }
 0x927   :  { %13975 = vst [vmem:[#allocation169_spill] sm:$0xff] %v11300_v61  ;;  %v14020_v61 = vld [vmem:[#allocation78_spill] sm:$0xff] }
 0x928   :  { %v2907_v38 = vadd.f32 %v14020_v61, %v2606_v63  ;;  %v11381_v61 = vadd.f32 %v11097_v47, %v14027_v2  ;;  %v14028_v63 = vld [vmem:[#allocation36_spill] sm:$0xff]  ;;  %v14034_v47 = vld [vmem:[#allocation134_spill] sm:$0xff] }
 0x929   :  { %v2913_v54 = vadd.f32 %v14028_v63, %v2615_v14  ;;  %v11397_v1 = vadd.f32 %v11268_v26, %v14034_v47  ;;  %v14035_v14 = vld [vmem:[#allocation137_spill] sm:$0xff]  ;;  %v14037_v63 = vld [vmem:[#allocation136_spill] sm:$0xff] }
 0x92b   :  { %v11308_v19 = vpop.f32.mrf.mxu2 }
 0x92c   :  { %v11304_v15 = vpop.f32.mrf.mxu3 }
 0x92d   :  { %13976 = vst [vmem:[#allocation170_spill] sm:$0xff] %v11304_v15  ;;  %v3029_v8 = vpop.f32.mrf.mxu0  ;;  %v14002_v15 = vld [vmem:[#allocation86_spill] sm:$0xff] }
 0x92e   :  { %v11306_v43 = vpop.f32.mrf.mxu1  ;;  %v2624_v28 = vadd.f32 %v14003_v55, %v14002_v15  ;;  %v2901_v15 = vadd.f32 %v14014_v60, %v2597_v22  ;;  %v14015_v55 = vld [vmem:[#allocation70_spill] sm:$0xff]  ;;  %v11371_v22 = vadd.f32 %v10972_v20, %v14023_v50  ;;  %v11387_v20 = vadd.f32 %v11164_v57, %v14030_v7  ;;  %v14039_v7 = vld [vmem:[#allocation96_spill] sm:$0xff] }
 0x92f   :  { %v2903_v44 = vadd.f32 %v14015_v55, %v2600_v39  ;;  %v14024_v39 = vld [vmem:[#allocation68_spill] sm:$0xff] }
 0x930   :  { %v2909_v60 = vadd.f32 %v14024_v39, %v2609_v4  ;;  %v14031_v4 = vld [vmem:[#allocation34_spill] sm:$0xff] }
 0x931   :  { %v2915_v56 = vadd.f32 %v14031_v4, %v2618_v23  ;;  %v2919_v23 = vadd.f32 %v14037_v63, %v2624_v28  ;;  %v3208_v4 = vadd.f32 %v3026_v36, %v14039_v7  ;;  %v14044_v28 = vld [vmem:[#allocation60_spill] sm:$0xff]  ;;  %v14045_v36 = vld [vmem:[#allocation118_spill] sm:$0xff] }
 0x932   :  { %v11415_v63 = vadd.f32 %v14045_v36, %v2899_v17 }
 0x933   :  { %v3145_v51 = vpop.f32.mrf.mxu2 }
 0x934   :  { %v11310_v59 = vpop.f32.mrf.mxu3 }
 0x935   :  { %13977 = vst [vmem:[#allocation171_spill] sm:$0xff] %v11310_v59  ;;  %v3032_v48 = vpop.f32.mrf.mxu0 }
 0x936   :  { %v11312_v52 = vpop.f32.mrf.mxu1  ;;  %v3212_v26 = vadd.f32 %v3032_v48, %v14041_v49  ;;  %v14046_v49 = vld [vmem:[#allocation144_spill] sm:$0xff] }
 0x93b   :  { %v3148_v25 = vpop.f32.mrf.mxu2 }
 0x93c   :  { %v11314_v29 = vpop.f32.mrf.mxu3  ;;  %v3215_v32 = vadd.f32 %v3148_v25, %v2925_v11  ;;  %v14036_v25 = vld [vmem:[#allocation140_spill] sm:$0xff] }
 0x93d   :  { %13978 = vst [vmem:[#allocation172_spill] sm:$0xff] %v11314_v29  ;;  %v3035_v37 = vpop.f32.mrf.mxu0  ;;  %v2897_v29 = vadd.f32 %v14012_v9, %v2591_v33  ;;  %v11367_v33 = vadd.f32 %v10923_v53, %v14022_v58  ;;  %v14026_v9 = vld [vmem:[#allocation67_spill] sm:$0xff]  ;;  %v14029_v53 = vld [vmem:[#allocation138_spill] sm:$0xff]  ;;  %v2917_v58 = vadd.f32 %v14032_v34, %v2621_v21  ;;  %v2927_v11 = vadd.f32 %v14036_v25, %v2636_v6  ;;  %v14042_v6 = vld [vmem:[#allocation100_spill] sm:$0xff] }
 0x93e   :  { %v11316_v40 = vpop.f32.mrf.mxu1  ;;  %v11377_v62 = vadd.f32 %v11020_v12, %v14026_v9  ;;  %v2923_v55 = vadd.f32 %v14029_v53, %v2630_v35  ;;  %v14033_v12 = vld [vmem:[#allocation95_spill] sm:$0xff]  ;;  %v2921_v35 = vadd.f32 %v14035_v14, %v2627_v31  ;;  %v14038_v53 = vld [vmem:[#allocation112_spill] sm:$0xff]  ;;  %v3214_v25 = vadd.f32 %v3035_v37, %v14042_v6  ;;  %v14047_v37 = vld [vmem:[#allocation146_spill] sm:$0xff] }
 0x93f   :  { %v11393_v39 = vadd.f32 %v11219_v13, %v14033_v12  ;;  %v3206_v21 = vadd.f32 %v11296_v0, %v14038_v53  ;;  %v14040_v13 = vld [vmem:[#allocation94_spill] sm:$0xff]  ;;  %v3209_v0 = vadd.f32 %v11302_v41, %v2919_v23  ;;  %v3195_v41 = vadd.f32 %v10958_v42, %v2905_v16  ;;  %v14050_v16 = vld [vmem:[#allocation71_spill] sm:$0xff] }
 0x940   :  { %v3213_v57 = vadd.f32 %v3145_v51, %v2923_v55  ;;  %v3210_v34 = vadd.f32 %v3029_v8, %v14040_v13  ;;  %v3211_v47 = vadd.f32 %v11308_v19, %v2921_v35  ;;  %v14043_v51 = vld [vmem:[#allocation98_spill] sm:$0xff] }
 0x941   :  { %v3499_v35 = vadd.f32 %v11312_v52, %v3209_v0 }
 0x942   :  { %v3501_v8 = vadd.f32 %v11316_v40, %v3211_v47  ;;  %v14056_v47 = vld [vmem:[#allocation167_spill] sm:$0xff] }
 0x943   :  { %v3151_v50 = vpop.f32.mrf.mxu2 }
 0x944   :  { %v11318_v24 = vpop.f32.mrf.mxu3  ;;  %v3217_v31 = vadd.f32 %v3151_v50, %v2927_v11  ;;  %v11423_v50 = vadd.f32 %v14047_v37, %v2903_v44 }
 0x945   :  { %13979 = vst [vmem:[#allocation173_spill] sm:$0xff] %v11318_v24  ;;  %v3038_v9 = vpop.f32.mrf.mxu0 }
 0x946   :  { %v3435_v27 = vpop.f32.mrf.mxu1  ;;  %v3216_v55 = vadd.f32 %v3038_v9, %v14044_v28  ;;  %v3197_v9 = vadd.f32 %v11006_v18, %v2907_v38  ;;  %v3710_v18 = vld [vmem:[%s13300_s15] sm:$0xff]  ;;  %v14051_v38 = vld [vmem:[#allocation169_spill] sm:$0xff] }
 0x947   :  { %v3503_v14 = vadd.f32 %v3435_v27, %v3213_v57  ;;  %v11420_v27 = vadd.f32 %v14046_v49, %v2901_v15  ;;  %v3199_v57 = vadd.f32 %v11077_v45, %v2909_v60  ;;  %v3205_v15 = vadd.f32 %v11251_v30, %v2915_v56  ;;  %3764 = vmatmul.f32.vlgmr.msrb.gmra.mxu0 %v3710_v18 }
 0x948   :  { %v3203_v45 = vadd.f32 %v14050_v16, %v2913_v54 }
 0x949   :  { %v3572_v17 = vmul.f32 %v11075_v10, %v3503_v14  ;;  %v3495_v30 = vadd.f32 %v14051_v38, %v3205_v15  ;;  %v14057_v14 = vld [vmem:[#allocation172_spill] sm:$0xff] }
 0x94a   :  { %v3493_v54 = vadd.f32 %v14056_v47, %v3203_v45  ;;  %v3498_v6 = vadd.f32 %v14057_v14, %v3208_v4 }
 0x94b   :  { %v11452_v13 = vadd.f32 %v11109_v3, %v3572_v17  ;;  %v3564_v0 = vmul.f32 %v11075_v10, %v3495_v30  ;;  %v14066_v17 = vld [vmem:[#allocation170_spill] sm:$0xff] }
 0x94c   :  { %v11348_v59 = vpop.f32.mrf.mxu3  ;;  %v14052_v60 = vld [vmem:[#allocation173_spill] sm:$0xff] }
 0x94d   :  { %v3500_v56 = vadd.f32 %v14052_v60, %v3210_v34  ;;  %14054 = vst [vmem:[#allocation82_spill] sm:$0xff] %v11452_v13  ;;  %v13427_v49 = vmax.f32 %v11452_v13, 0.0  ;;  %v11502_v30 = vadd.f32 %v11109_v3, %v3564_v0 }
 0x94e   :  { %v3438_v24 = vpop.f32.mrf.mxu1 }
 0x94f   :  { %v3505_v2 = vadd.f32 %v3438_v24, %v3215_v32  ;;  %v11410_v24 = vadd.f32 %v14043_v51, %v2897_v29  ;;  %v3207_v29 = vadd.f32 %v11289_v46, %v2917_v58  ;;  %v3502_v46 = vadd.f32 %v11348_v59, %v3212_v26  ;;  %v14053_v59 = vld [vmem:[#allocation147_spill] sm:$0xff]  ;;  %3804 = vmatmul.f32.vlgmr.msra.gmra.mxu0 %v3710_v18  ;;  %v14071_v18 = vld [vmem:[#allocation165_spill] sm:$0xff] }
 0x950   :  { %v3567_v15 = vmul.f32 %v14053_v59, %v3498_v6  ;;  %v14073_v6 = vld [vmem:[#allocation131_spill] sm:$0xff] }
 0x951   :  { %v3574_v48 = vmul.f32 %v11075_v10, %v3505_v2  ;;  %v3497_v44 = vadd.f32 %v11306_v43, %v3207_v29  ;;  %v3570_v2 = vmul.f32 %v11075_v10, %v3501_v8  ;;  %v3568_v43 = vmul.f32 %v11075_v10, %v3499_v35  ;;  %v14065_v29 = vld [vmem:[#allocation48_spill] sm:$0xff] }
 0x952   :  { %v3571_v34 = vmul.f32 %v14053_v59, %v3502_v46  ;;  %v3569_v8 = vmul.f32 %v14053_v59, %v3500_v56  ;;  %v3489_v35 = vadd.f32 %v14065_v29, %v3199_v57  ;;  %v14068_v57 = vld [vmem:[#allocation92_spill] sm:$0xff] }
 0x953   :  { %v11440_v42 = vadd.f32 %v11109_v3, %v3574_v48  ;;  %v11464_v28 = vadd.f32 %v11109_v3, %v3570_v2  ;;  %v11470_v4 = vadd.f32 %v11109_v3, %v3568_v43  ;;  %v14062_v48 = vld [vmem:[#allocation149_spill] sm:$0xff]  ;;  %v3487_v16 = vadd.f32 %v14068_v57, %v3197_v9  ;;  %v14075_v29 = vld [vmem:[#allocation104_spill] sm:$0xff]  ;;  %v14076_v57 = vld [vmem:[#allocation154_spill] sm:$0xff] }
 0x954   :  { %v3325_v12 = vpop.f32.mrf.mxu3  ;;  %v11495_v46 = vadd.f32 %v14062_v48, %v3571_v34  ;;  %v11512_v56 = vadd.f32 %v14062_v48, %v3569_v8  ;;  %v3488_v34 = vadd.f32 %v14073_v6, %v11381_v61  ;;  %v3727_v61 = vld [vmem:[%s13298_s13 + $0x78] sm:$0xff] }
 0x955   :  { %v3504_v11 = vadd.f32 %v3325_v12, %v3214_v25  ;;  %14049 = vst [vmem:[#allocation73_spill] sm:$0xff] %v11440_v42  ;;  %v14055_v12 = vld [vmem:[#allocation59_spill] sm:$0xff]  ;;  %v13425_v51 = vmax.f32 %v11440_v42, 0.0  ;;  %v13429_v2 = vmax.f32 %v11464_v28, 0.0  ;;  %v13431_v9 = vmax.f32 %v11470_v4, 0.0  ;;  %3828 = vmatpush.msrb.mxu1 %v3727_v61 }
 0x956   :  { %v3441_v32 = vpop.f32.mrf.mxu1  ;;  %v3201_v26 = vadd.f32 %v14055_v12, %v2911_v5  ;;  %14058 = vst [vmem:[#allocation72_spill] sm:$0xff] %v11464_v28  ;;  %v13430_v47 = vmax.f32 %v11495_v46, 0.0  ;;  %v3556_v14 = vmul.f32 %v11075_v10, %v3487_v16  ;;  %v3479_v16 = vadd.f32 %v14076_v57, %v11415_v63  ;;  %v4266_v28 = vld [vmem:[#allocation6 + $0xc8] sm:$0xff] }
 0x957   :  { %v3507_v19 = vadd.f32 %v3441_v32, %v3217_v31  ;;  %v3573_v23 = vmul.f32 %v14053_v59, %v3504_v11  ;;  %v3566_v31 = vmul.f32 %v11075_v10, %v3497_v44  ;;  %v14060_v32 = vld [vmem:[#allocation171_spill] sm:$0xff]  ;;  %14061 = vst [vmem:[#allocation61_spill] sm:$0xff] %v11470_v4  ;;  %v3494_v11 = vadd.f32 %v14066_v17, %v11397_v1  ;;  %v14069_v1 = vld [vmem:[#allocation168_spill] sm:$0xff]  ;;  %v4263_v4 = vld [vmem:[#allocation6 + $0xb0] sm:$0xff] }
 0x958   :  { %v3496_v36 = vadd.f32 %v14060_v32, %v3206_v21  ;;  %v3562_v21 = vmul.f32 %v11075_v10, %v3493_v54  ;;  %14067 = vst [vmem:[#allocation69_spill] sm:$0xff] %v11495_v46  ;;  %v3492_v38 = vadd.f32 %v14069_v1, %v11393_v39  ;;  %v14070_v39 = vld [vmem:[#allocation89_spill] sm:$0xff]  ;;  %v11529_v54 = vadd.f32 %v14062_v48, %v3567_v15  ;;  %v14074_v32 = vld [vmem:[#allocation160_spill] sm:$0xff]  ;;  %v14077_v1 = vld [vmem:[#allocation123_spill] sm:$0xff] }
 0x959   :  { %v3576_v40 = vmul.f32 %v11075_v10, %v3507_v19  ;;  %v11480_v37 = vadd.f32 %v14062_v48, %v3573_v23  ;;  %v3558_v23 = vmul.f32 %v11075_v10, %v3489_v35  ;;  %v3486_v35 = vadd.f32 %v14075_v29, %v11377_v62  ;;  %v3726_v62 = vld [vmem:[%s13298_s13 + $0x70] sm:$0xff]  ;;  %v14082_v29 = vld [vmem:[#allocation74_spill] sm:$0xff] }
 0x95a   :  { %v3565_v43 = vmul.f32 %v14053_v59, %v3496_v36  ;;  %v11519_v12 = vadd.f32 %v11109_v3, %v3562_v21  ;;  %v3481_v36 = vadd.f32 %v14074_v32, %v11420_v27  ;;  %3829 = vmatpush.msrb.mxu1 %v3726_v62  ;;  %v3548_v61 = vmul.f32 %v11075_v10, %v3479_v16  ;;  %v14080_v32 = vld [vmem:[#allocation58_spill] sm:$0xff] }
 0x95b   :  { %v11437_v52 = vadd.f32 %v11109_v3, %v3576_v40  ;;  %14064 = vst [vmem:[#allocation63_spill] sm:$0xff] %v11480_v37  ;;  %v11487_v40 = vadd.f32 %v11109_v3, %v3566_v31  ;;  %v13428_v60 = vmax.f32 %v11480_v37, 0.0  ;;  %v11558_v21 = vadd.f32 %v11109_v3, %v3558_v23  ;;  %v4247_v37 = vld [vmem:[#allocation6 + $0x30] sm:$0xff]  ;;  %v4244_v46 = vld [vmem:[#allocation6 + $0x18] sm:$0xff] }
 0x95c   :  { %v3328_v58 = vpop.f32.mrf.mxu3  ;;  %v11547_v0 = vadd.f32 %v14062_v48, %v3565_v43  ;;  %v13437_v27 = vmax.f32 %v11519_v12, 0.0  ;;  %v11579_v43 = vadd.f32 %v11109_v3, %v3556_v14  ;;  %v3555_v6 = vmul.f32 %v14053_v59, %v3486_v35  ;;  %v14083_v35 = vld [vmem:[#allocation75_spill] sm:$0xff] }
 0x95d   :  { %14048 = vst [vmem:[#allocation81_spill] sm:$0xff] %v11437_v52  ;;  %v13424_v53 = vmax.f32 %v11437_v52, 0.0  ;;  %v3506_v7 = vadd.f32 %v3328_v58, %v3216_v55  ;;  %v14059_v55 = vld [vmem:[#allocation129_spill] sm:$0xff]  ;;  %v3485_v58 = vadd.f32 %v14070_v39, %v3195_v41  ;;  %v13433_v41 = vmax.f32 %v11487_v40, 0.0 }
 0x95e   :  { %v3491_v5 = vadd.f32 %v14059_v55, %v3201_v26  ;;  %v3563_v26 = vmul.f32 %v14053_v59, %v3494_v11  ;;  %v3561_v55 = vmul.f32 %v14053_v59, %v3492_v38  ;;  %v13434_v11 = vmax.f32 %v11529_v54, 0.0 }
 0x95f   :  { %v3575_v25 = vmul.f32 %v14053_v59, %v3506_v7  ;;  %3808 = vmatpush.msra.mxu3 %v13424_v53  ;;  %v3490_v7 = vadd.f32 %v14071_v18, %v11387_v20  ;;  %v14072_v20 = vld [vmem:[#allocation54_spill] sm:$0xff]  ;;  %v3554_v8 = vmul.f32 %v11075_v10, %v3485_v58  ;;  %v3484_v38 = vadd.f32 %v14077_v1, %v11371_v22  ;;  %v3725_v22 = vld [vmem:[%s13298_s13 + $0x68] sm:$0xff] }
 0x960   :  { %v3560_v45 = vmul.f32 %v11075_v10, %v3491_v5  ;;  %v3483_v31 = vadd.f32 %v14072_v20, %v11423_v50  ;;  %v13432_v5 = vmax.f32 %v11512_v56, 0.0  ;;  %v13435_v50 = vmax.f32 %v11502_v30, 0.0  ;;  %v14078_v18 = vld [vmem:[#allocation148_spill] sm:$0xff]  ;;  %v14079_v20 = vld [vmem:[#allocation55_spill] sm:$0xff]  ;;  %3830 = vmatpush.msrb.mxu1 %v3725_v22 }
 0x961   :  { %v11474_v19 = vadd.f32 %v14062_v48, %v3575_v25  ;;  %3809 = vmatpush.msra.mxu3 %v13425_v51  ;;  %v3559_v17 = vmul.f32 %v14053_v59, %v3490_v7  ;;  %v11568_v15 = vadd.f32 %v14062_v48, %v3563_v26  ;;  %v3557_v39 = vmul.f32 %v14053_v59, %v3488_v34 }
 0x962   :  { %v11537_v25 = vadd.f32 %v11109_v3, %v3560_v45  ;;  %v3552_v45 = vmul.f32 %v11075_v10, %v3483_v31  ;;  %v13436_v58 = vmax.f32 %v11547_v0, 0.0  ;;  %v11589_v23 = vadd.f32 %v14062_v48, %v3561_v55 }
 0x963   :  { %14063 = vst [vmem:[#allocation44_spill] sm:$0xff] %v11474_v19  ;;  %v13426_v44 = vmax.f32 %v11474_v19, 0.0  ;;  %3810 = vmatpush.msra.mxu3 %v13427_v49  ;;  %v3477_v7 = vadd.f32 %v14078_v18, %v11410_v24  ;;  %v3550_v26 = vmul.f32 %v11075_v10, %v3481_v36  ;;  %v3482_v31 = vadd.f32 %v14079_v20, %v11367_v33  ;;  %v3724_v33 = vld [vmem:[%s13298_s13 + $0x60] sm:$0xff]  ;;  %v3743_v49 = vld [vmem:[%s13298_s13 + $0xf8] sm:$0xff]  ;;  %v4250_v19 = vld [vmem:[#allocation6 + $0x48] sm:$0xff] }
 0x964   :  { %v13439_v63 = vmax.f32 %v11537_v25, 0.0  ;;  %v11600_v14 = vadd.f32 %v11109_v3, %v3554_v8  ;;  %v13438_v34 = vmax.f32 %v11568_v15, 0.0  ;;  %v13441_v24 = vmax.f32 %v11558_v21, 0.0  ;;  %v14081_v36 = vld [vmem:[#allocation143_spill] sm:$0xff]  ;;  %3831 = vmatpush.msrb.mxu1 %v3724_v33 }
 0x965   :  { %3768 = vmatpush.msrb.mxu2 %v13426_v44  ;;  %3811 = vmatpush.msra.mxu3 %v13429_v2  ;;  %v11610_v55 = vadd.f32 %v14062_v48, %v3559_v17  ;;  %v3188_v8 = vadd.f32 %v14081_v36, %v14080_v32  ;;  %v3480_v62 = vadd.f32 %v14083_v35, %v14082_v29  ;;  %v13440_v17 = vmax.f32 %v11589_v23, 0.0  ;;  %v14085_v20 = vld [vmem:[#allocation115_spill] sm:$0xff]  ;;  %v14086_v32 = vld [vmem:[#allocation158_spill] sm:$0xff] }
 0x966   :  { %v11621_v57 = vadd.f32 %v11109_v3, %v3552_v45  ;;  %v3553_v1 = vmul.f32 %v14053_v59, %v3484_v38  ;;  %v13443_v16 = vmax.f32 %v11579_v43, 0.0  ;;  %v11631_v22 = vadd.f32 %v14062_v48, %v3557_v39  ;;  %v3723_v45 = vld [vmem:[%s13298_s13 + $0x58] sm:$0xff] }
 0x967   :  { %3769 = vmatpush.msrb.mxu2 %v13428_v60  ;;  %3812 = vmatpush.msra.mxu3 %v13431_v9  ;;  %v3546_v18 = vmul.f32 %v11075_v10, %v3477_v7  ;;  %v14084_v38 = vld [vmem:[#allocation50_spill] sm:$0xff]  ;;  %v3478_v36 = vadd.f32 %v14086_v32, %v3188_v8  ;;  %v11641_v29 = vadd.f32 %v11109_v3, %v3550_v26  ;;  %v13442_v39 = vmax.f32 %v11610_v55, 0.0  ;;  %v3722_v26 = vld [vmem:[%s13298_s13 + $0x50] sm:$0xff]  ;;  %v14087_v8 = vld [vmem:[#allocation152_spill] sm:$0xff] }
 0x968   :  { %v3186_v33 = vadd.f32 %v14085_v20, %v14084_v38  ;;  %3832 = vmatpush.msrb.mxu1 %v3723_v45  ;;  %v3551_v35 = vmul.f32 %v14053_v59, %v3482_v31  ;;  %v13445_v10 = vmax.f32 %v11600_v14, 0.0  ;;  %v11651_v7 = vadd.f32 %v14062_v48, %v3555_v6  ;;  %v3740_v60 = vld [vmem:[%s13298_s13 + $0xe0] sm:$0xff]  ;;  %v3739_v2 = vld [vmem:[%s13298_s13 + $0xd8] sm:$0xff] }
 0x969   :  { %3770 = vmatpush.msrb.mxu2 %v13430_v47  ;;  %3813 = vmatpush.msra.mxu3 %v13433_v41  ;;  %v11658_v31 = vadd.f32 %v11109_v3, %v3548_v61  ;;  %v3549_v38 = vmul.f32 %v14053_v59, %v3480_v62  ;;  %v13444_v6 = vmax.f32 %v11631_v22, 0.0  ;;  %v13447_v20 = vmax.f32 %v11621_v57, 0.0  ;;  %v3721_v61 = vld [vmem:[%s13298_s13 + $0x48] sm:$0xff] }
 0x96a   :  { %v3476_v45 = vadd.f32 %v14087_v8, %v3186_v33  ;;  %3833 = vmatpush.msrb.mxu1 %v3722_v26  ;;  %v11668_v32 = vadd.f32 %v14062_v48, %v3553_v1  ;;  %v11674_v33 = vadd.f32 %v11109_v3, %v3546_v18  ;;  %v3547_v62 = vmul.f32 %v14053_v59, %v3478_v36  ;;  %v3717_v47 = vld [vmem:[%s13298_s13 + $0x28] sm:$0xff] }
 0x96b   :  { %3771 = vmatpush.msrb.mxu2 %v13432_v5  ;;  %3814 = vmatpush.msra.mxu3 %v13435_v50  ;;  %v13446_v26 = vmax.f32 %v11651_v7, 0.0  ;;  %v13449_v1 = vmax.f32 %v11641_v29, 0.0  ;;  %v11684_v8 = vadd.f32 %v14062_v48, %v3551_v35  ;;  %v13451_v18 = vmax.f32 %v11658_v31, 0.0 }
 0x96c   :  { %3834 = vmatpush.msrb.mxu1 %v3721_v61  ;;  %v3545_v53 = vmul.f32 %v14053_v59, %v3476_v45  ;;  %v13448_v3 = vmax.f32 %v11668_v32, 0.0  ;;  %v11694_v36 = vadd.f32 %v14062_v48, %v3549_v38  ;;  %v13453_v35 = vmax.f32 %v11674_v33, 0.0  ;;  %v3711_v45 = vld [vmem:[%s13300_s15 + $0x8] sm:$0xff] }
 0x96d   :  { %3772 = vmatpush.msrb.mxu2 %v13434_v11  ;;  %3815 = vmatpush.msra.mxu3 %v13437_v27  ;;  %v13450_v59 = vmax.f32 %v11684_v8, 0.0  ;;  %v11706_v61 = vadd.f32 %v14062_v48, %v3547_v62 }
 0x96e   :  { %v13452_v38 = vmax.f32 %v11694_v36, 0.0  ;;  %v11714_v51 = vadd.f32 %v14062_v48, %v3545_v53  ;;  %v3742_v53 = vld [vmem:[%s13298_s13 + $0xf0] sm:$0xff]  ;;  %v3741_v48 = vld [vmem:[%s13298_s13 + $0xe8] sm:$0xff] }
 0x96f   :  { %3773 = vmatpush.msrb.mxu2 %v13436_v58  ;;  %3816 = vmatpush.msra.mxu3 %v13439_v63  ;;  %v13454_v44 = vmax.f32 %v11706_v61, 0.0 }
 0x970   :  { %v13455_v62 = vmax.f32 %v11714_v51, 0.0 }
 0x971   :  { %3774 = vmatpush.msrb.mxu2 %v13438_v34  ;;  %3817 = vmatpush.msra.mxu3 %v13441_v24  ;;  %v8130_v24 = vld [vmem:[%s13305_s20 + $0xa0] sm:$0xff] }
 0x973   :  { %3775 = vmatpush.msrb.mxu2 %v13440_v17  ;;  %3818 = vmatpush.msra.mxu3 %v13443_v16  ;;  %v8131_v16 = vld [vmem:[%s13305_s20 + $0xa8] sm:$0xff] }
 0x975   :  { %3776 = vmatpush.msrb.mxu2 %v13442_v39  ;;  %3819 = vmatpush.msra.mxu3 %v13445_v10  ;;  %v8132_v10 = vld [vmem:[%s13305_s20 + $0xb0] sm:$0xff] }
 0x977   :  { %3777 = vmatpush.msrb.mxu2 %v13444_v6  ;;  %3820 = vmatpush.msra.mxu3 %v13447_v20  ;;  %v8133_v20 = vld [vmem:[%s13305_s20 + $0xb8] sm:$0xff] }
 0x979   :  { %3778 = vmatpush.msrb.mxu2 %v13446_v26  ;;  %3821 = vmatpush.msra.mxu3 %v13449_v1  ;;  %v8134_v1 = vld [vmem:[%s13305_s20 + $0xc0] sm:$0xff] }
 0x97b   :  { %3779 = vmatpush.msrb.mxu2 %v13448_v3  ;;  %3822 = vmatpush.msra.mxu3 %v13451_v18  ;;  %v14120_v18 = vld [vmem:[#allocation162_spill] sm:$0xff] }
 0x97d   :  { %3780 = vmatpush.msrb.mxu2 %v13450_v59  ;;  %3823 = vmatpush.msra.mxu3 %v13453_v35 }
 0x97e   :  { %3824 = vmatmul.f32.vlgmr.msra.gmra.mxu3 %v3711_v45 }
 0x97f   :  { %3781 = vmatpush.msrb.mxu2 %v13452_v38  ;;  %v14121_v38 = vmax.f32 %v14120_v18, 0.0  ;;  %v4271_v18 = vld [vmem:[#allocation6 + $0xf0] sm:$0xff] }
 0x981   :  { %3782 = vmatpush.msrb.mxu2 %v13454_v44  ;;  %v8135_v44 = vld [vmem:[%s13305_s20 + $0xc8] sm:$0xff] }
 0x983   :  { %3783 = vmatpush.msrb.mxu2 %v13455_v62 }
 0x984   :  { %3784 = vmatmul.f32.vlgmr.msrb.gmra.mxu2 %v3711_v45  ;;  %v3738_v45 = vld [vmem:[%s13298_s13 + $0xd0] sm:$0xff] }
 0x985   :  { %3848 = vmatpush.msra.mxu2 %v3743_v49  ;;  %v3737_v49 = vld [vmem:[%s13298_s13 + $0xc8] sm:$0xff] }
 0x987   :  { %3849 = vmatpush.msra.mxu2 %v3742_v53  ;;  %v3736_v53 = vld [vmem:[%s13298_s13 + $0xc0] sm:$0xff] }
 0x989   :  { %3850 = vmatpush.msra.mxu2 %v3741_v48  ;;  %v3735_v48 = vld [vmem:[%s13298_s13 + $0xb8] sm:$0xff] }
 0x98b   :  { %3851 = vmatpush.msra.mxu2 %v3740_v60  ;;  %v3734_v60 = vld [vmem:[%s13298_s13 + $0xb0] sm:$0xff] }
 0x98d   :  { %3852 = vmatpush.msra.mxu2 %v3739_v2  ;;  %v3720_v2 = vld [vmem:[%s13298_s13 + $0x40] sm:$0xff] }
 0x98e   :  { %3835 = vmatpush.msrb.mxu1 %v3720_v2  ;;  %v3730_v2 = vld [vmem:[%s13298_s13 + $0x90] sm:$0xff] }
 0x98f   :  { %3853 = vmatpush.msra.mxu2 %v3738_v45  ;;  %v3733_v45 = vld [vmem:[%s13298_s13 + $0xa8] sm:$0xff] }
 0x991   :  { %3854 = vmatpush.msra.mxu2 %v3737_v49  ;;  %v3719_v49 = vld [vmem:[%s13298_s13 + $0x38] sm:$0xff] }
 0x992   :  { %3836 = vmatpush.msrb.mxu1 %v3719_v49  ;;  %v3729_v49 = vld [vmem:[%s13298_s13 + $0x88] sm:$0xff] }
 0x993   :  { %3855 = vmatpush.msra.mxu2 %v3736_v53  ;;  %v3732_v53 = vld [vmem:[%s13298_s13 + $0xa0] sm:$0xff] }
 0x995   :  { %3856 = vmatpush.msra.mxu2 %v3735_v48  ;;  %v3718_v48 = vld [vmem:[%s13298_s13 + $0x30] sm:$0xff] }
 0x996   :  { %3837 = vmatpush.msrb.mxu1 %v3718_v48  ;;  %v3728_v48 = vld [vmem:[%s13298_s13 + $0x80] sm:$0xff] }
 0x997   :  { %3857 = vmatpush.msra.mxu2 %v3734_v60  ;;  %v3731_v60 = vld [vmem:[%s13298_s13 + $0x98] sm:$0xff] }
 0x998   :  { %3838 = vmatpush.msrb.mxu1 %v3717_v47  ;;  %v3714_v47 = vld [vmem:[%s13298_s13 + $0x10] sm:$0xff] }
 0x999   :  { %3858 = vmatpush.msra.mxu2 %v3733_v45  ;;  %v3716_v45 = vld [vmem:[%s13298_s13 + $0x20] sm:$0xff] }
 0x99a   :  { %3839 = vmatpush.msrb.mxu1 %v3716_v45 }
 0x99b   :  { %3859 = vmatpush.msra.mxu2 %v3732_v53  ;;  %v3715_v53 = vld [vmem:[%s13298_s13 + $0x18] sm:$0xff] }
 0x99c   :  { %3840 = vmatpush.msrb.mxu1 %v3715_v53 }
 0x99d   :  { %3860 = vmatpush.msra.mxu2 %v3731_v60  ;;  %v3713_v60 = vld [vmem:[%s13298_s13 + $0x8] sm:$0xff] }
 0x99e   :  { %3841 = vmatpush.msrb.mxu1 %v3714_v47  ;;  %v3746_v47 = vld [vmem:[%s13299_s14 + $0x10] sm:$0xff] }
 0x99f   :  { %3861 = vmatpush.msra.mxu2 %v3730_v2  ;;  %v3712_v2 = vld [vmem:[%s13298_s13] sm:$0xff]  ;;  %3887 = vmatpush.msrb.mxu3 %v3746_v47 }
 0x9a0   :  { %3842 = vmatpush.msrb.mxu1 %v3713_v60  ;;  %v3744_v60 = vld [vmem:[%s13299_s14] sm:$0xff] }
 0x9a1   :  { %3862 = vmatpush.msra.mxu2 %v3729_v49  ;;  %3888 = vmatpush.msrb.mxu3 %v3744_v60 }
 0x9a2   :  { %3843 = vmatpush.msrb.mxu1 %v3712_v2  ;;  %v3747_v2 = vld [vmem:[%s13299_s14 + $0x18] sm:$0xff] }
 0x9a3   :  { %3863 = vmatpush.msra.mxu2 %v3728_v48  ;;  %3907 = vmatpush.msra.mxu3 %v3747_v2 }
 0x9c4   :  { %v3765_v45 = vpop.f32.mrf.mxu0 }
 0x9cc   :  { %v3805_v49 = vpop.f32.mrf.mxu0 }
 0xa01   :  { %v3825_v9 = vpop.f32.mrf.mxu3 }
 0xa02   :  { %v3826_v53 = vadd.f32 %v3825_v9, %v3805_v49  ;;  %v3745_v9 = vld [vmem:[%s13299_s14 + $0x8] sm:$0xff] }
 0xa03   :  { %3908 = vmatpush.msra.mxu3 %v3745_v9 }
 0xa04   :  { %3864 = vmatmul.f32.vlgmr.msra.gmra.mxu2 %v3826_v53 }
 0xa07   :  { %v3785_v48 = vpop.f32.mrf.mxu2 }
 0xa08   :  { %v3786_v5 = vadd.f32 %v3785_v48, %v3765_v45 }
 0xa0a   :  { %3844 = vmatmul.f32.vlgmr.msrb.gmra.mxu1 %v3786_v5 }
 0xa87   :  { %v3845_v5 = vpop.f32.mrf.mxu1  ;;  %v3865_v45 = vpop.f32.mrf.mxu2 }
 0xa88   :  { %v3866_v49 = vadd.f32 %v3865_v45, %v3845_v5 }
 0xa8a   :  { %v3868_v53 = vmax.f32 %v3866_v49, 0.0 }
 0xa8c   :  { %7680 = vmatmul.msk.f32.vlgmr.msrb.gmra.mxu3 %vm3869_vm7, %v3868_v53 }
 0xa94   :  { %7681 = vmatmul.msk.f32.vlgmr.msra.gmra.mxu3 %vm3869_vm7, %v3868_v53 }
 0xb0f   :  { %v3890_v48 = vpop.f32.mrf.mxu3 }
 0xb10   :  { %v7682_v47 = vmul.f32 -1.442695, %v3890_v48 }
 0xb12   :  { %7833 = vpow2.f32 %v7682_v47 }
 0xb17   :  { %v3910_v60 = vpop.f32.mrf.mxu3 }
 0xb18   :  { %v7834_v41 = vpop.eup %7833  ;;  %v7683_v11 = vmul.f32 -1.442695, %v3910_v60 }
 0xb19   :  { %v3919_v50 = vadd.f32 1.0, %v7834_v41 }
 0xb1a   :  { %7835 = vpow2.f32 %v7683_v11 }
 0xb1b   :  { %7837 = vrcp.f32 %v3919_v50  ;;  %v3932_v5 = vand.u32 2147483648, %v3919_v50  ;;  %v3930_v49 = vand.u32 2147483647, %v3919_v50  ;;  %vm3926_vm9 = vweird.f32 %v3919_v50 }
 0xb1d   :  { %v3933_v47 = vor.u32 1.1754944e-38, %v3932_v5  ;;  %vm3931_vm11 = vcmp.eq.f32.partialorder %v3930_v49, 8.507059e+37 }
 0xb20   :  { %v7836_v58 = vpop.eup %7835 }
 0xb21   :  { %v7838_v27 = vpop.eup %7837  ;;  %v3920_v2 = vadd.f32 1.0, %v7836_v58  ;;  %v8110_v58 = vld [vmem:[%s13305_s20] sm:$0xff] }
 0xb22   :  { %v3922_v9 = vmul.f32 %v7838_v27, %v3919_v50  ;;  %vm3927_vm8 = vweird.f32 %v7838_v27 }
 0xb23   :  { %7839 = vrcp.f32 %v3920_v2  ;;  %vm3928_vm10 = vmor %vm3926_vm9, %vm3927_vm8  ;;  %vm3941_vm13 = vweird.f32 %v3920_v2 }
 0xb24   :  { %v3923_v34 = vsub.f32 1.0, %v3922_v9 }
 0xb26   :  { %v3924_v45 = vmul.f32 %v7838_v27, %v3923_v34  ;;  %v3947_v34 = vand.u32 2147483648, %v3920_v2 }
 0xb28   :  { %v3925_v53 = vadd.f32 %v7838_v27, %v3924_v45  ;;  %v3945_v45 = vand.u32 2147483647, %v3920_v2  ;;  %v3948_v5 = vor.u32 1.1754944e-38, %v3947_v34  ;;  %v4288_v34 = vld [vmem:[#allocation6 + $0x178] sm:$0xff] }
 0xb29   :  { %v7840_v48 = vpop.eup %7839  ;;  %4339 = vmatpush.msrb.mxu2 %v4288_v34  ;;  %v4279_v34 = vld [vmem:[#allocation6 + $0x130] sm:$0xff] }
 0xb2a   :  { %v3929_v63 = vsel %vm3928_vm10, %v7838_v27, %v3925_v53  ;;  %v3937_v41 = vmul.f32 %v7840_v48, %v3920_v2  ;;  %vm3942_vm12 = vweird.f32 %v7840_v48  ;;  %vm3946_vm15 = vcmp.eq.f32.partialorder %v3945_v45, 8.507059e+37  ;;  %v8112_v53 = vld [vmem:[%s13305_s20 + $0x10] sm:$0xff]  ;;  %v8113_v2 = vld [vmem:[%s13305_s20 + $0x18] sm:$0xff]  ;;  %v4286_v45 = vld [vmem:[#allocation6 + $0x168] sm:$0xff] }
 0xb2b   :  { %v3934_v11 = vsel %vm3931_vm11, %v3933_v47, %v3929_v63  ;;  %vm3943_vm14 = vmor %vm3941_vm13, %vm3942_vm12  ;;  %v8111_v63 = vld [vmem:[%s13305_s20 + $0x8] sm:$0xff] }
 0xb2c   :  { %3966 = vmatpush.msrb.mxu0 %v3934_v11  ;;  %v3938_v60 = vsub.f32 1.0, %v3937_v41  ;;  %v8115_v47 = vld [vmem:[%s13305_s20 + $0x28] sm:$0xff]  ;;  %v8116_v41 = vld [vmem:[%s13305_s20 + $0x30] sm:$0xff]  ;;  %v8117_v11 = vld [vmem:[%s13305_s20 + $0x38] sm:$0xff] }
 0xb2d   :  { %7684 = vmatmul.msk.f32.vlgmr.msrb.gmra.mxu0 %vm1740_vm2, %v8110_v58 }
 0xb2e   :  { %v3939_v9 = vmul.f32 %v7840_v48, %v3938_v60  ;;  %v8118_v60 = vld [vmem:[%s13305_s20 + $0x40] sm:$0xff] }
 0xb30   :  { %v3940_v50 = vadd.f32 %v7840_v48, %v3939_v9  ;;  %v4287_v9 = vld [vmem:[#allocation6 + $0x170] sm:$0xff] }
 0xb31   :  { %4340 = vmatpush.msrb.mxu2 %v4287_v9  ;;  %v4299_v9 = vld [vmem:[#allocation6 + $0x1d0] sm:$0xff] }
 0xb32   :  { %v3944_v27 = vsel %vm3943_vm14, %v7840_v48, %v3940_v50  ;;  %v8114_v48 = vld [vmem:[%s13305_s20 + $0x20] sm:$0xff] }
 0xb33   :  { %v3949_v49 = vsel %vm3946_vm15, %v3948_v5, %v3944_v27  ;;  %v4285_v50 = vld [vmem:[#allocation6 + $0x160] sm:$0xff]  ;;  %4341 = vmatpush.msrb.mxu2 %v4286_v45  ;;  %v8120_v5 = vld [vmem:[%s13305_s20 + $0x50] sm:$0xff]  ;;  %v4284_v27 = vld [vmem:[#allocation6 + $0x158] sm:$0xff] }
 0xb34   :  { %4079 = vmatpush.msra.mxu1 %v3949_v49  ;;  %v4304_v49 = vld [vmem:[#allocation6 + $0x1f8] sm:$0xff]  ;;  %v4278_v45 = vld [vmem:[#allocation6 + $0x128] sm:$0xff] }
 0xb35   :  { %7685 = vmatmul.msk.f32.gmra.mxu0 %vm1740_vm2, %v8111_v63  ;;  %7716 = vmatmul.msk.f32.vlgmr.msra.gmra.mxu1 %vm1740_vm2, %v8110_v58  ;;  %v8119_v58 = vld [vmem:[%s13305_s20 + $0x48] sm:$0xff] }
 0xb36   :  { %4342 = vmatpush.msrb.mxu2 %v4285_v50  ;;  %4452 = vmatpush.msrb.mxu3 %v4304_v49  ;;  %v4298_v50 = vld [vmem:[#allocation6 + $0x1c8] sm:$0xff]  ;;  %v4297_v49 = vld [vmem:[#allocation6 + $0x1c0] sm:$0xff] }
 0xb38   :  { %4343 = vmatpush.msrb.mxu2 %v4284_v27  ;;  %v4277_v27 = vld [vmem:[#allocation6 + $0x120] sm:$0xff] }
 0xb3d   :  { %7686 = vmatmul.msk.f32.gmra.mxu0 %vm1740_vm2, %v8112_v53  ;;  %7717 = vmatmul.msk.f32.gmra.mxu1 %vm1740_vm2, %v8111_v63  ;;  %v4283_v63 = vld [vmem:[#allocation6 + $0x150] sm:$0xff] }
 0xb3e   :  { %4344 = vmatpush.msrb.mxu2 %v4283_v63  ;;  %v8122_v63 = vld [vmem:[%s13305_s20 + $0x60] sm:$0xff] }
 0xb45   :  { %7687 = vmatmul.msk.f32.gmra.mxu0 %vm1740_vm2, %v8113_v2  ;;  %7718 = vmatmul.msk.f32.gmra.mxu1 %vm1740_vm2, %v8112_v53  ;;  %v4303_v53 = vld [vmem:[#allocation6 + $0x1f0] sm:$0xff] }
 0xb46   :  { %4453 = vmatpush.msrb.mxu3 %v4303_v53  ;;  %v4296_v53 = vld [vmem:[#allocation6 + $0x1b8] sm:$0xff] }
 0xb4d   :  { %7688 = vmatmul.msk.f32.gmra.mxu0 %vm1740_vm2, %v8114_v48  ;;  %7719 = vmatmul.msk.f32.gmra.mxu1 %vm1740_vm2, %v8113_v2  ;;  %v4282_v2 = vld [vmem:[#allocation6 + $0x148] sm:$0xff] }
 0xb4e   :  { %4345 = vmatpush.msrb.mxu2 %v4282_v2  ;;  %v4275_v2 = vld [vmem:[#allocation6 + $0x110] sm:$0xff] }
 0xb55   :  { %7689 = vmatmul.msk.f32.gmra.mxu0 %vm1740_vm2, %v8115_v47  ;;  %7720 = vmatmul.msk.f32.gmra.mxu1 %vm1740_vm2, %v8114_v48  ;;  %v4302_v48 = vld [vmem:[#allocation6 + $0x1e8] sm:$0xff] }
 0xb56   :  { %4454 = vmatpush.msrb.mxu3 %v4302_v48  ;;  %v4295_v48 = vld [vmem:[#allocation6 + $0x1b0] sm:$0xff] }
 0xb5d   :  { %7690 = vmatmul.msk.f32.gmra.mxu0 %vm1740_vm2, %v8116_v41  ;;  %7721 = vmatmul.msk.f32.gmra.mxu1 %vm1740_vm2, %v8115_v47  ;;  %v4281_v47 = vld [vmem:[#allocation6 + $0x140] sm:$0xff] }
 0xb5e   :  { %4346 = vmatpush.msrb.mxu2 %v4281_v47  ;;  %v4274_v47 = vld [vmem:[#allocation6 + $0x108] sm:$0xff] }
 0xb65   :  { %7691 = vmatmul.msk.f32.gmra.mxu0 %vm1740_vm2, %v8117_v11  ;;  %7722 = vmatmul.msk.f32.gmra.mxu1 %vm1740_vm2, %v8116_v41  ;;  %v4301_v41 = vld [vmem:[#allocation6 + $0x1e0] sm:$0xff] }
 0xb66   :  { %4455 = vmatpush.msrb.mxu3 %v4301_v41  ;;  %v4294_v41 = vld [vmem:[#allocation6 + $0x1a8] sm:$0xff] }
 0xb6d   :  { %7692 = vmatmul.msk.f32.gmra.mxu0 %vm1740_vm2, %v8118_v60  ;;  %7723 = vmatmul.msk.f32.gmra.mxu1 %vm1740_vm2, %v8117_v11  ;;  %v8121_v11 = vld [vmem:[%s13305_s20 + $0x58] sm:$0xff] }
 0xb75   :  { %7693 = vmatmul.msk.f32.gmra.mxu0 %vm1740_vm2, %v8119_v58  ;;  %7724 = vmatmul.msk.f32.gmra.mxu1 %vm1740_vm2, %v8118_v60  ;;  %v4280_v60 = vld [vmem:[#allocation6 + $0x138] sm:$0xff] }
 0xb76   :  { %4347 = vmatpush.msrb.mxu2 %v4280_v60  ;;  %v4273_v60 = vld [vmem:[#allocation6 + $0x100] sm:$0xff] }
 0xb78   :  { %4348 = vmatpush.msrb.mxu2 %v4279_v34  ;;  %v4292_v34 = vld [vmem:[#allocation6 + $0x198] sm:$0xff] }
 0xb7a   :  { %4349 = vmatpush.msrb.mxu2 %v4278_v45  ;;  %v4290_v45 = vld [vmem:[#allocation6 + $0x188] sm:$0xff] }
 0xb7c   :  { %4350 = vmatpush.msrb.mxu2 %v4277_v27  ;;  %v8124_v27 = vld [vmem:[%s13305_s20 + $0x70] sm:$0xff] }
 0xb7d   :  { %7694 = vmatmul.msk.f32.gmra.mxu0 %vm1740_vm2, %v8120_v5  ;;  %7725 = vmatmul.msk.f32.gmra.mxu1 %vm1740_vm2, %v8119_v58  ;;  %v4300_v58 = vld [vmem:[#allocation6 + $0x1d8] sm:$0xff] }
 0xb7e   :  { %4456 = vmatpush.msrb.mxu3 %v4300_v58  ;;  %v4293_v58 = vld [vmem:[#allocation6 + $0x1a0] sm:$0xff] }
 0xb80   :  { %4457 = vmatpush.msrb.mxu3 %v4299_v9  ;;  %v4291_v9 = vld [vmem:[#allocation6 + $0x190] sm:$0xff] }
 0xb82   :  { %4458 = vmatpush.msrb.mxu3 %v4298_v50  ;;  %v4289_v50 = vld [vmem:[#allocation6 + $0x180] sm:$0xff] }
 0xb84   :  { %4459 = vmatpush.msrb.mxu3 %v4297_v49  ;;  %v8125_v49 = vld [vmem:[%s13305_s20 + $0x78] sm:$0xff] }
 0xb85   :  { %7695 = vmatmul.msk.f32.gmra.mxu0 %vm1740_vm2, %v8121_v11  ;;  %7726 = vmatmul.msk.f32.gmra.mxu1 %vm1740_vm2, %v8120_v5  ;;  %v4276_v5 = vld [vmem:[#allocation6 + $0x118] sm:$0xff] }
 0xb86   :  { %4351 = vmatpush.msrb.mxu2 %v4276_v5  ;;  %4460 = vmatpush.msrb.mxu3 %v4296_v53  ;;  %v8126_v5 = vld [vmem:[%s13305_s20 + $0x80] sm:$0xff] }
 0xb88   :  { %4352 = vmatpush.msrb.mxu2 %v4275_v2  ;;  %4461 = vmatpush.msrb.mxu3 %v4295_v48  ;;  %v14088_v48 = vld [vmem:[#allocation90_spill] sm:$0xff] }
 0xb8a   :  { %4353 = vmatpush.msrb.mxu2 %v4274_v47  ;;  %4462 = vmatpush.msrb.mxu3 %v4294_v41  ;;  %v14089_v47 = vmax.f32 %v14088_v48, 0.0 }
 0xb8c   :  { %4354 = vmatpush.msrb.mxu2 %v4273_v60  ;;  %4463 = vmatpush.msrb.mxu3 %v4293_v58  ;;  %v8127_v60 = vld [vmem:[%s13305_s20 + $0x88] sm:$0xff] }
 0xb8d   :  { %7696 = vmatmul.msk.f32.gmra.mxu0 %vm1740_vm2, %v8122_v63  ;;  %7727 = vmatmul.msk.f32.gmra.mxu1 %vm1740_vm2, %v8121_v11  ;;  %v8123_v11 = vld [vmem:[%s13305_s20 + $0x68] sm:$0xff] }
 0xb8e   :  { %4464 = vmatpush.msrb.mxu3 %v4292_v34  ;;  %v14090_v34 = vld [vmem:[#allocation76_spill] sm:$0xff] }
 0xb90   :  { %4465 = vmatpush.msrb.mxu3 %v4291_v9  ;;  %v14091_v9 = vmax.f32 %v14090_v34, 0.0 }
 0xb92   :  { %4466 = vmatpush.msrb.mxu3 %v4290_v45 }
 0xb94   :  { %4467 = vmatpush.msrb.mxu3 %v4289_v50  ;;  %v14092_v50 = vld [vmem:[#allocation164_spill] sm:$0xff] }
 0xb95   :  { %7697 = vmatmul.msk.f32.gmra.mxu0 %vm1740_vm2, %v8123_v11  ;;  %7728 = vmatmul.msk.f32.gmra.mxu1 %vm1740_vm2, %v8122_v63 }
 0xb9d   :  { %7698 = vmatmul.msk.f32.gmra.mxu0 %vm1740_vm2, %v8124_v27  ;;  %7729 = vmatmul.msk.f32.gmra.mxu1 %vm1740_vm2, %v8123_v11 }
 0xba5   :  { %7699 = vmatmul.msk.f32.gmra.mxu0 %vm1740_vm2, %v8125_v49  ;;  %7730 = vmatmul.msk.f32.gmra.mxu1 %vm1740_vm2, %v8124_v27  ;;  %v14093_v27 = vmax.f32 %v14092_v50, 0.0 }
 0xbaa   :  { %v11890_v63 = vpop.f32.mrf.mxu0 }
 0xbad   :  { %7700 = vmatmul.msk.f32.gmra.mxu0 %vm1740_vm2, %v8126_v5  ;;  %7731 = vmatmul.msk.f32.gmra.mxu1 %vm1740_vm2, %v8125_v49 }
 0xbb2   :  { %v3971_v53 = vpop.f32.mrf.mxu0  ;;  %v11897_v2 = vpop.f32.mrf.mxu1 }
 0xbb3   :  { %v11901_v41 = vmul.f32 %v3971_v53, %v14089_v47  ;;  %v8128_v53 = vld [vmem:[%s13305_s20 + $0x90] sm:$0xff]  ;;  %v14094_v47 = vld [vmem:[#allocation87_spill] sm:$0xff] }
 0xbb5   :  { %7701 = vmatmul.msk.f32.gmra.mxu0 %vm1740_vm2, %v8127_v60  ;;  %7732 = vmatmul.msk.f32.gmra.mxu1 %vm1740_vm2, %v8126_v5 }
 0xbb6   :  { %4355 = vmatmul.f32.vlgmr.msrb.gmra.mxu2 %v11901_v41 }
 0xbba   :  { %v3974_v58 = vpop.f32.mrf.mxu0  ;;  %v4084_v11 = vpop.f32.mrf.mxu1 }
 0xbbb   :  { %v11911_v45 = vmul.f32 %v3974_v58, %v14091_v9  ;;  %v11915_v49 = vmul.f32 %v4084_v11, %v14093_v27  ;;  %v14095_v58 = vmax.f32 %v14094_v47, 0.0  ;;  %v14096_v11 = vld [vmem:[#allocation163_spill] sm:$0xff]  ;;  %v8129_v27 = vld [vmem:[%s13305_s20 + $0x98] sm:$0xff] }
 0xbbc   :  { %v14097_v9 = vmax.f32 %v14096_v11, 0.0 }
 0xbbd   :  { %7702 = vmatmul.msk.f32.gmra.mxu0 %vm1740_vm2, %v8128_v53  ;;  %7733 = vmatmul.msk.f32.gmra.mxu1 %vm1740_vm2, %v8127_v60 }
 0xbbe   :  { %4358 = vmatmul.f32.gmra.mxu2 %v11911_v45  ;;  %4468 = vmatmul.f32.vlgmr.msrb.gmra.mxu3 %v11915_v49 }
 0xbc2   :  { %v3977_v5 = vpop.f32.mrf.mxu0  ;;  %v4087_v48 = vpop.f32.mrf.mxu1 }
 0xbc3   :  { %v11926_v34 = vmul.f32 %v3977_v5, %v14095_v58  ;;  %v11930_v50 = vmul.f32 %v4087_v48, %v14097_v9  ;;  %v14098_v5 = vld [vmem:[#allocation91_spill] sm:$0xff]  ;;  %v14100_v48 = vld [vmem:[#allocation141_spill] sm:$0xff] }
 0xbc4   :  { %v14099_v58 = vmax.f32 %v14098_v5, 0.0  ;;  %v14101_v11 = vmax.f32 %v14100_v48, 0.0 }
 0xbc5   :  { %7703 = vmatmul.msk.f32.gmra.mxu0 %vm1740_vm2, %v8129_v27  ;;  %7734 = vmatmul.msk.f32.gmra.mxu1 %vm1740_vm2, %v8128_v53 }
 0xbc6   :  { %4361 = vmatmul.f32.gmra.mxu2 %v11926_v34  ;;  %4471 = vmatmul.f32.gmra.mxu3 %v11930_v50 }
 0xbca   :  { %v3980_v60 = vpop.f32.mrf.mxu0  ;;  %v4090_v47 = vpop.f32.mrf.mxu1 }
 0xbcb   :  { %v11941_v17 = vmul.f32 %v3980_v60, %v14099_v58  ;;  %v11945_v9 = vmul.f32 %v4090_v47, %v14101_v11  ;;  %v14102_v60 = vld [vmem:[#allocation107_spill] sm:$0xff]  ;;  %v14104_v47 = vld [vmem:[#allocation84_spill] sm:$0xff] }
 0xbcc   :  { %v14103_v58 = vmax.f32 %v14102_v60, 0.0  ;;  %v14105_v48 = vmax.f32 %v14104_v47, 0.0 }
 0xbcd   :  { %7704 = vmatmul.msk.f32.gmra.mxu0 %vm1740_vm2, %v8130_v24  ;;  %7735 = vmatmul.msk.f32.gmra.mxu1 %vm1740_vm2, %v8129_v27 }
 0xbce   :  { %4364 = vmatmul.f32.gmra.mxu2 %v11941_v17  ;;  %4474 = vmatmul.f32.gmra.mxu3 %v11945_v9 }
 0xbd2   :  { %v3983_v53 = vpop.f32.mrf.mxu0  ;;  %v4093_v5 = vpop.f32.mrf.mxu1 }
 0xbd3   :  { %v11956_v39 = vmul.f32 %v3983_v53, %v14103_v58  ;;  %v11960_v11 = vmul.f32 %v4093_v5, %v14105_v48  ;;  %v14106_v53 = vld [vmem:[#allocation52_spill] sm:$0xff]  ;;  %v14108_v5 = vld [vmem:[#allocation142_spill] sm:$0xff] }
 0xbd4   :  { %v14107_v58 = vmax.f32 %v14106_v53, 0.0  ;;  %v14109_v47 = vmax.f32 %v14108_v5, 0.0 }
 0xbd5   :  { %7705 = vmatmul.msk.f32.gmra.mxu0 %vm1740_vm2, %v8131_v16  ;;  %7736 = vmatmul.msk.f32.gmra.mxu1 %vm1740_vm2, %v8130_v24 }
 0xbd6   :  { %4367 = vmatmul.f32.gmra.mxu2 %v11956_v39  ;;  %4477 = vmatmul.f32.gmra.mxu3 %v11960_v11 }
 0xbda   :  { %v3986_v27 = vpop.f32.mrf.mxu0  ;;  %v4096_v60 = vpop.f32.mrf.mxu1 }
 0xbdb   :  { %v11971_v6 = vmul.f32 %v3986_v27, %v14107_v58  ;;  %v11975_v48 = vmul.f32 %v4096_v60, %v14109_v47  ;;  %v14110_v27 = vld [vmem:[#allocation161_spill] sm:$0xff] }
 0xbdc   :  { %v14111_v58 = vmax.f32 %v14110_v27, 0.0  ;;  %v14112_v60 = vld [vmem:[#allocation133_spill] sm:$0xff] }
 0xbdd   :  { %7706 = vmatmul.msk.f32.gmra.mxu0 %vm1740_vm2, %v8132_v10  ;;  %7737 = vmatmul.msk.f32.gmra.mxu1 %vm1740_vm2, %v8131_v16  ;;  %v14113_v5 = vmax.f32 %v14112_v60, 0.0 }
 0xbde   :  { %4370 = vmatmul.f32.gmra.mxu2 %v11971_v6  ;;  %4480 = vmatmul.f32.gmra.mxu3 %v11975_v48 }
 0xbe2   :  { %v3989_v24 = vpop.f32.mrf.mxu0  ;;  %v4099_v53 = vpop.f32.mrf.mxu1 }
 0xbe3   :  { %v11986_v26 = vmul.f32 %v3989_v24, %v14111_v58  ;;  %v11990_v47 = vmul.f32 %v4099_v53, %v14113_v5  ;;  %v14114_v24 = vld [vmem:[#allocation159_spill] sm:$0xff]  ;;  %v14116_v53 = vld [vmem:[#allocation64_spill] sm:$0xff] }
 0xbe4   :  { %v14115_v58 = vmax.f32 %v14114_v24, 0.0  ;;  %v14117_v60 = vmax.f32 %v14116_v53, 0.0  ;;  %v4255_v24 = vld [vmem:[#allocation6 + $0x70] sm:$0xff] }
 0xbe5   :  { %7707 = vmatmul.msk.f32.gmra.mxu0 %vm1740_vm2, %v8133_v20  ;;  %7738 = vmatmul.msk.f32.gmra.mxu1 %vm1740_vm2, %v8132_v10  ;;  %v4256_v10 = vld [vmem:[#allocation6 + $0x78] sm:$0xff]  ;;  %v14118_v53 = vld [vmem:[#allocation157_spill] sm:$0xff] }
 0xbe6   :  { %4373 = vmatmul.f32.gmra.mxu2 %v11986_v26  ;;  %4483 = vmatmul.f32.gmra.mxu3 %v11990_v47 }
 0xbe7   :  { %4565 = vmatpush.msra.mxu0 %v4256_v10  ;;  %v4252_v10 = vld [vmem:[#allocation6 + $0x58] sm:$0xff] }
 0xbe9   :  { %4566 = vmatpush.msra.mxu0 %v4255_v24  ;;  %v4272_v24 = vld [vmem:[#allocation6 + $0xf8] sm:$0xff] }
 0xbea   :  { %v3992_v16 = vpop.f32.mrf.mxu0  ;;  %v4102_v27 = vpop.f32.mrf.mxu1  ;;  %4678 = vmatpush.msrb.mxu1 %v4272_v24  ;;  %v4249_v24 = vld [vmem:[#allocation6 + $0x40] sm:$0xff] }
 0xbeb   :  { %v12001_v3 = vmul.f32 %v3992_v16, %v14115_v58  ;;  %v12005_v5 = vmul.f32 %v4102_v27, %v14117_v60  ;;  %v4254_v27 = vld [vmem:[#allocation6 + $0x68] sm:$0xff]  ;;  %v14119_v60 = vmax.f32 %v14118_v53, 0.0 }
 0xbec   :  { %4567 = vmatpush.msra.mxu0 %v4254_v27  ;;  %4679 = vmatpush.msrb.mxu1 %v4271_v18  ;;  %v4270_v27 = vld [vmem:[#allocation6 + $0xe8] sm:$0xff]  ;;  %v4268_v18 = vld [vmem:[#allocation6 + $0xd8] sm:$0xff] }
 0xbed   :  { %7708 = vmatmul.msk.f32.gmra.mxu0 %vm1740_vm2, %v8134_v1  ;;  %7739 = vmatmul.msk.f32.gmra.mxu1 %vm1740_vm2, %v8133_v20  ;;  %v4253_v20 = vld [vmem:[#allocation6 + $0x60] sm:$0xff]  ;;  %v14122_v53 = vld [vmem:[#allocation156_spill] sm:$0xff] }
 0xbee   :  { %4376 = vmatmul.f32.gmra.mxu2 %v12001_v3  ;;  %4486 = vmatmul.f32.gmra.mxu3 %v12005_v5 }
 0xbef   :  { %4568 = vmatpush.msra.mxu0 %v4253_v20  ;;  %4680 = vmatpush.msrb.mxu1 %v4270_v27  ;;  %v4269_v20 = vld [vmem:[#allocation6 + $0xe0] sm:$0xff] }
 0xbf0   :  { %v14126_v27 = vld [vmem:[#allocation155_spill] sm:$0xff] }
 0xbf1   :  { %4569 = vmatpush.msra.mxu0 %v4252_v10  ;;  %v8136_v10 = vld [vmem:[%s13305_s20 + $0xd0] sm:$0xff]  ;;  %4681 = vmatpush.msrb.mxu1 %v4269_v20  ;;  %v4246_v20 = vld [vmem:[#allocation6 + $0x28] sm:$0xff] }
 0xbf2   :  { %v3995_v16 = vpop.f32.mrf.mxu0  ;;  %v4105_v58 = vpop.f32.mrf.mxu1 }
 0xbf3   :  { %v12016_v59 = vmul.f32 %v3995_v16, %v14119_v60  ;;  %v12020_v35 = vmul.f32 %v4105_v58, %v14121_v38  ;;  %v4251_v38 = vld [vmem:[#allocation6 + $0x50] sm:$0xff]  ;;  %v14123_v60 = vmax.f32 %v14122_v53, 0.0  ;;  %4682 = vmatpush.msrb.mxu1 %v4268_v18  ;;  %v14127_v53 = vmax.f32 %v14126_v27, 0.0  ;;  %v4245_v18 = vld [vmem:[#allocation6 + $0x20] sm:$0xff] }
 0xbf4   :  { %4570 = vmatpush.msra.mxu0 %v4251_v38  ;;  %v4267_v38 = vld [vmem:[#allocation6 + $0xd0] sm:$0xff] }
 0xbf5   :  { %7709 = vmatmul.msk.f32.gmra.mxu0 %vm1740_vm2, %v8135_v44  ;;  %7740 = vmatmul.msk.f32.gmra.mxu1 %vm1740_vm2, %v8134_v1  ;;  %v14124_v1 = vld [vmem:[#allocation101_spill] sm:$0xff] }
 0xbf6   :  { %4379 = vmatmul.f32.gmra.mxu2 %v12016_v59  ;;  %4489 = vmatmul.f32.gmra.mxu3 %v12020_v35  ;;  %v14125_v52 = vmax.f32 %v14124_v1, 0.0  ;;  %v14128_v1 = vld [vmem:[#allocation117_spill] sm:$0xff] }
 0xbf7   :  { %4571 = vmatpush.msra.mxu0 %v4250_v19  ;;  %4683 = vmatpush.msrb.mxu1 %v4267_v38  ;;  %v8137_v19 = vld [vmem:[%s13305_s20 + $0xd8] sm:$0xff] }
 0xbf9   :  { %4572 = vmatpush.msra.mxu0 %v4249_v24  ;;  %v4265_v24 = vld [vmem:[#allocation6 + $0xc0] sm:$0xff]  ;;  %4684 = vmatpush.msrb.mxu1 %v4266_v28 }
 0xbfa   :  { %v3998_v16 = vpop.f32.mrf.mxu0  ;;  %v4108_v58 = vpop.f32.mrf.mxu1  ;;  %v8138_v28 = vld [vmem:[%s13305_s20 + $0xe0] sm:$0xff] }
 0xbfb   :  { %v12031_v62 = vmul.f32 %v3998_v16, %v14123_v60  ;;  %v12035_v42 = vmul.f32 %v4108_v58, %v14125_v52  ;;  %v4248_v52 = vld [vmem:[#allocation6 + $0x38] sm:$0xff]  ;;  %4685 = vmatpush.msrb.mxu1 %v4265_v24  ;;  %v4242_v24 = vld [vmem:[#allocation6 + $0x8] sm:$0xff] }
 0xbfc   :  { %4573 = vmatpush.msra.mxu0 %v4248_v52  ;;  %v4264_v52 = vld [vmem:[#allocation6 + $0xb8] sm:$0xff] }
 0xbfd   :  { %7710 = vmatmul.msk.f32.gmra.mxu0 %vm1740_vm2, %v8136_v10  ;;  %7741 = vmatmul.msk.f32.gmra.mxu1 %vm1740_vm2, %v8135_v44  ;;  %v14129_v44 = vmax.f32 %v14128_v1, 0.0  ;;  %v14133_v1 = vld [vmem:[#allocation121_spill] sm:$0xff] }
 0xbfe   :  { %4382 = vmatmul.f32.gmra.mxu2 %v12031_v62  ;;  %4492 = vmatmul.f32.gmra.mxu3 %v12035_v42 }
 0xbff   :  { %4574 = vmatpush.msra.mxu0 %v4247_v37  ;;  %4686 = vmatpush.msrb.mxu1 %v4264_v52  ;;  %v4243_v37 = vld [vmem:[#allocation6 + $0x10] sm:$0xff] }
 0xc01   :  { %4575 = vmatpush.msra.mxu0 %v4246_v20  ;;  %v4262_v20 = vld [vmem:[#allocation6 + $0xa8] sm:$0xff]  ;;  %4687 = vmatpush.msrb.mxu1 %v4263_v4 }
 0xc02   :  { %v4001_v16 = vpop.f32.mrf.mxu0  ;;  %v4111_v58 = vpop.f32.mrf.mxu1  ;;  %v8139_v4 = vld [vmem:[%s13305_s20 + $0xe8] sm:$0xff] }
 0xc03   :  { %v12046_v60 = vmul.f32 %v4001_v16, %v14127_v53  ;;  %v12050_v13 = vmul.f32 %v4111_v58, %v14129_v44  ;;  %v14130_v58 = vld [vmem:[#allocation153_spill] sm:$0xff]  ;;  %4576 = vmatpush.msra.mxu0 %v4245_v18  ;;  %v4261_v18 = vld [vmem:[#allocation6 + $0xa0] sm:$0xff]  ;;  %4688 = vmatpush.msrb.mxu1 %v4262_v20 }
 0xc04   :  { %v14131_v27 = vmax.f32 %v14130_v58, 0.0 }
 0xc05   :  { %7711 = vmatmul.msk.f32.gmra.mxu0 %vm1740_vm2, %v8137_v19  ;;  %7742 = vmatmul.msk.f32.gmra.mxu1 %vm1740_vm2, %v8136_v10  ;;  %v14134_v10 = vmax.f32 %v14133_v1, 0.0  ;;  %v14138_v1 = vld [vmem:[#allocation77_spill] sm:$0xff] }
 0xc06   :  { %4385 = vmatmul.f32.gmra.mxu2 %v12046_v60  ;;  %4495 = vmatmul.f32.gmra.mxu3 %v12050_v13 }
 0xc07   :  { %4577 = vmatpush.msra.mxu0 %v4244_v46  ;;  %4689 = vmatpush.msrb.mxu1 %v4261_v18  ;;  %v4259_v46 = vld [vmem:[#allocation6 + $0x90] sm:$0xff]  ;;  %v14140_v18 = vld [vmem:[#allocation151_spill] sm:$0xff] }
 0xc09   :  { %4578 = vmatpush.msra.mxu0 %v4243_v37  ;;  %v4258_v37 = vld [vmem:[#allocation6 + $0x88] sm:$0xff] }
 0xc0a   :  { %v4004_v38 = vpop.f32.mrf.mxu0  ;;  %v4114_v16 = vpop.f32.mrf.mxu1 }
 0xc0b   :  { %v12061_v53 = vmul.f32 %v4004_v38, %v14131_v27  ;;  %v12065_v44 = vmul.f32 %v4114_v16, %v14134_v10  ;;  %v14136_v16 = vld [vmem:[#allocation119_spill] sm:$0xff]  ;;  %4579 = vmatpush.msra.mxu0 %v4242_v24 }
 0xc0c   :  { %v14137_v58 = vmax.f32 %v14136_v16, 0.0  ;;  %v14142_v16 = vld [vmem:[#allocation113_spill] sm:$0xff] }
 0xc0d   :  { %14132 = vst [vmem:[#allocation85_spill] sm:$0xff] %v12061_v53  ;;  %7712 = vmatmul.msk.f32.gmra.mxu0 %vm1740_vm2, %v8138_v28  ;;  %7743 = vmatmul.msk.f32.gmra.mxu1 %vm1740_vm2, %v8137_v19  ;;  %v14139_v19 = vmax.f32 %v14138_v1, 0.0 }
 0xc0e   :  { %14135 = vst [vmem:[#allocation38_spill] sm:$0xff] %v12065_v44  ;;  %4388 = vmatmul.f32.gmra.mxu2 %v12061_v53  ;;  %4498 = vmatmul.f32.gmra.mxu3 %v12065_v44  ;;  %v4241_v44 = vld [vmem:[#allocation6] sm:$0xff]  ;;  %v4260_v53 = vld [vmem:[#allocation6 + $0x98] sm:$0xff] }
 0xc0f   :  { %4580 = vmatpush.msra.mxu0 %v4241_v44  ;;  %4690 = vmatpush.msrb.mxu1 %v4260_v53 }
 0xc11   :  { %4691 = vmatpush.msrb.mxu1 %v4259_v46  ;;  %v14145_v46 = vld [vmem:[#allocation150_spill] sm:$0xff] }
 0xc12   :  { %v4007_v52 = vpop.f32.mrf.mxu0  ;;  %v4117_v38 = vpop.f32.mrf.mxu1 }
 0xc13   :  { %v12076_v27 = vmul.f32 %v4007_v52, %v14137_v58  ;;  %v12080_v10 = vmul.f32 %v4117_v38, %v14139_v19  ;;  %v14141_v52 = vmax.f32 %v14140_v18, 0.0  ;;  %v14143_v58 = vmax.f32 %v14142_v16, 0.0  ;;  %4692 = vmatpush.msrb.mxu1 %v4258_v37  ;;  %v8140_v19 = vld [vmem:[%s13305_s20 + $0xf0] sm:$0xff]  ;;  %v8141_v16 = vld [vmem:[%s13305_s20 + $0xf8] sm:$0xff] }
 0xc14   :  { %v14148_v37 = vld [vmem:[#allocation125_spill] sm:$0xff] }
 0xc15   :  { %7713 = vmatmul.msk.f32.gmra.mxu0 %vm1740_vm2, %v8139_v4  ;;  %7744 = vmatmul.msk.f32.gmra.mxu1 %vm1740_vm2, %v8138_v28  ;;  %v4257_v28 = vld [vmem:[#allocation6 + $0x80] sm:$0xff]  ;;  %v14149_v18 = vmax.f32 %v14148_v37, 0.0  ;;  %v14154_v37 = vld [vmem:[#allocation80_spill] sm:$0xff] }
 0xc16   :  { %4391 = vmatmul.f32.gmra.mxu2 %v12076_v27  ;;  %4501 = vmatmul.f32.gmra.mxu3 %v12080_v10 }
 0xc17   :  { %4693 = vmatpush.msrb.mxu1 %v4257_v28  ;;  %v14151_v28 = vld [vmem:[#allocation105_spill] sm:$0xff] }
 0xc1a   :  { %v4010_v20 = vpop.f32.mrf.mxu0  ;;  %v4120_v24 = vpop.f32.mrf.mxu1 }
 0xc1b   :  { %v12091_v38 = vmul.f32 %v4010_v20, %v14141_v52  ;;  %v12095_v1 = vmul.f32 %v4120_v24, %v14143_v58  ;;  %v14146_v20 = vmax.f32 %v14145_v46, 0.0 }
 0xc1d   :  { %14144 = vst [vmem:[#allocation106_spill] sm:$0xff] %v12095_v1  ;;  %7714 = vmatmul.msk.f32.gmra.mxu0 %vm1740_vm2, %v8140_v19  ;;  %7745 = vmatmul.msk.f32.gmra.mxu1 %vm1740_vm2, %v8139_v4 }
 0xc1e   :  { %4394 = vmatmul.f32.gmra.mxu2 %v12091_v38  ;;  %4504 = vmatmul.f32.gmra.mxu3 %v12095_v1 }
 0xc22   :  { %v4013_v53 = vpop.f32.mrf.mxu0  ;;  %v4123_v44 = vpop.f32.mrf.mxu1 }
 0xc23   :  { %v12106_v24 = vmul.f32 %v4013_v53, %v14146_v20  ;;  %v12110_v52 = vmul.f32 %v4123_v44, %v14149_v18  ;;  %v14152_v53 = vmax.f32 %v14151_v28, 0.0  ;;  %v14153_v44 = vmax.f32 %v11714_v51, 0.0  ;;  %v14156_v28 = vld [vmem:[#allocation166_spill] sm:$0xff] }
 0xc24   :  { %v14155_v18 = vmax.f32 %v14154_v37, 0.0  ;;  %v14158_v51 = vmax.f32 %v11706_v61, 0.0  ;;  %v14161_v61 = vmax.f32 %v11658_v31, 0.0  ;;  %v14164_v31 = vmax.f32 %v11641_v29, 0.0 }
 0xc25   :  { %14147 = vst [vmem:[#allocation110_spill] sm:$0xff] %v12106_v24  ;;  %7715 = vmatmul.msk.f32.gmra.mxu0 %vm1740_vm2, %v8141_v16  ;;  %7746 = vmatmul.msk.f32.gmra.mxu1 %vm1740_vm2, %v8140_v19  ;;  %v4177_v46 = vmul.f32 %v11890_v63, %v14152_v53  ;;  %v14167_v29 = vmax.f32 %v11621_v57, 0.0  ;;  %v14170_v57 = vmax.f32 %v11600_v14, 0.0  ;;  %v14173_v14 = vmax.f32 %v11579_v43, 0.0 }
 0xc26   :  { %14150 = vst [vmem:[#allocation103_spill] sm:$0xff] %v12110_v52  ;;  %4397 = vmatmul.f32.gmra.mxu2 %v12106_v24  ;;  %4507 = vmatmul.f32.gmra.mxu3 %v12110_v52  ;;  %v14157_v24 = vmax.f32 %v14156_v28, 0.0  ;;  %v14176_v43 = vmax.f32 %v11558_v21, 0.0  ;;  %v14179_v21 = vmax.f32 %v11537_v25, 0.0  ;;  %v14182_v25 = vmax.f32 %v11519_v12, 0.0 }
 0xc28   :  { %v4178_v63 = vmul.f32 %v11897_v2, %v14157_v24  ;;  %v14160_v2 = vmax.f32 %v11694_v36, 0.0 }
 0xc2a   :  { %v4016_v4 = vpop.f32.mrf.mxu0  ;;  %v4126_v58 = vpop.f32.mrf.mxu1 }
 0xc2b   :  { %v12124_v20 = vmul.f32 %v4016_v4, %v14153_v44  ;;  %v12128_v1 = vmul.f32 %v4126_v58, %v14155_v18  ;;  %v14159_v58 = vmax.f32 %v11674_v33, 0.0 }
 0xc2d   :  { %7747 = vmatmul.msk.f32.gmra.mxu1 %vm1740_vm2, %v8141_v16  ;;  %4581 = vmatmul.f32.vlgmr.msra.gmra.mxu0 %v4177_v46 }
 0xc2e   :  { %4400 = vmatmul.f32.gmra.mxu2 %v12124_v20  ;;  %4510 = vmatmul.f32.gmra.mxu3 %v12128_v1 }
 0xc32   :  { %v4019_v19 = vpop.f32.mrf.mxu0  ;;  %v4129_v52 = vpop.f32.mrf.mxu1 }
 0xc33   :  { %v12138_v4 = vmul.f32 %v4019_v19, %v14158_v51  ;;  %v12142_v53 = vmul.f32 %v4129_v52, %v14159_v58  ;;  %v14163_v19 = vmax.f32 %v11684_v8, 0.0 }
 0xc35   :  { %4584 = vmatmul.f32.gmra.mxu0 %v11901_v41  ;;  %4694 = vmatmul.f32.vlgmr.msrb.gmra.mxu1 %v4178_v63 }
 0xc36   :  { %4403 = vmatmul.f32.gmra.mxu2 %v12138_v4  ;;  %4513 = vmatmul.f32.gmra.mxu3 %v12142_v53 }
 0xc39   :  { %v4356_v16 = vpop.f32.mrf.mxu2 }
 0xc3a   :  { %v4022_v46 = vpop.f32.mrf.mxu0  ;;  %v4132_v44 = vpop.f32.mrf.mxu1 }
 0xc3b   :  { %v12149_v24 = vmul.f32 %v4022_v46, %v14160_v2  ;;  %v12153_v37 = vmul.f32 %v4132_v44, %v14161_v61  ;;  %v14166_v46 = vmax.f32 %v11668_v32, 0.0 }
 0xc3d   :  { %4587 = vmatmul.f32.gmra.mxu0 %v11911_v45  ;;  %4697 = vmatmul.f32.gmra.mxu1 %v11915_v49 }
 0xc3e   :  { %4406 = vmatmul.f32.gmra.mxu2 %v12149_v24  ;;  %4516 = vmatmul.f32.gmra.mxu3 %v12153_v37 }
 0xc41   :  { %v4359_v33 = vpop.f32.mrf.mxu2  ;;  %v4469_v41 = vpop.f32.mrf.mxu3 }
 0xc42   :  { %v12159_v52 = vadd.f32 %v4469_v41, %v4356_v16  ;;  %v4025_v18 = vpop.f32.mrf.mxu0  ;;  %v4135_v36 = vpop.f32.mrf.mxu1 }
 0xc43   :  { %v12163_v28 = vmul.f32 %v4025_v18, %v14163_v19  ;;  %v12167_v63 = vmul.f32 %v4135_v36, %v14164_v31  ;;  %v14169_v36 = vmax.f32 %v11651_v7, 0.0 }
 0xc44   :  { %14162 = vst [vmem:[#allocation66_spill] sm:$0xff] %v12159_v52 }
 0xc45   :  { %4590 = vmatmul.f32.gmra.mxu0 %v11926_v34  ;;  %4700 = vmatmul.f32.gmra.mxu1 %v11930_v50 }
 0xc46   :  { %4409 = vmatmul.f32.gmra.mxu2 %v12163_v28  ;;  %4519 = vmatmul.f32.gmra.mxu3 %v12167_v63 }
 0xc49   :  { %v4362_v49 = vpop.f32.mrf.mxu2  ;;  %v4472_v51 = vpop.f32.mrf.mxu3 }
 0xc4a   :  { %v12173_v58 = vadd.f32 %v4472_v51, %v4359_v33  ;;  %v4028_v16 = vpop.f32.mrf.mxu0  ;;  %v4138_v8 = vpop.f32.mrf.mxu1 }
 0xc4b   :  { %v12177_v44 = vmul.f32 %v4028_v16, %v14166_v46  ;;  %v12181_v2 = vmul.f32 %v4138_v8, %v14167_v29  ;;  %v14172_v46 = vmax.f32 %v11631_v22, 0.0 }
 0xc4c   :  { %14165 = vst [vmem:[#allocation99_spill] sm:$0xff] %v12173_v58 }
 0xc4d   :  { %4593 = vmatmul.f32.gmra.mxu0 %v11941_v17  ;;  %4703 = vmatmul.f32.gmra.mxu1 %v11945_v9 }
 0xc4e   :  { %4412 = vmatmul.f32.gmra.mxu2 %v12177_v44  ;;  %4522 = vmatmul.f32.gmra.mxu3 %v12181_v2 }
 0xc51   :  { %v4365_v61 = vpop.f32.mrf.mxu2  ;;  %v4475_v33 = vpop.f32.mrf.mxu3 }
 0xc52   :  { %v12187_v41 = vadd.f32 %v4475_v33, %v4362_v49  ;;  %v4031_v18 = vpop.f32.mrf.mxu0  ;;  %v4141_v32 = vpop.f32.mrf.mxu1 }
 0xc53   :  { %v12191_v19 = vmul.f32 %v4031_v18, %v14169_v36  ;;  %v12195_v31 = vmul.f32 %v4141_v32, %v14170_v57  ;;  %v14175_v57 = vmax.f32 %v11610_v55, 0.0 }
 0xc54   :  { %14168 = vst [vmem:[#allocation62_spill] sm:$0xff] %v12187_v41  ;;  %v14188_v41 = vmax.f32 %v11487_v40, 0.0  ;;  %v4331_v40 = vld [vmem:[#allocation6 + $0x2d0] sm:$0xff] }
 0xc55   :  { %4596 = vmatmul.f32.gmra.mxu0 %v11956_v39  ;;  %4706 = vmatmul.f32.gmra.mxu1 %v11960_v11 }
 0xc56   :  { %4415 = vmatmul.f32.gmra.mxu2 %v12191_v19  ;;  %4525 = vmatmul.f32.gmra.mxu3 %v12195_v31 }
 0xc59   :  { %v4368_v49 = vpop.f32.mrf.mxu2  ;;  %v4478_v51 = vpop.f32.mrf.mxu3 }
 0xc5a   :  { %v12201_v16 = vadd.f32 %v4478_v51, %v4365_v61  ;;  %v4034_v8 = vpop.f32.mrf.mxu0  ;;  %v4144_v7 = vpop.f32.mrf.mxu1 }
 0xc5b   :  { %v12205_v29 = vmul.f32 %v4034_v8, %v14172_v46  ;;  %v12209_v33 = vmul.f32 %v4144_v7, %v14173_v14 }
 0xc5c   :  { %14171 = vst [vmem:[#allocation97_spill] sm:$0xff] %v12201_v16  ;;  %v4317_v16 = vld [vmem:[#allocation6 + $0x260] sm:$0xff] }
 0xc5d   :  { %4599 = vmatmul.f32.gmra.mxu0 %v11971_v6  ;;  %4709 = vmatmul.f32.gmra.mxu1 %v11975_v48 }
 0xc5e   :  { %4418 = vmatmul.f32.gmra.mxu2 %v12205_v29  ;;  %4528 = vmatmul.f32.gmra.mxu3 %v12209_v33 }
 0xc61   :  { %v4371_v61 = vpop.f32.mrf.mxu2  ;;  %v4481_v18 = vpop.f32.mrf.mxu3 }
 0xc62   :  { %v12215_v32 = vadd.f32 %v4481_v18, %v4368_v49  ;;  %v4037_v36 = vpop.f32.mrf.mxu0  ;;  %v4147_v22 = vpop.f32.mrf.mxu1  ;;  %v14178_v18 = vmax.f32 %v11589_v23, 0.0 }
 0xc63   :  { %v12219_v51 = vmul.f32 %v4037_v36, %v14175_v57  ;;  %v12223_v8 = vmul.f32 %v4147_v22, %v14176_v43 }
 0xc64   :  { %14174 = vst [vmem:[#allocation65_spill] sm:$0xff] %v12215_v32 }
 0xc65   :  { %4602 = vmatmul.f32.gmra.mxu0 %v11986_v26  ;;  %4712 = vmatmul.f32.gmra.mxu1 %v11990_v47 }
 0xc66   :  { %4421 = vmatmul.f32.gmra.mxu2 %v12219_v51  ;;  %4531 = vmatmul.f32.gmra.mxu3 %v12223_v8 }
 0xc69   :  { %v4374_v49 = vpop.f32.mrf.mxu2  ;;  %v4484_v7 = vpop.f32.mrf.mxu3 }
 0xc6a   :  { %v12229_v46 = vadd.f32 %v4484_v7, %v4371_v61  ;;  %v4040_v14 = vpop.f32.mrf.mxu0  ;;  %v4150_v55 = vpop.f32.mrf.mxu1 }
 0xc6b   :  { %v12233_v36 = vmul.f32 %v4040_v14, %v14178_v18  ;;  %v12237_v22 = vmul.f32 %v4150_v55, %v14179_v21  ;;  %v14181_v14 = vmax.f32 %v11568_v15, 0.0  ;;  %v4319_v21 = vld [vmem:[#allocation6 + $0x270] sm:$0xff] }
 0xc6c   :  { %14177 = vst [vmem:[#allocation116_spill] sm:$0xff] %v12229_v46  ;;  %v14185_v46 = vmax.f32 %v11502_v30, 0.0 }
 0xc6d   :  { %4605 = vmatmul.f32.gmra.mxu0 %v12001_v3  ;;  %4715 = vmatmul.f32.gmra.mxu1 %v12005_v5 }
 0xc6e   :  { %4424 = vmatmul.f32.gmra.mxu2 %v12233_v36  ;;  %4534 = vmatmul.f32.gmra.mxu3 %v12237_v22 }
 0xc71   :  { %v4377_v61 = vpop.f32.mrf.mxu2  ;;  %v4487_v57 = vpop.f32.mrf.mxu3 }
 0xc72   :  { %v12243_v43 = vadd.f32 %v4487_v57, %v4374_v49  ;;  %v4043_v7 = vpop.f32.mrf.mxu0  ;;  %v4153_v23 = vpop.f32.mrf.mxu1  ;;  %v4320_v49 = vld [vmem:[#allocation6 + $0x278] sm:$0xff] }
 0xc73   :  { %v12247_v18 = vmul.f32 %v4043_v7, %v14181_v14  ;;  %v12251_v55 = vmul.f32 %v4153_v23, %v14182_v25  ;;  %4791 = vmatpush.msra.mxu2 %v4320_v49  ;;  %v4318_v23 = vld [vmem:[#allocation6 + $0x268] sm:$0xff]  ;;  %v14184_v14 = vmax.f32 %v11547_v0, 0.0  ;;  %v4315_v0 = vld [vmem:[#allocation6 + $0x250] sm:$0xff] }
 0xc74   :  { %14180 = vst [vmem:[#allocation93_spill] sm:$0xff] %v12243_v43  ;;  %v4335_v49 = vld [vmem:[#allocation6 + $0x2f0] sm:$0xff] }
 0xc75   :  { %4608 = vmatmul.f32.gmra.mxu0 %v12016_v59  ;;  %4718 = vmatmul.f32.gmra.mxu1 %v12020_v35 }
 0xc76   :  { %4427 = vmatmul.f32.gmra.mxu2 %v12247_v18  ;;  %4537 = vmatmul.f32.gmra.mxu3 %v12251_v55 }
 0xc77   :  { %4792 = vmatpush.msra.mxu2 %v4319_v21 }
 0xc79   :  { %v4380_v57 = vpop.f32.mrf.mxu2  ;;  %v4490_v43 = vpop.f32.mrf.mxu3  ;;  %4793 = vmatpush.msra.mxu2 %v4318_v23  ;;  %v4334_v23 = vld [vmem:[#allocation6 + $0x2e8] sm:$0xff] }
 0xc7a   :  { %v12257_v15 = vadd.f32 %v4490_v43, %v4377_v61  ;;  %v4046_v7 = vpop.f32.mrf.mxu0  ;;  %v4156_v12 = vpop.f32.mrf.mxu1  ;;  %v4316_v61 = vld [vmem:[#allocation6 + $0x258] sm:$0xff] }
 0xc7b   :  { %v12261_v25 = vmul.f32 %v4046_v7, %v14184_v14  ;;  %v12265_v32 = vmul.f32 %v4156_v12, %v14185_v46  ;;  %v4336_v43 = vld [vmem:[#allocation6 + $0x2f8] sm:$0xff]  ;;  %4794 = vmatpush.msra.mxu2 %v4317_v16  ;;  %v14187_v14 = vmax.f32 %v11529_v54, 0.0  ;;  %v4314_v16 = vld [vmem:[#allocation6 + $0x248] sm:$0xff] }
 0xc7c   :  { %14183 = vst [vmem:[#allocation120_spill] sm:$0xff] %v12257_v15  ;;  %4904 = vmatpush.msra.mxu3 %v4336_v43  ;;  %v4333_v43 = vld [vmem:[#allocation6 + $0x2e0] sm:$0xff]  ;;  %v4332_v54 = vld [vmem:[#allocation6 + $0x2d8] sm:$0xff] }
 0xc7d   :  { %4611 = vmatmul.f32.gmra.mxu0 %v12031_v62  ;;  %4721 = vmatmul.f32.gmra.mxu1 %v12035_v42 }
 0xc7e   :  { %4430 = vmatmul.f32.gmra.mxu2 %v12261_v25  ;;  %4540 = vmatmul.f32.gmra.mxu3 %v12265_v32 }
 0xc7f   :  { %4795 = vmatpush.msra.mxu2 %v4316_v61  ;;  %4905 = vmatpush.msra.mxu3 %v4335_v49  ;;  %v4312_v61 = vld [vmem:[#allocation6 + $0x238] sm:$0xff] }
 0xc81   :  { %v4383_v21 = vpop.f32.mrf.mxu2  ;;  %v4493_v30 = vpop.f32.mrf.mxu3  ;;  %4796 = vmatpush.msra.mxu2 %v4315_v0  ;;  %4906 = vmatpush.msra.mxu3 %v4334_v23 }
 0xc82   :  { %v12271_v46 = vadd.f32 %v4493_v30, %v4380_v57  ;;  %v4049_v7 = vpop.f32.mrf.mxu0  ;;  %v4159_v12 = vpop.f32.mrf.mxu1  ;;  %v4313_v57 = vld [vmem:[#allocation6 + $0x240] sm:$0xff] }
 0xc83   :  { %v12275_v15 = vmul.f32 %v4049_v7, %v14187_v14  ;;  %v12279_v58 = vmul.f32 %v4159_v12, %v14188_v41  ;;  %4797 = vmatpush.msra.mxu2 %v4314_v16  ;;  %4907 = vmatpush.msra.mxu3 %v4333_v43  ;;  %v14191_v12 = vmax.f32 %v11512_v56, 0.0  ;;  %v14193_v14 = vld [vmem:[#allocation61_spill] sm:$0xff]  ;;  %v4330_v43 = vld [vmem:[#allocation6 + $0x2c8] sm:$0xff]  ;;  %v4329_v56 = vld [vmem:[#allocation6 + $0x2c0] sm:$0xff] }
 0xc84   :  { %14186 = vst [vmem:[#allocation86_spill] sm:$0xff] %v12271_v46  ;;  %v14194_v46 = vmax.f32 %v14193_v14, 0.0  ;;  %v4311_v16 = vld [vmem:[#allocation6 + $0x230] sm:$0xff] }
 0xc85   :  { %14189 = vst [vmem:[#allocation122_spill] sm:$0xff] %v12279_v58  ;;  %4614 = vmatmul.f32.gmra.mxu0 %v12046_v60  ;;  %4724 = vmatmul.f32.gmra.mxu1 %v12050_v13 }
 0xc86   :  { %4433 = vmatmul.f32.gmra.mxu2 %v12275_v15  ;;  %4543 = vmatmul.f32.gmra.mxu3 %v12279_v58  ;;  %v14196_v58 = vld [vmem:[#allocation85_spill] sm:$0xff] }
 0xc87   :  { %4798 = vmatpush.msra.mxu2 %v4313_v57  ;;  %4908 = vmatpush.msra.mxu3 %v4332_v54  ;;  %v14197_v57 = vld [vmem:[#allocation38_spill] sm:$0xff]  ;;  %v4309_v54 = vld [vmem:[#allocation6 + $0x220] sm:$0xff] }
 0xc89   :  { %v4386_v41 = vpop.f32.mrf.mxu2  ;;  %v4496_v49 = vpop.f32.mrf.mxu3  ;;  %4799 = vmatpush.msra.mxu2 %v4312_v61  ;;  %4909 = vmatpush.msra.mxu3 %v4331_v40 }
 0xc8a   :  { %v12285_v0 = vadd.f32 %v4496_v49, %v4383_v21  ;;  %v4052_v30 = vpop.f32.mrf.mxu0  ;;  %v4162_v7 = vpop.f32.mrf.mxu1  ;;  %v4310_v21 = vld [vmem:[#allocation6 + $0x228] sm:$0xff]  ;;  %v4328_v49 = vld [vmem:[#allocation6 + $0x2b8] sm:$0xff] }
 0xc8b   :  { %v12289_v23 = vmul.f32 %v4052_v30, %v14191_v12  ;;  %v12293_v52 = vmul.f32 %v4162_v7, %v14194_v46  ;;  %4800 = vmatpush.msra.mxu2 %v4311_v16  ;;  %4910 = vmatpush.msra.mxu3 %v4330_v43  ;;  %v14199_v12 = vld [vmem:[#allocation69_spill] sm:$0xff]  ;;  %v4308_v16 = vld [vmem:[#allocation6 + $0x218] sm:$0xff] }
 0xc8c   :  { %14190 = vst [vmem:[#allocation111_spill] sm:$0xff] %v12285_v0  ;;  %v14200_v14 = vmax.f32 %v14199_v12, 0.0  ;;  %v4327_v43 = vld [vmem:[#allocation6 + $0x2b0] sm:$0xff] }
 0xc8d   :  { %14192 = vst [vmem:[#allocation124_spill] sm:$0xff] %v12289_v23  ;;  %4617 = vmatmul.f32.gmra.mxu0 %v14196_v58  ;;  %4727 = vmatmul.f32.gmra.mxu1 %v14197_v57 }
 0xc8e   :  { %14195 = vst [vmem:[#allocation108_spill] sm:$0xff] %v12293_v52  ;;  %4436 = vmatmul.f32.gmra.mxu2 %v12289_v23  ;;  %4546 = vmatmul.f32.gmra.mxu3 %v12293_v52  ;;  %v14202_v23 = vld [vmem:[#allocation72_spill] sm:$0xff] }
 0xc8f   :  { %4801 = vmatpush.msra.mxu2 %v4310_v21  ;;  %4911 = vmatpush.msra.mxu3 %v4329_v56  ;;  %v14203_v52 = vmax.f32 %v14202_v23, 0.0  ;;  %v4326_v21 = vld [vmem:[#allocation6 + $0x2a8] sm:$0xff]  ;;  %v4325_v23 = vld [vmem:[#allocation6 + $0x2a0] sm:$0xff] }
 0xc90   :  { %v4306_v56 = vld [vmem:[#allocation6 + $0x208] sm:$0xff] }
 0xc91   :  { %v4389_v46 = vpop.f32.mrf.mxu2  ;;  %v4499_v30 = vpop.f32.mrf.mxu3  ;;  %4802 = vmatpush.msra.mxu2 %v4309_v54  ;;  %4912 = vmatpush.msra.mxu3 %v4328_v49 }
 0xc92   :  { %v12299_v61 = vadd.f32 %v4499_v30, %v4386_v41  ;;  %v4055_v40 = vpop.f32.mrf.mxu0  ;;  %v4165_v7 = vpop.f32.mrf.mxu1  ;;  %v4307_v41 = vld [vmem:[#allocation6 + $0x210] sm:$0xff] }
 0xc93   :  { %v12303_v0 = vmul.f32 %v4055_v40, %v14200_v14  ;;  %v12307_v57 = vmul.f32 %v4165_v7, %v14203_v52  ;;  %4803 = vmatpush.msra.mxu2 %v4308_v16  ;;  %4913 = vmatpush.msra.mxu3 %v4327_v43  ;;  %v14206_v7 = vld [vmem:[#allocation63_spill] sm:$0xff]  ;;  %v4324_v43 = vld [vmem:[#allocation6 + $0x298] sm:$0xff] }
 0xc94   :  { %14198 = vst [vmem:[#allocation126_spill] sm:$0xff] %v12299_v61  ;;  %v14207_v12 = vmax.f32 %v14206_v7, 0.0  ;;  %v14209_v61 = vld [vmem:[#allocation82_spill] sm:$0xff]  ;;  %v4305_v16 = vld [vmem:[#allocation6 + $0x200] sm:$0xff] }
 0xc95   :  { %14201 = vst [vmem:[#allocation88_spill] sm:$0xff] %v12303_v0  ;;  %4620 = vmatmul.f32.gmra.mxu0 %v12076_v27  ;;  %4730 = vmatmul.f32.gmra.mxu1 %v12080_v10 }
 0xc96   :  { %14204 = vst [vmem:[#allocation127_spill] sm:$0xff] %v12307_v57  ;;  %4439 = vmatmul.f32.gmra.mxu2 %v12303_v0  ;;  %4549 = vmatmul.f32.gmra.mxu3 %v12307_v57  ;;  %v14210_v57 = vmax.f32 %v14209_v61, 0.0 }
 0xc97   :  { %4804 = vmatpush.msra.mxu2 %v4307_v41  ;;  %4914 = vmatpush.msra.mxu3 %v4326_v21  ;;  %v14212_v41 = vld [vmem:[#allocation106_spill] sm:$0xff]  ;;  %v4322_v21 = vld [vmem:[#allocation6 + $0x288] sm:$0xff] }
 0xc99   :  { %v4392_v52 = vpop.f32.mrf.mxu2  ;;  %v4502_v30 = vpop.f32.mrf.mxu3  ;;  %4805 = vmatpush.msra.mxu2 %v4306_v56  ;;  %4915 = vmatpush.msra.mxu3 %v4325_v23 }
 0xc9a   :  { %v12313_v54 = vadd.f32 %v4502_v30, %v4389_v46  ;;  %v4058_v49 = vpop.f32.mrf.mxu0  ;;  %v4168_v40 = vpop.f32.mrf.mxu1  ;;  %v4323_v46 = vld [vmem:[#allocation6 + $0x290] sm:$0xff] }
 0xc9b   :  { %v12317_v14 = vmul.f32 %v4058_v49, %v14207_v12  ;;  %v12321_v0 = vmul.f32 %v4168_v40, %v14210_v57  ;;  %4806 = vmatpush.msra.mxu2 %v4305_v16  ;;  %4916 = vmatpush.msra.mxu3 %v4324_v43  ;;  %v14214_v49 = vld [vmem:[#allocation44_spill] sm:$0xff]  ;;  %v14216_v12 = vld [vmem:[#allocation73_spill] sm:$0xff]  ;;  %v14218_v16 = vld [vmem:[#allocation110_spill] sm:$0xff] }
 0xc9c   :  { %14205 = vst [vmem:[#allocation109_spill] sm:$0xff] %v12313_v54  ;;  %v14215_v40 = vmax.f32 %v14214_v49, 0.0  ;;  %v14217_v54 = vmax.f32 %v14216_v12, 0.0  ;;  %v14219_v43 = vld [vmem:[#allocation103_spill] sm:$0xff] }
 0xc9d   :  { %14208 = vst [vmem:[#allocation128_spill] sm:$0xff] %v12317_v14  ;;  %4623 = vmatmul.f32.gmra.mxu0 %v12091_v38  ;;  %4733 = vmatmul.f32.gmra.mxu1 %v14212_v41 }
 0xc9e   :  { %14211 = vst [vmem:[#allocation130_spill] sm:$0xff] %v12321_v0  ;;  %4442 = vmatmul.f32.gmra.mxu2 %v12317_v14  ;;  %4552 = vmatmul.f32.gmra.mxu3 %v12321_v0  ;;  %v4321_v0 = vld [vmem:[#allocation6 + $0x280] sm:$0xff] }
 0xc9f   :  { %4917 = vmatpush.msra.mxu3 %v4323_v46 }
 0xca1   :  { %v4395_v30 = vpop.f32.mrf.mxu2  ;;  %v4505_v61 = vpop.f32.mrf.mxu3  ;;  %4918 = vmatpush.msra.mxu3 %v4322_v21 }
 0xca2   :  { %v12327_v57 = vadd.f32 %v4505_v61, %v4392_v52  ;;  %v4061_v56 = vpop.f32.mrf.mxu0  ;;  %v4171_v23 = vpop.f32.mrf.mxu1 }
 0xca3   :  { %v12331_v7 = vmul.f32 %v4061_v56, %v14215_v40  ;;  %v12335_v14 = vmul.f32 %v4171_v23, %v14217_v54  ;;  %4919 = vmatpush.msra.mxu3 %v4321_v0  ;;  %v14221_v54 = vld [vmem:[#allocation81_spill] sm:$0xff]  ;;  %v14223_v40 = vmov 0.0  }
 0xca4   :  { %14213 = vst [vmem:[#allocation132_spill] sm:$0xff] %v12327_v57  ;;  %v14222_v23 = vmax.f32 %v14221_v54, 0.0 }
 0xca5   :  { %4626 = vmatmul.f32.gmra.mxu0 %v14218_v16  ;;  %4736 = vmatmul.f32.gmra.mxu1 %v14219_v43 }
 0xca6   :  { %4445 = vmatmul.f32.gmra.mxu2 %v12331_v7  ;;  %4555 = vmatmul.f32.gmra.mxu3 %v12335_v14 }
 0xca9   :  { %v4398_v52 = vpop.f32.mrf.mxu2  ;;  %v4508_v46 = vpop.f32.mrf.mxu3 }
 0xcaa   :  { %v12341_v61 = vadd.f32 %v4508_v46, %v4395_v30  ;;  %v4174_v56 = vpop.f32.mrf.mxu1  ;;  %v12343_v49 = vpop.f32.mrf.mxu0 }
 0xcab   :  { %v12347_v21 = vmul.f32 %v4174_v56, %v14222_v23 }
 0xcac   :  { %14220 = vst [vmem:[#allocation46_spill] sm:$0xff] %v12341_v61 }
 0xcad   :  { %4629 = vmatmul.f32.gmra.mxu0 %v12124_v20  ;;  %4739 = vmatmul.f32.gmra.mxu1 %v12128_v1 }
 0xcae   :  { %4448 = vmatmul.f32.gmra.mxu2 %v14223_v40  ;;  %4558 = vmatmul.f32.gmra.mxu3 %v12347_v21 }
 0xcb1   :  { %v4401_v0 = vpop.f32.mrf.mxu2  ;;  %v4511_v12 = vpop.f32.mrf.mxu3 }
 0xcb2   :  { %v12353_v57 = vadd.f32 %v4511_v12, %v4398_v52  ;;  %v12355_v30 = vpop.f32.mrf.mxu0  ;;  %v12357_v46 = vpop.f32.mrf.mxu1 }
 0xcb4   :  { %14224 = vst [vmem:[#allocation70_spill] sm:$0xff] %v12353_v57 }
 0xcb5   :  { %4632 = vmatmul.f32.gmra.mxu0 %v12138_v4  ;;  %4742 = vmatmul.f32.gmra.mxu1 %v12142_v53 }
 0xcb6   :  { %4561 = vmatmul.f32.gmra.mxu3 %v14223_v40  ;;  %4807 = vmatmul.f32.vlgmr.msra.gmra.mxu2 %v11911_v45 }
 0xcb9   :  { %v4404_v56 = vpop.f32.mrf.mxu2  ;;  %v4514_v54 = vpop.f32.mrf.mxu3 }
 0xcba   :  { %v12363_v23 = vadd.f32 %v4514_v54, %v4401_v0  ;;  %v12365_v61 = vpop.f32.mrf.mxu0  ;;  %v12367_v52 = vpop.f32.mrf.mxu1 }
 0xcbc   :  { %14225 = vst [vmem:[#allocation40_spill] sm:$0xff] %v12363_v23 }
 0xcbd   :  { %4635 = vmatmul.f32.gmra.mxu0 %v12149_v24  ;;  %4745 = vmatmul.f32.gmra.mxu1 %v12153_v37 }
 0xcbe   :  { %4810 = vmatmul.f32.gmra.mxu2 %v11926_v34  ;;  %4920 = vmatmul.f32.vlgmr.msra.gmra.mxu3 %v11930_v50 }
 0xcc1   :  { %v4407_v12 = vpop.f32.mrf.mxu2  ;;  %v4517_v57 = vpop.f32.mrf.mxu3 }
 0xcc2   :  { %v12373_v40 = vadd.f32 %v4517_v57, %v4404_v56  ;;  %v12375_v45 = vpop.f32.mrf.mxu0  ;;  %v12377_v0 = vpop.f32.mrf.mxu1 }
 0xcc4   :  { %14226 = vst [vmem:[#allocation79_spill] sm:$0xff] %v12373_v40 }
 0xcc5   :  { %4638 = vmatmul.f32.gmra.mxu0 %v12163_v28  ;;  %4748 = vmatmul.f32.gmra.mxu1 %v12167_v63 }
 0xcc6   :  { %4813 = vmatmul.f32.gmra.mxu2 %v11941_v17  ;;  %4923 = vmatmul.f32.gmra.mxu3 %v11945_v9 }
 0xcc9   :  { %v4410_v54 = vpop.f32.mrf.mxu2  ;;  %v4520_v34 = vpop.f32.mrf.mxu3 }
 0xcca   :  { %v12383_v23 = vadd.f32 %v4520_v34, %v4407_v12  ;;  %v12385_v50 = vpop.f32.mrf.mxu0  ;;  %v12387_v57 = vpop.f32.mrf.mxu1 }
 0xccc   :  { %14227 = vst [vmem:[#allocation145_spill] sm:$0xff] %v12383_v23 }
 0xccd   :  { %4641 = vmatmul.f32.gmra.mxu0 %v12177_v44  ;;  %4751 = vmatmul.f32.gmra.mxu1 %v12181_v2 }
 0xcce   :  { %4816 = vmatmul.f32.gmra.mxu2 %v11956_v39  ;;  %4926 = vmatmul.f32.gmra.mxu3 %v11960_v11 }
 0xcd1   :  { %v4413_v56 = vpop.f32.mrf.mxu2  ;;  %v4523_v17 = vpop.f32.mrf.mxu3 }
 0xcd2   :  { %v12393_v40 = vadd.f32 %v4523_v17, %v4410_v54  ;;  %v12395_v9 = vpop.f32.mrf.mxu0  ;;  %v12397_v12 = vpop.f32.mrf.mxu1 }
 0xcd4   :  { %14228 = vst [vmem:[#allocation78_spill] sm:$0xff] %v12393_v40 }
 0xcd5   :  { %4644 = vmatmul.f32.gmra.mxu0 %v12191_v19  ;;  %4754 = vmatmul.f32.gmra.mxu1 %v12195_v31 }
 0xcd6   :  { %4819 = vmatmul.f32.gmra.mxu2 %v11971_v6  ;;  %4929 = vmatmul.f32.gmra.mxu3 %v11975_v48 }
 0xcd9   :  { %v4416_v34 = vpop.f32.mrf.mxu2  ;;  %v4526_v39 = vpop.f32.mrf.mxu3 }
 0xcda   :  { %v12403_v23 = vadd.f32 %v4526_v39, %v4413_v56  ;;  %v12405_v11 = vpop.f32.mrf.mxu0  ;;  %v12407_v54 = vpop.f32.mrf.mxu1 }
 0xcdb   :  { %14229 = vst [vmem:[#allocation139_spill] sm:$0xff] %v12405_v11 }
 0xcdd   :  { %4647 = vmatmul.f32.gmra.mxu0 %v12205_v29  ;;  %4757 = vmatmul.f32.gmra.mxu1 %v12209_v33 }
 0xcde   :  { %4822 = vmatmul.f32.gmra.mxu2 %v11986_v26  ;;  %4932 = vmatmul.f32.gmra.mxu3 %v11990_v47 }
 0xce1   :  { %v4419_v17 = vpop.f32.mrf.mxu2  ;;  %v4529_v6 = vpop.f32.mrf.mxu3 }
 0xce2   :  { %v12413_v40 = vadd.f32 %v4529_v6, %v4416_v34  ;;  %v12415_v48 = vpop.f32.mrf.mxu0  ;;  %v12417_v56 = vpop.f32.mrf.mxu1 }
 0xce3   :  { %14230 = vst [vmem:[#allocation57_spill] sm:$0xff] %v12415_v48 }
 0xce5   :  { %4650 = vmatmul.f32.gmra.mxu0 %v12219_v51  ;;  %4760 = vmatmul.f32.gmra.mxu1 %v12223_v8 }
 0xce6   :  { %4825 = vmatmul.f32.gmra.mxu2 %v12001_v3  ;;  %4935 = vmatmul.f32.gmra.mxu3 %v12005_v5 }
 0xce9   :  { %v4422_v39 = vpop.f32.mrf.mxu2  ;;  %v4532_v26 = vpop.f32.mrf.mxu3 }
 0xcea   :  { %v12423_v11 = vadd.f32 %v4532_v26, %v4419_v17  ;;  %v12425_v47 = vpop.f32.mrf.mxu0  ;;  %v12427_v34 = vpop.f32.mrf.mxu1 }
 0xceb   :  { %14231 = vst [vmem:[#allocation42_spill] sm:$0xff] %v12425_v47 }
 0xced   :  { %4653 = vmatmul.f32.gmra.mxu0 %v12233_v36  ;;  %4763 = vmatmul.f32.gmra.mxu1 %v12237_v22 }
 0xcee   :  { %4828 = vmatmul.f32.gmra.mxu2 %v12016_v59  ;;  %4938 = vmatmul.f32.gmra.mxu3 %v12020_v35 }
 0xcf1   :  { %v4425_v6 = vpop.f32.mrf.mxu2  ;;  %v4535_v3 = vpop.f32.mrf.mxu3 }
 0xcf2   :  { %v12433_v48 = vadd.f32 %v4535_v3, %v4422_v39  ;;  %v12435_v5 = vpop.f32.mrf.mxu0  ;;  %v12437_v17 = vpop.f32.mrf.mxu1 }
 0xcf3   :  { %14232 = vst [vmem:[#allocation68_spill] sm:$0xff] %v12435_v5 }
 0xcf4   :  { %14233 = vst [vmem:[#allocation114_spill] sm:$0xff] %v12437_v17 }
 0xcf5   :  { %4656 = vmatmul.f32.gmra.mxu0 %v12247_v18  ;;  %4766 = vmatmul.f32.gmra.mxu1 %v12251_v55 }
 0xcf6   :  { %4831 = vmatmul.f32.gmra.mxu2 %v12031_v62  ;;  %4941 = vmatmul.f32.gmra.mxu3 %v12035_v42 }
 0xcf9   :  { %v4428_v26 = vpop.f32.mrf.mxu2  ;;  %v4538_v59 = vpop.f32.mrf.mxu3 }
 0xcfa   :  { %v12443_v47 = vadd.f32 %v4538_v59, %v4425_v6  ;;  %v12445_v35 = vpop.f32.mrf.mxu0  ;;  %v12447_v39 = vpop.f32.mrf.mxu1  ;;  %v14238_v59 = vld [vmem:[#allocation122_spill] sm:$0xff] }
 0xcfb   :  { %14234 = vst [vmem:[#allocation67_spill] sm:$0xff] %v12445_v35 }
 0xcfc   :  { %14235 = vst [vmem:[#allocation56_spill] sm:$0xff] %v12447_v39  ;;  %v14239_v39 = vld [vmem:[#allocation38_spill] sm:$0xff] }
 0xcfd   :  { %4659 = vmatmul.f32.gmra.mxu0 %v12261_v25  ;;  %4769 = vmatmul.f32.gmra.mxu1 %v12265_v32 }
 0xcfe   :  { %4834 = vmatmul.f32.gmra.mxu2 %v12046_v60  ;;  %4944 = vmatmul.f32.gmra.mxu3 %v12050_v13 }
 0xd01   :  { %v4431_v3 = vpop.f32.mrf.mxu2  ;;  %v4541_v62 = vpop.f32.mrf.mxu3 }
 0xd02   :  { %v12453_v17 = vadd.f32 %v4541_v62, %v4428_v26  ;;  %v12455_v42 = vpop.f32.mrf.mxu0  ;;  %v12457_v6 = vpop.f32.mrf.mxu1  ;;  %v14243_v62 = vld [vmem:[#allocation124_spill] sm:$0xff] }
 0xd03   :  { %14236 = vst [vmem:[#allocation36_spill] sm:$0xff] %v12455_v42  ;;  %v14244_v42 = vld [vmem:[#allocation108_spill] sm:$0xff] }
 0xd04   :  { %14237 = vst [vmem:[#allocation138_spill] sm:$0xff] %v12457_v6 }
 0xd05   :  { %4662 = vmatmul.f32.gmra.mxu0 %v12275_v15  ;;  %4772 = vmatmul.f32.gmra.mxu1 %v14238_v59 }
 0xd06   :  { %4837 = vmatmul.f32.gmra.mxu2 %v14196_v58  ;;  %4947 = vmatmul.f32.gmra.mxu3 %v14239_v39 }
 0xd09   :  { %v4434_v5 = vpop.f32.mrf.mxu2  ;;  %v4544_v60 = vpop.f32.mrf.mxu3 }
 0xd0a   :  { %v12463_v35 = vadd.f32 %v4544_v60, %v4431_v3  ;;  %v12465_v13 = vpop.f32.mrf.mxu0  ;;  %v12467_v26 = vpop.f32.mrf.mxu1  ;;  %v14248_v60 = vld [vmem:[#allocation88_spill] sm:$0xff] }
 0xd0b   :  { %14241 = vst [vmem:[#allocation34_spill] sm:$0xff] %v12465_v13 }
 0xd0c   :  { %14240 = vst [vmem:[#allocation102_spill] sm:$0xff] %v12463_v35  ;;  %v14249_v35 = vld [vmem:[#allocation127_spill] sm:$0xff] }
 0xd0d   :  { %14242 = vst [vmem:[#allocation135_spill] sm:$0xff] %v12467_v26  ;;  %4665 = vmatmul.f32.gmra.mxu0 %v14243_v62  ;;  %4775 = vmatmul.f32.gmra.mxu1 %v14244_v42 }
 0xd0e   :  { %4840 = vmatmul.f32.gmra.mxu2 %v12076_v27  ;;  %4950 = vmatmul.f32.gmra.mxu3 %v12080_v10 }
 0xd11   :  { %v4437_v6 = vpop.f32.mrf.mxu2  ;;  %v4547_v58 = vpop.f32.mrf.mxu3 }
 0xd12   :  { %v12473_v59 = vadd.f32 %v4547_v58, %v4434_v5  ;;  %v12475_v39 = vpop.f32.mrf.mxu0  ;;  %v12477_v3 = vpop.f32.mrf.mxu1  ;;  %v14251_v58 = vld [vmem:[#allocation128_spill] sm:$0xff] }
 0xd13   :  { %14246 = vst [vmem:[#allocation134_spill] sm:$0xff] %v12475_v39 }
 0xd14   :  { %14245 = vst [vmem:[#allocation95_spill] sm:$0xff] %v12473_v59  ;;  %v14252_v59 = vld [vmem:[#allocation130_spill] sm:$0xff] }
 0xd15   :  { %14247 = vst [vmem:[#allocation137_spill] sm:$0xff] %v12477_v3  ;;  %4668 = vmatmul.f32.gmra.mxu0 %v14248_v60  ;;  %4778 = vmatmul.f32.gmra.mxu1 %v14249_v35 }
 0xd16   :  { %4843 = vmatmul.f32.gmra.mxu2 %v12091_v38  ;;  %4953 = vmatmul.f32.gmra.mxu3 %v14212_v41 }
 0xd19   :  { %v4440_v26 = vpop.f32.mrf.mxu2  ;;  %v4550_v27 = vpop.f32.mrf.mxu3 }
 0xd1a   :  { %v12483_v13 = vadd.f32 %v4550_v27, %v4437_v6  ;;  %v12485_v10 = vpop.f32.mrf.mxu0  ;;  %v12487_v5 = vpop.f32.mrf.mxu1 }
 0xd1c   :  { %14250 = vst [vmem:[#allocation140_spill] sm:$0xff] %v12483_v13 }
 0xd1d   :  { %4671 = vmatmul.f32.gmra.mxu0 %v14251_v58  ;;  %4781 = vmatmul.f32.gmra.mxu1 %v14252_v59 }
 0xd1e   :  { %4846 = vmatmul.f32.gmra.mxu2 %v14218_v16  ;;  %4956 = vmatmul.f32.gmra.mxu3 %v14219_v43 }
 0xd21   :  { %v4443_v3 = vpop.f32.mrf.mxu2  ;;  %v4553_v38 = vpop.f32.mrf.mxu3 }
 0xd22   :  { %v12493_v39 = vadd.f32 %v4553_v38, %v4440_v26  ;;  %v12495_v41 = vpop.f32.mrf.mxu0  ;;  %v12497_v6 = vpop.f32.mrf.mxu1 }
 0xd23   :  { %14254 = vst [vmem:[#allocation112_spill] sm:$0xff] %v12495_v41 }
 0xd24   :  { %14253 = vst [vmem:[#allocation136_spill] sm:$0xff] %v12493_v39 }
 0xd25   :  { %4674 = vmatmul.f32.gmra.mxu0 %v12331_v7  ;;  %4784 = vmatmul.f32.gmra.mxu1 %v12335_v14 }
 0xd26   :  { %4849 = vmatmul.f32.gmra.mxu2 %v12124_v20  ;;  %4959 = vmatmul.f32.gmra.mxu3 %v12128_v1 }
 0xd29   :  { %v4446_v27 = vpop.f32.mrf.mxu2  ;;  %v4556_v16 = vpop.f32.mrf.mxu3 }
 0xd2a   :  { %v12503_v13 = vadd.f32 %v4556_v16, %v4443_v3  ;;  %v12505_v43 = vpop.f32.mrf.mxu0  ;;  %v12507_v26 = vpop.f32.mrf.mxu1 }
 0xd2b   :  { %14256 = vst [vmem:[#allocation94_spill] sm:$0xff] %v12505_v43 }
 0xd2c   :  { %14255 = vst [vmem:[#allocation96_spill] sm:$0xff] %v12503_v13 }
 0xd2d   :  { %4787 = vmatmul.f32.gmra.mxu1 %v12347_v21 }
 0xd2e   :  { %4852 = vmatmul.f32.gmra.mxu2 %v12138_v4  ;;  %4962 = vmatmul.f32.gmra.mxu3 %v12142_v53  ;;  %v14261_v53 = vld [vmem:[#allocation66_spill] sm:$0xff] }
 0xd31   :  { %v4449_v38 = vpop.f32.mrf.mxu2  ;;  %v4559_v39 = vpop.f32.mrf.mxu3 }
 0xd32   :  { %v12512_v41 = vadd.f32 %v4559_v39, %v4446_v27  ;;  %v12514_v20 = vpop.f32.mrf.mxu0  ;;  %v12516_v1 = vpop.f32.mrf.mxu1  ;;  %v4583_v39 = vadd.f32 %v12343_v49, %v14261_v53 }
 0xd33   :  { %14258 = vst [vmem:[#allocation100_spill] sm:$0xff] %v12514_v20 }
 0xd34   :  { %14257 = vst [vmem:[#allocation83_spill] sm:$0xff] %v12512_v41 }
 0xd35   :  { %14259 = vst [vmem:[#allocation98_spill] sm:$0xff] %v12516_v1 }
 0xd36   :  { %4855 = vmatmul.f32.gmra.mxu2 %v12149_v24  ;;  %4965 = vmatmul.f32.gmra.mxu3 %v12153_v37  ;;  %v4696_v24 = vadd.f32 %v12357_v46, %v4583_v39 }
 0xd39   :  { %v4562_v3 = vpop.f32.mrf.mxu3  ;;  %v4808_v16 = vpop.f32.mrf.mxu2 }
 0xd3a   :  { %v12520_v13 = vadd.f32 %v4562_v3, %v4449_v38  ;;  %v12522_v43 = vpop.f32.mrf.mxu0  ;;  %v12524_v4 = vpop.f32.mrf.mxu1 }
 0xd3c   :  { %14260 = vst [vmem:[#allocation60_spill] sm:$0xff] %v12520_v13 }
 0xd3e   :  { %4858 = vmatmul.f32.gmra.mxu2 %v12163_v28  ;;  %4968 = vmatmul.f32.gmra.mxu3 %v12167_v63  ;;  %v14263_v28 = vld [vmem:[#allocation99_spill] sm:$0xff] }
 0xd3f   :  { %v4586_v63 = vadd.f32 %v12355_v30, %v14263_v28 }
 0xd41   :  { %v4811_v27 = vpop.f32.mrf.mxu2  ;;  %v4921_v41 = vpop.f32.mrf.mxu3  ;;  %v4699_v13 = vadd.f32 %v12367_v52, %v4586_v63 }
 0xd42   :  { %v4922_v37 = vadd.f32 %v4921_v41, %v4808_v16  ;;  %v4639_v20 = vpop.f32.mrf.mxu0  ;;  %v12531_v1 = vpop.f32.mrf.mxu1 }
 0xd43   :  { %14262 = vst [vmem:[#allocation118_spill] sm:$0xff] %v12531_v1  ;;  %v4640_v38 = vadd.f32 %v4639_v20, %v12403_v23 }
 0xd44   :  { %v12534_v3 = vadd.f32 %v4922_v37, %v4696_v24 }
 0xd46   :  { %4861 = vmatmul.f32.gmra.mxu2 %v12177_v44  ;;  %4971 = vmatmul.f32.gmra.mxu3 %v12181_v2  ;;  %v14264_v44 = vld [vmem:[#allocation62_spill] sm:$0xff] }
 0xd47   :  { %v4589_v2 = vadd.f32 %v12365_v61, %v14264_v44 }
 0xd49   :  { %v4814_v49 = vpop.f32.mrf.mxu2  ;;  %v4924_v53 = vpop.f32.mrf.mxu3  ;;  %v4702_v52 = vadd.f32 %v12377_v0, %v4589_v2 }
 0xd4a   :  { %v4925_v46 = vadd.f32 %v4924_v53, %v4811_v27  ;;  %v4642_v41 = vpop.f32.mrf.mxu0  ;;  %v4752_v16 = vpop.f32.mrf.mxu1 }
 0xd4b   :  { %v4643_v39 = vadd.f32 %v4642_v41, %v12413_v40  ;;  %v12542_v1 = vadd.f32 %v4752_v16, %v4640_v38 }
 0xd4c   :  { %v12544_v23 = vadd.f32 %v4925_v46, %v4699_v13 }
 0xd4e   :  { %4864 = vmatmul.f32.gmra.mxu2 %v12191_v19  ;;  %4974 = vmatmul.f32.gmra.mxu3 %v12195_v31  ;;  %v14265_v19 = vld [vmem:[#allocation97_spill] sm:$0xff] }
 0xd4f   :  { %v4592_v31 = vadd.f32 %v12375_v45, %v14265_v19 }
 0xd51   :  { %v4817_v30 = vpop.f32.mrf.mxu2  ;;  %v4927_v20 = vpop.f32.mrf.mxu3  ;;  %v4705_v0 = vadd.f32 %v12387_v57, %v4592_v31 }
 0xd52   :  { %v4928_v27 = vadd.f32 %v4927_v20, %v4814_v49  ;;  %v4645_v24 = vpop.f32.mrf.mxu0  ;;  %v4755_v37 = vpop.f32.mrf.mxu1 }
 0xd53   :  { %v4646_v40 = vadd.f32 %v4645_v24, %v12423_v11  ;;  %v12552_v38 = vadd.f32 %v4755_v37, %v4643_v39 }
 0xd54   :  { %v12554_v13 = vadd.f32 %v4928_v27, %v4702_v52 }
 0xd56   :  { %4867 = vmatmul.f32.gmra.mxu2 %v12205_v29  ;;  %4977 = vmatmul.f32.gmra.mxu3 %v12209_v33  ;;  %v14266_v29 = vld [vmem:[#allocation65_spill] sm:$0xff] }
 0xd57   :  { %v4595_v33 = vadd.f32 %v12385_v50, %v14266_v29 }
 0xd59   :  { %v4820_v61 = vpop.f32.mrf.mxu2  ;;  %v4930_v28 = vpop.f32.mrf.mxu3  ;;  %v4708_v57 = vadd.f32 %v12397_v12, %v4595_v33 }
 0xd5a   :  { %v4931_v63 = vadd.f32 %v4930_v28, %v4817_v30  ;;  %v4648_v49 = vpop.f32.mrf.mxu0  ;;  %v4758_v53 = vpop.f32.mrf.mxu1 }
 0xd5b   :  { %v4649_v11 = vadd.f32 %v4648_v49, %v12433_v48  ;;  %v12562_v46 = vadd.f32 %v4758_v53, %v4646_v40  ;;  %v14271_v49 = vld [vmem:[#allocation57_spill] sm:$0xff] }
 0xd5c   :  { %v12564_v41 = vadd.f32 %v4931_v63, %v4705_v0 }
 0xd5e   :  { %4870 = vmatmul.f32.gmra.mxu2 %v12219_v51  ;;  %4980 = vmatmul.f32.gmra.mxu3 %v12223_v8  ;;  %v14267_v51 = vld [vmem:[#allocation116_spill] sm:$0xff] }
 0xd5f   :  { %v4598_v8 = vadd.f32 %v12395_v9, %v14267_v51 }
 0xd61   :  { %v4823_v45 = vpop.f32.mrf.mxu2  ;;  %v4933_v16 = vpop.f32.mrf.mxu3  ;;  %v4711_v12 = vadd.f32 %v12407_v54, %v4598_v8  ;;  %v14275_v8 = vld [vmem:[#allocation46_spill] sm:$0xff] }
 0xd62   :  { %v4934_v39 = vadd.f32 %v4933_v16, %v4820_v61  ;;  %v4651_v44 = vpop.f32.mrf.mxu0  ;;  %v4761_v2 = vpop.f32.mrf.mxu1 }
 0xd63   :  { %v4652_v48 = vadd.f32 %v4651_v44, %v12443_v47  ;;  %v12572_v30 = vadd.f32 %v4761_v2, %v4649_v11  ;;  %v14273_v2 = vmov 0.0  }
 0xd64   :  { %v12574_v20 = vadd.f32 %v4934_v39, %v4708_v57 }
 0xd66   :  { %4873 = vmatmul.f32.gmra.mxu2 %v12233_v36  ;;  %4983 = vmatmul.f32.gmra.mxu3 %v12237_v22  ;;  %v14268_v36 = vld [vmem:[#allocation93_spill] sm:$0xff]  ;;  %v14269_v22 = vld [vmem:[#allocation139_spill] sm:$0xff] }
 0xd67   :  { %v4601_v9 = vadd.f32 %v14269_v22, %v14268_v36  ;;  %v14280_v36 = vld [vmem:[#allocation112_spill] sm:$0xff] }
 0xd69   :  { %v4826_v50 = vpop.f32.mrf.mxu2  ;;  %v4936_v52 = vpop.f32.mrf.mxu3  ;;  %v4714_v54 = vadd.f32 %v12417_v56, %v4601_v9 }
 0xd6a   :  { %v4937_v27 = vadd.f32 %v4936_v52, %v4823_v45  ;;  %v4654_v24 = vpop.f32.mrf.mxu0  ;;  %v4764_v37 = vpop.f32.mrf.mxu1  ;;  %v14272_v45 = vld [vmem:[#allocation122_spill] sm:$0xff] }
 0xd6b   :  { %v4655_v47 = vadd.f32 %v4654_v24, %v12453_v17  ;;  %v12582_v40 = vadd.f32 %v4764_v37, %v4652_v48  ;;  %v14274_v48 = vld [vmem:[#allocation70_spill] sm:$0xff] }
 0xd6c   :  { %v12584_v19 = vadd.f32 %v4937_v27, %v4711_v12  ;;  %v4625_v51 = vadd.f32 %v12485_v10, %v14274_v48  ;;  %v14277_v12 = vld [vmem:[#allocation132_spill] sm:$0xff]  ;;  %v14278_v27 = vld [vmem:[#allocation34_spill] sm:$0xff]  ;;  %v14281_v10 = vld [vmem:[#allocation109_spill] sm:$0xff] }
 0xd6d   :  { %v4619_v24 = vadd.f32 %v14278_v27, %v14277_v12  ;;  %v14292_v12 = vld [vmem:[#allocation56_spill] sm:$0xff] }
 0xd6e   :  { %4876 = vmatmul.f32.gmra.mxu2 %v12247_v18  ;;  %4986 = vmatmul.f32.gmra.mxu3 %v12251_v55  ;;  %v14270_v18 = vld [vmem:[#allocation120_spill] sm:$0xff]  ;;  %v4738_v52 = vadd.f32 %v12497_v6, %v4625_v51  ;;  %v14287_v51 = vld [vmem:[#allocation111_spill] sm:$0xff] }
 0xd6f   :  { %v4604_v55 = vadd.f32 %v14271_v49, %v14270_v18 }
 0xd71   :  { %v4829_v31 = vpop.f32.mrf.mxu2  ;;  %v4939_v61 = vpop.f32.mrf.mxu3  ;;  %v4717_v29 = vadd.f32 %v12427_v34, %v4604_v55  ;;  %v12636_v55 = vld [vmem:[%s13302_s17] ss:$0 sm:$0xff] }
 0xd72   :  { %v4940_v28 = vadd.f32 %v4939_v61, %v4826_v50  ;;  %v4767_v0 = vpop.f32.mrf.mxu1  ;;  %v14282_v61 = vld [vmem:[#allocation36_spill] sm:$0xff] }
 0xd73   :  { %v12591_v63 = vadd.f32 %v4767_v0, %v4655_v47  ;;  %v14279_v47 = vld [vmem:[#allocation40_spill] sm:$0xff] }
 0xd74   :  { %v12593_v17 = vadd.f32 %v4940_v28, %v4714_v54  ;;  %v4628_v22 = vadd.f32 %v14280_v36, %v14279_v47  ;;  %v4616_v54 = vadd.f32 %v14282_v61, %v14281_v10  ;;  %v14283_v28 = vld [vmem:[#allocation137_spill] sm:$0xff]  ;;  %v14296_v61 = vld [vmem:[#allocation98_spill] sm:$0xff] }
 0xd75   :  { %v4732_v0 = vadd.f32 %v14283_v28, %v4619_v24  ;;  %v14293_v24 = vld [vmem:[#allocation79_spill] sm:$0xff] }
 0xd76   :  { %4879 = vmatmul.f32.gmra.mxu2 %v12261_v25  ;;  %4989 = vmatmul.f32.gmra.mxu3 %v12265_v32  ;;  %v4741_v49 = vadd.f32 %v12507_v26, %v4628_v22  ;;  %v14288_v26 = vld [vmem:[#allocation68_spill] sm:$0xff] }
 0xd79   :  { %v12599_v53 = vpop.f32.mrf.mxu2  ;;  %v4942_v11 = vpop.f32.mrf.mxu3 }
 0xd7a   :  { %v4943_v33 = vadd.f32 %v4942_v11, %v4829_v31 }
 0xd7c   :  { %v12602_v56 = vadd.f32 %v4943_v33, %v4717_v29  ;;  %v14284_v33 = vld [vmem:[#allocation126_spill] sm:$0xff] }
 0xd7e   :  { %4882 = vmatmul.f32.gmra.mxu2 %v12275_v15  ;;  %4992 = vmatmul.f32.gmra.mxu3 %v14272_v45  ;;  %v14285_v45 = vld [vmem:[#allocation67_spill] sm:$0xff] }
 0xd81   :  { %v4835_v16 = vpop.f32.mrf.mxu2  ;;  %v4945_v57 = vpop.f32.mrf.mxu3 }
 0xd86   :  { %4885 = vmatmul.f32.gmra.mxu2 %v14243_v62  ;;  %4995 = vmatmul.f32.gmra.mxu3 %v14244_v42 }
 0xd89   :  { %v4838_v32 = vpop.f32.mrf.mxu2  ;;  %v4948_v25 = vpop.f32.mrf.mxu3 }
 0xd8e   :  { %4888 = vmatmul.f32.gmra.mxu2 %v14248_v60  ;;  %4998 = vmatmul.f32.gmra.mxu3 %v14249_v35 }
 0xd91   :  { %v4841_v34 = vpop.f32.mrf.mxu2  ;;  %v4951_v39 = vpop.f32.mrf.mxu3 }
 0xd96   :  { %4891 = vmatmul.f32.gmra.mxu2 %v14251_v58  ;;  %5001 = vmatmul.f32.gmra.mxu3 %v14252_v59 }
 0xd99   :  { %v4844_v15 = vpop.f32.mrf.mxu2  ;;  %v4954_v44 = vpop.f32.mrf.mxu3 }
 0xd9e   :  { %4894 = vmatmul.f32.gmra.mxu2 %v12331_v7  ;;  %5004 = vmatmul.f32.gmra.mxu3 %v12335_v14  ;;  %v14276_v14 = vld [vmem:[#allocation134_spill] sm:$0xff] }
 0xd9f   :  { %v4622_v50 = vadd.f32 %v14276_v14, %v14275_v8  ;;  %v4949_v8 = vadd.f32 %v4948_v25, %v4835_v16  ;;  %v14289_v14 = vld [vmem:[#allocation138_spill] sm:$0xff]  ;;  %v4946_v25 = vadd.f32 %v4945_v57, %v12599_v53 }
 0xda1   :  { %v4847_v62 = vpop.f32.mrf.mxu2  ;;  %v4957_v42 = vpop.f32.mrf.mxu3  ;;  %v4735_v37 = vadd.f32 %v12487_v5, %v4622_v50  ;;  %v4955_v5 = vadd.f32 %v4954_v44, %v4841_v34 }
 0xda2   :  { %v4958_v9 = vadd.f32 %v4957_v42, %v4844_v15  ;;  %v4613_v15 = vadd.f32 %v14285_v45, %v14284_v33 }
 0xda4   :  { %v4726_v50 = vadd.f32 %v14289_v14, %v4613_v15 }
 0xda6   :  { %5007 = vmatmul.f32.gmra.mxu3 %v12347_v21  ;;  %4897 = vmatmul.f32.gmra.mxu2 %v14273_v2 }
 0xda9   :  { %v4850_v60 = vpop.f32.mrf.mxu2  ;;  %v4960_v35 = vpop.f32.mrf.mxu3 }
 0xdaa   :  { %v4961_v21 = vadd.f32 %v4960_v35, %v4847_v62  ;;  %v14286_v62 = vld [vmem:[#allocation135_spill] sm:$0xff]  ;;  %v5029_v35 = vadd.f32 %v4958_v9, %v4732_v0 }
 0xdab   :  { %v4729_v42 = vadd.f32 %v14286_v62, %v4616_v54 }
 0xdac   :  { %v5030_v11 = vadd.f32 %v4961_v21, %v4735_v37  ;;  %v14294_v37 = vld [vmem:[#allocation94_spill] sm:$0xff]  ;;  %v5064_v36 = vmul.f32 %v12636_v55, %v5029_v35 }
 0xdad   :  { %v4631_v16 = vadd.f32 %v14294_v37, %v14293_v24  ;;  %v5057_v37 = vmul.f32 %v12636_v55, %v12584_v19  ;;  %v14301_v19 = vld [vmem:[#allocation118_spill] sm:$0xff] }
 0xdae   :  { %5010 = vmatmul.f32.gmra.mxu3 %v14273_v2  ;;  %4900 = vmatmul.f32.gmra.mxu2 %v14273_v2  ;;  %v5065_v34 = vmul.f32 %v12636_v55, %v5030_v11 }
 0xdaf   :  { %v4744_v54 = vadd.f32 %v14296_v61, %v4631_v16 }
 0xdb1   :  { %v4853_v58 = vpop.f32.mrf.mxu2  ;;  %v4963_v59 = vpop.f32.mrf.mxu3 }
 0xdb2   :  { %v4964_v7 = vadd.f32 %v4963_v59, %v4850_v60  ;;  %v4952_v60 = vadd.f32 %v4951_v39, %v4838_v32  ;;  %v14290_v32 = vld [vmem:[#allocation86_spill] sm:$0xff] }
 0xdb3   :  { %v14291_v39 = vld [vmem:[#allocation42_spill] sm:$0xff] }
 0xdb4   :  { %v5031_v31 = vadd.f32 %v4964_v7, %v4738_v52  ;;  %v4610_v7 = vadd.f32 %v14288_v26, %v14287_v51  ;;  %v5028_v52 = vadd.f32 %v4955_v5, %v4729_v42  ;;  %v4607_v21 = vadd.f32 %v14291_v39, %v14290_v32  ;;  %v12689_v26 = vld [vmem:[%s14297_s0 + $0x8] sm:$0xff] }
 0xdb5   :  { %v5027_v47 = vadd.f32 %v4952_v60, %v4726_v50  ;;  %v5059_v32 = vmul.f32 %v12636_v55, %v12602_v56 }
 0xdb6   :  { %5013 = vmatmul.f32.gmra.mxu3 %v14273_v2  ;;  %v5066_v59 = vmul.f32 %v12636_v55, %v5031_v31  ;;  %v4723_v27 = vadd.f32 %v14292_v12, %v4610_v7  ;;  %v14295_v31 = vld [vmem:[#allocation114_spill] sm:$0xff] }
 0xdb7   :  { %v4720_v10 = vadd.f32 %v14295_v31, %v4607_v21  ;;  %v5062_v33 = vmul.f32 %v12636_v55, %v5027_v47 }
 0xdb8   :  { %v5026_v28 = vadd.f32 %v4949_v8, %v4723_v27 }
 0xdb9   :  { %v4856_v18 = vpop.f32.mrf.mxu2  ;;  %v4966_v6 = vpop.f32.mrf.mxu3  ;;  %v5025_v57 = vadd.f32 %v4946_v25, %v4720_v10 }
 0xdba   :  { %v4967_v29 = vadd.f32 %v4966_v6, %v4853_v58  ;;  %v12650_v58 = vld [vmem:[%s13303_s18] ss:$0 sm:$0xff]  ;;  %v5061_v42 = vmul.f32 %v12636_v55, %v5026_v28 }
 0xdbb   :  { %v5101_v9 = vadd.f32 %v12650_v58, %v5066_v59  ;;  %v5100_v53 = vadd.f32 %v12650_v58, %v5065_v34  ;;  %v5099_v62 = vadd.f32 %v12650_v58, %v5064_v36  ;;  %v14298_v59 = vld [vmem:[#allocation145_spill] sm:$0xff]  ;;  %v5060_v7 = vmul.f32 %v12636_v55, %v5025_v57 }
 0xdbc   :  { %v5032_v48 = vadd.f32 %v4967_v29, %v4741_v49  ;;  %v5063_v49 = vmul.f32 %v12636_v55, %v5028_v52  ;;  %v12668_v29 = vld [vmem:[%s14297_s0 + $0x18] sm:$0xff]  ;;  %v5097_v14 = vadd.f32 %v12650_v58, %v5062_v33  ;;  %v5096_v12 = vadd.f32 %v12650_v58, %v5061_v42 }
 0xdbd   :  { %v5133_v15 = vmax.f32 %v5101_v9, 0.0  ;;  %5603 = vmatpush.msrb.mxu2 %v12668_v29  ;;  %5668 = vmatpush.msrb.mxu3 %v12668_v29  ;;  %v5132_v60 = vmax.f32 %v5100_v53, 0.0  ;;  %v5131_v8 = vmax.f32 %v5099_v62, 0.0  ;;  %v5095_v56 = vadd.f32 %v12650_v58, %v5060_v7  ;;  %v5151_v7 = vld [vmem:[%s13304_s19] sm:$0xff] }
 0xdbe   :  { %v5067_v44 = vmul.f32 %v12636_v55, %v5032_v48  ;;  %v5098_v35 = vadd.f32 %v12650_v58, %v5063_v49  ;;  %v14299_v48 = vld [vmem:[#allocation100_spill] sm:$0xff]  ;;  %v5129_v24 = vmax.f32 %v5097_v14, 0.0  ;;  %v5128_v16 = vmax.f32 %v5096_v12, 0.0 }
 0xdbf   :  { %v4634_v51 = vadd.f32 %v14299_v48, %v14298_v59  ;;  %v5094_v25 = vadd.f32 %v12650_v58, %v5059_v32  ;;  %v5056_v36 = vmul.f32 %v12636_v55, %v12574_v20  ;;  %v5092_v20 = vadd.f32 %v12650_v58, %v5057_v37  ;;  %v4770_v37 = vpop.f32.mrf.mxu1 }
 0xdc0   :  { %v5102_v22 = vadd.f32 %v12650_v58, %v5067_v44  ;;  %v12699_v44 = vld [vmem:[%s14297_s0] sm:$0xff]  ;;  %v5130_v21 = vmax.f32 %v5098_v35, 0.0  ;;  %v5052_v57 = vmul.f32 %v12636_v55, %v12534_v3 }
 0xdc1   :  { %v4859_v0 = vpop.f32.mrf.mxu2  ;;  %v4969_v6 = vpop.f32.mrf.mxu3  ;;  %v4747_v50 = vadd.f32 %v12524_v4, %v4634_v51  ;;  %v5058_v4 = vmul.f32 %v12636_v55, %v12593_v17  ;;  %v14300_v17 = vld [vmem:[#allocation78_spill] sm:$0xff]  ;;  %v5126_v28 = vmax.f32 %v5094_v25, 0.0 }
 0xdc2   :  { %v5134_v5 = vmax.f32 %v5102_v22, 0.0  ;;  %v4970_v11 = vadd.f32 %v4969_v6, %v4856_v18  ;;  %v12678_v18 = vld [vmem:[%s14297_s0 + $0x10] sm:$0xff]  ;;  %v4637_v47 = vadd.f32 %v12522_v43, %v14300_v17  ;;  %v5127_v22 = vmax.f32 %v5095_v56, 0.0 }
 0xdc3   :  { %5604 = vmatpush.msrb.mxu2 %v12678_v18  ;;  %5669 = vmatpush.msrb.mxu3 %v12678_v18  ;;  %v5093_v9 = vadd.f32 %v12650_v58, %v5058_v4  ;;  %v5055_v43 = vmul.f32 %v12636_v55, %v12564_v41  ;;  %v5124_v41 = vmax.f32 %v5092_v20, 0.0  ;;  %v5087_v48 = vadd.f32 %v12650_v58, %v5052_v57 }
 0xdc4   :  { %v12671_v45 = vadd.f32 %v4970_v11, %v4744_v54  ;;  %5153 = vmatpush.msrb.mxu0 %v5134_v5  ;;  %v4750_v31 = vadd.f32 %v14301_v19, %v4637_v47  ;;  %v5091_v5 = vadd.f32 %v12650_v58, %v5056_v36  ;;  %v5053_v11 = vmul.f32 %v12636_v55, %v12544_v23 }
 0xdc5   :  { %5605 = vmatpush.msrb.mxu2 %v12689_v26  ;;  %5670 = vmatpush.msrb.mxu3 %v12689_v26  ;;  %v5125_v49 = vmax.f32 %v5093_v9, 0.0  ;;  %v5090_v53 = vadd.f32 %v12650_v58, %v5055_v43  ;;  %v5119_v51 = vmax.f32 %v5087_v48, 0.0 }
 0xdc6   :  { %5154 = vmatpush.msrb.mxu0 %v5133_v15  ;;  %v5123_v33 = vmax.f32 %v5091_v5, 0.0  ;;  %v5088_v35 = vadd.f32 %v12650_v58, %v5053_v11 }
 0xdc7   :  { %5606 = vmatpush.msrb.mxu2 %v12699_v44  ;;  %5671 = vmatpush.msrb.mxu3 %v12699_v44 }
 0xdc8   :  { %5155 = vmatpush.msrb.mxu0 %v5132_v60  ;;  %v5122_v60 = vmax.f32 %v5090_v53, 0.0  ;;  %v5120_v3 = vmax.f32 %v5088_v35, 0.0 }
 0xdc9   :  { %v4862_v52 = vpop.f32.mrf.mxu2  ;;  %v4972_v34 = vpop.f32.mrf.mxu3  ;;  %5863 = vmatpush.msra.mxu2 %v12668_v29  ;;  %5928 = vmatpush.msra.mxu3 %v12668_v29 }
 0xdca   :  { %v4973_v39 = vadd.f32 %v4972_v34, %v4859_v0  ;;  %5156 = vmatpush.msrb.mxu0 %v5131_v8  ;;  %v5054_v0 = vmul.f32 %v12636_v55, %v12554_v13 }
 0xdcb   :  { %5864 = vmatpush.msra.mxu2 %v12678_v18  ;;  %5929 = vmatpush.msra.mxu3 %v12678_v18 }
 0xdcc   :  { %v12710_v27 = vadd.f32 %v4973_v39, %v4747_v50  ;;  %5157 = vmatpush.msrb.mxu0 %v5130_v21  ;;  %v5089_v13 = vadd.f32 %v12650_v58, %v5054_v0 }
 0xdcd   :  { %5865 = vmatpush.msra.mxu2 %v12689_v26  ;;  %5930 = vmatpush.msra.mxu3 %v12689_v26 }
 0xdce   :  { %5158 = vmatpush.msrb.mxu0 %v5129_v24  ;;  %v5121_v59 = vmax.f32 %v5089_v13, 0.0  ;;  %v14302_v13 = vld [vmem:[#allocation83_spill] sm:$0xff] }
 0xdcf   :  { %5866 = vmatpush.msra.mxu2 %v12699_v44  ;;  %5931 = vmatpush.msra.mxu3 %v12699_v44 }
 0xdd0   :  { %5159 = vmatpush.msrb.mxu0 %v5128_v16 }
 0xdd1   :  { %v4865_v10 = vpop.f32.mrf.mxu2  ;;  %v4975_v61 = vpop.f32.mrf.mxu3 }
 0xdd2   :  { %v4976_v54 = vadd.f32 %v4975_v61, %v4862_v52  ;;  %5160 = vmatpush.msrb.mxu0 %v5127_v22  ;;  %v4773_v22 = vpop.f32.mrf.mxu1 }
 0xdd4   :  { %v12734_v6 = vadd.f32 %v4976_v54, %v4750_v31  ;;  %5161 = vmatpush.msrb.mxu0 %v5126_v28 }
 0xdd6   :  { %5162 = vmatpush.msrb.mxu0 %v5125_v49 }
 0xdd8   :  { %5163 = vmatpush.msrb.mxu0 %v5124_v41 }
 0xdd9   :  { %v4868_v15 = vpop.f32.mrf.mxu2  ;;  %v4978_v62 = vpop.f32.mrf.mxu3 }
 0xdda   :  { %v4979_v42 = vadd.f32 %v4978_v62, %v4865_v10  ;;  %5164 = vmatpush.msrb.mxu0 %v5123_v33  ;;  %v4776_v10 = vpop.f32.mrf.mxu1 }
 0xddc   :  { %v12745_v23 = vadd.f32 %v4979_v42, %v12542_v1  ;;  %5165 = vmatpush.msrb.mxu0 %v5122_v60  ;;  %v14303_v60 = vld [vmem:[#allocation96_spill] sm:$0xff] }
 0xdde   :  { %5166 = vmatpush.msrb.mxu0 %v5121_v59 }
 0xde0   :  { %5167 = vmatpush.msrb.mxu0 %v5120_v3  ;;  %v14304_v3 = vld [vmem:[#allocation136_spill] sm:$0xff] }
 0xde1   :  { %v4871_v8 = vpop.f32.mrf.mxu2  ;;  %v4981_v14 = vpop.f32.mrf.mxu3 }
 0xde2   :  { %v4982_v50 = vadd.f32 %v4981_v14, %v4868_v15  ;;  %5168 = vmatpush.msrb.mxu0 %v5119_v51  ;;  %v4779_v28 = vpop.f32.mrf.mxu1 }
 0xde3   :  { %5169 = vmatmul.f32.vlgmr.msrb.gmra.mxu0 %v5151_v7 }
 0xde4   :  { %v12752_v1 = vadd.f32 %v4982_v50, %v12552_v38  ;;  %5213 = vmatpush.msra.mxu0 %v12668_v29  ;;  %v14305_v50 = vld [vmem:[#allocation60_spill] sm:$0xff] }
 0xde6   :  { %5214 = vmatpush.msra.mxu0 %v12678_v18 }
 0xde8   :  { %5215 = vmatpush.msra.mxu0 %v12689_v26 }
 0xde9   :  { %v4874_v52 = vpop.f32.mrf.mxu2  ;;  %v4984_v34 = vpop.f32.mrf.mxu3 }
 0xdea   :  { %v4985_v32 = vadd.f32 %v4984_v34, %v4871_v8  ;;  %5216 = vmatpush.msra.mxu0 %v12699_v44  ;;  %v4782_v5 = vpop.f32.mrf.mxu1 }
 0xdeb   :  { %5217 = vmatmul.f32.vlgmr.msra.gmra.mxu0 %v14273_v2 }
 0xdec   :  { %v12760_v39 = vadd.f32 %v4985_v32, %v12562_v46  ;;  %5343 = vmatpush.msrb.mxu0 %v12668_v29  ;;  %v4657_v46 = vpop.f32.mrf.mxu0 }
 0xdee   :  { %5344 = vmatpush.msrb.mxu0 %v12678_v18 }
 0xdf0   :  { %5345 = vmatpush.msrb.mxu0 %v12689_v26 }
 0xdf1   :  { %v4877_v38 = vpop.f32.mrf.mxu2  ;;  %v4987_v21 = vpop.f32.mrf.mxu3 }
 0xdf2   :  { %v4988_v12 = vadd.f32 %v4987_v21, %v4874_v52  ;;  %5346 = vmatpush.msrb.mxu0 %v12699_v44  ;;  %v4785_v57 = vpop.f32.mrf.mxu1 }
 0xdf4   :  { %5473 = vmatpush.msra.mxu0 %v12668_v29  ;;  %v12768_v4 = vadd.f32 %v4988_v12, %v12572_v30  ;;  %v4660_v36 = vpop.f32.mrf.mxu0 }
 0xdf6   :  { %5474 = vmatpush.msra.mxu0 %v12678_v18 }
 0xdf8   :  { %5475 = vmatpush.msra.mxu0 %v12689_v26 }
 0xdf9   :  { %v4880_v2 = vpop.f32.mrf.mxu2  ;;  %v4990_v24 = vpop.f32.mrf.mxu3 }
 0xdfa   :  { %5476 = vmatpush.msra.mxu0 %v12699_v44  ;;  %v4991_v56 = vadd.f32 %v4990_v24, %v4877_v38  ;;  %v4788_v7 = vpop.f32.mrf.mxu1  ;;  %v14306_v38 = vld [vmem:[#allocation140_spill] sm:$0xff] }
 0xdfc   :  { %v12774_v16 = vadd.f32 %v4991_v56, %v12582_v40  ;;  %v4663_v31 = vpop.f32.mrf.mxu0 }
 0xdfd   :  { %v4664_v21 = vadd.f32 %v4663_v31, %v14306_v38 }
 0xe01   :  { %v4883_v25 = vpop.f32.mrf.mxu2  ;;  %v4993_v17 = vpop.f32.mrf.mxu3 }
 0xe02   :  { %v4994_v47 = vadd.f32 %v4993_v17, %v4880_v2 }
 0xe04   :  { %v12777_v30 = vadd.f32 %v4994_v47, %v12591_v63  ;;  %v4666_v54 = vpop.f32.mrf.mxu0 }
 0xe05   :  { %v4667_v51 = vadd.f32 %v4666_v54, %v14304_v3  ;;  %v5075_v3 = vmul.f32 %v12636_v55, %v12774_v16  ;;  %v5072_v16 = vmul.f32 %v12636_v55, %v12752_v1  ;;  %v5069_v1 = vmul.f32 %v12636_v55, %v12710_v27 }
 0xe07   :  { %v4780_v12 = vadd.f32 %v4779_v28, %v4667_v51 }
 0xe09   :  { %v4886_v9 = vpop.f32.mrf.mxu2  ;;  %v4996_v19 = vpop.f32.mrf.mxu3 }
 0xe0c   :  { %v4669_v40 = vpop.f32.mrf.mxu0 }
 0xe0d   :  { %v4670_v35 = vadd.f32 %v4669_v40, %v14303_v60  ;;  %v14307_v40 = vld [vmem:[#allocation95_spill] sm:$0xff] }
 0xe0f   :  { %v4783_v14 = vadd.f32 %v4782_v5, %v4670_v35  ;;  %v5076_v35 = vmul.f32 %v12636_v55, %v12777_v30  ;;  %v5073_v30 = vmul.f32 %v12636_v55, %v12760_v39  ;;  %v5070_v39 = vmul.f32 %v12636_v55, %v12734_v6 }
 0xe11   :  { %v4889_v61 = vpop.f32.mrf.mxu2  ;;  %v4999_v43 = vpop.f32.mrf.mxu3 }
 0xe14   :  { %v4672_v53 = vpop.f32.mrf.mxu0 }
 0xe15   :  { %v4673_v15 = vadd.f32 %v4672_v53, %v14302_v13  ;;  %v4661_v53 = vadd.f32 %v4660_v36, %v14307_v40  ;;  %v5105_v40 = vadd.f32 %v12650_v58, %v5070_v39 }
 0xe17   :  { %v4786_v59 = vadd.f32 %v4785_v57, %v4673_v15 }
 0xe19   :  { %v5002_v20 = vpop.f32.mrf.mxu3  ;;  %v4892_v0 = vpop.f32.mrf.mxu2 }
 0xe1a   :  { %v5003_v56 = vadd.f32 %v5002_v20, %v4889_v61 }
 0xe1c   :  { %v4675_v42 = vpop.f32.mrf.mxu0 }
 0xe1d   :  { %v4676_v52 = vadd.f32 %v4675_v42, %v14305_v50  ;;  %v5111_v50 = vadd.f32 %v12650_v58, %v5076_v35 }
 0xe1f   :  { %v4789_v24 = vadd.f32 %v4788_v7, %v4676_v52 }
 0xe21   :  { %v5005_v49 = vpop.f32.mrf.mxu3  ;;  %v4895_v11 = vpop.f32.mrf.mxu2 }
 0xe22   :  { %v5006_v34 = vadd.f32 %v5005_v49, %v4892_v0  ;;  %v4774_v0 = vadd.f32 %v4773_v22, %v4661_v53  ;;  %v4997_v49 = vadd.f32 %v4996_v19, %v4883_v25  ;;  %v5104_v53 = vadd.f32 %v12650_v58, %v5069_v1 }
 0xe24   :  { %v5045_v54 = vadd.f32 %v5006_v34, %v4780_v12  ;;  %v5110_v34 = vadd.f32 %v12650_v58, %v5075_v3  ;;  %v5108_v12 = vadd.f32 %v12650_v58, %v5073_v30  ;;  %v5136_v27 = vmax.f32 %v5104_v53, 0.0 }
 0xe26   :  { %v5080_v15 = vmul.f32 %v12636_v55, %v5045_v54 }
 0xe28   :  { %v5115_v19 = vadd.f32 %v12650_v58, %v5080_v15 }
 0xe29   :  { %v5008_v41 = vpop.f32.mrf.mxu3  ;;  %v4898_v63 = vpop.f32.mrf.mxu2 }
 0xe2a   :  { %v5009_v48 = vadd.f32 %v5008_v41, %v4895_v11  ;;  %v4777_v11 = vadd.f32 %v4776_v10, %v4664_v21  ;;  %v5000_v41 = vadd.f32 %v4999_v43, %v4886_v9  ;;  %v5142_v21 = vmax.f32 %v5110_v34, 0.0 }
 0xe2c   :  { %v5046_v17 = vadd.f32 %v5009_v48, %v4783_v14  ;;  %v5044_v13 = vadd.f32 %v5003_v56, %v4777_v11  ;;  %v5043_v20 = vadd.f32 %v5000_v41, %v4774_v0  ;;  %v5140_v56 = vmax.f32 %v5108_v12, 0.0 }
 0xe2d   :  { %v5137_v11 = vmax.f32 %v5105_v40, 0.0 }
 0xe2e   :  { %v5081_v31 = vmul.f32 %v12636_v55, %v5046_v17  ;;  %v5079_v43 = vmul.f32 %v12636_v55, %v5044_v13  ;;  %v5078_v25 = vmul.f32 %v12636_v55, %v5043_v20 }
 0xe30   :  { %v5114_v60 = vadd.f32 %v12650_v58, %v5079_v43  ;;  %v5113_v48 = vadd.f32 %v12650_v58, %v5078_v25 }
 0xe31   :  { %v5011_v33 = vpop.f32.mrf.mxu3  ;;  %v4901_v8 = vpop.f32.mrf.mxu2 }
 0xe32   :  { %v5012_v62 = vadd.f32 %v5011_v33, %v4898_v63  ;;  %v14308_v63 = vld [vmem:[#allocation102_spill] sm:$0xff]  ;;  %v5146_v51 = vmax.f32 %v5114_v60, 0.0  ;;  %v5145_v14 = vmax.f32 %v5113_v48, 0.0 }
 0xe33   :  { %v4658_v33 = vadd.f32 %v4657_v46, %v14308_v63  ;;  %v5116_v46 = vadd.f32 %v12650_v58, %v5081_v31 }
 0xe34   :  { %v5047_v32 = vadd.f32 %v5012_v62, %v4786_v59  ;;  %v5147_v59 = vmax.f32 %v5115_v19, 0.0 }
 0xe35   :  { %v4771_v61 = vadd.f32 %v4770_v37, %v4658_v33  ;;  %v5148_v42 = vmax.f32 %v5116_v46, 0.0 }
 0xe36   :  { %v5082_v57 = vmul.f32 %v12636_v55, %v5047_v32  ;;  %v5143_v32 = vmax.f32 %v5111_v50, 0.0 }
 0xe37   :  { %v5042_v10 = vadd.f32 %v4997_v49, %v4771_v61 }
 0xe38   :  { %v5117_v9 = vadd.f32 %v12650_v58, %v5082_v57 }
 0xe39   :  { %v5014_v2 = vpop.f32.mrf.mxu3  ;;  %v5077_v37 = vmul.f32 %v12636_v55, %v5042_v10 }
 0xe3a   :  { %v5015_v47 = vadd.f32 %v5014_v2, %v4901_v8  ;;  %v5149_v22 = vmax.f32 %v5117_v9, 0.0  ;;  %v5074_v8 = vmul.f32 %v12636_v55, %v12768_v4  ;;  %v5071_v4 = vmul.f32 %v12636_v55, %v12745_v23 }
 0xe3b   :  { %v5112_v7 = vadd.f32 %v12650_v58, %v5077_v37  ;;  %v5068_v23 = vmul.f32 %v12636_v55, %v12671_v45  ;;  %v12835_v45 = vld [vmem:[%s14309_s1] ss:$0 sm:$0xff] }
 0xe3c   :  { %v5048_v5 = vadd.f32 %v5015_v47, %v4789_v24  ;;  %v5109_v38 = vadd.f32 %v12650_v58, %v5074_v8  ;;  %v5107_v24 = vadd.f32 %v12650_v58, %v5072_v16  ;;  %v5106_v17 = vadd.f32 %v12650_v58, %v5071_v4 }
 0xe3d   :  { %v5144_v52 = vmax.f32 %v5112_v7, 0.0  ;;  %v5103_v41 = vadd.f32 %v12650_v58, %v5068_v23 }
 0xe3e   :  { %v5083_v28 = vmul.f32 %v12636_v55, %v5048_v5  ;;  %v5141_v2 = vmax.f32 %v5109_v38, 0.0  ;;  %v5139_v47 = vmax.f32 %v5107_v24, 0.0  ;;  %v5138_v6 = vmax.f32 %v5106_v17, 0.0  ;;  %v5152_v55 = vld [vmem:[%s13304_s19 + $0x8] sm:$0xff]  ;;  %s8237_s19 = smov 64  }
 0xe3f   :  { %v5135_v57 = vmax.f32 %v5103_v41, 0.0 }
 0xe40   :  { %v5118_v36 = vadd.f32 %v12650_v58, %v5083_v28  ;;  %v14310_v58 = vld [vmem:[#allocation12_spill] sm:$0xff] }
 0xe41   :  { %v266_v5 = vadd.f32 %v12835_v45, %v14310_v58 }
 0xe42   :  { %v5150_v62 = vmax.f32 %v5118_v36, 0.0 }
 0xe44   :  { %5173 = vmatpush.msra.mxu1 %v5150_v62 }
 0xe46   :  { %5174 = vmatpush.msra.mxu1 %v5149_v22 }
 0xe48   :  { %5175 = vmatpush.msra.mxu1 %v5148_v42 }
 0xe4a   :  { %5176 = vmatpush.msra.mxu1 %v5147_v59 }
 0xe4c   :  { %5177 = vmatpush.msra.mxu1 %v5146_v51  ;;  %v14311_v51 = vld [vmem:[#allocation14_spill] sm:$0xff] }
 0xe4d   :  { %v269_v7 = vadd.f32 %v12835_v45, %v14311_v51 }
 0xe4e   :  { %5178 = vmatpush.msra.mxu1 %v5145_v14 }
 0xe50   :  { %5179 = vmatpush.msra.mxu1 %v5144_v52 }
 0xe52   :  { %5180 = vmatpush.msra.mxu1 %v5143_v32 }
 0xe54   :  { %5181 = vmatpush.msra.mxu1 %v5142_v21 }
 0xe56   :  { %5182 = vmatpush.msra.mxu1 %v5141_v2 }
 0xe58   :  { %5183 = vmatpush.msra.mxu1 %v5140_v56 }
 0xe5a   :  { %5184 = vmatpush.msra.mxu1 %v5139_v47 }
 0xe5c   :  { %5185 = vmatpush.msra.mxu1 %v5138_v6 }
 0xe5e   :  { %5186 = vmatpush.msra.mxu1 %v5137_v11 }
 0xe60   :  { %v12827_v54 = vpop.f32.mrf.mxu0  ;;  %5187 = vmatpush.msra.mxu1 %v5136_v27  ;;  %v14312_v27 = vld [vmem:[#allocation16_spill] sm:$0xff] }
 0xe62   :  { %5188 = vmatpush.msra.mxu1 %v5135_v57  ;;  %v272_v57 = vadd.f32 %v12835_v45, %v14312_v27 }
 0xe63   :  { %5189 = vmatmul.f32.vlgmr.msra.gmra.mxu1 %v5152_v55 }
 0xe64   :  { %5278 = vmatpush.msrb.mxu1 %v12668_v29 }
 0xe66   :  { %5279 = vmatpush.msrb.mxu1 %v12678_v18 }
 0xe68   :  { %v5218_v63 = vpop.f32.mrf.mxu0  ;;  %5280 = vmatpush.msrb.mxu1 %v12689_v26 }
 0xe69   :  { %v5221_v33 = vadd.f32 %v5218_v63, %v266_v5 }
 0xe6a   :  { %5281 = vmatpush.msrb.mxu1 %v12699_v44 }
 0xe6b   :  { %7841 = vtanh.f32 %v5221_v33  ;;  %v7748_v49 = vmul.f32 -1.442695, %v5221_v33 }
 0xe6c   :  { %5408 = vmatpush.msra.mxu1 %v12668_v29 }
 0xe6d   :  { %7843 = vpow2.f32 %v7748_v49 }
 0xe6e   :  { %5409 = vmatpush.msra.mxu1 %v12678_v18 }
 0xe70   :  { %5410 = vmatpush.msra.mxu1 %v12689_v26 }
 0xe71   :  { %v7842_v0 = vpop.eup %7841 }
 0xe72   :  { %5411 = vmatpush.msra.mxu1 %v12699_v44  ;;  %5244 = vrot.lane.b32.xlu0 %v7842_v0, %s8237_s19 }
 0xe73   :  { %v7844_v13 = vpop.eup %7843 }
 0xe74   :  { %v5225_v31 = vadd.f32 1.0, %v7844_v13 }
 0xe76   :  { %7845 = vrcp.f32 %v5225_v31  ;;  %v5237_v9 = vand.u32 2147483648, %v5225_v31  ;;  %vm5231_vm1 = vweird.f32 %v5225_v31  ;;  %v5235_v10 = vand.u32 2147483647, %v5225_v31 }
 0xe78   :  { %v5238_v62 = vor.u32 1.1754944e-38, %v5237_v9  ;;  %vm5236_vm3 = vcmp.eq.f32.partialorder %v5235_v10, 8.507059e+37 }
 0xe7c   :  { %v7846_v28 = vpop.eup %7845 }
 0xe7d   :  { %v5227_v61 = vmul.f32 %v7846_v28, %v5225_v31  ;;  %vm5232_vm0 = vweird.f32 %v7846_v28 }
 0xe7e   :  { %vm5233_vm2 = vmor %vm5231_vm1, %vm5232_vm0 }
 0xe7f   :  { %v5228_v20 = vsub.f32 1.0, %v5227_v61 }
 0xe81   :  { %v5229_v15 = vmul.f32 %v7846_v28, %v5228_v20 }
 0xe83   :  { %v5230_v36 = vadd.f32 %v7846_v28, %v5229_v15 }
 0xe85   :  { %v5234_v43 = vsel %vm5233_vm2, %v7846_v28, %v5230_v36 }
 0xe86   :  { %v5239_v25 = vsel %vm5236_vm3, %v5238_v62, %v5234_v43 }
 0xe87   :  { %v5242_v19 = vmul.f32 0.0, %v5239_v25 }
 0xee0   :  { %v12856_v3 = vpop.f32.mrf.mxu1 }
 0xee4   :  { %v5245_v46 = vpop.permute.xlu0 %5244 }
 0xee5   :  { %v5247_v22 = vmul.f32 %v5245_v46, %v5239_v25 }
 0xee7   :  { %5249 = vrot.lane.b32.xlu0 %v5247_v22, %s8238_s5 }
 0xf59   :  { %v5250_v37 = vpop.permute.xlu0 %5249 }
 0xf5a   :  { %v5252_v42 = vadd.f32 %v5250_v37, %v5242_v19 }
 0xf5c   :  { %7847 = vtanh.f32 %v5252_v42 }
 0xf62   :  { %v7848_v60 = vpop.eup %7847 }
 0xf63   :  { %5255 = vrot.lane.b32.xlu1 %v7848_v60, %s8237_s19 }
 0xfd5   :  { %v5256_v35 = vpop.permute.xlu1 %5255 }
 0xfd6   :  { %v5258_v59 = vmul.f32 %v5256_v35, %v5239_v25  ;;  %v14313_v35 = vld [vmem:[#allocation17_spill] sm:$0xff] }
 0xfd8   :  { %5262 = vrot.lane.b32.xlu1 %v5258_v59, %s8238_s5  ;;  %v275_v59 = vadd.f32 %v12835_v45, %v14313_v35 }
0x104a   :  { %v5263_v48 = vpop.permute.xlu1 %5262 }
0x104b   :  { %7749 = vmatmul.msk.f32.vlgmr.msrb.gmra.mxu1 %vm5198_vm4, %v5263_v48 }
0x104c   :  { %5538 = vmatpush.msrb.mxu1 %v12668_v29 }
0x104e   :  { %5539 = vmatpush.msrb.mxu1 %v12678_v18 }
0x1050   :  { %5540 = vmatpush.msrb.mxu1 %v12689_v26 }
0x1052   :  { %5541 = vmatpush.msrb.mxu1 %v12699_v44 }
0x10c8   :  { %v5283_v8 = vpop.f32.mrf.mxu1 }
0x10c9   :  { %v5286_v14 = vadd.f32 %v5283_v8, %v269_v7 }
0x10cb   :  { %7849 = vtanh.f32 %v5286_v14  ;;  %v7750_v30 = vmul.f32 -1.442695, %v5286_v14 }
0x10cd   :  { %7851 = vpow2.f32 %v7750_v30 }
0x10d1   :  { %v7850_v50 = vpop.eup %7849 }
0x10d2   :  { %5309 = vrot.lane.b32.xlu2 %v7850_v50, %s8237_s19 }
0x10d3   :  { %v7852_v52 = vpop.eup %7851 }
0x10d4   :  { %v5290_v34 = vadd.f32 1.0, %v7852_v52 }
0x10d6   :  { %7853 = vrcp.f32 %v5290_v34  ;;  %v5302_v12 = vand.u32 2147483648, %v5290_v34  ;;  %vm5296_vm6 = vweird.f32 %v5290_v34  ;;  %v5300_v39 = vand.u32 2147483647, %v5290_v34 }
0x10d8   :  { %v5303_v24 = vor.u32 1.1754944e-38, %v5302_v12  ;;  %vm5301_vm8 = vcmp.eq.f32.partialorder %v5300_v39, 8.507059e+37 }
0x10dc   :  { %v7854_v16 = vpop.eup %7853 }
0x10dd   :  { %v5292_v32 = vmul.f32 %v7854_v16, %v5290_v34  ;;  %vm5297_vm5 = vweird.f32 %v7854_v16 }
0x10de   :  { %vm5298_vm7 = vmor %vm5296_vm6, %vm5297_vm5 }
0x10df   :  { %v5293_v38 = vsub.f32 1.0, %v5292_v32 }
0x10e1   :  { %v5294_v4 = vmul.f32 %v7854_v16, %v5293_v38 }
0x10e3   :  { %v5295_v21 = vadd.f32 %v7854_v16, %v5294_v4 }
0x10e5   :  { %v5299_v2 = vsel %vm5298_vm7, %v7854_v16, %v5295_v21 }
0x10e6   :  { %v5304_v56 = vsel %vm5301_vm8, %v5303_v24, %v5299_v2 }
0x10e7   :  { %v5307_v23 = vmul.f32 %v5304_v56, %v5252_v42 }
0x112c   :  { %v5310_v1 = vpop.permute.xlu2 %5309 }
0x112d   :  { %v5312_v17 = vmul.f32 %v5310_v1, %v5304_v56 }
0x112f   :  { %5314 = vrot.lane.b32.xlu2 %v5312_v17, %s8238_s5 }
0x1189   :  { %v5315_v47 = vpop.permute.xlu2 %5314 }
0x118a   :  { %v5317_v40 = vadd.f32 %v5315_v47, %v5307_v23 }
0x118c   :  { %7855 = vtanh.f32 %v5317_v40 }
0x1192   :  { %v7856_v6 = vpop.eup %7855 }
0x1193   :  { %5320 = vrot.lane.b32.xlu0 %v7856_v6, %s8237_s19 }
0x1205   :  { %v5321_v53 = vpop.permute.xlu0 %5320 }
0x1206   :  { %v5323_v11 = vmul.f32 %v5321_v53, %v5304_v56  ;;  %v14314_v53 = vld [vmem:[#allocation18_spill] sm:$0xff] }
0x1208   :  { %5327 = vrot.lane.b32.xlu1 %v5323_v11, %s8238_s5  ;;  %v278_v11 = vadd.f32 %v12835_v45, %v14314_v53 }
0x127a   :  { %v5328_v41 = vpop.permute.xlu1 %5327 }
0x127b   :  { %7751 = vmatmul.msk.f32.vlgmr.msrb.gmra.mxu0 %vm5198_vm4, %v5328_v41 }
0x127c   :  { %5733 = vmatpush.msrb.mxu0 %v12668_v29 }
0x127e   :  { %5734 = vmatpush.msrb.mxu0 %v12678_v18 }
0x1280   :  { %5735 = vmatpush.msrb.mxu0 %v12689_v26 }
0x1282   :  { %5736 = vmatpush.msrb.mxu0 %v12699_v44 }
0x12f8   :  { %v5348_v55 = vpop.f32.mrf.mxu0 }
0x12f9   :  { %v5351_v58 = vadd.f32 %v5348_v55, %v272_v57 }
0x12fb   :  { %7857 = vtanh.f32 %v5351_v58  ;;  %v7752_v63 = vmul.f32 -1.442695, %v5351_v58 }
0x12fd   :  { %7859 = vpow2.f32 %v7752_v63 }
0x1301   :  { %v7858_v5 = vpop.eup %7857 }
0x1302   :  { %5374 = vrot.lane.b32.xlu2 %v7858_v5, %s8237_s19 }
0x1303   :  { %v7860_v33 = vpop.eup %7859 }
0x1304   :  { %v5355_v0 = vadd.f32 1.0, %v7860_v33 }
0x1306   :  { %7861 = vrcp.f32 %v5355_v0  ;;  %v5367_v20 = vand.u32 2147483648, %v5355_v0  ;;  %vm5361_vm10 = vweird.f32 %v5355_v0  ;;  %v5365_v15 = vand.u32 2147483647, %v5355_v0 }
0x1308   :  { %v5368_v9 = vor.u32 1.1754944e-38, %v5367_v20  ;;  %vm5366_vm12 = vcmp.eq.f32.partialorder %v5365_v15, 8.507059e+37 }
0x130c   :  { %v7862_v49 = vpop.eup %7861 }
0x130d   :  { %v5357_v13 = vmul.f32 %v7862_v49, %v5355_v0  ;;  %vm5362_vm9 = vweird.f32 %v7862_v49 }
0x130e   :  { %vm5363_vm11 = vmor %vm5361_vm10, %vm5362_vm9 }
0x130f   :  { %v5358_v31 = vsub.f32 1.0, %v5357_v13 }
0x1311   :  { %v5359_v28 = vmul.f32 %v7862_v49, %v5358_v31 }
0x1313   :  { %v5360_v61 = vadd.f32 %v7862_v49, %v5359_v28 }
0x1315   :  { %v5364_v36 = vsel %vm5363_vm11, %v7862_v49, %v5360_v61 }
0x1316   :  { %v5369_v43 = vsel %vm5366_vm12, %v5368_v9, %v5364_v36 }
0x1317   :  { %v5372_v46 = vmul.f32 %v5369_v43, %v5317_v40 }
0x135c   :  { %v5375_v10 = vpop.permute.xlu2 %5374 }
0x135d   :  { %v5377_v62 = vmul.f32 %v5375_v10, %v5369_v43 }
0x135f   :  { %5379 = vrot.lane.b32.xlu0 %v5377_v62, %s8238_s5 }
0x13d1   :  { %v5380_v25 = vpop.permute.xlu0 %5379 }
0x13d2   :  { %v5382_v22 = vadd.f32 %v5380_v25, %v5372_v46 }
0x13d4   :  { %7863 = vtanh.f32 %v5382_v22 }
0x13da   :  { %v7864_v19 = vpop.eup %7863 }
0x13db   :  { %5385 = vrot.lane.b32.xlu1 %v7864_v19, %s8237_s19 }
0x144d   :  { %v5386_v37 = vpop.permute.xlu1 %5385 }
0x144e   :  { %v5388_v42 = vmul.f32 %v5386_v37, %v5369_v43  ;;  %v14315_v37 = vld [vmem:[#allocation19_spill] sm:$0xff] }
0x1450   :  { %5392 = vrot.lane.b32.xlu2 %v5388_v42, %s8238_s5  ;;  %v281_v42 = vadd.f32 %v12835_v45, %v14315_v37 }
0x14aa   :  { %v5393_v60 = vpop.permute.xlu2 %5392 }
0x14ab   :  { %7753 = vmatmul.msk.f32.vlgmr.msra.gmra.mxu1 %vm5198_vm4, %v5393_v60 }
0x14ac   :  { %5798 = vmatpush.msra.mxu1 %v12668_v29 }
0x14ae   :  { %5799 = vmatpush.msra.mxu1 %v12678_v18 }
0x14b0   :  { %5800 = vmatpush.msra.mxu1 %v12689_v26 }
0x14b2   :  { %5801 = vmatpush.msra.mxu1 %v12699_v44 }
0x1528   :  { %v5413_v48 = vpop.f32.mrf.mxu1 }
0x1529   :  { %v5416_v51 = vadd.f32 %v5413_v48, %v275_v59 }
0x152b   :  { %7865 = vtanh.f32 %v5416_v51  ;;  %v7754_v8 = vmul.f32 -1.442695, %v5416_v51 }
0x152d   :  { %7867 = vpow2.f32 %v7754_v8 }
0x1531   :  { %v7866_v7 = vpop.eup %7865 }
0x1532   :  { %5439 = vrot.lane.b32.xlu0 %v7866_v7, %s8237_s19 }
0x1533   :  { %v7868_v14 = vpop.eup %7867 }
0x1534   :  { %v5420_v50 = vadd.f32 1.0, %v7868_v14 }
0x1536   :  { %7869 = vrcp.f32 %v5420_v50  ;;  %v5432_v38 = vand.u32 2147483648, %v5420_v50  ;;  %vm5426_vm14 = vweird.f32 %v5420_v50  ;;  %v5430_v4 = vand.u32 2147483647, %v5420_v50 }
0x1538   :  { %v5433_v12 = vor.u32 1.1754944e-38, %v5432_v38  ;;  %vm5431_vm0 = vcmp.eq.f32.partialorder %v5430_v4, 8.507059e+37 }
0x153c   :  { %v7870_v30 = vpop.eup %7869 }
0x153d   :  { %v5422_v52 = vmul.f32 %v7870_v30, %v5420_v50  ;;  %vm5427_vm13 = vweird.f32 %v7870_v30 }
0x153e   :  { %vm5428_vm15 = vmor %vm5426_vm14, %vm5427_vm13 }
0x153f   :  { %v5423_v34 = vsub.f32 1.0, %v5422_v52 }
0x1541   :  { %v5424_v16 = vmul.f32 %v7870_v30, %v5423_v34 }
0x1543   :  { %v5425_v32 = vadd.f32 %v7870_v30, %v5424_v16 }
0x1545   :  { %v5429_v21 = vsel %vm5428_vm15, %v7870_v30, %v5425_v32 }
0x1546   :  { %v5434_v2 = vsel %vm5431_vm0, %v5433_v12, %v5429_v21 }
0x1547   :  { %v5437_v1 = vmul.f32 %v5434_v2, %v5382_v22 }
0x15a4   :  { %v5440_v39 = vpop.permute.xlu0 %5439 }
0x15a5   :  { %v5442_v24 = vmul.f32 %v5440_v39, %v5434_v2 }
0x15a7   :  { %5444 = vrot.lane.b32.xlu1 %v5442_v24, %s8238_s5 }
0x1619   :  { %v5445_v56 = vpop.permute.xlu1 %5444 }
0x161a   :  { %v5447_v17 = vadd.f32 %v5445_v56, %v5437_v1 }
0x161c   :  { %7871 = vtanh.f32 %v5447_v17 }
0x1622   :  { %v7872_v23 = vpop.eup %7871 }
0x1623   :  { %5450 = vrot.lane.b32.xlu2 %v7872_v23, %s8237_s19  ;;  %v12912_v23 = vld [vmem:[%s14297_s0 + $0x18] sm:$0xff] }
0x167d   :  { %v5451_v47 = vpop.permute.xlu2 %5450 }
0x167e   :  { %v5453_v40 = vmul.f32 %v5451_v47, %v5434_v2  ;;  %v14316_v47 = vld [vmem:[#allocation20_spill] sm:$0xff] }
0x1680   :  { %5457 = vrot.lane.b32.xlu0 %v5453_v40, %s8238_s5  ;;  %v284_v40 = vadd.f32 %v12835_v45, %v14316_v47 }
0x16f2   :  { %v5458_v6 = vpop.permute.xlu0 %5457 }
0x16f3   :  { %7755 = vmatmul.msk.f32.vlgmr.msra.gmra.mxu0 %vm5198_vm4, %v5458_v6 }
0x16f4   :  { %5993 = vmatpush.msra.mxu0 %v12668_v29 }
0x16f6   :  { %5994 = vmatpush.msra.mxu0 %v12678_v18 }
0x16f8   :  { %5995 = vmatpush.msra.mxu0 %v12689_v26 }
0x16fa   :  { %5996 = vmatpush.msra.mxu0 %v12699_v44 }
0x1770   :  { %v5478_v41 = vpop.f32.mrf.mxu0 }
0x1771   :  { %v5481_v27 = vadd.f32 %v5478_v41, %v278_v11 }
0x1773   :  { %7873 = vtanh.f32 %v5481_v27  ;;  %v7756_v55 = vmul.f32 -1.442695, %v5481_v27 }
0x1775   :  { %7875 = vpow2.f32 %v7756_v55 }
0x1779   :  { %v7874_v57 = vpop.eup %7873 }
0x177a   :  { %5504 = vrot.lane.b32.xlu1 %v7874_v57, %s8237_s19 }
0x177b   :  { %v7876_v58 = vpop.eup %7875 }
0x177c   :  { %v5485_v5 = vadd.f32 1.0, %v7876_v58 }
0x177e   :  { %7877 = vrcp.f32 %v5485_v5  ;;  %v5497_v31 = vand.u32 2147483648, %v5485_v5  ;;  %vm5491_vm2 = vweird.f32 %v5485_v5  ;;  %v5495_v28 = vand.u32 2147483647, %v5485_v5 }
0x1780   :  { %v5498_v20 = vor.u32 1.1754944e-38, %v5497_v31  ;;  %vm5496_vm5 = vcmp.eq.f32.partialorder %v5495_v28, 8.507059e+37 }
0x1784   :  { %v7878_v63 = vpop.eup %7877 }
0x1785   :  { %v5487_v33 = vmul.f32 %v7878_v63, %v5485_v5  ;;  %vm5492_vm1 = vweird.f32 %v7878_v63 }
0x1786   :  { %vm5493_vm3 = vmor %vm5491_vm2, %vm5492_vm1 }
0x1787   :  { %v5488_v0 = vsub.f32 1.0, %v5487_v33 }
0x1789   :  { %v5489_v49 = vmul.f32 %v7878_v63, %v5488_v0 }
0x178b   :  { %v5490_v13 = vadd.f32 %v7878_v63, %v5489_v49 }
0x178d   :  { %v5494_v61 = vsel %vm5493_vm3, %v7878_v63, %v5490_v13 }
0x178e   :  { %v5499_v36 = vsel %vm5496_vm5, %v5498_v20, %v5494_v61 }
0x178f   :  { %v5502_v10 = vmul.f32 %v5499_v36, %v5447_v17 }
0x17ec   :  { %v5505_v15 = vpop.permute.xlu1 %5504 }
0x17ed   :  { %v5507_v9 = vmul.f32 %v5505_v15, %v5499_v36 }
0x17ef   :  { %5509 = vrot.lane.b32.xlu2 %v5507_v9, %s8238_s5 }
0x1849   :  { %v5510_v43 = vpop.permute.xlu2 %5509 }
0x184a   :  { %v5512_v62 = vadd.f32 %v5510_v43, %v5502_v10  ;;  %v12929_v43 = vld [vmem:[%s14297_s0 + $0x10] sm:$0xff] }
0x184c   :  { %7879 = vtanh.f32 %v5512_v62 }
0x1852   :  { %v7880_v46 = vpop.eup %7879 }
0x1853   :  { %5515 = vrot.lane.b32.xlu0 %v7880_v46, %s8237_s19  ;;  %v12941_v46 = vld [vmem:[%s14297_s0] sm:$0xff] }
0x18c5   :  { %v5516_v25 = vpop.permute.xlu0 %5515 }
0x18c6   :  { %v5518_v22 = vmul.f32 %v5516_v25, %v5499_v36  ;;  %v14317_v25 = vld [vmem:[#allocation21_spill] sm:$0xff] }
0x18c8   :  { %5522 = vrot.lane.b32.xlu1 %v5518_v22, %s8238_s5  ;;  %v287_v22 = vadd.f32 %v12835_v45, %v14317_v25 }
0x193a   :  { %v5523_v19 = vpop.permute.xlu1 %5522 }
0x193b   :  { %7757 = vmatmul.msk.f32.vlgmr.msrb.gmra.mxu1 %vm5198_vm4, %v5523_v19 }
0x193c   :  { %6058 = vmatpush.msrb.mxu1 %v12668_v29 }
0x193e   :  { %6059 = vmatpush.msrb.mxu1 %v12678_v18 }
0x1940   :  { %6060 = vmatpush.msrb.mxu1 %v12689_v26 }
0x1942   :  { %6061 = vmatpush.msrb.mxu1 %v12699_v44 }
0x19b8   :  { %v5543_v60 = vpop.f32.mrf.mxu1 }
0x19b9   :  { %v5546_v35 = vadd.f32 %v5543_v60, %v281_v42 }
0x19bb   :  { %7881 = vtanh.f32 %v5546_v35  ;;  %v7758_v48 = vmul.f32 -1.442695, %v5546_v35 }
0x19bd   :  { %7883 = vpow2.f32 %v7758_v48 }
0x19c1   :  { %v7882_v59 = vpop.eup %7881 }
0x19c2   :  { %5569 = vrot.lane.b32.xlu2 %v7882_v59, %s8237_s19 }
0x19c3   :  { %v7884_v51 = vpop.eup %7883 }
0x19c4   :  { %v5550_v7 = vadd.f32 1.0, %v7884_v51 }
0x19c6   :  { %7885 = vrcp.f32 %v5550_v7  ;;  %v5562_v52 = vand.u32 2147483648, %v5550_v7  ;;  %vm5556_vm7 = vweird.f32 %v5550_v7  ;;  %v5560_v34 = vand.u32 2147483647, %v5550_v7 }
0x19c8   :  { %v5563_v32 = vor.u32 1.1754944e-38, %v5562_v52  ;;  %vm5561_vm9 = vcmp.eq.f32.partialorder %v5560_v34, 8.507059e+37 }
0x19cc   :  { %v7886_v29 = vpop.eup %7885 }
0x19cd   :  { %v5552_v8 = vmul.f32 %v7886_v29, %v5550_v7  ;;  %vm5557_vm6 = vweird.f32 %v7886_v29 }
0x19ce   :  { %vm5558_vm8 = vmor %vm5556_vm7, %vm5557_vm6 }
0x19cf   :  { %v5553_v14 = vsub.f32 1.0, %v5552_v8 }
0x19d1   :  { %v5554_v50 = vmul.f32 %v7886_v29, %v5553_v14 }
0x19d3   :  { %v5555_v30 = vadd.f32 %v7886_v29, %v5554_v50 }
0x19d5   :  { %v5559_v16 = vsel %vm5558_vm8, %v7886_v29, %v5555_v30 }
0x19d6   :  { %v5564_v4 = vsel %vm5561_vm9, %v5563_v32, %v5559_v16 }
0x19d7   :  { %v5567_v12 = vmul.f32 %v5564_v4, %v5512_v62  ;;  %v12935_v62 = vld [vmem:[%s14297_s0 + $0x8] sm:$0xff] }
0x1a1c   :  { %v5570_v38 = vpop.permute.xlu2 %5569 }
0x1a1d   :  { %v5572_v21 = vmul.f32 %v5570_v38, %v5564_v4 }
0x1a1f   :  { %5574 = vrot.lane.b32.xlu0 %v5572_v21, %s8238_s5 }
0x1a91   :  { %v5575_v39 = vpop.permute.xlu0 %5574 }
0x1a92   :  { %v5577_v2 = vadd.f32 %v5575_v39, %v5567_v12 }
0x1a94   :  { %7887 = vtanh.f32 %v5577_v2 }
0x1a9a   :  { %v7888_v24 = vpop.eup %7887 }
0x1a9b   :  { %5580 = vrot.lane.b32.xlu1 %v7888_v24, %s8237_s19 }
0x1b0d   :  { %v5581_v1 = vpop.permute.xlu1 %5580 }
0x1b0e   :  { %v5583_v56 = vmul.f32 %v5581_v1, %v5564_v4  ;;  %v14318_v1 = vld [vmem:[#allocation22_spill] sm:$0xff] }
0x1b10   :  { %5587 = vrot.lane.b32.xlu2 %v5583_v56, %s8238_s5  ;;  %v290_v56 = vadd.f32 %v12835_v45, %v14318_v1 }
0x1b6a   :  { %v5588_v17 = vpop.permute.xlu2 %5587 }
0x1b6b   :  { %7759 = vmatmul.msk.f32.vlgmr.msrb.gmra.mxu2 %vm5198_vm4, %v5588_v17 }
0x1b6c   :  { %6123 = vmatpush.msrb.mxu2 %v12912_v23 }
0x1b6e   :  { %6124 = vmatpush.msrb.mxu2 %v12678_v18 }
0x1b70   :  { %6125 = vmatpush.msrb.mxu2 %v12689_v26 }
0x1b72   :  { %6126 = vmatpush.msrb.mxu2 %v12699_v44 }
0x1bee   :  { %v5608_v6 = vpop.f32.mrf.mxu2 }
0x1bef   :  { %v5611_v53 = vadd.f32 %v5608_v6, %v284_v40 }
0x1bf1   :  { %7889 = vtanh.f32 %v5611_v53  ;;  %v7760_v41 = vmul.f32 -1.442695, %v5611_v53 }
0x1bf3   :  { %7891 = vpow2.f32 %v7760_v41 }
0x1bf7   :  { %v7890_v11 = vpop.eup %7889 }
0x1bf8   :  { %5634 = vrot.lane.b32.xlu0 %v7890_v11, %s8237_s19 }
0x1bf9   :  { %v7892_v27 = vpop.eup %7891 }
0x1bfa   :  { %v5615_v57 = vadd.f32 1.0, %v7892_v27 }
0x1bfc   :  { %7893 = vrcp.f32 %v5615_v57  ;;  %v5627_v44 = vand.u32 2147483648, %v5615_v57  ;;  %vm5621_vm11 = vweird.f32 %v5615_v57  ;;  %v5625_v63 = vand.u32 2147483647, %v5615_v57 }
0x1bfe   :  { %v5628_v0 = vor.u32 1.1754944e-38, %v5627_v44  ;;  %vm5626_vm13 = vcmp.eq.f32.partialorder %v5625_v63, 8.507059e+37 }
0x1c02   :  { %v7894_v55 = vpop.eup %7893 }
0x1c03   :  { %v5617_v18 = vmul.f32 %v7894_v55, %v5615_v57  ;;  %vm5622_vm10 = vweird.f32 %v7894_v55 }
0x1c04   :  { %vm5623_vm12 = vmor %vm5621_vm11, %vm5622_vm10 }
0x1c05   :  { %v5618_v58 = vsub.f32 1.0, %v5617_v18 }
0x1c07   :  { %v5619_v26 = vmul.f32 %v7894_v55, %v5618_v58 }
0x1c09   :  { %v5620_v5 = vadd.f32 %v7894_v55, %v5619_v26 }
0x1c0b   :  { %v5624_v33 = vsel %vm5623_vm12, %v7894_v55, %v5620_v5 }
0x1c0c   :  { %v5629_v13 = vsel %vm5626_vm13, %v5628_v0, %v5624_v33 }
0x1c0d   :  { %v5632_v28 = vmul.f32 %v5629_v13, %v5577_v2 }
0x1c6a   :  { %v5635_v49 = vpop.permute.xlu0 %5634 }
0x1c6b   :  { %v5637_v31 = vmul.f32 %v5635_v49, %v5629_v13 }
0x1c6d   :  { %5639 = vrot.lane.b32.xlu1 %v5637_v31, %s8238_s5 }
0x1cdf   :  { %v5640_v61 = vpop.permute.xlu1 %5639 }
0x1ce0   :  { %v5642_v20 = vadd.f32 %v5640_v61, %v5632_v28 }
0x1ce2   :  { %7895 = vtanh.f32 %v5642_v20 }
0x1ce8   :  { %v7896_v15 = vpop.eup %7895 }
0x1ce9   :  { %5645 = vrot.lane.b32.xlu2 %v7896_v15, %s8237_s19 }
0x1d43   :  { %v5646_v36 = vpop.permute.xlu2 %5645 }
0x1d44   :  { %v5648_v9 = vmul.f32 %v5646_v36, %v5629_v13  ;;  %v14319_v36 = vld [vmem:[#allocation23_spill] sm:$0xff] }
0x1d46   :  { %5652 = vrot.lane.b32.xlu0 %v5648_v9, %s8238_s5  ;;  %v293_v9 = vadd.f32 %v12835_v45, %v14319_v36 }
0x1db8   :  { %v5653_v10 = vpop.permute.xlu0 %5652 }
0x1db9   :  { %7761 = vmatmul.msk.f32.vlgmr.msrb.gmra.mxu3 %vm5198_vm4, %v5653_v10 }
0x1dba   :  { %6188 = vmatpush.msrb.mxu3 %v12912_v23 }
0x1dbc   :  { %6189 = vmatpush.msrb.mxu3 %v12929_v43 }
0x1dbe   :  { %6190 = vmatpush.msrb.mxu3 %v12935_v62 }
0x1dc0   :  { %6191 = vmatpush.msrb.mxu3 %v12941_v46 }
0x1e3c   :  { %v5673_v19 = vpop.f32.mrf.mxu3 }
0x1e3d   :  { %v5676_v37 = vadd.f32 %v5673_v19, %v287_v22 }
0x1e3f   :  { %7897 = vtanh.f32 %v5676_v37  ;;  %v7762_v60 = vmul.f32 -1.442695, %v5676_v37 }
0x1e41   :  { %7899 = vpow2.f32 %v7762_v60 }
0x1e45   :  { %v7898_v42 = vpop.eup %7897 }
0x1e46   :  { %5699 = vrot.lane.b32.xlu1 %v7898_v42, %s8237_s19 }
0x1e47   :  { %v7900_v35 = vpop.eup %7899 }
0x1e48   :  { %v5680_v59 = vadd.f32 1.0, %v7900_v35 }
0x1e4a   :  { %7901 = vrcp.f32 %v5680_v59  ;;  %v5692_v14 = vand.u32 2147483648, %v5680_v59  ;;  %vm5686_vm15 = vweird.f32 %v5680_v59  ;;  %v5690_v50 = vand.u32 2147483647, %v5680_v59 }
0x1e4c   :  { %v5693_v52 = vor.u32 1.1754944e-38, %v5692_v14  ;;  %vm5691_vm1 = vcmp.eq.f32.partialorder %v5690_v50, 8.507059e+37 }
0x1e50   :  { %v7902_v48 = vpop.eup %7901 }
0x1e51   :  { %v5682_v51 = vmul.f32 %v7902_v48, %v5680_v59  ;;  %vm5687_vm14 = vweird.f32 %v7902_v48 }
0x1e52   :  { %vm5688_vm0 = vmor %vm5686_vm15, %vm5687_vm14 }
0x1e53   :  { %v5683_v7 = vsub.f32 1.0, %v5682_v51 }
0x1e55   :  { %v5684_v29 = vmul.f32 %v7902_v48, %v5683_v7 }
0x1e57   :  { %v5685_v8 = vadd.f32 %v7902_v48, %v5684_v29 }
0x1e59   :  { %v5689_v30 = vsel %vm5688_vm0, %v7902_v48, %v5685_v8 }
0x1e5a   :  { %v5694_v16 = vsel %vm5691_vm1, %v5693_v52, %v5689_v30 }
0x1e5b   :  { %v5697_v38 = vmul.f32 %v5694_v16, %v5642_v20 }
0x1eb8   :  { %v5700_v34 = vpop.permute.xlu1 %5699 }
0x1eb9   :  { %v5702_v32 = vmul.f32 %v5700_v34, %v5694_v16 }
0x1ebb   :  { %5704 = vrot.lane.b32.xlu2 %v5702_v32, %s8238_s5 }
0x1f15   :  { %v5705_v4 = vpop.permute.xlu2 %5704 }
0x1f16   :  { %v5707_v21 = vadd.f32 %v5705_v4, %v5697_v38 }
0x1f18   :  { %7903 = vtanh.f32 %v5707_v21 }
0x1f1e   :  { %v7904_v12 = vpop.eup %7903 }
0x1f1f   :  { %5710 = vrot.lane.b32.xlu0 %v7904_v12, %s8237_s19 }
0x1f91   :  { %v5711_v39 = vpop.permute.xlu0 %5710 }
0x1f92   :  { %v5713_v2 = vmul.f32 %v5711_v39, %v5694_v16  ;;  %v14320_v39 = vld [vmem:[#allocation24_spill] sm:$0xff] }
0x1f94   :  { %5717 = vrot.lane.b32.xlu1 %v5713_v2, %s8238_s5  ;;  %v296_v2 = vadd.f32 %v12835_v45, %v14320_v39 }
0x2006   :  { %v5718_v24 = vpop.permute.xlu1 %5717 }
0x2007   :  { %7763 = vmatmul.msk.f32.vlgmr.msrb.gmra.mxu0 %vm5198_vm4, %v5718_v24 }
0x2008   :  { %6253 = vmatpush.msrb.mxu0 %v12912_v23 }
0x200a   :  { %6254 = vmatpush.msrb.mxu0 %v12929_v43 }
0x200c   :  { %6255 = vmatpush.msrb.mxu0 %v12935_v62 }
0x200e   :  { %6256 = vmatpush.msrb.mxu0 %v12941_v46 }
0x2084   :  { %v5738_v17 = vpop.f32.mrf.mxu0 }
0x2085   :  { %v5741_v47 = vadd.f32 %v5738_v17, %v290_v56 }
0x2087   :  { %7905 = vtanh.f32 %v5741_v47  ;;  %v7764_v6 = vmul.f32 -1.442695, %v5741_v47 }
0x2089   :  { %7907 = vpow2.f32 %v7764_v6 }
0x208d   :  { %v7906_v40 = vpop.eup %7905 }
0x208e   :  { %5764 = vrot.lane.b32.xlu2 %v7906_v40, %s8237_s19 }
0x208f   :  { %v7908_v53 = vpop.eup %7907 }
0x2090   :  { %v5745_v11 = vadd.f32 1.0, %v7908_v53 }
0x2092   :  { %7909 = vrcp.f32 %v5745_v11  ;;  %v5757_v58 = vand.u32 2147483648, %v5745_v11  ;;  %vm5751_vm3 = vweird.f32 %v5745_v11  ;;  %v5755_v26 = vand.u32 2147483647, %v5745_v11 }
0x2094   :  { %v5758_v44 = vor.u32 1.1754944e-38, %v5757_v58  ;;  %vm5756_vm6 = vcmp.eq.f32.partialorder %v5755_v26, 8.507059e+37 }
0x2098   :  { %v7910_v41 = vpop.eup %7909 }
0x2099   :  { %v5747_v27 = vmul.f32 %v7910_v41, %v5745_v11  ;;  %vm5752_vm2 = vweird.f32 %v7910_v41 }
0x209a   :  { %vm5753_vm5 = vmor %vm5751_vm3, %vm5752_vm2 }
0x209b   :  { %v5748_v57 = vsub.f32 1.0, %v5747_v27 }
0x209d   :  { %v5749_v55 = vmul.f32 %v7910_v41, %v5748_v57 }
0x209f   :  { %v5750_v18 = vadd.f32 %v7910_v41, %v5749_v55 }
0x20a1   :  { %v5754_v5 = vsel %vm5753_vm5, %v7910_v41, %v5750_v18 }
0x20a2   :  { %v5759_v33 = vsel %vm5756_vm6, %v5758_v44, %v5754_v5 }
0x20a3   :  { %v5762_v49 = vmul.f32 %v5759_v33, %v5707_v21 }
0x20e8   :  { %v5765_v63 = vpop.permute.xlu2 %5764 }
0x20e9   :  { %v5767_v0 = vmul.f32 %v5765_v63, %v5759_v33 }
0x20eb   :  { %5769 = vrot.lane.b32.xlu0 %v5767_v0, %s8238_s5 }
0x215d   :  { %v5770_v13 = vpop.permute.xlu0 %5769 }
0x215e   :  { %v5772_v31 = vadd.f32 %v5770_v13, %v5762_v49 }
0x2160   :  { %7911 = vtanh.f32 %v5772_v31 }
0x2166   :  { %v7912_v28 = vpop.eup %7911 }
0x2167   :  { %5775 = vrot.lane.b32.xlu1 %v7912_v28, %s8237_s19 }
0x21d9   :  { %v5776_v61 = vpop.permute.xlu1 %5775 }
0x21da   :  { %v5778_v20 = vmul.f32 %v5776_v61, %v5759_v33  ;;  %v14321_v61 = vld [vmem:[#allocation25_spill] sm:$0xff] }
0x21dc   :  { %5782 = vrot.lane.b32.xlu2 %v5778_v20, %s8238_s5  ;;  %v299_v20 = vadd.f32 %v12835_v45, %v14321_v61 }
0x2236   :  { %v5783_v15 = vpop.permute.xlu2 %5782 }
0x2237   :  { %7765 = vmatmul.msk.f32.vlgmr.msra.gmra.mxu1 %vm5198_vm4, %v5783_v15 }
0x2238   :  { %6318 = vmatpush.msra.mxu1 %v12912_v23 }
0x223a   :  { %6319 = vmatpush.msra.mxu1 %v12929_v43 }
0x223c   :  { %6320 = vmatpush.msra.mxu1 %v12935_v62 }
0x223e   :  { %6321 = vmatpush.msra.mxu1 %v12941_v46 }
0x22b4   :  { %v5803_v10 = vpop.f32.mrf.mxu1 }
0x22b5   :  { %v5806_v25 = vadd.f32 %v5803_v10, %v293_v9 }
0x22b7   :  { %7913 = vtanh.f32 %v5806_v25  ;;  %v7766_v19 = vmul.f32 -1.442695, %v5806_v25 }
0x22b9   :  { %7915 = vpow2.f32 %v7766_v19 }
0x22bd   :  { %v7914_v22 = vpop.eup %7913 }
0x22be   :  { %5829 = vrot.lane.b32.xlu0 %v7914_v22, %s8237_s19 }
0x22bf   :  { %v7916_v37 = vpop.eup %7915 }
0x22c0   :  { %v5810_v42 = vadd.f32 1.0, %v7916_v37 }
0x22c2   :  { %7917 = vrcp.f32 %v5810_v42  ;;  %v5822_v7 = vand.u32 2147483648, %v5810_v42  ;;  %vm5816_vm8 = vweird.f32 %v5810_v42  ;;  %v5820_v29 = vand.u32 2147483647, %v5810_v42 }
0x22c4   :  { %v5823_v14 = vor.u32 1.1754944e-38, %v5822_v7  ;;  %vm5821_vm10 = vcmp.eq.f32.partialorder %v5820_v29, 8.507059e+37 }
0x22c8   :  { %v7918_v60 = vpop.eup %7917 }
0x22c9   :  { %v5812_v35 = vmul.f32 %v7918_v60, %v5810_v42  ;;  %vm5817_vm7 = vweird.f32 %v7918_v60 }
0x22ca   :  { %vm5818_vm9 = vmor %vm5816_vm8, %vm5817_vm7 }
0x22cb   :  { %v5813_v59 = vsub.f32 1.0, %v5812_v35 }
0x22cd   :  { %v5814_v48 = vmul.f32 %v7918_v60, %v5813_v59 }
0x22cf   :  { %v5815_v51 = vadd.f32 %v7918_v60, %v5814_v48 }
0x22d1   :  { %v5819_v8 = vsel %vm5818_vm9, %v7918_v60, %v5815_v51 }
0x22d2   :  { %v5824_v30 = vsel %vm5821_vm10, %v5823_v14, %v5819_v8 }
0x22d3   :  { %v5827_v34 = vmul.f32 %v5824_v30, %v5772_v31 }
0x2330   :  { %v5830_v50 = vpop.permute.xlu0 %5829 }
0x2331   :  { %v5832_v52 = vmul.f32 %v5830_v50, %v5824_v30 }
0x2333   :  { %5834 = vrot.lane.b32.xlu1 %v5832_v52, %s8238_s5 }
0x23a5   :  { %v5835_v16 = vpop.permute.xlu1 %5834 }
0x23a6   :  { %v5837_v32 = vadd.f32 %v5835_v16, %v5827_v34 }
0x23a8   :  { %7919 = vtanh.f32 %v5837_v32 }
0x23ae   :  { %v7920_v38 = vpop.eup %7919 }
0x23af   :  { %5840 = vrot.lane.b32.xlu2 %v7920_v38, %s8237_s19  ;;  %v13002_v38 = vld [vmem:[%s14309_s1] ss:$0 sm:$0xff] }
0x2409   :  { %v5841_v4 = vpop.permute.xlu2 %5840 }
0x240a   :  { %v5843_v21 = vmul.f32 %v5841_v4, %v5824_v30  ;;  %v14322_v4 = vld [vmem:[#allocation26_spill] sm:$0xff] }
0x240c   :  { %5847 = vrot.lane.b32.xlu0 %v5843_v21, %s8238_s5  ;;  %v302_v21 = vadd.f32 %v13002_v38, %v14322_v4 }
0x247e   :  { %v5848_v12 = vpop.permute.xlu0 %5847 }
0x247f   :  { %7767 = vmatmul.msk.f32.vlgmr.msra.gmra.mxu2 %vm5198_vm4, %v5848_v12 }
0x2480   :  { %6383 = vmatpush.msra.mxu2 %v12912_v23 }
0x2482   :  { %6384 = vmatpush.msra.mxu2 %v12929_v43 }
0x2484   :  { %6385 = vmatpush.msra.mxu2 %v12935_v62 }
0x2486   :  { %6386 = vmatpush.msra.mxu2 %v12941_v46 }
0x2502   :  { %v5868_v24 = vpop.f32.mrf.mxu2 }
0x2503   :  { %v5871_v1 = vadd.f32 %v5868_v24, %v296_v2 }
0x2505   :  { %7921 = vtanh.f32 %v5871_v1  ;;  %v7768_v17 = vmul.f32 -1.442695, %v5871_v1 }
0x2507   :  { %7923 = vpow2.f32 %v7768_v17 }
0x250b   :  { %v7922_v56 = vpop.eup %7921 }
0x250c   :  { %5894 = vrot.lane.b32.xlu1 %v7922_v56, %s8237_s19 }
0x250d   :  { %v7924_v47 = vpop.eup %7923 }
0x250e   :  { %v5875_v40 = vadd.f32 1.0, %v7924_v47 }
0x2510   :  { %7925 = vrcp.f32 %v5875_v40  ;;  %v5887_v57 = vand.u32 2147483648, %v5875_v40  ;;  %vm5881_vm12 = vweird.f32 %v5875_v40  ;;  %v5885_v55 = vand.u32 2147483647, %v5875_v40 }
0x2512   :  { %v5888_v58 = vor.u32 1.1754944e-38, %v5887_v57  ;;  %vm5886_vm14 = vcmp.eq.f32.partialorder %v5885_v55, 8.507059e+37 }
0x2516   :  { %v7926_v6 = vpop.eup %7925 }
0x2517   :  { %v5877_v53 = vmul.f32 %v7926_v6, %v5875_v40  ;;  %vm5882_vm11 = vweird.f32 %v7926_v6 }
0x2518   :  { %vm5883_vm13 = vmor %vm5881_vm12, %vm5882_vm11 }
0x2519   :  { %v5878_v11 = vsub.f32 1.0, %v5877_v53 }
0x251b   :  { %v5879_v41 = vmul.f32 %v7926_v6, %v5878_v11 }
0x251d   :  { %v5880_v27 = vadd.f32 %v7926_v6, %v5879_v41 }
0x251f   :  { %v5884_v18 = vsel %vm5883_vm13, %v7926_v6, %v5880_v27 }
0x2520   :  { %v5889_v5 = vsel %vm5886_vm14, %v5888_v58, %v5884_v18 }
0x2521   :  { %v5892_v63 = vmul.f32 %v5889_v5, %v5837_v32 }
0x257e   :  { %v5895_v26 = vpop.permute.xlu1 %5894 }
0x257f   :  { %v5897_v44 = vmul.f32 %v5895_v26, %v5889_v5 }
0x2581   :  { %5899 = vrot.lane.b32.xlu2 %v5897_v44, %s8238_s5 }
0x25db   :  { %v5900_v33 = vpop.permute.xlu2 %5899 }
0x25dc   :  { %v5902_v0 = vadd.f32 %v5900_v33, %v5892_v63 }
0x25de   :  { %7927 = vtanh.f32 %v5902_v0 }
0x25e4   :  { %v7928_v49 = vpop.eup %7927 }
0x25e5   :  { %5905 = vrot.lane.b32.xlu0 %v7928_v49, %s8237_s19 }
0x2657   :  { %v5906_v13 = vpop.permute.xlu0 %5905 }
0x2658   :  { %v5908_v31 = vmul.f32 %v5906_v13, %v5889_v5  ;;  %v14323_v13 = vld [vmem:[#allocation27_spill] sm:$0xff] }
0x265a   :  { %5912 = vrot.lane.b32.xlu1 %v5908_v31, %s8238_s5  ;;  %v305_v31 = vadd.f32 %v13002_v38, %v14323_v13 }
0x26cc   :  { %v5913_v28 = vpop.permute.xlu1 %5912 }
0x26cd   :  { %7769 = vmatmul.msk.f32.vlgmr.msra.gmra.mxu3 %vm5198_vm4, %v5913_v28 }
0x26ce   :  { %6448 = vmatpush.msra.mxu3 %v12912_v23 }
0x26d0   :  { %6449 = vmatpush.msra.mxu3 %v12929_v43 }
0x26d2   :  { %6450 = vmatpush.msra.mxu3 %v12935_v62 }
0x26d4   :  { %6451 = vmatpush.msra.mxu3 %v12941_v46 }
0x2750   :  { %v5933_v15 = vpop.f32.mrf.mxu3 }
0x2751   :  { %v5936_v36 = vadd.f32 %v5933_v15, %v299_v20 }
0x2753   :  { %7929 = vtanh.f32 %v5936_v36  ;;  %v7770_v10 = vmul.f32 -1.442695, %v5936_v36 }
0x2755   :  { %7931 = vpow2.f32 %v7770_v10 }
0x2759   :  { %v7930_v9 = vpop.eup %7929 }
0x275a   :  { %5959 = vrot.lane.b32.xlu2 %v7930_v9, %s8237_s19 }
0x275b   :  { %v7932_v25 = vpop.eup %7931 }
0x275c   :  { %v5940_v22 = vadd.f32 1.0, %v7932_v25 }
0x275e   :  { %7933 = vrcp.f32 %v5940_v22  ;;  %v5952_v59 = vand.u32 2147483648, %v5940_v22  ;;  %vm5946_vm0 = vweird.f32 %v5940_v22  ;;  %v5950_v45 = vand.u32 2147483647, %v5940_v22 }
0x2760   :  { %v5953_v51 = vor.u32 1.1754944e-38, %v5952_v59  ;;  %vm5951_vm2 = vcmp.eq.f32.partialorder %v5950_v45, 8.507059e+37 }
0x2764   :  { %v7934_v19 = vpop.eup %7933 }
0x2765   :  { %v5942_v37 = vmul.f32 %v7934_v19, %v5940_v22  ;;  %vm5947_vm15 = vweird.f32 %v7934_v19 }
0x2766   :  { %vm5948_vm1 = vmor %vm5946_vm0, %vm5947_vm15 }
0x2767   :  { %v5943_v42 = vsub.f32 1.0, %v5942_v37 }
0x2769   :  { %v5944_v60 = vmul.f32 %v7934_v19, %v5943_v42 }
0x276b   :  { %v5945_v35 = vadd.f32 %v7934_v19, %v5944_v60 }
0x276d   :  { %v5949_v48 = vsel %vm5948_vm1, %v7934_v19, %v5945_v35 }
0x276e   :  { %v5954_v29 = vsel %vm5951_vm2, %v5953_v51, %v5949_v48 }
0x276f   :  { %v5957_v14 = vmul.f32 %v5954_v29, %v5902_v0 }
0x27b4   :  { %v5960_v7 = vpop.permute.xlu2 %5959 }
0x27b5   :  { %v5962_v8 = vmul.f32 %v5960_v7, %v5954_v29 }
0x27b7   :  { %5964 = vrot.lane.b32.xlu0 %v5962_v8, %s8238_s5 }
0x2829   :  { %v5965_v50 = vpop.permute.xlu0 %5964 }
0x282a   :  { %v5967_v30 = vadd.f32 %v5965_v50, %v5957_v14 }
0x282c   :  { %7935 = vtanh.f32 %v5967_v30 }
0x2832   :  { %v7936_v52 = vpop.eup %7935 }
0x2833   :  { %5970 = vrot.lane.b32.xlu1 %v7936_v52, %s8237_s19 }
0x28a5   :  { %v5971_v34 = vpop.permute.xlu1 %5970 }
0x28a6   :  { %v5973_v16 = vmul.f32 %v5971_v34, %v5954_v29  ;;  %v14324_v34 = vld [vmem:[#allocation28_spill] sm:$0xff] }
0x28a8   :  { %5977 = vrot.lane.b32.xlu2 %v5973_v16, %s8238_s5  ;;  %v308_v16 = vadd.f32 %v13002_v38, %v14324_v34 }
0x2902   :  { %v5978_v32 = vpop.permute.xlu2 %5977 }
0x2903   :  { %7771 = vmatmul.msk.f32.vlgmr.msra.gmra.mxu0 %vm5198_vm4, %v5978_v32 }
0x2904   :  { %6513 = vmatpush.msra.mxu0 %v12912_v23 }
0x2906   :  { %6514 = vmatpush.msra.mxu0 %v12929_v43 }
0x2908   :  { %6515 = vmatpush.msra.mxu0 %v12935_v62 }
0x290a   :  { %6516 = vmatpush.msra.mxu0 %v12941_v46 }
0x2980   :  { %v5998_v12 = vpop.f32.mrf.mxu0 }
0x2981   :  { %v6001_v39 = vadd.f32 %v5998_v12, %v302_v21 }
0x2983   :  { %7937 = vtanh.f32 %v6001_v39  ;;  %v7772_v24 = vmul.f32 -1.442695, %v6001_v39 }
0x2985   :  { %7939 = vpow2.f32 %v7772_v24 }
0x2989   :  { %v7938_v2 = vpop.eup %7937 }
0x298a   :  { %6024 = vrot.lane.b32.xlu0 %v7938_v2, %s8237_s19 }
0x298b   :  { %v7940_v1 = vpop.eup %7939 }
0x298c   :  { %v6005_v56 = vadd.f32 1.0, %v7940_v1 }
0x298e   :  { %7941 = vrcp.f32 %v6005_v56  ;;  %v6017_v11 = vand.u32 2147483648, %v6005_v56  ;;  %vm6011_vm5 = vweird.f32 %v6005_v56  ;;  %v6015_v41 = vand.u32 2147483647, %v6005_v56 }
0x2990   :  { %v6018_v57 = vor.u32 1.1754944e-38, %v6017_v11  ;;  %vm6016_vm7 = vcmp.eq.f32.partialorder %v6015_v41, 8.507059e+37 }
0x2994   :  { %v7942_v17 = vpop.eup %7941 }
0x2995   :  { %v6007_v47 = vmul.f32 %v7942_v17, %v6005_v56  ;;  %vm6012_vm3 = vweird.f32 %v7942_v17 }
0x2996   :  { %vm6013_vm6 = vmor %vm6011_vm5, %vm6012_vm3 }
0x2997   :  { %v6008_v40 = vsub.f32 1.0, %v6007_v47 }
0x2999   :  { %v6009_v6 = vmul.f32 %v7942_v17, %v6008_v40 }
0x299b   :  { %v6010_v53 = vadd.f32 %v7942_v17, %v6009_v6 }
0x299d   :  { %v6014_v27 = vsel %vm6013_vm6, %v7942_v17, %v6010_v53 }
0x299e   :  { %v6019_v18 = vsel %vm6016_vm7, %v6018_v57, %v6014_v27 }
0x299f   :  { %v6022_v26 = vmul.f32 %v6019_v18, %v5967_v30 }
0x29fc   :  { %v6025_v55 = vpop.permute.xlu0 %6024 }
0x29fd   :  { %v6027_v58 = vmul.f32 %v6025_v55, %v6019_v18 }
0x29ff   :  { %6029 = vrot.lane.b32.xlu1 %v6027_v58, %s8238_s5 }
0x2a71   :  { %v6030_v5 = vpop.permute.xlu1 %6029 }
0x2a72   :  { %v6032_v44 = vadd.f32 %v6030_v5, %v6022_v26 }
0x2a74   :  { %7943 = vtanh.f32 %v6032_v44 }
0x2a7a   :  { %v7944_v63 = vpop.eup %7943 }
0x2a7b   :  { %6035 = vrot.lane.b32.xlu2 %v7944_v63, %s8237_s19 }
0x2ad5   :  { %v6036_v33 = vpop.permute.xlu2 %6035 }
0x2ad6   :  { %v6038_v0 = vmul.f32 %v6036_v33, %v6019_v18  ;;  %v14325_v33 = vld [vmem:[#allocation29_spill] sm:$0xff] }
0x2ad8   :  { %6042 = vrot.lane.b32.xlu0 %v6038_v0, %s8238_s5  ;;  %v311_v0 = vadd.f32 %v13002_v38, %v14325_v33 }
0x2b4a   :  { %v6043_v49 = vpop.permute.xlu0 %6042 }
0x2b4b   :  { %7773 = vmatmul.msk.f32.vlgmr.msrb.gmra.mxu1 %vm5198_vm4, %v6043_v49 }
0x2b4c   :  { %6578 = vmatpush.msrb.mxu1 %v12912_v23 }
0x2b4e   :  { %6579 = vmatpush.msrb.mxu1 %v12929_v43 }
0x2b50   :  { %6580 = vmatpush.msrb.mxu1 %v12935_v62 }
0x2b52   :  { %6581 = vmatpush.msrb.mxu1 %v12941_v46 }
0x2bc8   :  { %v6063_v28 = vpop.f32.mrf.mxu1 }
0x2bc9   :  { %v6066_v61 = vadd.f32 %v6063_v28, %v305_v31 }
0x2bcb   :  { %7945 = vtanh.f32 %v6066_v61  ;;  %v7774_v15 = vmul.f32 -1.442695, %v6066_v61 }
0x2bcd   :  { %7947 = vpow2.f32 %v7774_v15 }
0x2bd1   :  { %v7946_v20 = vpop.eup %7945 }
0x2bd2   :  { %6089 = vrot.lane.b32.xlu1 %v7946_v20, %s8237_s19 }
0x2bd3   :  { %v7948_v36 = vpop.eup %7947 }
0x2bd4   :  { %v6070_v9 = vadd.f32 1.0, %v7948_v36 }
0x2bd6   :  { %7949 = vrcp.f32 %v6070_v9  ;;  %v6082_v42 = vand.u32 2147483648, %v6070_v9  ;;  %vm6076_vm9 = vweird.f32 %v6070_v9  ;;  %v6080_v60 = vand.u32 2147483647, %v6070_v9 }
0x2bd8   :  { %v6083_v59 = vor.u32 1.1754944e-38, %v6082_v42  ;;  %vm6081_vm11 = vcmp.eq.f32.partialorder %v6080_v60, 8.507059e+37 }
0x2bdc   :  { %v7950_v10 = vpop.eup %7949 }
0x2bdd   :  { %v6072_v25 = vmul.f32 %v7950_v10, %v6070_v9  ;;  %vm6077_vm8 = vweird.f32 %v7950_v10 }
0x2bde   :  { %vm6078_vm10 = vmor %vm6076_vm9, %vm6077_vm8 }
0x2bdf   :  { %v6073_v22 = vsub.f32 1.0, %v6072_v25 }
0x2be1   :  { %v6074_v19 = vmul.f32 %v7950_v10, %v6073_v22 }
0x2be3   :  { %v6075_v37 = vadd.f32 %v7950_v10, %v6074_v19 }
0x2be5   :  { %v6079_v35 = vsel %vm6078_vm10, %v7950_v10, %v6075_v37 }
0x2be6   :  { %v6084_v48 = vsel %vm6081_vm11, %v6083_v59, %v6079_v35 }
0x2be7   :  { %v6087_v7 = vmul.f32 %v6084_v48, %v6032_v44 }
0x2c44   :  { %v6090_v45 = vpop.permute.xlu1 %6089 }
0x2c45   :  { %v6092_v51 = vmul.f32 %v6090_v45, %v6084_v48 }
0x2c47   :  { %6094 = vrot.lane.b32.xlu2 %v6092_v51, %s8238_s5 }
0x2ca1   :  { %v6095_v29 = vpop.permute.xlu2 %6094 }
0x2ca2   :  { %v6097_v8 = vadd.f32 %v6095_v29, %v6087_v7 }
0x2ca4   :  { %7951 = vtanh.f32 %v6097_v8 }
0x2caa   :  { %v7952_v14 = vpop.eup %7951 }
0x2cab   :  { %6100 = vrot.lane.b32.xlu0 %v7952_v14, %s8237_s19 }
0x2d1d   :  { %v6101_v50 = vpop.permute.xlu0 %6100 }
0x2d1e   :  { %v6103_v30 = vmul.f32 %v6101_v50, %v6084_v48  ;;  %v14326_v50 = vld [vmem:[#allocation30_spill] sm:$0xff] }
0x2d20   :  { %6107 = vrot.lane.b32.xlu1 %v6103_v30, %s8238_s5  ;;  %v314_v30 = vadd.f32 %v13002_v38, %v14326_v50 }
0x2d92   :  { %v6108_v52 = vpop.permute.xlu1 %6107 }
0x2d93   :  { %7775 = vmatmul.msk.f32.vlgmr.msrb.gmra.mxu2 %vm5198_vm4, %v6108_v52 }
0x2d94   :  { %6643 = vmatpush.msrb.mxu2 %v12912_v23 }
0x2d96   :  { %6644 = vmatpush.msrb.mxu2 %v12929_v43 }
0x2d98   :  { %6645 = vmatpush.msrb.mxu2 %v12935_v62 }
0x2d9a   :  { %6646 = vmatpush.msrb.mxu2 %v12941_v46 }
0x2e16   :  { %v6128_v32 = vpop.f32.mrf.mxu2 }
0x2e17   :  { %v6131_v4 = vadd.f32 %v6128_v32, %v308_v16 }
0x2e19   :  { %7953 = vtanh.f32 %v6131_v4  ;;  %v7776_v12 = vmul.f32 -1.442695, %v6131_v4 }
0x2e1b   :  { %7955 = vpow2.f32 %v7776_v12 }
0x2e1f   :  { %v7954_v21 = vpop.eup %7953 }
0x2e20   :  { %6154 = vrot.lane.b32.xlu2 %v7954_v21, %s8237_s19 }
0x2e21   :  { %v7956_v39 = vpop.eup %7955 }
0x2e22   :  { %v6135_v2 = vadd.f32 1.0, %v7956_v39 }
0x2e24   :  { %7957 = vrcp.f32 %v6135_v2  ;;  %v6147_v40 = vand.u32 2147483648, %v6135_v2  ;;  %vm6141_vm13 = vweird.f32 %v6135_v2  ;;  %v6145_v6 = vand.u32 2147483647, %v6135_v2 }
0x2e26   :  { %v6148_v11 = vor.u32 1.1754944e-38, %v6147_v40  ;;  %vm6146_vm15 = vcmp.eq.f32.partialorder %v6145_v6, 8.507059e+37 }
0x2e2a   :  { %v7958_v24 = vpop.eup %7957 }
0x2e2b   :  { %v6137_v1 = vmul.f32 %v7958_v24, %v6135_v2  ;;  %vm6142_vm12 = vweird.f32 %v7958_v24 }
0x2e2c   :  { %vm6143_vm14 = vmor %vm6141_vm13, %vm6142_vm12 }
0x2e2d   :  { %v6138_v56 = vsub.f32 1.0, %v6137_v1 }
0x2e2f   :  { %v6139_v17 = vmul.f32 %v7958_v24, %v6138_v56 }
0x2e31   :  { %v6140_v47 = vadd.f32 %v7958_v24, %v6139_v17 }
0x2e33   :  { %v6144_v53 = vsel %vm6143_vm14, %v7958_v24, %v6140_v47 }
0x2e34   :  { %v6149_v27 = vsel %vm6146_vm15, %v6148_v11, %v6144_v53 }
0x2e35   :  { %v6152_v55 = vmul.f32 %v6149_v27, %v6097_v8 }
0x2e7a   :  { %v6155_v41 = vpop.permute.xlu2 %6154 }
0x2e7b   :  { %v6157_v57 = vmul.f32 %v6155_v41, %v6149_v27 }
0x2e7d   :  { %6159 = vrot.lane.b32.xlu0 %v6157_v57, %s8238_s5 }
0x2eef   :  { %v6160_v18 = vpop.permute.xlu0 %6159 }
0x2ef0   :  { %v6162_v58 = vadd.f32 %v6160_v18, %v6152_v55 }
0x2ef2   :  { %7959 = vtanh.f32 %v6162_v58 }
0x2ef8   :  { %v7960_v26 = vpop.eup %7959 }
0x2ef9   :  { %6165 = vrot.lane.b32.xlu1 %v7960_v26, %s8237_s19 }
0x2f6b   :  { %v6166_v5 = vpop.permute.xlu1 %6165 }
0x2f6c   :  { %v6168_v44 = vmul.f32 %v6166_v5, %v6149_v27  ;;  %v14327_v5 = vld [vmem:[#allocation31_spill] sm:$0xff] }
0x2f6e   :  { %6172 = vrot.lane.b32.xlu2 %v6168_v44, %s8238_s5  ;;  %v317_v44 = vadd.f32 %v13002_v38, %v14327_v5 }
0x2fc8   :  { %v6173_v63 = vpop.permute.xlu2 %6172 }
0x2fc9   :  { %7777 = vmatmul.msk.f32.vlgmr.msrb.gmra.mxu3 %vm5198_vm4, %v6173_v63 }
0x2fca   :  { %6708 = vmatpush.msrb.mxu3 %v12912_v23 }
0x2fcc   :  { %6709 = vmatpush.msrb.mxu3 %v12929_v43 }
0x2fce   :  { %6710 = vmatpush.msrb.mxu3 %v12935_v62 }
0x2fd0   :  { %6711 = vmatpush.msrb.mxu3 %v12941_v46 }
0x304c   :  { %v6193_v49 = vpop.f32.mrf.mxu3 }
0x304d   :  { %v6196_v13 = vadd.f32 %v6193_v49, %v311_v0 }
0x304f   :  { %7961 = vtanh.f32 %v6196_v13  ;;  %v7778_v28 = vmul.f32 -1.442695, %v6196_v13 }
0x3051   :  { %7963 = vpow2.f32 %v7778_v28 }
0x3055   :  { %v7962_v31 = vpop.eup %7961 }
0x3056   :  { %6219 = vrot.lane.b32.xlu0 %v7962_v31, %s8237_s19 }
0x3057   :  { %v7964_v61 = vpop.eup %7963 }
0x3058   :  { %v6200_v20 = vadd.f32 1.0, %v7964_v61 }
0x305a   :  { %7965 = vrcp.f32 %v6200_v20  ;;  %v6212_v22 = vand.u32 2147483648, %v6200_v20  ;;  %vm6206_vm1 = vweird.f32 %v6200_v20  ;;  %v6210_v19 = vand.u32 2147483647, %v6200_v20 }
0x305c   :  { %v6213_v42 = vor.u32 1.1754944e-38, %v6212_v22  ;;  %vm6211_vm3 = vcmp.eq.f32.partialorder %v6210_v19, 8.507059e+37 }
0x3060   :  { %v7966_v15 = vpop.eup %7965 }
0x3061   :  { %v6202_v36 = vmul.f32 %v7966_v15, %v6200_v20  ;;  %vm6207_vm0 = vweird.f32 %v7966_v15 }
0x3062   :  { %vm6208_vm2 = vmor %vm6206_vm1, %vm6207_vm0 }
0x3063   :  { %v6203_v9 = vsub.f32 1.0, %v6202_v36 }
0x3065   :  { %v6204_v10 = vmul.f32 %v7966_v15, %v6203_v9 }
0x3067   :  { %v6205_v25 = vadd.f32 %v7966_v15, %v6204_v10 }
0x3069   :  { %v6209_v37 = vsel %vm6208_vm2, %v7966_v15, %v6205_v25 }
0x306a   :  { %v6214_v35 = vsel %vm6211_vm3, %v6213_v42, %v6209_v37 }
0x306b   :  { %v6217_v45 = vmul.f32 %v6214_v35, %v6162_v58 }
0x30c8   :  { %v6220_v60 = vpop.permute.xlu0 %6219 }
0x30c9   :  { %v6222_v59 = vmul.f32 %v6220_v60, %v6214_v35 }
0x30cb   :  { %6224 = vrot.lane.b32.xlu1 %v6222_v59, %s8238_s5 }
0x313d   :  { %v6225_v48 = vpop.permute.xlu1 %6224 }
0x313e   :  { %v6227_v51 = vadd.f32 %v6225_v48, %v6217_v45 }
0x3140   :  { %7967 = vtanh.f32 %v6227_v51 }
0x3146   :  { %v7968_v7 = vpop.eup %7967 }
0x3147   :  { %6230 = vrot.lane.b32.xlu2 %v7968_v7, %s8237_s19  ;;  %v13069_v7 = vld [vmem:[%s14297_s0 + $0x18] sm:$0xff] }
0x31a1   :  { %v6231_v29 = vpop.permute.xlu2 %6230 }
0x31a2   :  { %v6233_v8 = vmul.f32 %v6231_v29, %v6214_v35  ;;  %v14328_v29 = vld [vmem:[#allocation32_spill] sm:$0xff] }
0x31a4   :  { %6237 = vrot.lane.b32.xlu0 %v6233_v8, %s8238_s5  ;;  %v320_v8 = vadd.f32 %v13002_v38, %v14328_v29 }
0x3216   :  { %v6238_v14 = vpop.permute.xlu0 %6237 }
0x3217   :  { %7779 = vmatmul.msk.f32.vlgmr.msrb.gmra.mxu0 %vm5198_vm4, %v6238_v14 }
0x3218   :  { %6773 = vmatpush.msrb.mxu0 %v12912_v23 }
0x321a   :  { %6774 = vmatpush.msrb.mxu0 %v12929_v43 }
0x321c   :  { %6775 = vmatpush.msrb.mxu0 %v12935_v62 }
0x321e   :  { %6776 = vmatpush.msrb.mxu0 %v12941_v46 }
0x3294   :  { %v6258_v52 = vpop.f32.mrf.mxu0 }
0x3295   :  { %v6261_v34 = vadd.f32 %v6258_v52, %v314_v30 }
0x3297   :  { %7969 = vtanh.f32 %v6261_v34  ;;  %v7780_v32 = vmul.f32 -1.442695, %v6261_v34 }
0x3299   :  { %7971 = vpow2.f32 %v7780_v32 }
0x329d   :  { %v7970_v16 = vpop.eup %7969 }
0x329e   :  { %6284 = vrot.lane.b32.xlu1 %v7970_v16, %s8237_s19 }
0x329f   :  { %v7972_v4 = vpop.eup %7971 }
0x32a0   :  { %v6265_v21 = vadd.f32 1.0, %v7972_v4 }
0x32a2   :  { %7973 = vrcp.f32 %v6265_v21  ;;  %v6277_v56 = vand.u32 2147483648, %v6265_v21  ;;  %vm6271_vm6 = vweird.f32 %v6265_v21  ;;  %v6275_v17 = vand.u32 2147483647, %v6265_v21 }
0x32a4   :  { %v6278_v40 = vor.u32 1.1754944e-38, %v6277_v56  ;;  %vm6276_vm8 = vcmp.eq.f32.partialorder %v6275_v17, 8.507059e+37 }
0x32a8   :  { %v7974_v12 = vpop.eup %7973 }
0x32a9   :  { %v6267_v39 = vmul.f32 %v7974_v12, %v6265_v21  ;;  %vm6272_vm5 = vweird.f32 %v7974_v12 }
0x32aa   :  { %vm6273_vm7 = vmor %vm6271_vm6, %vm6272_vm5 }
0x32ab   :  { %v6268_v2 = vsub.f32 1.0, %v6267_v39 }
0x32ad   :  { %v6269_v24 = vmul.f32 %v7974_v12, %v6268_v2 }
0x32af   :  { %v6270_v1 = vadd.f32 %v7974_v12, %v6269_v24 }
0x32b1   :  { %v6274_v47 = vsel %vm6273_vm7, %v7974_v12, %v6270_v1 }
0x32b2   :  { %v6279_v53 = vsel %vm6276_vm8, %v6278_v40, %v6274_v47 }
0x32b3   :  { %v6282_v41 = vmul.f32 %v6279_v53, %v6227_v51 }
0x3310   :  { %v6285_v6 = vpop.permute.xlu1 %6284 }
0x3311   :  { %v6287_v11 = vmul.f32 %v6285_v6, %v6279_v53 }
0x3313   :  { %6289 = vrot.lane.b32.xlu2 %v6287_v11, %s8238_s5 }
0x336d   :  { %v6290_v27 = vpop.permute.xlu2 %6289 }
0x336e   :  { %v6292_v57 = vadd.f32 %v6290_v27, %v6282_v41  ;;  %v13086_v27 = vld [vmem:[%s14297_s0 + $0x10] sm:$0xff] }
0x3370   :  { %7975 = vtanh.f32 %v6292_v57 }
0x3376   :  { %v7976_v55 = vpop.eup %7975 }
0x3377   :  { %6295 = vrot.lane.b32.xlu0 %v7976_v55, %s8237_s19  ;;  %v13098_v55 = vld [vmem:[%s14297_s0] sm:$0xff] }
0x33e9   :  { %v6296_v18 = vpop.permute.xlu0 %6295 }
0x33ea   :  { %v6298_v58 = vmul.f32 %v6296_v18, %v6279_v53  ;;  %v14329_v18 = vld [vmem:[#allocation33_spill] sm:$0xff] }
0x33ec   :  { %6302 = vrot.lane.b32.xlu1 %v6298_v58, %s8238_s5  ;;  %v323_v58 = vadd.f32 %v13002_v38, %v14329_v18 }
0x345e   :  { %v6303_v26 = vpop.permute.xlu1 %6302 }
0x345f   :  { %7781 = vmatmul.msk.f32.vlgmr.msra.gmra.mxu1 %vm5198_vm4, %v6303_v26 }
0x3460   :  { %6838 = vmatpush.msra.mxu1 %v12912_v23 }
0x3462   :  { %6839 = vmatpush.msra.mxu1 %v12929_v43 }
0x3464   :  { %6840 = vmatpush.msra.mxu1 %v12935_v62 }
0x3466   :  { %6841 = vmatpush.msra.mxu1 %v12941_v46 }
0x34dc   :  { %v6323_v63 = vpop.f32.mrf.mxu1 }
0x34dd   :  { %v6326_v33 = vadd.f32 %v6323_v63, %v317_v44 }
0x34df   :  { %7977 = vtanh.f32 %v6326_v33  ;;  %v7782_v49 = vmul.f32 -1.442695, %v6326_v33 }
0x34e1   :  { %7979 = vpow2.f32 %v7782_v49 }
0x34e5   :  { %v7978_v0 = vpop.eup %7977 }
0x34e6   :  { %6349 = vrot.lane.b32.xlu2 %v7978_v0, %s8237_s19 }
0x34e7   :  { %v7980_v13 = vpop.eup %7979 }
0x34e8   :  { %v6330_v31 = vadd.f32 1.0, %v7980_v13 }
0x34ea   :  { %7981 = vrcp.f32 %v6330_v31  ;;  %v6342_v36 = vand.u32 2147483648, %v6330_v31  ;;  %vm6336_vm10 = vweird.f32 %v6330_v31  ;;  %v6340_v9 = vand.u32 2147483647, %v6330_v31 }
0x34ec   :  { %v6343_v25 = vor.u32 1.1754944e-38, %v6342_v36  ;;  %vm6341_vm12 = vcmp.eq.f32.partialorder %v6340_v9, 8.507059e+37 }
0x34f0   :  { %v7982_v23 = vpop.eup %7981 }
0x34f1   :  { %v6332_v28 = vmul.f32 %v7982_v23, %v6330_v31  ;;  %vm6337_vm9 = vweird.f32 %v7982_v23 }
0x34f2   :  { %vm6338_vm11 = vmor %vm6336_vm10, %vm6337_vm9 }
0x34f3   :  { %v6333_v61 = vsub.f32 1.0, %v6332_v28 }
0x34f5   :  { %v6334_v20 = vmul.f32 %v7982_v23, %v6333_v61 }
0x34f7   :  { %v6335_v15 = vadd.f32 %v7982_v23, %v6334_v20 }
0x34f9   :  { %v6339_v10 = vsel %vm6338_vm11, %v7982_v23, %v6335_v15 }
0x34fa   :  { %v6344_v19 = vsel %vm6341_vm12, %v6343_v25, %v6339_v10 }
0x34fb   :  { %v6347_v42 = vmul.f32 %v6344_v19, %v6292_v57  ;;  %v13092_v57 = vld [vmem:[%s14297_s0 + $0x8] sm:$0xff] }
0x3540   :  { %v6350_v22 = vpop.permute.xlu2 %6349 }
0x3541   :  { %v6352_v37 = vmul.f32 %v6350_v22, %v6344_v19 }
0x3543   :  { %6354 = vrot.lane.b32.xlu0 %v6352_v37, %s8238_s5 }
0x35b5   :  { %v6355_v60 = vpop.permute.xlu0 %6354 }
0x35b6   :  { %v6357_v35 = vadd.f32 %v6355_v60, %v6347_v42 }
0x35b8   :  { %7983 = vtanh.f32 %v6357_v35 }
0x35be   :  { %v7984_v59 = vpop.eup %7983 }
0x35bf   :  { %6360 = vrot.lane.b32.xlu1 %v7984_v59, %s8237_s19 }
0x3631   :  { %v6361_v45 = vpop.permute.xlu1 %6360 }
0x3632   :  { %v6363_v48 = vmul.f32 %v6361_v45, %v6344_v19  ;;  %v14330_v45 = vld [vmem:[#allocation35_spill] sm:$0xff] }
0x3634   :  { %6367 = vrot.lane.b32.xlu2 %v6363_v48, %s8238_s5  ;;  %v326_v48 = vadd.f32 %v13002_v38, %v14330_v45 }
0x368e   :  { %v6368_v51 = vpop.permute.xlu2 %6367 }
0x368f   :  { %7783 = vmatmul.msk.f32.vlgmr.msra.gmra.mxu2 %vm5198_vm4, %v6368_v51 }
0x3690   :  { %6903 = vmatpush.msra.mxu2 %v13069_v7 }
0x3692   :  { %6904 = vmatpush.msra.mxu2 %v12929_v43 }
0x3694   :  { %6905 = vmatpush.msra.mxu2 %v12935_v62 }
0x3696   :  { %6906 = vmatpush.msra.mxu2 %v12941_v46 }
0x3712   :  { %v6388_v14 = vpop.f32.mrf.mxu2 }
0x3713   :  { %v6391_v50 = vadd.f32 %v6388_v14, %v320_v8 }
0x3715   :  { %7985 = vtanh.f32 %v6391_v50  ;;  %v7784_v52 = vmul.f32 -1.442695, %v6391_v50 }
0x3717   :  { %7987 = vpow2.f32 %v7784_v52 }
0x371b   :  { %v7986_v30 = vpop.eup %7985 }
0x371c   :  { %6414 = vrot.lane.b32.xlu0 %v7986_v30, %s8237_s19 }
0x371d   :  { %v7988_v34 = vpop.eup %7987 }
0x371e   :  { %v6395_v16 = vadd.f32 1.0, %v7988_v34 }
0x3720   :  { %7989 = vrcp.f32 %v6395_v16  ;;  %v6407_v46 = vand.u32 2147483648, %v6395_v16  ;;  %vm6401_vm14 = vweird.f32 %v6395_v16  ;;  %v6405_v12 = vand.u32 2147483647, %v6395_v16 }
0x3722   :  { %v6408_v2 = vor.u32 1.1754944e-38, %v6407_v46  ;;  %vm6406_vm0 = vcmp.eq.f32.partialorder %v6405_v12, 8.507059e+37 }
0x3726   :  { %v7990_v32 = vpop.eup %7989 }
0x3727   :  { %v6397_v43 = vmul.f32 %v7990_v32, %v6395_v16  ;;  %vm6402_vm13 = vweird.f32 %v7990_v32 }
0x3728   :  { %vm6403_vm15 = vmor %vm6401_vm14, %vm6402_vm13 }
0x3729   :  { %v6398_v4 = vsub.f32 1.0, %v6397_v43 }
0x372b   :  { %v6399_v62 = vmul.f32 %v7990_v32, %v6398_v4 }
0x372d   :  { %v6400_v21 = vadd.f32 %v7990_v32, %v6399_v62 }
0x372f   :  { %v6404_v39 = vsel %vm6403_vm15, %v7990_v32, %v6400_v21 }
0x3730   :  { %v6409_v1 = vsel %vm6406_vm0, %v6408_v2, %v6404_v39 }
0x3731   :  { %v6412_v17 = vmul.f32 %v6409_v1, %v6357_v35 }
0x378e   :  { %v6415_v24 = vpop.permute.xlu0 %6414 }
0x378f   :  { %v6417_v56 = vmul.f32 %v6415_v24, %v6409_v1 }
0x3791   :  { %6419 = vrot.lane.b32.xlu1 %v6417_v56, %s8238_s5 }
0x3803   :  { %v6420_v47 = vpop.permute.xlu1 %6419 }
0x3804   :  { %v6422_v40 = vadd.f32 %v6420_v47, %v6412_v17 }
0x3806   :  { %7991 = vtanh.f32 %v6422_v40 }
0x380c   :  { %v7992_v6 = vpop.eup %7991 }
0x380d   :  { %6425 = vrot.lane.b32.xlu2 %v7992_v6, %s8237_s19 }
0x3867   :  { %v6426_v53 = vpop.permute.xlu2 %6425 }
0x3868   :  { %v6428_v11 = vmul.f32 %v6426_v53, %v6409_v1  ;;  %v14331_v53 = vld [vmem:[#allocation37_spill] sm:$0xff] }
0x386a   :  { %6432 = vrot.lane.b32.xlu0 %v6428_v11, %s8238_s5  ;;  %v329_v11 = vadd.f32 %v13002_v38, %v14331_v53 }
0x38dc   :  { %v6433_v41 = vpop.permute.xlu0 %6432 }
0x38dd   :  { %7785 = vmatmul.msk.f32.vlgmr.msra.gmra.mxu3 %vm5198_vm4, %v6433_v41 }
0x38de   :  { %6968 = vmatpush.msra.mxu3 %v13069_v7 }
0x38e0   :  { %6969 = vmatpush.msra.mxu3 %v13086_v27 }
0x38e2   :  { %6970 = vmatpush.msra.mxu3 %v13092_v57 }
0x38e4   :  { %6971 = vmatpush.msra.mxu3 %v13098_v55 }
0x3960   :  { %v6453_v26 = vpop.f32.mrf.mxu3 }
0x3961   :  { %v6456_v5 = vadd.f32 %v6453_v26, %v323_v58 }
0x3963   :  { %7993 = vtanh.f32 %v6456_v5  ;;  %v7786_v63 = vmul.f32 -1.442695, %v6456_v5 }
0x3965   :  { %7995 = vpow2.f32 %v7786_v63 }
0x3969   :  { %v7994_v44 = vpop.eup %7993 }
0x396a   :  { %6479 = vrot.lane.b32.xlu1 %v7994_v44, %s8237_s19 }
0x396b   :  { %v7996_v33 = vpop.eup %7995 }
0x396c   :  { %v6460_v0 = vadd.f32 1.0, %v7996_v33 }
0x396e   :  { %7997 = vrcp.f32 %v6460_v0  ;;  %v6472_v61 = vand.u32 2147483648, %v6460_v0  ;;  %vm6466_vm2 = vweird.f32 %v6460_v0  ;;  %v6470_v20 = vand.u32 2147483647, %v6460_v0 }
0x3970   :  { %v6473_v36 = vor.u32 1.1754944e-38, %v6472_v61  ;;  %vm6471_vm5 = vcmp.eq.f32.partialorder %v6470_v20, 8.507059e+37 }
0x3974   :  { %v7998_v49 = vpop.eup %7997 }
0x3975   :  { %v6462_v13 = vmul.f32 %v7998_v49, %v6460_v0  ;;  %vm6467_vm1 = vweird.f32 %v7998_v49 }
0x3976   :  { %vm6468_vm3 = vmor %vm6466_vm2, %vm6467_vm1 }
0x3977   :  { %v6463_v31 = vsub.f32 1.0, %v6462_v13 }
0x3979   :  { %v6464_v23 = vmul.f32 %v7998_v49, %v6463_v31 }
0x397b   :  { %v6465_v28 = vadd.f32 %v7998_v49, %v6464_v23 }
0x397d   :  { %v6469_v15 = vsel %vm6468_vm3, %v7998_v49, %v6465_v28 }
0x397e   :  { %v6474_v10 = vsel %vm6471_vm5, %v6473_v36, %v6469_v15 }
0x397f   :  { %v6477_v22 = vmul.f32 %v6474_v10, %v6422_v40 }
0x39dc   :  { %v6480_v9 = vpop.permute.xlu1 %6479 }
0x39dd   :  { %v6482_v25 = vmul.f32 %v6480_v9, %v6474_v10 }
0x39df   :  { %6484 = vrot.lane.b32.xlu2 %v6482_v25, %s8238_s5 }
0x3a39   :  { %v6485_v19 = vpop.permute.xlu2 %6484 }
0x3a3a   :  { %v6487_v37 = vadd.f32 %v6485_v19, %v6477_v22 }
0x3a3c   :  { %7999 = vtanh.f32 %v6487_v37 }
0x3a42   :  { %v8000_v42 = vpop.eup %7999 }
0x3a43   :  { %6490 = vrot.lane.b32.xlu0 %v8000_v42, %s8237_s19 }
0x3ab5   :  { %v6491_v60 = vpop.permute.xlu0 %6490 }
0x3ab6   :  { %v6493_v35 = vmul.f32 %v6491_v60, %v6474_v10  ;;  %v14332_v60 = vld [vmem:[#allocation39_spill] sm:$0xff] }
0x3ab8   :  { %6497 = vrot.lane.b32.xlu1 %v6493_v35, %s8238_s5  ;;  %v332_v35 = vadd.f32 %v13002_v38, %v14332_v60 }
0x3b2a   :  { %v6498_v59 = vpop.permute.xlu1 %6497 }
0x3b2b   :  { %7787 = vmatmul.msk.f32.vlgmr.msra.gmra.mxu0 %vm5198_vm4, %v6498_v59 }
0x3b2c   :  { %7033 = vmatpush.msra.mxu0 %v13069_v7 }
0x3b2e   :  { %7034 = vmatpush.msra.mxu0 %v13086_v27 }
0x3b30   :  { %7035 = vmatpush.msra.mxu0 %v13092_v57 }
0x3b32   :  { %7036 = vmatpush.msra.mxu0 %v13098_v55 }
0x3ba8   :  { %v6518_v51 = vpop.f32.mrf.mxu0 }
0x3ba9   :  { %v6521_v29 = vadd.f32 %v6518_v51, %v326_v48 }
0x3bab   :  { %8001 = vtanh.f32 %v6521_v29  ;;  %v7788_v14 = vmul.f32 -1.442695, %v6521_v29 }
0x3bad   :  { %8003 = vpow2.f32 %v7788_v14 }
0x3bb1   :  { %v8002_v8 = vpop.eup %8001 }
0x3bb2   :  { %6544 = vrot.lane.b32.xlu2 %v8002_v8, %s8237_s19 }
0x3bb3   :  { %v8004_v50 = vpop.eup %8003 }
0x3bb4   :  { %v6525_v30 = vadd.f32 1.0, %v8004_v50 }
0x3bb6   :  { %8005 = vrcp.f32 %v6525_v30  ;;  %v6537_v4 = vand.u32 2147483648, %v6525_v30  ;;  %vm6531_vm7 = vweird.f32 %v6525_v30  ;;  %v6535_v62 = vand.u32 2147483647, %v6525_v30 }
0x3bb8   :  { %v6538_v46 = vor.u32 1.1754944e-38, %v6537_v4  ;;  %vm6536_vm9 = vcmp.eq.f32.partialorder %v6535_v62, 8.507059e+37 }
0x3bbc   :  { %v8006_v52 = vpop.eup %8005 }
0x3bbd   :  { %v6527_v34 = vmul.f32 %v8006_v52, %v6525_v30  ;;  %vm6532_vm6 = vweird.f32 %v8006_v52 }
0x3bbe   :  { %vm6533_vm8 = vmor %vm6531_vm7, %vm6532_vm6 }
0x3bbf   :  { %v6528_v16 = vsub.f32 1.0, %v6527_v34 }
0x3bc1   :  { %v6529_v32 = vmul.f32 %v8006_v52, %v6528_v16 }
0x3bc3   :  { %v6530_v43 = vadd.f32 %v8006_v52, %v6529_v32 }
0x3bc5   :  { %v6534_v21 = vsel %vm6533_vm8, %v8006_v52, %v6530_v43 }
0x3bc6   :  { %v6539_v39 = vsel %vm6536_vm9, %v6538_v46, %v6534_v21 }
0x3bc7   :  { %v6542_v24 = vmul.f32 %v6539_v39, %v6487_v37 }
0x3c0c   :  { %v6545_v12 = vpop.permute.xlu2 %6544 }
0x3c0d   :  { %v6547_v2 = vmul.f32 %v6545_v12, %v6539_v39 }
0x3c0f   :  { %6549 = vrot.lane.b32.xlu0 %v6547_v2, %s8238_s5 }
0x3c81   :  { %v6550_v1 = vpop.permute.xlu0 %6549 }
0x3c82   :  { %v6552_v56 = vadd.f32 %v6550_v1, %v6542_v24 }
0x3c84   :  { %8007 = vtanh.f32 %v6552_v56 }
0x3c8a   :  { %v8008_v17 = vpop.eup %8007 }
0x3c8b   :  { %6555 = vrot.lane.b32.xlu1 %v8008_v17, %s8237_s19 }
0x3cfd   :  { %v6556_v47 = vpop.permute.xlu1 %6555 }
0x3cfe   :  { %v6558_v40 = vmul.f32 %v6556_v47, %v6539_v39  ;;  %v14333_v47 = vld [vmem:[#allocation41_spill] sm:$0xff] }
0x3d00   :  { %6562 = vrot.lane.b32.xlu2 %v6558_v40, %s8238_s5  ;;  %v335_v40 = vadd.f32 %v13002_v38, %v14333_v47 }
0x3d5a   :  { %v6563_v6 = vpop.permute.xlu2 %6562 }
0x3d5b   :  { %7789 = vmatmul.msk.f32.vlgmr.msrb.gmra.mxu1 %vm5198_vm4, %v6563_v6 }
0x3d5c   :  { %7098 = vmatpush.msrb.mxu1 %v13069_v7 }
0x3d5e   :  { %7099 = vmatpush.msrb.mxu1 %v13086_v27 }
0x3d60   :  { %7100 = vmatpush.msrb.mxu1 %v13092_v57 }
0x3d62   :  { %7101 = vmatpush.msrb.mxu1 %v13098_v55 }
0x3dd8   :  { %v6583_v41 = vpop.f32.mrf.mxu1 }
0x3dd9   :  { %v6586_v18 = vadd.f32 %v6583_v41, %v329_v11 }
0x3ddb   :  { %8009 = vtanh.f32 %v6586_v18  ;;  %v7790_v26 = vmul.f32 -1.442695, %v6586_v18 }
0x3ddd   :  { %8011 = vpow2.f32 %v7790_v26 }
0x3de1   :  { %v8010_v58 = vpop.eup %8009 }
0x3de2   :  { %6609 = vrot.lane.b32.xlu0 %v8010_v58, %s8237_s19 }
0x3de3   :  { %v8012_v5 = vpop.eup %8011 }
0x3de4   :  { %v6590_v44 = vadd.f32 1.0, %v8012_v5 }
0x3de6   :  { %8013 = vrcp.f32 %v6590_v44  ;;  %v6602_v31 = vand.u32 2147483648, %v6590_v44  ;;  %vm6596_vm11 = vweird.f32 %v6590_v44  ;;  %v6600_v23 = vand.u32 2147483647, %v6590_v44 }
0x3de8   :  { %v6603_v61 = vor.u32 1.1754944e-38, %v6602_v31  ;;  %vm6601_vm13 = vcmp.eq.f32.partialorder %v6600_v23, 8.507059e+37 }
0x3dec   :  { %v8014_v63 = vpop.eup %8013 }
0x3ded   :  { %v6592_v33 = vmul.f32 %v8014_v63, %v6590_v44  ;;  %vm6597_vm10 = vweird.f32 %v8014_v63 }
0x3dee   :  { %vm6598_vm12 = vmor %vm6596_vm11, %vm6597_vm10 }
0x3def   :  { %v6593_v0 = vsub.f32 1.0, %v6592_v33 }
0x3df1   :  { %v6594_v49 = vmul.f32 %v8014_v63, %v6593_v0 }
0x3df3   :  { %v6595_v13 = vadd.f32 %v8014_v63, %v6594_v49 }
0x3df5   :  { %v6599_v28 = vsel %vm6598_vm12, %v8014_v63, %v6595_v13 }
0x3df6   :  { %v6604_v15 = vsel %vm6601_vm13, %v6603_v61, %v6599_v28 }
0x3df7   :  { %v6607_v9 = vmul.f32 %v6604_v15, %v6552_v56 }
0x3e54   :  { %v6610_v20 = vpop.permute.xlu0 %6609 }
0x3e55   :  { %v6612_v36 = vmul.f32 %v6610_v20, %v6604_v15 }
0x3e57   :  { %6614 = vrot.lane.b32.xlu1 %v6612_v36, %s8238_s5  ;;  %v13155_v36 = vld [vmem:[%s14309_s1] ss:$0 sm:$0xff] }
0x3ec9   :  { %v6615_v10 = vpop.permute.xlu1 %6614 }
0x3eca   :  { %v6617_v25 = vadd.f32 %v6615_v10, %v6607_v9  ;;  %v14334_v9 = vld [vmem:[#allocation43_spill] sm:$0xff] }
0x3ecb   :  { %v338_v10 = vadd.f32 %v13155_v36, %v14334_v9 }
0x3ecc   :  { %8015 = vtanh.f32 %v6617_v25 }
0x3ed2   :  { %v8016_v22 = vpop.eup %8015 }
0x3ed3   :  { %6620 = vrot.lane.b32.xlu2 %v8016_v22, %s8237_s19 }
0x3f2d   :  { %v6621_v19 = vpop.permute.xlu2 %6620 }
0x3f2e   :  { %v6623_v37 = vmul.f32 %v6621_v19, %v6604_v15 }
0x3f30   :  { %6627 = vrot.lane.b32.xlu0 %v6623_v37, %s8238_s5 }
0x3fa2   :  { %v6628_v42 = vpop.permute.xlu0 %6627 }
0x3fa3   :  { %7791 = vmatmul.msk.f32.vlgmr.msrb.gmra.mxu2 %vm5198_vm4, %v6628_v42 }
0x3fa4   :  { %7163 = vmatpush.msrb.mxu2 %v13069_v7 }
0x3fa6   :  { %7164 = vmatpush.msrb.mxu2 %v13086_v27 }
0x3fa8   :  { %7165 = vmatpush.msrb.mxu2 %v13092_v57 }
0x3faa   :  { %7166 = vmatpush.msrb.mxu2 %v13098_v55 }
0x4026   :  { %v6648_v59 = vpop.f32.mrf.mxu2 }
0x4027   :  { %v6651_v45 = vadd.f32 %v6648_v59, %v332_v35 }
0x4029   :  { %8017 = vtanh.f32 %v6651_v45  ;;  %v7792_v51 = vmul.f32 -1.442695, %v6651_v45 }
0x402b   :  { %8019 = vpow2.f32 %v7792_v51 }
0x402f   :  { %v8018_v48 = vpop.eup %8017 }
0x4030   :  { %6674 = vrot.lane.b32.xlu1 %v8018_v48, %s8237_s19 }
0x4031   :  { %v8020_v29 = vpop.eup %8019 }
0x4032   :  { %v6655_v8 = vadd.f32 1.0, %v8020_v29 }
0x4034   :  { %8021 = vrcp.f32 %v6655_v8  ;;  %v6667_v16 = vand.u32 2147483648, %v6655_v8  ;;  %vm6661_vm15 = vweird.f32 %v6655_v8  ;;  %v6665_v32 = vand.u32 2147483647, %v6655_v8 }
0x4036   :  { %v6668_v4 = vor.u32 1.1754944e-38, %v6667_v16  ;;  %vm6666_vm1 = vcmp.eq.f32.partialorder %v6665_v32, 8.507059e+37 }
0x403a   :  { %v8022_v14 = vpop.eup %8021 }
0x403b   :  { %v6657_v50 = vmul.f32 %v8022_v14, %v6655_v8  ;;  %vm6662_vm14 = vweird.f32 %v8022_v14 }
0x403c   :  { %vm6663_vm0 = vmor %vm6661_vm15, %vm6662_vm14 }
0x403d   :  { %v6658_v30 = vsub.f32 1.0, %v6657_v50 }
0x403f   :  { %v6659_v52 = vmul.f32 %v8022_v14, %v6658_v30 }
0x4041   :  { %v6660_v34 = vadd.f32 %v8022_v14, %v6659_v52 }
0x4043   :  { %v6664_v43 = vsel %vm6663_vm0, %v8022_v14, %v6660_v34 }
0x4044   :  { %v6669_v21 = vsel %vm6666_vm1, %v6668_v4, %v6664_v43 }
0x4045   :  { %v6672_v12 = vmul.f32 %v6669_v21, %v6617_v25 }
0x40a2   :  { %v6675_v62 = vpop.permute.xlu1 %6674 }
0x40a3   :  { %v6677_v46 = vmul.f32 %v6675_v62, %v6669_v21 }
0x40a5   :  { %6679 = vrot.lane.b32.xlu2 %v6677_v46, %s8238_s5 }
0x40ff   :  { %v6680_v39 = vpop.permute.xlu2 %6679 }
0x4100   :  { %v6682_v2 = vadd.f32 %v6680_v39, %v6672_v12  ;;  %v14335_v12 = vld [vmem:[#allocation45_spill] sm:$0xff] }
0x4101   :  { %v341_v39 = vadd.f32 %v13155_v36, %v14335_v12 }
0x4102   :  { %8023 = vtanh.f32 %v6682_v2 }
0x4108   :  { %v8024_v24 = vpop.eup %8023 }
0x4109   :  { %6685 = vrot.lane.b32.xlu0 %v8024_v24, %s8237_s19 }
0x417b   :  { %v6686_v1 = vpop.permute.xlu0 %6685 }
0x417c   :  { %v6688_v56 = vmul.f32 %v6686_v1, %v6669_v21 }
0x417e   :  { %6692 = vrot.lane.b32.xlu1 %v6688_v56, %s8238_s5 }
0x41f0   :  { %v6693_v17 = vpop.permute.xlu1 %6692 }
0x41f1   :  { %7793 = vmatmul.msk.f32.vlgmr.msrb.gmra.mxu3 %vm5198_vm4, %v6693_v17 }
0x41f2   :  { %7228 = vmatpush.msrb.mxu3 %v13069_v7 }
0x41f4   :  { %7229 = vmatpush.msrb.mxu3 %v13086_v27 }
0x41f6   :  { %7230 = vmatpush.msrb.mxu3 %v13092_v57 }
0x41f8   :  { %7231 = vmatpush.msrb.mxu3 %v13098_v55 }
0x4274   :  { %v6713_v6 = vpop.f32.mrf.mxu3 }
0x4275   :  { %v6716_v53 = vadd.f32 %v6713_v6, %v335_v40 }
0x4277   :  { %8025 = vtanh.f32 %v6716_v53  ;;  %v7794_v41 = vmul.f32 -1.442695, %v6716_v53 }
0x4279   :  { %8027 = vpow2.f32 %v7794_v41 }
0x427d   :  { %v8026_v11 = vpop.eup %8025 }
0x427e   :  { %6739 = vrot.lane.b32.xlu2 %v8026_v11, %s8237_s19 }
0x427f   :  { %v8028_v18 = vpop.eup %8027 }
0x4280   :  { %v6720_v58 = vadd.f32 1.0, %v8028_v18 }
0x4282   :  { %8029 = vrcp.f32 %v6720_v58  ;;  %v6732_v55 = vand.u32 2147483648, %v6720_v58  ;;  %vm6726_vm3 = vweird.f32 %v6720_v58  ;;  %v6730_v38 = vand.u32 2147483647, %v6720_v58 }
0x4284   :  { %v6733_v63 = vor.u32 1.1754944e-38, %v6732_v55  ;;  %vm6731_vm6 = vcmp.eq.f32.partialorder %v6730_v38, 8.507059e+37 }
0x4288   :  { %v8030_v7 = vpop.eup %8029 }
0x4289   :  { %v6722_v27 = vmul.f32 %v8030_v7, %v6720_v58  ;;  %vm6727_vm2 = vweird.f32 %v8030_v7 }
0x428a   :  { %vm6728_vm5 = vmor %vm6726_vm3, %vm6727_vm2 }
0x428b   :  { %v6723_v26 = vsub.f32 1.0, %v6722_v27 }
0x428d   :  { %v6724_v57 = vmul.f32 %v8030_v7, %v6723_v26 }
0x428f   :  { %v6725_v5 = vadd.f32 %v8030_v7, %v6724_v57 }
0x4291   :  { %v6729_v44 = vsel %vm6728_vm5, %v8030_v7, %v6725_v5 }
0x4292   :  { %v6734_v0 = vsel %vm6731_vm6, %v6733_v63, %v6729_v44 }
0x4293   :  { %v6737_v13 = vmul.f32 %v6734_v0, %v6682_v2 }
0x42d8   :  { %v6740_v33 = vpop.permute.xlu2 %6739 }
0x42d9   :  { %v6742_v49 = vmul.f32 %v6740_v33, %v6734_v0 }
0x42db   :  { %6744 = vrot.lane.b32.xlu0 %v6742_v49, %s8238_s5 }
0x434d   :  { %v6745_v31 = vpop.permute.xlu0 %6744 }
0x434e   :  { %v6747_v23 = vadd.f32 %v6745_v31, %v6737_v13  ;;  %v14336_v13 = vld [vmem:[#allocation47_spill] sm:$0xff] }
0x434f   :  { %v344_v31 = vadd.f32 %v13155_v36, %v14336_v13  ;;  %v7283_v13 = vld [vmem:[%s13307_s22 + $0x28] sm:$0xff] }
0x4350   :  { %8031 = vtanh.f32 %v6747_v23 }
0x4356   :  { %v8032_v28 = vpop.eup %8031 }
0x4357   :  { %6750 = vrot.lane.b32.xlu1 %v8032_v28, %s8237_s19 }
0x43c9   :  { %v6751_v61 = vpop.permute.xlu1 %6750 }
0x43ca   :  { %v6753_v20 = vmul.f32 %v6751_v61, %v6734_v0 }
0x43cc   :  { %6757 = vrot.lane.b32.xlu2 %v6753_v20, %s8238_s5 }
0x4426   :  { %v6758_v15 = vpop.permute.xlu2 %6757 }
0x4427   :  { %7795 = vmatmul.msk.f32.vlgmr.msrb.gmra.mxu0 %vm5198_vm4, %v6758_v15 }
0x44a4   :  { %v6778_v25 = vpop.f32.mrf.mxu0 }
0x44a5   :  { %v6781_v22 = vadd.f32 %v6778_v25, %v338_v10 }
0x44a7   :  { %8033 = vtanh.f32 %v6781_v22  ;;  %v7796_v37 = vmul.f32 -1.442695, %v6781_v22 }
0x44a9   :  { %8035 = vpow2.f32 %v7796_v37 }
0x44ad   :  { %v8034_v19 = vpop.eup %8033 }
0x44ae   :  { %6804 = vrot.lane.b32.xlu0 %v8034_v19, %s8237_s19 }
0x44af   :  { %v8036_v42 = vpop.eup %8035 }
0x44b0   :  { %v6785_v60 = vadd.f32 1.0, %v8036_v42 }
0x44b2   :  { %8037 = vrcp.f32 %v6785_v60  ;;  %v6797_v29 = vand.u32 2147483648, %v6785_v60  ;;  %vm6791_vm8 = vweird.f32 %v6785_v60  ;;  %v6795_v8 = vand.u32 2147483647, %v6785_v60 }
0x44b4   :  { %v6798_v50 = vor.u32 1.1754944e-38, %v6797_v29  ;;  %vm6796_vm10 = vcmp.eq.f32.partialorder %v6795_v8, 8.507059e+37 }
0x44b8   :  { %v8038_v35 = vpop.eup %8037 }
0x44b9   :  { %v6787_v59 = vmul.f32 %v8038_v35, %v6785_v60  ;;  %vm6792_vm7 = vweird.f32 %v8038_v35 }
0x44ba   :  { %vm6793_vm9 = vmor %vm6791_vm8, %vm6792_vm7 }
0x44bb   :  { %v6788_v45 = vsub.f32 1.0, %v6787_v59 }
0x44bd   :  { %v6789_v48 = vmul.f32 %v8038_v35, %v6788_v45 }
0x44bf   :  { %v6790_v51 = vadd.f32 %v8038_v35, %v6789_v48 }
0x44c1   :  { %v6794_v14 = vsel %vm6793_vm9, %v8038_v35, %v6790_v51 }
0x44c2   :  { %v6799_v52 = vsel %vm6796_vm10, %v6798_v50, %v6794_v14 }
0x44c3   :  { %v6802_v16 = vmul.f32 %v6799_v52, %v6747_v23 }
0x4520   :  { %v6805_v30 = vpop.permute.xlu0 %6804 }
0x4521   :  { %v6807_v34 = vmul.f32 %v6805_v30, %v6799_v52 }
0x4523   :  { %6809 = vrot.lane.b32.xlu1 %v6807_v34, %s8238_s5 }
0x4595   :  { %v6810_v32 = vpop.permute.xlu1 %6809 }
0x4596   :  { %v6812_v43 = vadd.f32 %v6810_v32, %v6802_v16  ;;  %v14337_v16 = vld [vmem:[#allocation49_spill] sm:$0xff] }
0x4597   :  { %v347_v32 = vadd.f32 %v13155_v36, %v14337_v16 }
0x4598   :  { %8039 = vtanh.f32 %v6812_v43 }
0x459e   :  { %v8040_v4 = vpop.eup %8039 }
0x459f   :  { %6815 = vrot.lane.b32.xlu2 %v8040_v4, %s8237_s19 }
0x45f9   :  { %v6816_v62 = vpop.permute.xlu2 %6815 }
0x45fa   :  { %v6818_v21 = vmul.f32 %v6816_v62, %v6799_v52 }
0x45fc   :  { %6822 = vrot.lane.b32.xlu0 %v6818_v21, %s8238_s5 }
0x466e   :  { %v6823_v46 = vpop.permute.xlu0 %6822 }
0x466f   :  { %7797 = vmatmul.msk.f32.vlgmr.msra.gmra.mxu1 %vm5198_vm4, %v6823_v46 }
0x46ec   :  { %v6843_v2 = vpop.f32.mrf.mxu1 }
0x46ed   :  { %v6846_v24 = vadd.f32 %v6843_v2, %v341_v39 }
0x46ef   :  { %8041 = vtanh.f32 %v6846_v24  ;;  %v7798_v56 = vmul.f32 -1.442695, %v6846_v24 }
0x46f1   :  { %8043 = vpow2.f32 %v7798_v56 }
0x46f5   :  { %v8042_v1 = vpop.eup %8041 }
0x46f6   :  { %6869 = vrot.lane.b32.xlu1 %v8042_v1, %s8237_s19 }
0x46f7   :  { %v8044_v17 = vpop.eup %8043 }
0x46f8   :  { %v6850_v47 = vadd.f32 1.0, %v8044_v17 }
0x46fa   :  { %8045 = vrcp.f32 %v6850_v47  ;;  %v6862_v18 = vand.u32 2147483648, %v6850_v47  ;;  %vm6856_vm12 = vweird.f32 %v6850_v47  ;;  %v6860_v58 = vand.u32 2147483647, %v6850_v47 }
0x46fc   :  { %v6863_v27 = vor.u32 1.1754944e-38, %v6862_v18  ;;  %vm6861_vm14 = vcmp.eq.f32.partialorder %v6860_v58, 8.507059e+37 }
0x4700   :  { %v8046_v40 = vpop.eup %8045 }
0x4701   :  { %v6852_v6 = vmul.f32 %v8046_v40, %v6850_v47  ;;  %vm6857_vm11 = vweird.f32 %v8046_v40 }
0x4702   :  { %vm6858_vm13 = vmor %vm6856_vm12, %vm6857_vm11 }
0x4703   :  { %v6853_v53 = vsub.f32 1.0, %v6852_v6 }
0x4705   :  { %v6854_v11 = vmul.f32 %v8046_v40, %v6853_v53 }
0x4707   :  { %v6855_v41 = vadd.f32 %v8046_v40, %v6854_v11 }
0x4709   :  { %v6859_v7 = vsel %vm6858_vm13, %v8046_v40, %v6855_v41 }
0x470a   :  { %v6864_v57 = vsel %vm6861_vm14, %v6863_v27, %v6859_v7 }
0x470b   :  { %v6867_v55 = vmul.f32 %v6864_v57, %v6812_v43 }
0x4768   :  { %v6870_v26 = vpop.permute.xlu1 %6869 }
0x4769   :  { %v6872_v5 = vmul.f32 %v6870_v26, %v6864_v57  ;;  %v7293_v26 = vld [vmem:[%s13307_s22 + $0x78] sm:$0xff] }
0x476a   :  { %7294 = vmatpush.msrb.mxu0 %v7293_v26 }
0x476b   :  { %6874 = vrot.lane.b32.xlu2 %v6872_v5, %s8238_s5  ;;  %v7291_v5 = vld [vmem:[%s13307_s22 + $0x68] sm:$0xff] }
0x47c5   :  { %v6875_v38 = vpop.permute.xlu2 %6874 }
0x47c6   :  { %v6877_v44 = vadd.f32 %v6875_v38, %v6867_v55  ;;  %v7290_v55 = vld [vmem:[%s13307_s22 + $0x60] sm:$0xff]  ;;  %v7289_v38 = vld [vmem:[%s13307_s22 + $0x58] sm:$0xff] }
0x47c8   :  { %8047 = vtanh.f32 %v6877_v44 }
0x47ce   :  { %v8048_v63 = vpop.eup %8047 }
0x47cf   :  { %6880 = vrot.lane.b32.xlu0 %v8048_v63, %s8237_s19  ;;  %v7287_v63 = vld [vmem:[%s13307_s22 + $0x48] sm:$0xff] }
0x4841   :  { %v6881_v33 = vpop.permute.xlu0 %6880 }
0x4842   :  { %v6883_v0 = vmul.f32 %v6881_v33, %v6864_v57  ;;  %v7292_v57 = vld [vmem:[%s13307_s22 + $0x70] sm:$0xff]  ;;  %v7286_v33 = vld [vmem:[%s13307_s22 + $0x40] sm:$0xff] }
0x4843   :  { %7295 = vmatpush.msrb.mxu0 %v7292_v57 }
0x4844   :  { %6887 = vrot.lane.b32.xlu1 %v6883_v0, %s8238_s5  ;;  %v7285_v0 = vld [vmem:[%s13307_s22 + $0x38] sm:$0xff] }
0x4845   :  { %7296 = vmatpush.msrb.mxu0 %v7291_v5 }
0x4847   :  { %7297 = vmatpush.msrb.mxu0 %v7290_v55 }
0x4849   :  { %7298 = vmatpush.msrb.mxu0 %v7289_v38 }
0x48b6   :  { %v6888_v49 = vpop.permute.xlu1 %6887 }
0x48b7   :  { %7799 = vmatmul.msk.f32.vlgmr.msra.gmra.mxu2 %vm5198_vm4, %v6888_v49  ;;  %v7284_v49 = vld [vmem:[%s13307_s22 + $0x30] sm:$0xff] }
0x493a   :  { %v6908_v23 = vpop.f32.mrf.mxu2 }
0x493b   :  { %v6911_v28 = vadd.f32 %v6908_v23, %v344_v31  ;;  %v7282_v31 = vld [vmem:[%s13307_s22 + $0x20] sm:$0xff] }
0x493d   :  { %8049 = vtanh.f32 %v6911_v28  ;;  %v7800_v20 = vmul.f32 -1.442695, %v6911_v28 }
0x493f   :  { %8051 = vpow2.f32 %v7800_v20  ;;  %v7280_v20 = vld [vmem:[%s13307_s22 + $0x10] sm:$0xff] }
0x4943   :  { %v8050_v61 = vpop.eup %8049 }
0x4944   :  { %6934 = vrot.lane.b32.xlu2 %v8050_v61, %s8237_s19  ;;  %v7281_v61 = vld [vmem:[%s13307_s22 + $0x18] sm:$0xff] }
0x4945   :  { %v8052_v15 = vpop.eup %8051 }
0x4946   :  { %v6915_v9 = vadd.f32 1.0, %v8052_v15  ;;  %v7279_v15 = vld [vmem:[%s13307_s22 + $0x8] sm:$0xff] }
0x4948   :  { %8053 = vrcp.f32 %v6915_v9  ;;  %v6927_v42 = vand.u32 2147483648, %v6915_v9  ;;  %vm6921_vm0 = vweird.f32 %v6915_v9  ;;  %v6925_v60 = vand.u32 2147483647, %v6915_v9 }
0x494a   :  { %v6928_v59 = vor.u32 1.1754944e-38, %v6927_v42  ;;  %vm6926_vm2 = vcmp.eq.f32.partialorder %v6925_v60, 8.507059e+37 }
0x494e   :  { %v8054_v10 = vpop.eup %8053 }
0x494f   :  { %v6917_v25 = vmul.f32 %v8054_v10, %v6915_v9  ;;  %vm6922_vm15 = vweird.f32 %v8054_v10  ;;  %v7278_v9 = vld [vmem:[%s13307_s22] sm:$0xff] }
0x4950   :  { %vm6923_vm1 = vmor %vm6921_vm0, %vm6922_vm15 }
0x4951   :  { %v6918_v22 = vsub.f32 1.0, %v6917_v25  ;;  %v5191_v25 = vadd.f32 %v12856_v3, %v12827_v54 }
0x4953   :  { %v6919_v19 = vmul.f32 %v8054_v10, %v6918_v22  ;;  %v14338_v22 = vld [vmem:[#allocation51_spill] sm:$0xff] }
0x4955   :  { %v6920_v37 = vadd.f32 %v8054_v10, %v6919_v19  ;;  %v350_v19 = vadd.f32 %v13155_v36, %v14338_v22 }
0x4957   :  { %v6924_v35 = vsel %vm6923_vm1, %v8054_v10, %v6920_v37 }
0x4958   :  { %v6929_v48 = vsel %vm6926_vm2, %v6928_v59, %v6924_v35 }
0x4959   :  { %v6932_v29 = vmul.f32 %v6929_v48, %v6877_v44  ;;  %v7288_v44 = vld [vmem:[%s13307_s22 + $0x50] sm:$0xff] }
0x495a   :  { %7299 = vmatpush.msrb.mxu0 %v7288_v44 }
0x495c   :  { %7300 = vmatpush.msrb.mxu0 %v7287_v63 }
0x495e   :  { %7301 = vmatpush.msrb.mxu0 %v7286_v33 }
0x4960   :  { %7302 = vmatpush.msrb.mxu0 %v7285_v0 }
0x4962   :  { %7303 = vmatpush.msrb.mxu0 %v7284_v49 }
0x4964   :  { %7304 = vmatpush.msrb.mxu0 %v7283_v13 }
0x4966   :  { %7305 = vmatpush.msrb.mxu0 %v7282_v31  ;;  %v14340_v31 = vld [vmem:[#allocation13_spill] sm:$0xff] }
0x4968   :  { %7306 = vmatpush.msrb.mxu0 %v7281_v61 }
0x496a   :  { %7307 = vmatpush.msrb.mxu0 %v7280_v20 }
0x496c   :  { %7308 = vmatpush.msrb.mxu0 %v7279_v15 }
0x496e   :  { %7309 = vmatpush.msrb.mxu0 %v7278_v9 }
0x499e   :  { %v6935_v45 = vpop.permute.xlu2 %6934 }
0x499f   :  { %v6937_v51 = vmul.f32 %v6935_v45, %v6929_v48 }
0x49a1   :  { %6939 = vrot.lane.b32.xlu0 %v6937_v51, %s8238_s5 }
0x4a13   :  { %v6940_v8 = vpop.permute.xlu0 %6939 }
0x4a14   :  { %v6942_v14 = vadd.f32 %v6940_v8, %v6932_v29 }
0x4a16   :  { %8055 = vtanh.f32 %v6942_v14 }
0x4a1c   :  { %v8056_v50 = vpop.eup %8055 }
0x4a1d   :  { %6945 = vrot.lane.b32.xlu1 %v8056_v50, %s8237_s19 }
0x4a8f   :  { %v6946_v30 = vpop.permute.xlu1 %6945 }
0x4a90   :  { %v6948_v52 = vmul.f32 %v6946_v30, %v6929_v48 }
0x4a92   :  { %6952 = vrot.lane.b32.xlu2 %v6948_v52, %s8238_s5 }
0x4aec   :  { %v6953_v34 = vpop.permute.xlu2 %6952 }
0x4aed   :  { %7801 = vmatmul.msk.f32.vlgmr.msra.gmra.mxu3 %vm5198_vm4, %v6953_v34 }
0x4b70   :  { %v6973_v43 = vpop.f32.mrf.mxu3 }
0x4b71   :  { %v6976_v4 = vadd.f32 %v6973_v43, %v347_v32 }
0x4b73   :  { %8057 = vtanh.f32 %v6976_v4  ;;  %v7802_v21 = vmul.f32 -1.442695, %v6976_v4 }
0x4b75   :  { %8059 = vpow2.f32 %v7802_v21 }
0x4b79   :  { %v8058_v62 = vpop.eup %8057 }
0x4b7a   :  { %6999 = vrot.lane.b32.xlu0 %v8058_v62, %s8237_s19 }
0x4b7b   :  { %v8060_v46 = vpop.eup %8059 }
0x4b7c   :  { %v6980_v12 = vadd.f32 1.0, %v8060_v46 }
0x4b7e   :  { %8061 = vrcp.f32 %v6980_v12  ;;  %v6992_v17 = vand.u32 2147483648, %v6980_v12  ;;  %vm6986_vm5 = vweird.f32 %v6980_v12  ;;  %v6990_v47 = vand.u32 2147483647, %v6980_v12 }
0x4b80   :  { %v6993_v6 = vor.u32 1.1754944e-38, %v6992_v17  ;;  %vm6991_vm7 = vcmp.eq.f32.partialorder %v6990_v47, 8.507059e+37 }
0x4b84   :  { %v8062_v39 = vpop.eup %8061 }
0x4b85   :  { %v6982_v2 = vmul.f32 %v8062_v39, %v6980_v12  ;;  %vm6987_vm3 = vweird.f32 %v8062_v39 }
0x4b86   :  { %vm6988_vm6 = vmor %vm6986_vm5, %vm6987_vm3 }
0x4b87   :  { %v6983_v24 = vsub.f32 1.0, %v6982_v2 }
0x4b89   :  { %v6984_v1 = vmul.f32 %v8062_v39, %v6983_v24 }
0x4b8b   :  { %v6985_v56 = vadd.f32 %v8062_v39, %v6984_v1 }
0x4b8d   :  { %v6989_v40 = vsel %vm6988_vm6, %v8062_v39, %v6985_v56  ;;  %v14339_v39 = vld [vmem:[#allocation53_spill] sm:$0xff] }
0x4b8e   :  { %v6994_v11 = vsel %vm6991_vm7, %v6993_v6, %v6989_v40  ;;  %v353_v2 = vadd.f32 %v13155_v36, %v14339_v39 }
0x4b8f   :  { %v6997_v18 = vmul.f32 %v6994_v11, %v6942_v14 }
0x4bec   :  { %v7000_v53 = vpop.permute.xlu0 %6999 }
0x4bed   :  { %v7002_v41 = vmul.f32 %v7000_v53, %v6994_v11 }
0x4bef   :  { %7004 = vrot.lane.b32.xlu1 %v7002_v41, %s8238_s5 }
0x4c61   :  { %v7005_v58 = vpop.permute.xlu1 %7004 }
0x4c62   :  { %v13182_v7 = vadd.f32 %v7005_v58, %v6997_v18 }
0x4c64   :  { %8063 = vtanh.f32 %v13182_v7 }
0x4c6a   :  { %v8064_v27 = vpop.eup %8063 }
0x4c6b   :  { %7010 = vrot.lane.b32.xlu2 %v8064_v27, %s8237_s19 }
0x4cc5   :  { %v7011_v23 = vpop.permute.xlu2 %7010 }
0x4cc6   :  { %v7013_v28 = vmul.f32 %v7011_v23, %v6994_v11  ;;  %v356_v23 = vadd.f32 %v13155_v36, %v14340_v31 }
0x4cc8   :  { %7017 = vrot.lane.b32.xlu0 %v7013_v28, %s8238_s5 }
0x4d3a   :  { %v7018_v10 = vpop.permute.xlu0 %7017 }
0x4d3b   :  { %7803 = vmatmul.msk.f32.vlgmr.msra.gmra.mxu0 %vm5198_vm4, %v7018_v10 }
0x4d43   :  { %7310 = vmatmul.f32.vlgmr.msrb.gmra.mxu0 %v5191_v25 }
0x4db8   :  { %v7038_v37 = vpop.f32.mrf.mxu0 }
0x4db9   :  { %v7041_v42 = vadd.f32 %v7038_v37, %v350_v19 }
0x4dbb   :  { %8065 = vtanh.f32 %v7041_v42  ;;  %v7804_v35 = vmul.f32 -1.442695, %v7041_v42 }
0x4dbd   :  { %8067 = vpow2.f32 %v7804_v35 }
0x4dc1   :  { %v8066_v60 = vpop.eup %8065 }
0x4dc2   :  { %7064 = vrot.lane.b32.xlu1 %v8066_v60, %s8237_s19 }
0x4dc3   :  { %v8068_v59 = vpop.eup %8067 }
0x4dc4   :  { %v7045_v45 = vadd.f32 1.0, %v8068_v59 }
0x4dc6   :  { %8069 = vrcp.f32 %v7045_v45  ;;  %v7057_v3 = vand.u32 2147483648, %v7045_v45  ;;  %vm7051_vm9 = vweird.f32 %v7045_v45  ;;  %v7055_v14 = vand.u32 2147483647, %v7045_v45 }
0x4dc8   :  { %v7058_v30 = vor.u32 1.1754944e-38, %v7057_v3  ;;  %vm7056_vm11 = vcmp.eq.f32.partialorder %v7055_v14, 8.507059e+37 }
0x4dcc   :  { %v8070_v48 = vpop.eup %8069 }
0x4dcd   :  { %v7047_v51 = vmul.f32 %v8070_v48, %v7045_v45  ;;  %vm7052_vm8 = vweird.f32 %v8070_v48 }
0x4dce   :  { %vm7053_vm10 = vmor %vm7051_vm9, %vm7052_vm8 }
0x4dcf   :  { %v7048_v29 = vsub.f32 1.0, %v7047_v51 }
0x4dd1   :  { %v7049_v8 = vmul.f32 %v8070_v48, %v7048_v29 }
0x4dd3   :  { %v7050_v54 = vadd.f32 %v8070_v48, %v7049_v8 }
0x4dd5   :  { %v7054_v50 = vsel %vm7053_vm10, %v8070_v48, %v7050_v54 }
0x4dd6   :  { %v7059_v34 = vsel %vm7056_vm11, %v7058_v30, %v7054_v50 }
0x4dd7   :  { %v7062_v32 = vmul.f32 %v7059_v34, %v13182_v7 }
0x4e34   :  { %v7065_v52 = vpop.permute.xlu1 %7064 }
0x4e35   :  { %v7067_v16 = vmul.f32 %v7065_v52, %v7059_v34 }
0x4e37   :  { %7069 = vrot.lane.b32.xlu2 %v7067_v16, %s8238_s5 }
0x4e91   :  { %v7070_v43 = vpop.permute.xlu2 %7069 }
0x4e92   :  { %v7072_v4 = vadd.f32 %v7070_v43, %v7062_v32 }
0x4e94   :  { %8071 = vtanh.f32 %v7072_v4 }
0x4e9a   :  { %v8072_v62 = vpop.eup %8071 }
0x4e9b   :  { %7075 = vrot.lane.b32.xlu0 %v8072_v62, %s8237_s19 }
0x4f0d   :  { %v7076_v21 = vpop.permute.xlu0 %7075 }
0x4f0e   :  { %v7078_v46 = vmul.f32 %v7076_v21, %v7059_v34  ;;  %v14341_v34 = vld [vmem:[#allocation15_spill] sm:$0xff] }
0x4f0f   :  { %v359_v16 = vadd.f32 %v13155_v36, %v14341_v34 }
0x4f10   :  { %7082 = vrot.lane.b32.xlu1 %v7078_v46, %s8238_s5 }
0x4f82   :  { %v7083_v12 = vpop.permute.xlu1 %7082 }
0x4f83   :  { %7805 = vmatmul.msk.f32.vlgmr.msrb.gmra.mxu1 %vm5198_vm4, %v7083_v12 }
0x5000   :  { %v7103_v24 = vpop.f32.mrf.mxu1 }
0x5001   :  { %v7106_v1 = vadd.f32 %v7103_v24, %v353_v2 }
0x5003   :  { %8073 = vtanh.f32 %v7106_v1  ;;  %v7806_v17 = vmul.f32 -1.442695, %v7106_v1 }
0x5005   :  { %8075 = vpow2.f32 %v7806_v17 }
0x5009   :  { %v8074_v56 = vpop.eup %8073 }
0x500a   :  { %7129 = vrot.lane.b32.xlu2 %v8074_v56, %s8237_s19 }
0x500b   :  { %v8076_v47 = vpop.eup %8075 }
0x500c   :  { %v7110_v40 = vadd.f32 1.0, %v8076_v47 }
0x500e   :  { %8077 = vrcp.f32 %v7110_v40  ;;  %v7122_v58 = vand.u32 2147483648, %v7110_v40  ;;  %vm7116_vm13 = vweird.f32 %v7110_v40  ;;  %v7120_v7 = vand.u32 2147483647, %v7110_v40 }
0x5010   :  { %v7123_v26 = vor.u32 1.1754944e-38, %v7122_v58  ;;  %vm7121_vm15 = vcmp.eq.f32.partialorder %v7120_v7, 8.507059e+37  ;;  %v7277_v7 = vld [vmem:[%s13306_s21 + $0x18] sm:$0xff] }
0x5011   :  { %7331 = vmatpush.msra.mxu1 %v7277_v7 }
0x5014   :  { %v8078_v6 = vpop.eup %8077 }
0x5015   :  { %v7112_v53 = vmul.f32 %v8078_v6, %v7110_v40  ;;  %vm7117_vm12 = vweird.f32 %v8078_v6 }
0x5016   :  { %vm7118_vm14 = vmor %vm7116_vm13, %vm7117_vm12 }
0x5017   :  { %v7113_v11 = vsub.f32 1.0, %v7112_v53 }
0x5019   :  { %v7114_v41 = vmul.f32 %v8078_v6, %v7113_v11 }
0x501b   :  { %v7115_v18 = vadd.f32 %v8078_v6, %v7114_v41 }
0x501d   :  { %v7119_v27 = vsel %vm7118_vm14, %v8078_v6, %v7115_v18 }
0x501e   :  { %v7124_v5 = vsel %vm7121_vm15, %v7123_v26, %v7119_v27  ;;  %v7276_v27 = vld [vmem:[%s13306_s21 + $0x10] sm:$0xff]  ;;  %v7275_v26 = vld [vmem:[%s13306_s21 + $0x8] sm:$0xff] }
0x501f   :  { %v7127_v38 = vmul.f32 %v7124_v5, %v7072_v4  ;;  %7332 = vmatpush.msra.mxu1 %v7276_v27 }
0x5021   :  { %7333 = vmatpush.msra.mxu1 %v7275_v26 }
0x5064   :  { %v7130_v57 = vpop.permute.xlu2 %7129 }
0x5065   :  { %v7132_v55 = vmul.f32 %v7130_v57, %v7124_v5  ;;  %v7274_v57 = vld [vmem:[%s13306_s21] sm:$0xff]  ;;  %s8239_s21 = smov [#allocation8]  }
0x5066   :  { %7334 = vmatpush.msra.mxu1 %v7274_v57 }
0x5067   :  { %7134 = vrot.lane.b32.xlu0 %v7132_v55, %s8238_s5 }
0x50d9   :  { %v7135_v44 = vpop.permute.xlu0 %7134 }
0x50da   :  { %v7137_v63 = vadd.f32 %v7135_v44, %v7127_v38  ;;  %v7344_v44 = vlaneseq }
0x50dc   :  { %8079 = vtanh.f32 %v7137_v63 }
0x50e2   :  { %v8080_v33 = vpop.eup %8079 }
0x50e3   :  { %7140 = vrot.lane.b32.xlu1 %v8080_v33, %s8237_s19  ;;  %v7828_v33 = vld [vmem:[%s13308_s23] ss:$0 sm:$0xff] }
0x5155   :  { %v7141_v0 = vpop.permute.xlu1 %7140 }
0x5156   :  { %v7143_v49 = vmul.f32 %v7141_v0, %v7124_v5  ;;  %v7311_v0 = vpop.f32.mrf.mxu0 }
0x5158   :  { %7147 = vrot.lane.b32.xlu2 %v7143_v49, %s8238_s5 }
0x51b2   :  { %v7148_v13 = vpop.permute.xlu2 %7147 }
0x51b3   :  { %7807 = vmatmul.msk.f32.vlgmr.msrb.gmra.mxu2 %vm5198_vm4, %v7148_v13 }
0x5236   :  { %v7168_v28 = vpop.f32.mrf.mxu2 }
0x5237   :  { %v7171_v61 = vadd.f32 %v7168_v28, %v356_v23 }
0x5239   :  { %8081 = vtanh.f32 %v7171_v61  ;;  %v7808_v15 = vmul.f32 -1.442695, %v7171_v61 }
0x523b   :  { %8083 = vpow2.f32 %v7808_v15 }
0x523f   :  { %v8082_v20 = vpop.eup %8081 }
0x5240   :  { %7194 = vrot.lane.b32.xlu0 %v8082_v20, %s8237_s19 }
0x5241   :  { %v8084_v9 = vpop.eup %8083 }
0x5242   :  { %v7175_v10 = vadd.f32 1.0, %v8084_v9 }
0x5244   :  { %8085 = vrcp.f32 %v7175_v10  ;;  %v7187_v60 = vand.u32 2147483648, %v7175_v10  ;;  %vm7181_vm1 = vweird.f32 %v7175_v10  ;;  %v7185_v35 = vand.u32 2147483647, %v7175_v10 }
0x5246   :  { %v7188_v45 = vor.u32 1.1754944e-38, %v7187_v60  ;;  %vm7186_vm3 = vcmp.eq.f32.partialorder %v7185_v35, 8.507059e+37 }
0x524a   :  { %v8086_v25 = vpop.eup %8085 }
0x524b   :  { %v7177_v22 = vmul.f32 %v8086_v25, %v7175_v10  ;;  %vm7182_vm0 = vweird.f32 %v8086_v25 }
0x524c   :  { %vm7183_vm2 = vmor %vm7181_vm1, %vm7182_vm0 }
0x524d   :  { %v7178_v19 = vsub.f32 1.0, %v7177_v22 }
0x524f   :  { %v7179_v37 = vmul.f32 %v8086_v25, %v7178_v19 }
0x5251   :  { %v7180_v42 = vadd.f32 %v8086_v25, %v7179_v37 }
0x5253   :  { %v7184_v59 = vsel %vm7183_vm2, %v8086_v25, %v7180_v42 }
0x5254   :  { %v7189_v51 = vsel %vm7186_vm3, %v7188_v45, %v7184_v59 }
0x5255   :  { %v7192_v8 = vmul.f32 %v7189_v51, %v7137_v63  ;;  %v7345_v63 = vand.u32 127, %v7344_v44 }
0x5257   :  { %vm7346_vm9 = vcmp.lt.s32.totalorder %v7345_v63, 5 }
0x52b2   :  { %v7195_v48 = vpop.permute.xlu0 %7194 }
0x52b3   :  { %v7197_v29 = vmul.f32 %v7195_v48, %v7189_v51 }
0x52b5   :  { %7199 = vrot.lane.b32.xlu1 %v7197_v29, %s8238_s5 }
0x5327   :  { %v7200_v54 = vpop.permute.xlu1 %7199 }
0x5328   :  { %v7202_v3 = vadd.f32 %v7200_v54, %v7192_v8 }
0x532a   :  { %8087 = vtanh.f32 %v7202_v3 }
0x5330   :  { %v8088_v14 = vpop.eup %8087 }
0x5331   :  { %7205 = vrot.lane.b32.xlu2 %v8088_v14, %s8237_s19 }
0x538b   :  { %v7206_v50 = vpop.permute.xlu2 %7205 }
0x538c   :  { %v7208_v30 = vmul.f32 %v7206_v50, %v7189_v51 }
0x538e   :  { %7212 = vrot.lane.b32.xlu0 %v7208_v30, %s8238_s5 }
0x5400   :  { %v7213_v52 = vpop.permute.xlu0 %7212 }
0x5401   :  { %7809 = vmatmul.msk.f32.vlgmr.msrb.gmra.mxu3 %vm5198_vm4, %v7213_v52 }
0x5484   :  { %v7233_v32 = vpop.f32.mrf.mxu3 }
0x5485   :  { %v7236_v43 = vadd.f32 %v7233_v32, %v359_v16 }
0x5487   :  { %8089 = vtanh.f32 %v7236_v43  ;;  %v7810_v62 = vmul.f32 -1.442695, %v7236_v43 }
0x5489   :  { %8091 = vpow2.f32 %v7810_v62 }
0x548d   :  { %v8090_v4 = vpop.eup %8089 }
0x548e   :  { %7259 = vrot.lane.b32.xlu1 %v8090_v4, %s8237_s19 }
0x548f   :  { %v8092_v21 = vpop.eup %8091 }
0x5490   :  { %v7240_v46 = vadd.f32 1.0, %v8092_v21 }
0x5492   :  { %8093 = vrcp.f32 %v7240_v46  ;;  %v7252_v56 = vand.u32 2147483648, %v7240_v46  ;;  %vm7246_vm6 = vweird.f32 %v7240_v46  ;;  %v7250_v36 = vand.u32 2147483647, %v7240_v46 }
0x5494   :  { %v7253_v47 = vor.u32 1.1754944e-38, %v7252_v56  ;;  %vm7251_vm8 = vcmp.eq.f32.partialorder %v7250_v36, 8.507059e+37 }
0x5498   :  { %v8094_v12 = vpop.eup %8093 }
0x5499   :  { %v7242_v39 = vmul.f32 %v8094_v12, %v7240_v46  ;;  %vm7247_vm5 = vweird.f32 %v8094_v12 }
0x549a   :  { %vm7248_vm7 = vmor %vm7246_vm6, %vm7247_vm5 }
0x549b   :  { %v7243_v2 = vsub.f32 1.0, %v7242_v39 }
0x549d   :  { %v7244_v24 = vmul.f32 %v8094_v12, %v7243_v2 }
0x549f   :  { %v7245_v1 = vadd.f32 %v8094_v12, %v7244_v24 }
0x54a1   :  { %v7249_v17 = vsel %vm7248_vm7, %v8094_v12, %v7245_v1 }
0x54a2   :  { %v7254_v6 = vsel %vm7251_vm8, %v7253_v47, %v7249_v17 }
0x54a3   :  { %v7257_v11 = vmul.f32 %v7254_v6, %v7202_v3 }
0x5500   :  { %v7260_v40 = vpop.permute.xlu1 %7259 }
0x5501   :  { %v7262_v53 = vmul.f32 %v7260_v40, %v7254_v6 }
0x5503   :  { %7264 = vrot.lane.b32.xlu2 %v7262_v53, %s8238_s5 }
0x555d   :  { %v7265_v41 = vpop.permute.xlu2 %7264 }
0x555e   :  { %v7267_v18 = vadd.f32 %v7265_v41, %v7257_v11 }
0x5560   :  { %8095 = vtanh.f32 %v7267_v18 }
0x5566   :  { %v8096_v58 = vpop.eup %8095 }
0x5567   :  { %7270 = vrot.lane.b32.xlu0 %v8096_v58, %s8237_s19 }
0x55d9   :  { %v7271_v5 = vpop.permute.xlu0 %7270 }
0x55da   :  { %v7273_v55 = vmul.f32 %v7271_v5, %v7254_v6 }
0x55dc   :  { %7315 = vrot.lane.b32.xlu1 %v7273_v55, %s8238_s5  ;;  %s7364_s5 = sshll.u32 %s8239_s21, 4  ;;  %s7365_s5 = int_to_ptr.vmem [resolvable:$true] %s7364_s5 }
0x564e   :  { %v7316_v38 = vpop.permute.xlu1 %7315 }
0x564f   :  { %7811 = vmatmul.msk.f32.vlgmr.msra.gmra.mxu1 %vm5198_vm4, %v7316_v38 }
0x56cc   :  { %v7336_v49 = vpop.f32.mrf.mxu1 }
0x56cd   :  { %v7337_v13 = vadd.f32 %v7336_v49, %v7311_v0 }
0x56cf   :  { %v7343_v31 = vadd.f32 %v7828_v33, %v7337_v13 }
0x56d1   :  { %v7347_v23 = vsel %vm7346_vm9, %v7343_v31, -1e+30 }
0x56d2   :  { %7348 = vmax.xlane.f32.xlu2 %v7347_v23 }
0x5745   :  { %v7349_v28 = vpop.xlane.xlu2 %7348 }
0x5746   :  { %v7350_v61 = vsub.f32 %v7347_v23, %v7349_v28 }
0x5748   :  { %v7351_v20 = vmul.f32 1.442695, %v7350_v61 }
0x574a   :  { %8097 = vpow2.f32 %v7351_v20 }
0x5750   :  { %v8098_v15 = vpop.eup %8097 }
0x5751   :  { %7353 = vadd.xlane.f32.xlu0 %v8098_v15 }
0x57c4   :  { %v7354_v9 = vpop.xlane.xlu0 %7353 }
0x57c5   :  { %8099 = vlog2.f32 %v7354_v9 }
0x57cb   :  { %v8100_v10 = vpop.eup %8099 }
0x57cc   :  { %v7356_v25 = vmul.f32 0.6931472, %v8100_v10 }
0x57ce   :  { %v7357_v22 = vsub.f32 %v7350_v61, %v7356_v25 }
0x57d0   :  { %7358 = vst [vmem:[#allocation8] sm:$0xff] %v7357_v22 }
0x57d1   :  { %7369 = dma.vmem_to_hbm [thread:$0]  %s7365_s5, 128, %s7367_s2, [#allocation5]  }
0x57d2   :  { %8228 = dma.done.wait [#allocation5], 128  }
0x57d3   :  { %8229 = vsyncadd [#allocation5], 4294967168 }
0x57d4   :  { %7374 = vsyncpa [#allocation4], 1 }
0x57d5   :  { %7375 = vsyncpa [#allocation7], 1 }
0x57d6   :  { %7376 = vsyncpa [#allocation5], 1 }

</bundles_post_ra>
